<compile_context>
chip_gen: v6e
topology: v6e:2x2x1
jax: 0.10.0
libtpu: 0.0.40
codegen_flags: <defaults>
</compile_context>

<pallas_src>
import functools

import jax
import jax.numpy as jnp
import numpy as np
from jax.experimental import pallas as pl
from jax.experimental.pallas import tpu as pltpu

LEAKY_SLOPE = 0.2
BN_EPS = 1e-5
K = 5  # conv kernel size everywhere

# ---- fixed spatial plumbing for 28x28 inputs (architecture constants) ----
H1 = 14                    # layer-1 output: 28 -> (circular pad 2, k5 s2) -> 14
R1 = H1 * H1               # 196 valid layer-1 output positions per sample
PB2, WQ2, H2 = 81, 9, 7    # layer-2 input: 18x18 phase-packed into 4 blocks of 9x9; out 7x7
L2 = 344                   # flat phase-packed layer-2 input length (4*81 + slack)
R2 = H2 * WQ2              # 63 layer-2 output lanes (valid where col % 9 < 7)
W3, H3 = 17, 13            # layer-3: dilate 7->13, zero-pad 2 -> 17x17; out 13x13
L3 = 296                   # 17*17 + slack
R3 = H3 * W3               # 221 layer-3 output lanes (valid where col % 17 < 13)
W4, H4 = 29, 25            # layer-4: dilate 13->25, zero-pad 2 -> 29x29; out 25x25
L4 = 848                   # 29*29 + slack
R4 = H4 * W4               # 725 layer-4 output lanes (valid where col % 29 < 25)


# -------------------- static (trace-time) tables --------------------

@functools.lru_cache(maxsize=None)
def _static_tables():
    # layer-1 im2col gather indices over the circularly padded 32x32 input
    ki = np.repeat(np.arange(K), K)[:, None].astype(np.int32)      # (25,1)
    kj = np.tile(np.arange(K), K)[:, None].astype(np.int32)        # (25,1)
    ho = np.repeat(np.arange(H1), H1)[None, :].astype(np.int32)    # (1,196)
    wo = np.tile(np.arange(H1), H1)[None, :].astype(np.int32)      # (1,196)
    hi_idx = 2 * ho + ki                                           # (25,196)
    wi_idx = 2 * wo + kj

    # layer 2: circular pad 14 -> 18, phase-pack into 4 blocks of 9x9 (row selection)
    s2 = np.zeros((L2, R1), np.float32)
    for pi in range(2):
        for pj in range(2):
            for a in range(9):
                for b in range(9):
                    hs = (2 * a + pi - 2) % H1
                    ws = (2 * b + pj - 2) % H1
                    s2[PB2 * (2 * pi + pj) + a * 9 + b, hs * H1 + ws] = 1.0
    starts2 = tuple(PB2 * (2 * (a % 2) + (b % 2)) + (a // 2) * 9 + (b // 2)
                    for a in range(K) for b in range(K))
    mask2 = (np.arange(R2) % WQ2 < H2).astype(np.float32)[None, :]          # (1,63)

    # layer 3 (ConvT k5 s2 p2): dilate 7->13, zero-pad 2 -> flat 17x17 (row selection)
    s3 = np.zeros((L3, R2), np.float32)
    for a in range(H2):
        for b in range(H2):
            s3[(2 + 2 * a) * W3 + (2 + 2 * b), a * WQ2 + b] = 1.0
    starts3 = tuple(a * W3 + b for a in range(K) for b in range(K))
    mask3 = (np.arange(R3) % W3 < H3).astype(np.float32)[None, :]           # (1,221)

    # layer 4 (ConvT k5 s2 p2): dilate 13->25, zero-pad 2 -> flat 29x29 (row selection)
    s4 = np.zeros((L4, R3), np.float32)
    for a in range(H3):
        for b in range(H3):
            s4[(2 + 2 * a) * W4 + (2 + 2 * b), a * W3 + b] = 1.0
    starts4 = tuple(a * W4 + b for a in range(K) for b in range(K))

    return dict(hi_idx=hi_idx, wi_idx=wi_idx,
                s2t=s2.T.copy(), s3t=s3.T.copy(), s4t=s4.T.copy(),
                mask2=mask2, mask3=mask3,
                starts2=starts2, starts3=starts3, starts4=starts4)


# -------------------- fused Pallas kernel (whole forward) --------------------

def _fused_forward_kernel(starts2, starts3, starts4,
                          x1_ref, zt_ref, w1_ref, w2_ref, g2_ref, b2_ref,
                          s2t_ref, w3_ref, g3_ref, b3_ref, s3t_ref,
                          w4_ref, s4t_ref, m2_ref, m3_ref, out_ref):
    f32 = jnp.float32
    n_batch = x1_ref.shape[0]
    nz = zt_ref.shape[0]

    def leaky(v):
        return jnp.where(v >= 0, v, LEAKY_SLOPE * v)

    def conv_mm(w, in_flat, starts, r):
        # in_flat: (Cin, L) flat padded image; take the k*k taps as contiguous lane
        # slices, stack along sublanes, contract on the MXU -> (Cout, r), lane-dense.
        taps = [in_flat[:, s0:s0 + r] for s0 in starts]
        lhs_t = jnp.concatenate(taps, axis=0)                       # (k*k*Cin, r)
        return jnp.dot(w, lhs_t, preferred_element_type=f32)        # (Cout, r)

    def batch_stats(ys, mask, n_valid):
        # biased (training-mode) stats over batch + valid spatial positions
        tot = ys[0] * mask
        for y in ys[1:]:
            tot = tot + y * mask
        mean = jnp.sum(tot, axis=1, keepdims=True) / n_valid        # (C,1)
        sq = jnp.square(ys[0] - mean) * mask
        for y in ys[1:]:
            sq = sq + jnp.square(y - mean) * mask
        var = jnp.sum(sq, axis=1, keepdims=True) / n_valid          # (C,1)
        return mean, var

    # ---- layer 1 (conv+leaky) and layer-2 conv (pre-BN), per sample ----
    y2s = []
    for n in range(n_batch):
        h1 = leaky(jnp.dot(w1_ref[...], x1_ref[n],
                           preferred_element_type=f32))             # (ngf, 196)
        in2 = jnp.dot(h1, s2t_ref[...], preferred_element_type=f32)  # (ngf, 344)
        y2s.append(conv_mm(w2_ref[...], in2, starts2, R2))           # (2ngf, 63)

    # ---- BatchNorm2d + LeakyReLU, z concat, layer-3 conv (pre-BN) ----
    m2 = m2_ref[...]
    mean2, var2 = batch_stats(y2s, m2, float(n_batch * H2 * H2))
    sc2 = g2_ref[...] * jax.lax.rsqrt(var2 + BN_EPS)
    sh2 = b2_ref[...] - mean2 * sc2

    y3s = []
    for n in range(n_batch):
        h2 = leaky(y2s[n] * sc2 + sh2)                               # (2ngf, 63)
        zb = jnp.broadcast_to(zt_ref[:, n:n + 1], (nz, R2))          # (nz, 63)
        emb = jnp.concatenate([h2, zb], axis=0)                      # (2ngf+nz, 63)
        in3 = jnp.dot(emb, s3t_ref[...], preferred_element_type=f32)  # (2ngf+nz, 296)
        y3s.append(conv_mm(w3_ref[...], in3, starts3, R3))            # (ngf, 221)

    # ---- BatchNorm2d + ReLU, layer-4 conv, sigmoid ----
    m3 = m3_ref[...]
    mean3, var3 = batch_stats(y3s, m3, float(n_batch * H3 * H3))
    sc3 = g3_ref[...] * jax.lax.rsqrt(var3 + BN_EPS)
    sh3 = b3_ref[...] - mean3 * sc3

    for n in range(n_batch):
        h3 = jnp.maximum(y3s[n] * sc3 + sh3, 0.0)                    # (ngf, 221)
        in4 = jnp.dot(h3, s4t_ref[...], preferred_element_type=f32)  # (ngf, 848)
        y4 = conv_mm(w4_ref[...], in4, starts4, R4)                  # (8, 725); row 0 real
        out_ref[n:n + 1, :] = jax.nn.sigmoid(y4[0:1, :])


# -------------------- parameters --------------------

def init_params(key, ngf=8, nz=8):
    ndf = ngf
    ks = jax.random.split(key, 4)
    return dict(
        w1=0.02 * jax.random.normal(ks[0], (ndf, 1, 5, 5), jnp.float32),            # Conv2d
        w2=0.02 * jax.random.normal(ks[1], (ndf * 2, ndf, 5, 5), jnp.float32),      # Conv2d
        bn2_g=jnp.ones((ndf * 2,), jnp.float32),
        bn2_b=jnp.zeros((ndf * 2,), jnp.float32),
        wt1=0.02 * jax.random.normal(ks[2], (ndf * 2 + nz, ngf, 5, 5), jnp.float32),  # ConvT
        bn3_g=jnp.ones((ngf,), jnp.float32),
        bn3_b=jnp.zeros((ngf,), jnp.float32),
        wt2=0.02 * jax.random.normal(ks[3], (ngf, 1, 5, 5), jnp.float32),            # ConvT
    )


# -------------------- forward (jit this; thin glue + one pallas_call) --------------------

def gan_generator_forward(params, stop, z):
    """stop: (N,1,28,28), z: (N,nz,1,1)  ->  (N,1,25,25), all NCHW like PyTorch."""
    t = _static_tables()
    f32 = jnp.float32
    n_batch = stop.shape[0]
    ndf = params["w1"].shape[0]
    c2 = params["w2"].shape[0]
    ngf = params["wt1"].shape[1]

    # --- lightweight glue (fuses under jit) ---
    xpad = jnp.pad(stop.astype(f32), ((0, 0), (0, 0), (2, 2), (2, 2)), mode="wrap")
    x1 = xpad[:, 0][:, t["hi_idx"], t["wi_idx"]]                   # (N,25,196): layer-1 im2col^T
    zt = z.reshape(n_batch, -1).T.astype(f32)                      # (nz, N)

    # weights pre-packed as (Cout, k*k*Cin) with (kh, kw, cin)-ordered columns
    w1t = params["w1"].reshape(ndf, K * K)
    w2t = params["w2"].transpose(0, 2, 3, 1).reshape(c2, K * K * ndf)
    weq3 = jnp.flip(params["wt1"], axis=(2, 3)).transpose(1, 0, 2, 3)   # ConvT -> conv weight
    w3t = weq3.transpose(0, 2, 3, 1).reshape(ngf, -1)
    weq4 = jnp.flip(params["wt2"], axis=(2, 3)).transpose(1, 0, 2, 3)
    w4t = weq4.transpose(0, 2, 3, 1).reshape(1, -1)
    w4t = jnp.concatenate([w4t, jnp.zeros((7, w4t.shape[1]), f32)], axis=0)  # pad Cout 1 -> 8

    g2 = params["bn2_g"].reshape(-1, 1).astype(f32)
    b2 = params["bn2_b"].reshape(-1, 1).astype(f32)
    g3 = params["bn3_g"].reshape(-1, 1).astype(f32)
    b3 = params["bn3_b"].reshape(-1, 1).astype(f32)

    inputs = (x1, zt, w1t, w2t, g2, b2, jnp.asarray(t["s2t"]),
              w3t, g3, b3, jnp.asarray(t["s3t"]),
              w4t, jnp.asarray(t["s4t"]),
              jnp.asarray(t["mask2"]), jnp.asarray(t["mask3"]))

    kernel = functools.partial(_fused_forward_kernel,
                               t["starts2"], t["starts3"], t["starts4"])
    out_flat = pl.pallas_call(
        kernel,
        out_shape=jax.ShapeDtypeStruct((n_batch, R4), f32),
        in_specs=[pl.BlockSpec(memory_space=pltpu.MemorySpace.VMEM)] * len(inputs),
        out_specs=pl.BlockSpec(memory_space=pltpu.MemorySpace.VMEM),
    )(*inputs)

    # (N, 725) lane-dense kernel output -> (N, 1, 25, 25); drop padded-width columns
    return out_flat.reshape(n_batch, H4, W4)[:, :, :H4][:, None]


# -------------------- pure-XLA reference (validation only) --------------------

def _reference_forward(p, stop, z):
    dn = ("NCHW", "OIHW", "NCHW")
    hi = jax.lax.Precision.HIGHEST

    def circ_conv(x, w):
        x = jnp.pad(x, ((0, 0), (0, 0), (2, 2), (2, 2)), mode="wrap")
        return jax.lax.conv_general_dilated(x, w, (2, 2), "VALID",
                                            dimension_numbers=dn, precision=hi)

    def conv_t(x, w):
        w_eq = jnp.flip(w, axis=(2, 3)).transpose(1, 0, 2, 3)
        return jax.lax.conv_general_dilated(x, w_eq, (1, 1), ((2, 2), (2, 2)),
                                            lhs_dilation=(2, 2),
                                            dimension_numbers=dn, precision=hi)

    def bn(x, g, b):
        mean = jnp.mean(x, axis=(0, 2, 3), keepdims=True)
        var = jnp.mean(jnp.square(x - mean), axis=(0, 2, 3), keepdims=True)
        return ((x - mean) * jax.lax.rsqrt(var + BN_EPS) * g.reshape(1, -1, 1, 1)
                + b.reshape(1, -1, 1, 1))

    def lrelu(v):
        return jnp.where(v >= 0, v, LEAKY_SLOPE * v)

    h = lrelu(circ_conv(stop, p["w1"]))
    h = lrelu(bn(circ_conv(h, p["w2"]), p["bn2_g"], p["bn2_b"]))
    z_emb = jnp.tile(z, (1, 1, h.shape[2], h.shape[3]))
    emb = jnp.concatenate([h, z_emb], axis=1)
    h = jnp.maximum(bn(conv_t(emb, p["wt1"]), p["bn3_g"], p["bn3_b"]), 0.0)
    return jax.nn.sigmoid(conv_t(h, p["wt2"]))


if __name__ == "__main__":
    ngf, nz, N = 8, 8, 2
    key = jax.random.PRNGKey(0)
    k_par, k_stop, k_z = jax.random.split(key, 3)

    params = init_params(k_par, ngf=ngf, nz=nz)
    stop = jax.random.normal(k_stop, (N, 1, 28, 28), jnp.float32)
    z = jax.random.normal(k_z, (N, nz, 1, 1), jnp.float32)

    fwd = jax.jit(gan_generator_forward)
    out = jax.block_until_ready(fwd(params, stop, z))

    assert out.shape == (N, 1, 25, 25), out.shape
    assert bool(jnp.all(jnp.isfinite(out)))
    assert bool(jnp.all((out >= 0.0) & (out <= 1.0)))  # sigmoid output range

    ref = _reference_forward(params, stop, z)
    err = float(jnp.max(jnp.abs(out - ref)))
    assert err < 2e-2, f"mismatch vs XLA reference: max abs err = {err}"
    print("KERNEL_OK")
</pallas_src>

<mosaic_0001>
module attributes {stable_mosaic.version = 11 : i64} {
  func.func @_fused_forward_kernel(%arg0: memref<2x25x196xf32, #tpu.memory_space<vmem>>, %arg1: memref<8x2xf32, #tpu.memory_space<vmem>>, %arg2: memref<8x25xf32, #tpu.memory_space<vmem>>, %arg3: memref<16x200xf32, #tpu.memory_space<vmem>>, %arg4: memref<16x1xf32, #tpu.memory_space<vmem>>, %arg5: memref<16x1xf32, #tpu.memory_space<vmem>>, %arg6: memref<196x344xf32, #tpu.memory_space<vmem>>, %arg7: memref<8x600xf32, #tpu.memory_space<vmem>>, %arg8: memref<8x1xf32, #tpu.memory_space<vmem>>, %arg9: memref<8x1xf32, #tpu.memory_space<vmem>>, %arg10: memref<63x296xf32, #tpu.memory_space<vmem>>, %arg11: memref<8x200xf32, #tpu.memory_space<vmem>>, %arg12: memref<221x848xf32, #tpu.memory_space<vmem>>, %arg13: memref<1x63xf32, #tpu.memory_space<vmem>>, %arg14: memref<1x221xf32, #tpu.memory_space<vmem>>, %arg15: memref<2x725xf32, #tpu.memory_space<vmem>>) attributes {dimension_semantics = [], scalar_prefetch = 0 : i64, scratch_operands = 0 : i64, tpu.core_type = #tpu.core_type<tc>} {
    %c0 = arith.constant 0 : index
    %c0_0 = arith.constant 0 : index
    %0 = vector.load %arg2[%c0, %c0_0] : memref<8x25xf32, #tpu.memory_space<vmem>>, vector<8x25xf32>
    %c0_1 = arith.constant 0 : index
    %c0_2 = arith.constant 0 : index
    %c0_3 = arith.constant 0 : index
    %1 = vector.load %arg0[%c0_1, %c0_2, %c0_3] : memref<2x25x196xf32, #tpu.memory_space<vmem>>, vector<1x25x196xf32>
    %2 = vector.shape_cast %1 : vector<1x25x196xf32> to vector<25x196xf32>
    %cst = arith.constant dense<0.000000e+00> : vector<8x196xf32>
    %3 = tpu.matmul %0, %2, %cst {dimension_numbers = #tpu.dot_dimension_numbers<[1], [0], [0], [1], [0, 0, 1, 1], [], []>} : vector<8x25xf32>, vector<25x196xf32>, vector<8x196xf32> -> vector<8x196xf32>
    %cst_4 = arith.constant 0.000000e+00 : f32
    %4 = vector.broadcast %cst_4 : f32 to vector<8x196xf32>
    %5 = arith.cmpf oge, %3, %4 : vector<8x196xf32>
    %cst_5 = arith.constant 2.000000e-01 : f32
    %6 = vector.broadcast %cst_5 : f32 to vector<8x196xf32>
    %7 = arith.mulf %6, %3 : vector<8x196xf32>
    %8 = arith.select %5, %3, %7 : vector<8x196xi1>, vector<8x196xf32>
    %c0_6 = arith.constant 0 : index
    %c0_7 = arith.constant 0 : index
    %9 = vector.load %arg6[%c0_6, %c0_7] : memref<196x344xf32, #tpu.memory_space<vmem>>, vector<196x344xf32>
    %cst_8 = arith.constant dense<0.000000e+00> : vector<8x344xf32>
    %10 = tpu.matmul %8, %9, %cst_8 {dimension_numbers = #tpu.dot_dimension_numbers<[1], [0], [0], [1], [0, 0, 1, 1], [], []>} : vector<8x196xf32>, vector<196x344xf32>, vector<8x344xf32> -> vector<8x344xf32>
    %c0_9 = arith.constant 0 : index
    %c0_10 = arith.constant 0 : index
    %11 = vector.load %arg3[%c0_9, %c0_10] : memref<16x200xf32, #tpu.memory_space<vmem>>, vector<16x200xf32>
    %12 = vector.extract_strided_slice %10 {offsets = [0, 0], sizes = [8, 63], strides = [1, 1]} : vector<8x344xf32> to vector<8x63xf32>
    %13 = vector.extract_strided_slice %10 {offsets = [0, 81], sizes = [8, 63], strides = [1, 1]} : vector<8x344xf32> to vector<8x63xf32>
    %14 = vector.extract_strided_slice %10 {offsets = [0, 1], sizes = [8, 63], strides = [1, 1]} : vector<8x344xf32> to vector<8x63xf32>
    %15 = vector.extract_strided_slice %10 {offsets = [0, 82], sizes = [8, 63], strides = [1, 1]} : vector<8x344xf32> to vector<8x63xf32>
    %16 = vector.extract_strided_slice %10 {offsets = [0, 2], sizes = [8, 63], strides = [1, 1]} : vector<8x344xf32> to vector<8x63xf32>
    %17 = vector.extract_strided_slice %10 {offsets = [0, 162], sizes = [8, 63], strides = [1, 1]} : vector<8x344xf32> to vector<8x63xf32>
    %18 = vector.extract_strided_slice %10 {offsets = [0, 243], sizes = [8, 63], strides = [1, 1]} : vector<8x344xf32> to vector<8x63xf32>
    %19 = vector.extract_strided_slice %10 {offsets = [0, 163], sizes = [8, 63], strides = [1, 1]} : vector<8x344xf32> to vector<8x63xf32>
    %20 = vector.extract_strided_slice %10 {offsets = [0, 244], sizes = [8, 63], strides = [1, 1]} : vector<8x344xf32> to vector<8x63xf32>
    %21 = vector.extract_strided_slice %10 {offsets = [0, 164], sizes = [8, 63], strides = [1, 1]} : vector<8x344xf32> to vector<8x63xf32>
    %22 = vector.extract_strided_slice %10 {offsets = [0, 9], sizes = [8, 63], strides = [1, 1]} : vector<8x344xf32> to vector<8x63xf32>
    %23 = vector.extract_strided_slice %10 {offsets = [0, 90], sizes = [8, 63], strides = [1, 1]} : vector<8x344xf32> to vector<8x63xf32>
    %24 = vector.extract_strided_slice %10 {offsets = [0, 10], sizes = [8, 63], strides = [1, 1]} : vector<8x344xf32> to vector<8x63xf32>
    %25 = vector.extract_strided_slice %10 {offsets = [0, 91], sizes = [8, 63], strides = [1, 1]} : vector<8x344xf32> to vector<8x63xf32>
    %26 = vector.extract_strided_slice %10 {offsets = [0, 11], sizes = [8, 63], strides = [1, 1]} : vector<8x344xf32> to vector<8x63xf32>
    %27 = vector.extract_strided_slice %10 {offsets = [0, 171], sizes = [8, 63], strides = [1, 1]} : vector<8x344xf32> to vector<8x63xf32>
    %28 = vector.extract_strided_slice %10 {offsets = [0, 252], sizes = [8, 63], strides = [1, 1]} : vector<8x344xf32> to vector<8x63xf32>
    %29 = vector.extract_strided_slice %10 {offsets = [0, 172], sizes = [8, 63], strides = [1, 1]} : vector<8x344xf32> to vector<8x63xf32>
    %30 = vector.extract_strided_slice %10 {offsets = [0, 253], sizes = [8, 63], strides = [1, 1]} : vector<8x344xf32> to vector<8x63xf32>
    %31 = vector.extract_strided_slice %10 {offsets = [0, 173], sizes = [8, 63], strides = [1, 1]} : vector<8x344xf32> to vector<8x63xf32>
    %32 = vector.extract_strided_slice %10 {offsets = [0, 18], sizes = [8, 63], strides = [1, 1]} : vector<8x344xf32> to vector<8x63xf32>
    %33 = vector.extract_strided_slice %10 {offsets = [0, 99], sizes = [8, 63], strides = [1, 1]} : vector<8x344xf32> to vector<8x63xf32>
    %34 = vector.extract_strided_slice %10 {offsets = [0, 19], sizes = [8, 63], strides = [1, 1]} : vector<8x344xf32> to vector<8x63xf32>
    %35 = vector.extract_strided_slice %10 {offsets = [0, 100], sizes = [8, 63], strides = [1, 1]} : vector<8x344xf32> to vector<8x63xf32>
    %36 = vector.extract_strided_slice %10 {offsets = [0, 20], sizes = [8, 63], strides = [1, 1]} : vector<8x344xf32> to vector<8x63xf32>
    %37 = tpu.concatenate %12, %13, %14, %15, %16, %17, %18, %19, %20, %21, %22, %23, %24, %25, %26, %27 in 0 : vector<8x63xf32>, vector<8x63xf32>, vector<8x63xf32>, vector<8x63xf32>, vector<8x63xf32>, vector<8x63xf32>, vector<8x63xf32>, vector<8x63xf32>, vector<8x63xf32>, vector<8x63xf32>, vector<8x63xf32>, vector<8x63xf32>, vector<8x63xf32>, vector<8x63xf32>, vector<8x63xf32>, vector<8x63xf32> -> vector<128x63xf32>
    %38 = tpu.concatenate %28, %29, %30, %31, %32, %33, %34, %35, %36 in 0 : vector<8x63xf32>, vector<8x63xf32>, vector<8x63xf32>, vector<8x63xf32>, vector<8x63xf32>, vector<8x63xf32>, vector<8x63xf32>, vector<8x63xf32>, vector<8x63xf32> -> vector<72x63xf32>
    %39 = tpu.concatenate %37, %38 in 0 : vector<128x63xf32>, vector<72x63xf32> -> vector<200x63xf32>
    %cst_11 = arith.constant dense<0.000000e+00> : vector<16x63xf32>
    %40 = tpu.matmul %11, %39, %cst_11 {dimension_numbers = #tpu.dot_dimension_numbers<[1], [0], [0], [1], [0, 0, 1, 1], [], []>} : vector<16x200xf32>, vector<200x63xf32>, vector<16x63xf32> -> vector<16x63xf32>
    %c0_12 = arith.constant 0 : index
    %c0_13 = arith.constant 0 : index
    %41 = vector.load %arg2[%c0_12, %c0_13] : memref<8x25xf32, #tpu.memory_space<vmem>>, vector<8x25xf32>
    %c1 = arith.constant 1 : index
    %c0_14 = arith.constant 0 : index
    %c0_15 = arith.constant 0 : index
    %42 = vector.load %arg0[%c1, %c0_14, %c0_15] : memref<2x25x196xf32, #tpu.memory_space<vmem>>, vector<1x25x196xf32>
    %43 = vector.shape_cast %42 : vector<1x25x196xf32> to vector<25x196xf32>
    %cst_16 = arith.constant dense<0.000000e+00> : vector<8x196xf32>
    %44 = tpu.matmul %41, %43, %cst_16 {dimension_numbers = #tpu.dot_dimension_numbers<[1], [0], [0], [1], [0, 0, 1, 1], [], []>} : vector<8x25xf32>, vector<25x196xf32>, vector<8x196xf32> -> vector<8x196xf32>
    %cst_17 = arith.constant 0.000000e+00 : f32
    %45 = vector.broadcast %cst_17 : f32 to vector<8x196xf32>
    %46 = arith.cmpf oge, %44, %45 : vector<8x196xf32>
    %cst_18 = arith.constant 2.000000e-01 : f32
    %47 = vector.broadcast %cst_18 : f32 to vector<8x196xf32>
    %48 = arith.mulf %47, %44 : vector<8x196xf32>
    %49 = arith.select %46, %44, %48 : vector<8x196xi1>, vector<8x196xf32>
    %c0_19 = arith.constant 0 : index
    %c0_20 = arith.constant 0 : index
    %50 = vector.load %arg6[%c0_19, %c0_20] : memref<196x344xf32, #tpu.memory_space<vmem>>, vector<196x344xf32>
    %cst_21 = arith.constant dense<0.000000e+00> : vector<8x344xf32>
    %51 = tpu.matmul %49, %50, %cst_21 {dimension_numbers = #tpu.dot_dimension_numbers<[1], [0], [0], [1], [0, 0, 1, 1], [], []>} : vector<8x196xf32>, vector<196x344xf32>, vector<8x344xf32> -> vector<8x344xf32>
    %c0_22 = arith.constant 0 : index
    %c0_23 = arith.constant 0 : index
    %52 = vector.load %arg3[%c0_22, %c0_23] : memref<16x200xf32, #tpu.memory_space<vmem>>, vector<16x200xf32>
    %53 = vector.extract_strided_slice %51 {offsets = [0, 0], sizes = [8, 63], strides = [1, 1]} : vector<8x344xf32> to vector<8x63xf32>
    %54 = vector.extract_strided_slice %51 {offsets = [0, 81], sizes = [8, 63], strides = [1, 1]} : vector<8x344xf32> to vector<8x63xf32>
    %55 = vector.extract_strided_slice %51 {offsets = [0, 1], sizes = [8, 63], strides = [1, 1]} : vector<8x344xf32> to vector<8x63xf32>
    %56 = vector.extract_strided_slice %51 {offsets = [0, 82], sizes = [8, 63], strides = [1, 1]} : vector<8x344xf32> to vector<8x63xf32>
    %57 = vector.extract_strided_slice %51 {offsets = [0, 2], sizes = [8, 63], strides = [1, 1]} : vector<8x344xf32> to vector<8x63xf32>
    %58 = vector.extract_strided_slice %51 {offsets = [0, 162], sizes = [8, 63], strides = [1, 1]} : vector<8x344xf32> to vector<8x63xf32>
    %59 = vector.extract_strided_slice %51 {offsets = [0, 243], sizes = [8, 63], strides = [1, 1]} : vector<8x344xf32> to vector<8x63xf32>
    %60 = vector.extract_strided_slice %51 {offsets = [0, 163], sizes = [8, 63], strides = [1, 1]} : vector<8x344xf32> to vector<8x63xf32>
    %61 = vector.extract_strided_slice %51 {offsets = [0, 244], sizes = [8, 63], strides = [1, 1]} : vector<8x344xf32> to vector<8x63xf32>
    %62 = vector.extract_strided_slice %51 {offsets = [0, 164], sizes = [8, 63], strides = [1, 1]} : vector<8x344xf32> to vector<8x63xf32>
    %63 = vector.extract_strided_slice %51 {offsets = [0, 9], sizes = [8, 63], strides = [1, 1]} : vector<8x344xf32> to vector<8x63xf32>
    %64 = vector.extract_strided_slice %51 {offsets = [0, 90], sizes = [8, 63], strides = [1, 1]} : vector<8x344xf32> to vector<8x63xf32>
    %65 = vector.extract_strided_slice %51 {offsets = [0, 10], sizes = [8, 63], strides = [1, 1]} : vector<8x344xf32> to vector<8x63xf32>
    %66 = vector.extract_strided_slice %51 {offsets = [0, 91], sizes = [8, 63], strides = [1, 1]} : vector<8x344xf32> to vector<8x63xf32>
    %67 = vector.extract_strided_slice %51 {offsets = [0, 11], sizes = [8, 63], strides = [1, 1]} : vector<8x344xf32> to vector<8x63xf32>
    %68 = vector.extract_strided_slice %51 {offsets = [0, 171], sizes = [8, 63], strides = [1, 1]} : vector<8x344xf32> to vector<8x63xf32>
    %69 = vector.extract_strided_slice %51 {offsets = [0, 252], sizes = [8, 63], strides = [1, 1]} : vector<8x344xf32> to vector<8x63xf32>
    %70 = vector.extract_strided_slice %51 {offsets = [0, 172], sizes = [8, 63], strides = [1, 1]} : vector<8x344xf32> to vector<8x63xf32>
    %71 = vector.extract_strided_slice %51 {offsets = [0, 253], sizes = [8, 63], strides = [1, 1]} : vector<8x344xf32> to vector<8x63xf32>
    %72 = vector.extract_strided_slice %51 {offsets = [0, 173], sizes = [8, 63], strides = [1, 1]} : vector<8x344xf32> to vector<8x63xf32>
    %73 = vector.extract_strided_slice %51 {offsets = [0, 18], sizes = [8, 63], strides = [1, 1]} : vector<8x344xf32> to vector<8x63xf32>
    %74 = vector.extract_strided_slice %51 {offsets = [0, 99], sizes = [8, 63], strides = [1, 1]} : vector<8x344xf32> to vector<8x63xf32>
    %75 = vector.extract_strided_slice %51 {offsets = [0, 19], sizes = [8, 63], strides = [1, 1]} : vector<8x344xf32> to vector<8x63xf32>
    %76 = vector.extract_strided_slice %51 {offsets = [0, 100], sizes = [8, 63], strides = [1, 1]} : vector<8x344xf32> to vector<8x63xf32>
    %77 = vector.extract_strided_slice %51 {offsets = [0, 20], sizes = [8, 63], strides = [1, 1]} : vector<8x344xf32> to vector<8x63xf32>
    %78 = tpu.concatenate %53, %54, %55, %56, %57, %58, %59, %60, %61, %62, %63, %64, %65, %66, %67, %68 in 0 : vector<8x63xf32>, vector<8x63xf32>, vector<8x63xf32>, vector<8x63xf32>, vector<8x63xf32>, vector<8x63xf32>, vector<8x63xf32>, vector<8x63xf32>, vector<8x63xf32>, vector<8x63xf32>, vector<8x63xf32>, vector<8x63xf32>, vector<8x63xf32>, vector<8x63xf32>, vector<8x63xf32>, vector<8x63xf32> -> vector<128x63xf32>
    %79 = tpu.concatenate %69, %70, %71, %72, %73, %74, %75, %76, %77 in 0 : vector<8x63xf32>, vector<8x63xf32>, vector<8x63xf32>, vector<8x63xf32>, vector<8x63xf32>, vector<8x63xf32>, vector<8x63xf32>, vector<8x63xf32>, vector<8x63xf32> -> vector<72x63xf32>
    %80 = tpu.concatenate %78, %79 in 0 : vector<128x63xf32>, vector<72x63xf32> -> vector<200x63xf32>
    %cst_24 = arith.constant dense<0.000000e+00> : vector<16x63xf32>
    %81 = tpu.matmul %52, %80, %cst_24 {dimension_numbers = #tpu.dot_dimension_numbers<[1], [0], [0], [1], [0, 0, 1, 1], [], []>} : vector<16x200xf32>, vector<200x63xf32>, vector<16x63xf32> -> vector<16x63xf32>
    %c0_25 = arith.constant 0 : index
    %c0_26 = arith.constant 0 : index
    %82 = vector.load %arg13[%c0_25, %c0_26] : memref<1x63xf32, #tpu.memory_space<vmem>>, vector<1x63xf32>
    %83 = vector.broadcast %82 : vector<1x63xf32> to vector<16x63xf32>
    %84 = arith.mulf %40, %83 : vector<16x63xf32>
    %85 = vector.broadcast %82 : vector<1x63xf32> to vector<16x63xf32>
    %86 = arith.mulf %81, %85 : vector<16x63xf32>
    %87 = arith.addf %84, %86 : vector<16x63xf32>
    %cst_27 = arith.constant dense<0.000000e+00> : vector<16xf32>
    %88 = vector.multi_reduction <add>, %87, %cst_27 [1] : vector<16x63xf32> to vector<16xf32>
    %89 = vector.shape_cast %88 : vector<16xf32> to vector<16x1xf32>
    %cst_28 = arith.constant 9.800000e+01 : f32
    %90 = vector.broadcast %cst_28 : f32 to vector<16x1xf32>
    %91 = arith.divf %89, %90 : vector<16x1xf32>
    %92 = vector.broadcast %91 : vector<16x1xf32> to vector<16x63xf32>
    %93 = arith.subf %40, %92 : vector<16x63xf32>
    %94 = arith.mulf %93, %93 : vector<16x63xf32>
    %95 = vector.broadcast %82 : vector<1x63xf32> to vector<16x63xf32>
    %96 = arith.mulf %94, %95 : vector<16x63xf32>
    %97 = vector.broadcast %91 : vector<16x1xf32> to vector<16x63xf32>
    %98 = arith.subf %81, %97 : vector<16x63xf32>
    %99 = arith.mulf %98, %98 : vector<16x63xf32>
    %100 = vector.broadcast %82 : vector<1x63xf32> to vector<16x63xf32>
    %101 = arith.mulf %99, %100 : vector<16x63xf32>
    %102 = arith.addf %96, %101 : vector<16x63xf32>
    %cst_29 = arith.constant dense<0.000000e+00> : vector<16xf32>
    %103 = vector.multi_reduction <add>, %102, %cst_29 [1] : vector<16x63xf32> to vector<16xf32>
    %104 = vector.shape_cast %103 : vector<16xf32> to vector<16x1xf32>
    %cst_30 = arith.constant 9.800000e+01 : f32
    %105 = vector.broadcast %cst_30 : f32 to vector<16x1xf32>
    %106 = arith.divf %104, %105 : vector<16x1xf32>
    %c0_31 = arith.constant 0 : index
    %c0_32 = arith.constant 0 : index
    %107 = vector.load %arg4[%c0_31, %c0_32] : memref<16x1xf32, #tpu.memory_space<vmem>>, vector<16x1xf32>
    %cst_33 = arith.constant 9.99999974E-6 : f32
    %108 = vector.broadcast %cst_33 : f32 to vector<16x1xf32>
    %109 = arith.addf %106, %108 : vector<16x1xf32>
    %110 = math.rsqrt %109 : vector<16x1xf32>
    %111 = arith.mulf %107, %110 : vector<16x1xf32>
    %c0_34 = arith.constant 0 : index
    %c0_35 = arith.constant 0 : index
    %112 = vector.load %arg5[%c0_34, %c0_35] : memref<16x1xf32, #tpu.memory_space<vmem>>, vector<16x1xf32>
    %113 = arith.mulf %91, %111 : vector<16x1xf32>
    %114 = arith.subf %112, %113 : vector<16x1xf32>
    %115 = vector.broadcast %111 : vector<16x1xf32> to vector<16x63xf32>
    %116 = arith.mulf %40, %115 : vector<16x63xf32>
    %117 = vector.broadcast %114 : vector<16x1xf32> to vector<16x63xf32>
    %118 = arith.addf %116, %117 : vector<16x63xf32>
    %cst_36 = arith.constant 0.000000e+00 : f32
    %119 = vector.broadcast %cst_36 : f32 to vector<16x63xf32>
    %120 = arith.cmpf oge, %118, %119 : vector<16x63xf32>
    %cst_37 = arith.constant 2.000000e-01 : f32
    %121 = vector.broadcast %cst_37 : f32 to vector<16x63xf32>
    %122 = arith.mulf %121, %118 : vector<16x63xf32>
    %123 = arith.select %120, %118, %122 : vector<16x63xi1>, vector<16x63xf32>
    %c0_38 = arith.constant 0 : index
    %c0_39 = arith.constant 0 : index
    %124 = vector.load %arg1[%c0_38, %c0_39] : memref<8x2xf32, #tpu.memory_space<vmem>>, vector<8x1xf32>
    %125 = vector.shape_cast %124 : vector<8x1xf32> to vector<8x1xf32>
    %126 = vector.broadcast %125 : vector<8x1xf32> to vector<8x63xf32>
    %127 = tpu.concatenate %123, %126 in 0 : vector<16x63xf32>, vector<8x63xf32> -> vector<24x63xf32>
    %c0_40 = arith.constant 0 : index
    %c0_41 = arith.constant 0 : index
    %128 = vector.load %arg10[%c0_40, %c0_41] : memref<63x296xf32, #tpu.memory_space<vmem>>, vector<63x296xf32>
    %cst_42 = arith.constant dense<0.000000e+00> : vector<24x296xf32>
    %129 = tpu.matmul %127, %128, %cst_42 {dimension_numbers = #tpu.dot_dimension_numbers<[1], [0], [0], [1], [0, 0, 1, 1], [], []>} : vector<24x63xf32>, vector<63x296xf32>, vector<24x296xf32> -> vector<24x296xf32>
    %c0_43 = arith.constant 0 : index
    %c0_44 = arith.constant 0 : index
    %130 = vector.load %arg7[%c0_43, %c0_44] : memref<8x600xf32, #tpu.memory_space<vmem>>, vector<8x600xf32>
    %131 = vector.extract_strided_slice %129 {offsets = [0, 0], sizes = [24, 221], strides = [1, 1]} : vector<24x296xf32> to vector<24x221xf32>
    %132 = vector.extract_strided_slice %129 {offsets = [0, 1], sizes = [24, 221], strides = [1, 1]} : vector<24x296xf32> to vector<24x221xf32>
    %133 = vector.extract_strided_slice %129 {offsets = [0, 2], sizes = [24, 221], strides = [1, 1]} : vector<24x296xf32> to vector<24x221xf32>
    %134 = vector.extract_strided_slice %129 {offsets = [0, 3], sizes = [24, 221], strides = [1, 1]} : vector<24x296xf32> to vector<24x221xf32>
    %135 = vector.extract_strided_slice %129 {offsets = [0, 4], sizes = [24, 221], strides = [1, 1]} : vector<24x296xf32> to vector<24x221xf32>
    %136 = vector.extract_strided_slice %129 {offsets = [0, 17], sizes = [24, 221], strides = [1, 1]} : vector<24x296xf32> to vector<24x221xf32>
    %137 = vector.extract_strided_slice %129 {offsets = [0, 18], sizes = [24, 221], strides = [1, 1]} : vector<24x296xf32> to vector<24x221xf32>
    %138 = vector.extract_strided_slice %129 {offsets = [0, 19], sizes = [24, 221], strides = [1, 1]} : vector<24x296xf32> to vector<24x221xf32>
    %139 = vector.extract_strided_slice %129 {offsets = [0, 20], sizes = [24, 221], strides = [1, 1]} : vector<24x296xf32> to vector<24x221xf32>
    %140 = vector.extract_strided_slice %129 {offsets = [0, 21], sizes = [24, 221], strides = [1, 1]} : vector<24x296xf32> to vector<24x221xf32>
    %141 = vector.extract_strided_slice %129 {offsets = [0, 34], sizes = [24, 221], strides = [1, 1]} : vector<24x296xf32> to vector<24x221xf32>
    %142 = vector.extract_strided_slice %129 {offsets = [0, 35], sizes = [24, 221], strides = [1, 1]} : vector<24x296xf32> to vector<24x221xf32>
    %143 = vector.extract_strided_slice %129 {offsets = [0, 36], sizes = [24, 221], strides = [1, 1]} : vector<24x296xf32> to vector<24x221xf32>
    %144 = vector.extract_strided_slice %129 {offsets = [0, 37], sizes = [24, 221], strides = [1, 1]} : vector<24x296xf32> to vector<24x221xf32>
    %145 = vector.extract_strided_slice %129 {offsets = [0, 38], sizes = [24, 221], strides = [1, 1]} : vector<24x296xf32> to vector<24x221xf32>
    %146 = vector.extract_strided_slice %129 {offsets = [0, 51], sizes = [24, 221], strides = [1, 1]} : vector<24x296xf32> to vector<24x221xf32>
    %147 = vector.extract_strided_slice %129 {offsets = [0, 52], sizes = [24, 221], strides = [1, 1]} : vector<24x296xf32> to vector<24x221xf32>
    %148 = vector.extract_strided_slice %129 {offsets = [0, 53], sizes = [24, 221], strides = [1, 1]} : vector<24x296xf32> to vector<24x221xf32>
    %149 = vector.extract_strided_slice %129 {offsets = [0, 54], sizes = [24, 221], strides = [1, 1]} : vector<24x296xf32> to vector<24x221xf32>
    %150 = vector.extract_strided_slice %129 {offsets = [0, 55], sizes = [24, 221], strides = [1, 1]} : vector<24x296xf32> to vector<24x221xf32>
    %151 = vector.extract_strided_slice %129 {offsets = [0, 68], sizes = [24, 221], strides = [1, 1]} : vector<24x296xf32> to vector<24x221xf32>
    %152 = vector.extract_strided_slice %129 {offsets = [0, 69], sizes = [24, 221], strides = [1, 1]} : vector<24x296xf32> to vector<24x221xf32>
    %153 = vector.extract_strided_slice %129 {offsets = [0, 70], sizes = [24, 221], strides = [1, 1]} : vector<24x296xf32> to vector<24x221xf32>
    %154 = vector.extract_strided_slice %129 {offsets = [0, 71], sizes = [24, 221], strides = [1, 1]} : vector<24x296xf32> to vector<24x221xf32>
    %155 = vector.extract_strided_slice %129 {offsets = [0, 72], sizes = [24, 221], strides = [1, 1]} : vector<24x296xf32> to vector<24x221xf32>
    %156 = tpu.concatenate %131, %132, %133, %134, %135, %136, %137, %138, %139, %140, %141, %142, %143, %144, %145, %146 in 0 : vector<24x221xf32>, vector<24x221xf32>, vector<24x221xf32>, vector<24x221xf32>, vector<24x221xf32>, vector<24x221xf32>, vector<24x221xf32>, vector<24x221xf32>, vector<24x221xf32>, vector<24x221xf32>, vector<24x221xf32>, vector<24x221xf32>, vector<24x221xf32>, vector<24x221xf32>, vector<24x221xf32>, vector<24x221xf32> -> vector<384x221xf32>
    %157 = tpu.concatenate %147, %148, %149, %150, %151, %152, %153, %154, %155 in 0 : vector<24x221xf32>, vector<24x221xf32>, vector<24x221xf32>, vector<24x221xf32>, vector<24x221xf32>, vector<24x221xf32>, vector<24x221xf32>, vector<24x221xf32>, vector<24x221xf32> -> vector<216x221xf32>
    %158 = tpu.concatenate %156, %157 in 0 : vector<384x221xf32>, vector<216x221xf32> -> vector<600x221xf32>
    %cst_45 = arith.constant dense<0.000000e+00> : vector<8x221xf32>
    %159 = tpu.matmul %130, %158, %cst_45 {dimension_numbers = #tpu.dot_dimension_numbers<[1], [0], [0], [1], [0, 0, 1, 1], [], []>} : vector<8x600xf32>, vector<600x221xf32>, vector<8x221xf32> -> vector<8x221xf32>
    %160 = vector.broadcast %111 : vector<16x1xf32> to vector<16x63xf32>
    %161 = arith.mulf %81, %160 : vector<16x63xf32>
    %162 = vector.broadcast %114 : vector<16x1xf32> to vector<16x63xf32>
    %163 = arith.addf %161, %162 : vector<16x63xf32>
    %cst_46 = arith.constant 0.000000e+00 : f32
    %164 = vector.broadcast %cst_46 : f32 to vector<16x63xf32>
    %165 = arith.cmpf oge, %163, %164 : vector<16x63xf32>
    %cst_47 = arith.constant 2.000000e-01 : f32
    %166 = vector.broadcast %cst_47 : f32 to vector<16x63xf32>
    %167 = arith.mulf %166, %163 : vector<16x63xf32>
    %168 = arith.select %165, %163, %167 : vector<16x63xi1>, vector<16x63xf32>
    %c0_48 = arith.constant 0 : index
    %c1_49 = arith.constant 1 : index
    %169 = vector.load %arg1[%c0_48, %c1_49] : memref<8x2xf32, #tpu.memory_space<vmem>>, vector<8x1xf32>
    %170 = vector.shape_cast %169 : vector<8x1xf32> to vector<8x1xf32>
    %171 = vector.broadcast %170 : vector<8x1xf32> to vector<8x63xf32>
    %172 = tpu.concatenate %168, %171 in 0 : vector<16x63xf32>, vector<8x63xf32> -> vector<24x63xf32>
    %c0_50 = arith.constant 0 : index
    %c0_51 = arith.constant 0 : index
    %173 = vector.load %arg10[%c0_50, %c0_51] : memref<63x296xf32, #tpu.memory_space<vmem>>, vector<63x296xf32>
    %cst_52 = arith.constant dense<0.000000e+00> : vector<24x296xf32>
    %174 = tpu.matmul %172, %173, %cst_52 {dimension_numbers = #tpu.dot_dimension_numbers<[1], [0], [0], [1], [0, 0, 1, 1], [], []>} : vector<24x63xf32>, vector<63x296xf32>, vector<24x296xf32> -> vector<24x296xf32>
    %c0_53 = arith.constant 0 : index
    %c0_54 = arith.constant 0 : index
    %175 = vector.load %arg7[%c0_53, %c0_54] : memref<8x600xf32, #tpu.memory_space<vmem>>, vector<8x600xf32>
    %176 = vector.extract_strided_slice %174 {offsets = [0, 0], sizes = [24, 221], strides = [1, 1]} : vector<24x296xf32> to vector<24x221xf32>
    %177 = vector.extract_strided_slice %174 {offsets = [0, 1], sizes = [24, 221], strides = [1, 1]} : vector<24x296xf32> to vector<24x221xf32>
    %178 = vector.extract_strided_slice %174 {offsets = [0, 2], sizes = [24, 221], strides = [1, 1]} : vector<24x296xf32> to vector<24x221xf32>
    %179 = vector.extract_strided_slice %174 {offsets = [0, 3], sizes = [24, 221], strides = [1, 1]} : vector<24x296xf32> to vector<24x221xf32>
    %180 = vector.extract_strided_slice %174 {offsets = [0, 4], sizes = [24, 221], strides = [1, 1]} : vector<24x296xf32> to vector<24x221xf32>
    %181 = vector.extract_strided_slice %174 {offsets = [0, 17], sizes = [24, 221], strides = [1, 1]} : vector<24x296xf32> to vector<24x221xf32>
    %182 = vector.extract_strided_slice %174 {offsets = [0, 18], sizes = [24, 221], strides = [1, 1]} : vector<24x296xf32> to vector<24x221xf32>
    %183 = vector.extract_strided_slice %174 {offsets = [0, 19], sizes = [24, 221], strides = [1, 1]} : vector<24x296xf32> to vector<24x221xf32>
    %184 = vector.extract_strided_slice %174 {offsets = [0, 20], sizes = [24, 221], strides = [1, 1]} : vector<24x296xf32> to vector<24x221xf32>
    %185 = vector.extract_strided_slice %174 {offsets = [0, 21], sizes = [24, 221], strides = [1, 1]} : vector<24x296xf32> to vector<24x221xf32>
    %186 = vector.extract_strided_slice %174 {offsets = [0, 34], sizes = [24, 221], strides = [1, 1]} : vector<24x296xf32> to vector<24x221xf32>
    %187 = vector.extract_strided_slice %174 {offsets = [0, 35], sizes = [24, 221], strides = [1, 1]} : vector<24x296xf32> to vector<24x221xf32>
    %188 = vector.extract_strided_slice %174 {offsets = [0, 36], sizes = [24, 221], strides = [1, 1]} : vector<24x296xf32> to vector<24x221xf32>
    %189 = vector.extract_strided_slice %174 {offsets = [0, 37], sizes = [24, 221], strides = [1, 1]} : vector<24x296xf32> to vector<24x221xf32>
    %190 = vector.extract_strided_slice %174 {offsets = [0, 38], sizes = [24, 221], strides = [1, 1]} : vector<24x296xf32> to vector<24x221xf32>
    %191 = vector.extract_strided_slice %174 {offsets = [0, 51], sizes = [24, 221], strides = [1, 1]} : vector<24x296xf32> to vector<24x221xf32>
    %192 = vector.extract_strided_slice %174 {offsets = [0, 52], sizes = [24, 221], strides = [1, 1]} : vector<24x296xf32> to vector<24x221xf32>
    %193 = vector.extract_strided_slice %174 {offsets = [0, 53], sizes = [24, 221], strides = [1, 1]} : vector<24x296xf32> to vector<24x221xf32>
    %194 = vector.extract_strided_slice %174 {offsets = [0, 54], sizes = [24, 221], strides = [1, 1]} : vector<24x296xf32> to vector<24x221xf32>
    %195 = vector.extract_strided_slice %174 {offsets = [0, 55], sizes = [24, 221], strides = [1, 1]} : vector<24x296xf32> to vector<24x221xf32>
    %196 = vector.extract_strided_slice %174 {offsets = [0, 68], sizes = [24, 221], strides = [1, 1]} : vector<24x296xf32> to vector<24x221xf32>
    %197 = vector.extract_strided_slice %174 {offsets = [0, 69], sizes = [24, 221], strides = [1, 1]} : vector<24x296xf32> to vector<24x221xf32>
    %198 = vector.extract_strided_slice %174 {offsets = [0, 70], sizes = [24, 221], strides = [1, 1]} : vector<24x296xf32> to vector<24x221xf32>
    %199 = vector.extract_strided_slice %174 {offsets = [0, 71], sizes = [24, 221], strides = [1, 1]} : vector<24x296xf32> to vector<24x221xf32>
    %200 = vector.extract_strided_slice %174 {offsets = [0, 72], sizes = [24, 221], strides = [1, 1]} : vector<24x296xf32> to vector<24x221xf32>
    %201 = tpu.concatenate %176, %177, %178, %179, %180, %181, %182, %183, %184, %185, %186, %187, %188, %189, %190, %191 in 0 : vector<24x221xf32>, vector<24x221xf32>, vector<24x221xf32>, vector<24x221xf32>, vector<24x221xf32>, vector<24x221xf32>, vector<24x221xf32>, vector<24x221xf32>, vector<24x221xf32>, vector<24x221xf32>, vector<24x221xf32>, vector<24x221xf32>, vector<24x221xf32>, vector<24x221xf32>, vector<24x221xf32>, vector<24x221xf32> -> vector<384x221xf32>
    %202 = tpu.concatenate %192, %193, %194, %195, %196, %197, %198, %199, %200 in 0 : vector<24x221xf32>, vector<24x221xf32>, vector<24x221xf32>, vector<24x221xf32>, vector<24x221xf32>, vector<24x221xf32>, vector<24x221xf32>, vector<24x221xf32>, vector<24x221xf32> -> vector<216x221xf32>
    %203 = tpu.concatenate %201, %202 in 0 : vector<384x221xf32>, vector<216x221xf32> -> vector<600x221xf32>
    %cst_55 = arith.constant dense<0.000000e+00> : vector<8x221xf32>
    %204 = tpu.matmul %175, %203, %cst_55 {dimension_numbers = #tpu.dot_dimension_numbers<[1], [0], [0], [1], [0, 0, 1, 1], [], []>} : vector<8x600xf32>, vector<600x221xf32>, vector<8x221xf32> -> vector<8x221xf32>
    %c0_56 = arith.constant 0 : index
    %c0_57 = arith.constant 0 : index
    %205 = vector.load %arg14[%c0_56, %c0_57] : memref<1x221xf32, #tpu.memory_space<vmem>>, vector<1x221xf32>
    %206 = vector.broadcast %205 : vector<1x221xf32> to vector<8x221xf32>
    %207 = arith.mulf %159, %206 : vector<8x221xf32>
    %208 = vector.broadcast %205 : vector<1x221xf32> to vector<8x221xf32>
    %209 = arith.mulf %204, %208 : vector<8x221xf32>
    %210 = arith.addf %207, %209 : vector<8x221xf32>
    %cst_58 = arith.constant dense<0.000000e+00> : vector<8xf32>
    %211 = vector.multi_reduction <add>, %210, %cst_58 [1] : vector<8x221xf32> to vector<8xf32>
    %212 = vector.shape_cast %211 : vector<8xf32> to vector<8x1xf32>
    %cst_59 = arith.constant 3.380000e+02 : f32
    %213 = vector.broadcast %cst_59 : f32 to vector<8x1xf32>
    %214 = arith.divf %212, %213 : vector<8x1xf32>
    %215 = vector.broadcast %214 : vector<8x1xf32> to vector<8x221xf32>
    %216 = arith.subf %159, %215 : vector<8x221xf32>
    %217 = arith.mulf %216, %216 : vector<8x221xf32>
    %218 = vector.broadcast %205 : vector<1x221xf32> to vector<8x221xf32>
    %219 = arith.mulf %217, %218 : vector<8x221xf32>
    %220 = vector.broadcast %214 : vector<8x1xf32> to vector<8x221xf32>
    %221 = arith.subf %204, %220 : vector<8x221xf32>
    %222 = arith.mulf %221, %221 : vector<8x221xf32>
    %223 = vector.broadcast %205 : vector<1x221xf32> to vector<8x221xf32>
    %224 = arith.mulf %222, %223 : vector<8x221xf32>
    %225 = arith.addf %219, %224 : vector<8x221xf32>
    %cst_60 = arith.constant dense<0.000000e+00> : vector<8xf32>
    %226 = vector.multi_reduction <add>, %225, %cst_60 [1] : vector<8x221xf32> to vector<8xf32>
    %227 = vector.shape_cast %226 : vector<8xf32> to vector<8x1xf32>
    %cst_61 = arith.constant 3.380000e+02 : f32
    %228 = vector.broadcast %cst_61 : f32 to vector<8x1xf32>
    %229 = arith.divf %227, %228 : vector<8x1xf32>
    %c0_62 = arith.constant 0 : index
    %c0_63 = arith.constant 0 : index
    %230 = vector.load %arg8[%c0_62, %c0_63] : memref<8x1xf32, #tpu.memory_space<vmem>>, vector<8x1xf32>
    %cst_64 = arith.constant 9.99999974E-6 : f32
    %231 = vector.broadcast %cst_64 : f32 to vector<8x1xf32>
    %232 = arith.addf %229, %231 : vector<8x1xf32>
    %233 = math.rsqrt %232 : vector<8x1xf32>
    %234 = arith.mulf %230, %233 : vector<8x1xf32>
    %c0_65 = arith.constant 0 : index
    %c0_66 = arith.constant 0 : index
    %235 = vector.load %arg9[%c0_65, %c0_66] : memref<8x1xf32, #tpu.memory_space<vmem>>, vector<8x1xf32>
    %236 = arith.mulf %214, %234 : vector<8x1xf32>
    %237 = arith.subf %235, %236 : vector<8x1xf32>
    %238 = vector.broadcast %234 : vector<8x1xf32> to vector<8x221xf32>
    %239 = arith.mulf %159, %238 : vector<8x221xf32>
    %240 = vector.broadcast %237 : vector<8x1xf32> to vector<8x221xf32>
    %241 = arith.addf %239, %240 : vector<8x221xf32>
    %cst_67 = arith.constant 0.000000e+00 : f32
    %242 = vector.broadcast %cst_67 : f32 to vector<8x221xf32>
    %243 = arith.maximumf %241, %242 : vector<8x221xf32>
    %c0_68 = arith.constant 0 : index
    %c0_69 = arith.constant 0 : index
    %244 = vector.load %arg12[%c0_68, %c0_69] : memref<221x848xf32, #tpu.memory_space<vmem>>, vector<221x848xf32>
    %cst_70 = arith.constant dense<0.000000e+00> : vector<8x848xf32>
    %245 = tpu.matmul %243, %244, %cst_70 {dimension_numbers = #tpu.dot_dimension_numbers<[1], [0], [0], [1], [0, 0, 1, 1], [], []>} : vector<8x221xf32>, vector<221x848xf32>, vector<8x848xf32> -> vector<8x848xf32>
    %c0_71 = arith.constant 0 : index
    %c0_72 = arith.constant 0 : index
    %246 = vector.load %arg11[%c0_71, %c0_72] : memref<8x200xf32, #tpu.memory_space<vmem>>, vector<8x200xf32>
    %247 = vector.extract_strided_slice %245 {offsets = [0, 0], sizes = [8, 725], strides = [1, 1]} : vector<8x848xf32> to vector<8x725xf32>
    %248 = vector.extract_strided_slice %245 {offsets = [0, 1], sizes = [8, 725], strides = [1, 1]} : vector<8x848xf32> to vector<8x725xf32>
    %249 = vector.extract_strided_slice %245 {offsets = [0, 2], sizes = [8, 725], strides = [1, 1]} : vector<8x848xf32> to vector<8x725xf32>
    %250 = vector.extract_strided_slice %245 {offsets = [0, 3], sizes = [8, 725], strides = [1, 1]} : vector<8x848xf32> to vector<8x725xf32>
    %251 = vector.extract_strided_slice %245 {offsets = [0, 4], sizes = [8, 725], strides = [1, 1]} : vector<8x848xf32> to vector<8x725xf32>
    %252 = vector.extract_strided_slice %245 {offsets = [0, 29], sizes = [8, 725], strides = [1, 1]} : vector<8x848xf32> to vector<8x725xf32>
    %253 = vector.extract_strided_slice %245 {offsets = [0, 30], sizes = [8, 725], strides = [1, 1]} : vector<8x848xf32> to vector<8x725xf32>
    %254 = vector.extract_strided_slice %245 {offsets = [0, 31], sizes = [8, 725], strides = [1, 1]} : vector<8x848xf32> to vector<8x725xf32>
    %255 = vector.extract_strided_slice %245 {offsets = [0, 32], sizes = [8, 725], strides = [1, 1]} : vector<8x848xf32> to vector<8x725xf32>
    %256 = vector.extract_strided_slice %245 {offsets = [0, 33], sizes = [8, 725], strides = [1, 1]} : vector<8x848xf32> to vector<8x725xf32>
    %257 = vector.extract_strided_slice %245 {offsets = [0, 58], sizes = [8, 725], strides = [1, 1]} : vector<8x848xf32> to vector<8x725xf32>
    %258 = vector.extract_strided_slice %245 {offsets = [0, 59], sizes = [8, 725], strides = [1, 1]} : vector<8x848xf32> to vector<8x725xf32>
    %259 = vector.extract_strided_slice %245 {offsets = [0, 60], sizes = [8, 725], strides = [1, 1]} : vector<8x848xf32> to vector<8x725xf32>
    %260 = vector.extract_strided_slice %245 {offsets = [0, 61], sizes = [8, 725], strides = [1, 1]} : vector<8x848xf32> to vector<8x725xf32>
    %261 = vector.extract_strided_slice %245 {offsets = [0, 62], sizes = [8, 725], strides = [1, 1]} : vector<8x848xf32> to vector<8x725xf32>
    %262 = vector.extract_strided_slice %245 {offsets = [0, 87], sizes = [8, 725], strides = [1, 1]} : vector<8x848xf32> to vector<8x725xf32>
    %263 = vector.extract_strided_slice %245 {offsets = [0, 88], sizes = [8, 725], strides = [1, 1]} : vector<8x848xf32> to vector<8x725xf32>
    %264 = vector.extract_strided_slice %245 {offsets = [0, 89], sizes = [8, 725], strides = [1, 1]} : vector<8x848xf32> to vector<8x725xf32>
    %265 = vector.extract_strided_slice %245 {offsets = [0, 90], sizes = [8, 725], strides = [1, 1]} : vector<8x848xf32> to vector<8x725xf32>
    %266 = vector.extract_strided_slice %245 {offsets = [0, 91], sizes = [8, 725], strides = [1, 1]} : vector<8x848xf32> to vector<8x725xf32>
    %267 = vector.extract_strided_slice %245 {offsets = [0, 116], sizes = [8, 725], strides = [1, 1]} : vector<8x848xf32> to vector<8x725xf32>
    %268 = vector.extract_strided_slice %245 {offsets = [0, 117], sizes = [8, 725], strides = [1, 1]} : vector<8x848xf32> to vector<8x725xf32>
    %269 = vector.extract_strided_slice %245 {offsets = [0, 118], sizes = [8, 725], strides = [1, 1]} : vector<8x848xf32> to vector<8x725xf32>
    %270 = vector.extract_strided_slice %245 {offsets = [0, 119], sizes = [8, 725], strides = [1, 1]} : vector<8x848xf32> to vector<8x725xf32>
    %271 = vector.extract_strided_slice %245 {offsets = [0, 120], sizes = [8, 725], strides = [1, 1]} : vector<8x848xf32> to vector<8x725xf32>
    %272 = tpu.concatenate %247, %248, %249, %250, %251, %252, %253, %254, %255, %256, %257, %258, %259, %260, %261, %262 in 0 : vector<8x725xf32>, vector<8x725xf32>, vector<8x725xf32>, vector<8x725xf32>, vector<8x725xf32>, vector<8x725xf32>, vector<8x725xf32>, vector<8x725xf32>, vector<8x725xf32>, vector<8x725xf32>, vector<8x725xf32>, vector<8x725xf32>, vector<8x725xf32>, vector<8x725xf32>, vector<8x725xf32>, vector<8x725xf32> -> vector<128x725xf32>
    %273 = tpu.concatenate %263, %264, %265, %266, %267, %268, %269, %270, %271 in 0 : vector<8x725xf32>, vector<8x725xf32>, vector<8x725xf32>, vector<8x725xf32>, vector<8x725xf32>, vector<8x725xf32>, vector<8x725xf32>, vector<8x725xf32>, vector<8x725xf32> -> vector<72x725xf32>
    %274 = tpu.concatenate %272, %273 in 0 : vector<128x725xf32>, vector<72x725xf32> -> vector<200x725xf32>
    %cst_73 = arith.constant dense<0.000000e+00> : vector<8x725xf32>
    %275 = tpu.matmul %246, %274, %cst_73 {dimension_numbers = #tpu.dot_dimension_numbers<[1], [0], [0], [1], [0, 0, 1, 1], [], []>} : vector<8x200xf32>, vector<200x725xf32>, vector<8x725xf32> -> vector<8x725xf32>
    %276 = vector.extract_strided_slice %275 {offsets = [0, 0], sizes = [1, 725], strides = [1, 1]} : vector<8x725xf32> to vector<1x725xf32>
    %277 = arith.negf %276 : vector<1x725xf32>
    %278 = math.exp %277 : vector<1x725xf32>
    %cst_74 = arith.constant 1.000000e+00 : f32
    %279 = vector.broadcast %cst_74 : f32 to vector<1x725xf32>
    %280 = arith.addf %279, %278 : vector<1x725xf32>
    %281 = arith.divf %279, %280 : vector<1x725xf32>
    %c0_75 = arith.constant 0 : index
    %c0_76 = arith.constant 0 : index
    %282 = vector.load %arg15[%c0_75, %c0_76] : memref<2x725xf32, #tpu.memory_space<vmem>>, vector<1x725xf32>
    tpu.vector_store %arg15[%c0_75, %c0_76], %281 {strides = array<i32>} : memref<2x725xf32, #tpu.memory_space<vmem>>, vector<1x725xf32>,
    %283 = vector.broadcast %234 : vector<8x1xf32> to vector<8x221xf32>
    %284 = arith.mulf %204, %283 : vector<8x221xf32>
    %285 = vector.broadcast %237 : vector<8x1xf32> to vector<8x221xf32>
    %286 = arith.addf %284, %285 : vector<8x221xf32>
    %cst_77 = arith.constant 0.000000e+00 : f32
    %287 = vector.broadcast %cst_77 : f32 to vector<8x221xf32>
    %288 = arith.maximumf %286, %287 : vector<8x221xf32>
    %c0_78 = arith.constant 0 : index
    %c0_79 = arith.constant 0 : index
    %289 = vector.load %arg12[%c0_78, %c0_79] : memref<221x848xf32, #tpu.memory_space<vmem>>, vector<221x848xf32>
    %cst_80 = arith.constant dense<0.000000e+00> : vector<8x848xf32>
    %290 = tpu.matmul %288, %289, %cst_80 {dimension_numbers = #tpu.dot_dimension_numbers<[1], [0], [0], [1], [0, 0, 1, 1], [], []>} : vector<8x221xf32>, vector<221x848xf32>, vector<8x848xf32> -> vector<8x848xf32>
    %c0_81 = arith.constant 0 : index
    %c0_82 = arith.constant 0 : index
    %291 = vector.load %arg11[%c0_81, %c0_82] : memref<8x200xf32, #tpu.memory_space<vmem>>, vector<8x200xf32>
    %292 = vector.extract_strided_slice %290 {offsets = [0, 0], sizes = [8, 725], strides = [1, 1]} : vector<8x848xf32> to vector<8x725xf32>
    %293 = vector.extract_strided_slice %290 {offsets = [0, 1], sizes = [8, 725], strides = [1, 1]} : vector<8x848xf32> to vector<8x725xf32>
    %294 = vector.extract_strided_slice %290 {offsets = [0, 2], sizes = [8, 725], strides = [1, 1]} : vector<8x848xf32> to vector<8x725xf32>
    %295 = vector.extract_strided_slice %290 {offsets = [0, 3], sizes = [8, 725], strides = [1, 1]} : vector<8x848xf32> to vector<8x725xf32>
    %296 = vector.extract_strided_slice %290 {offsets = [0, 4], sizes = [8, 725], strides = [1, 1]} : vector<8x848xf32> to vector<8x725xf32>
    %297 = vector.extract_strided_slice %290 {offsets = [0, 29], sizes = [8, 725], strides = [1, 1]} : vector<8x848xf32> to vector<8x725xf32>
    %298 = vector.extract_strided_slice %290 {offsets = [0, 30], sizes = [8, 725], strides = [1, 1]} : vector<8x848xf32> to vector<8x725xf32>
    %299 = vector.extract_strided_slice %290 {offsets = [0, 31], sizes = [8, 725], strides = [1, 1]} : vector<8x848xf32> to vector<8x725xf32>
    %300 = vector.extract_strided_slice %290 {offsets = [0, 32], sizes = [8, 725], strides = [1, 1]} : vector<8x848xf32> to vector<8x725xf32>
    %301 = vector.extract_strided_slice %290 {offsets = [0, 33], sizes = [8, 725], strides = [1, 1]} : vector<8x848xf32> to vector<8x725xf32>
    %302 = vector.extract_strided_slice %290 {offsets = [0, 58], sizes = [8, 725], strides = [1, 1]} : vector<8x848xf32> to vector<8x725xf32>
    %303 = vector.extract_strided_slice %290 {offsets = [0, 59], sizes = [8, 725], strides = [1, 1]} : vector<8x848xf32> to vector<8x725xf32>
    %304 = vector.extract_strided_slice %290 {offsets = [0, 60], sizes = [8, 725], strides = [1, 1]} : vector<8x848xf32> to vector<8x725xf32>
    %305 = vector.extract_strided_slice %290 {offsets = [0, 61], sizes = [8, 725], strides = [1, 1]} : vector<8x848xf32> to vector<8x725xf32>
    %306 = vector.extract_strided_slice %290 {offsets = [0, 62], sizes = [8, 725], strides = [1, 1]} : vector<8x848xf32> to vector<8x725xf32>
    %307 = vector.extract_strided_slice %290 {offsets = [0, 87], sizes = [8, 725], strides = [1, 1]} : vector<8x848xf32> to vector<8x725xf32>
    %308 = vector.extract_strided_slice %290 {offsets = [0, 88], sizes = [8, 725], strides = [1, 1]} : vector<8x848xf32> to vector<8x725xf32>
    %309 = vector.extract_strided_slice %290 {offsets = [0, 89], sizes = [8, 725], strides = [1, 1]} : vector<8x848xf32> to vector<8x725xf32>
    %310 = vector.extract_strided_slice %290 {offsets = [0, 90], sizes = [8, 725], strides = [1, 1]} : vector<8x848xf32> to vector<8x725xf32>
    %311 = vector.extract_strided_slice %290 {offsets = [0, 91], sizes = [8, 725], strides = [1, 1]} : vector<8x848xf32> to vector<8x725xf32>
    %312 = vector.extract_strided_slice %290 {offsets = [0, 116], sizes = [8, 725], strides = [1, 1]} : vector<8x848xf32> to vector<8x725xf32>
    %313 = vector.extract_strided_slice %290 {offsets = [0, 117], sizes = [8, 725], strides = [1, 1]} : vector<8x848xf32> to vector<8x725xf32>
    %314 = vector.extract_strided_slice %290 {offsets = [0, 118], sizes = [8, 725], strides = [1, 1]} : vector<8x848xf32> to vector<8x725xf32>
    %315 = vector.extract_strided_slice %290 {offsets = [0, 119], sizes = [8, 725], strides = [1, 1]} : vector<8x848xf32> to vector<8x725xf32>
    %316 = vector.extract_strided_slice %290 {offsets = [0, 120], sizes = [8, 725], strides = [1, 1]} : vector<8x848xf32> to vector<8x725xf32>
    %317 = tpu.concatenate %292, %293, %294, %295, %296, %297, %298, %299, %300, %301, %302, %303, %304, %305, %306, %307 in 0 : vector<8x725xf32>, vector<8x725xf32>, vector<8x725xf32>, vector<8x725xf32>, vector<8x725xf32>, vector<8x725xf32>, vector<8x725xf32>, vector<8x725xf32>, vector<8x725xf32>, vector<8x725xf32>, vector<8x725xf32>, vector<8x725xf32>, vector<8x725xf32>, vector<8x725xf32>, vector<8x725xf32>, vector<8x725xf32> -> vector<128x725xf32>
    %318 = tpu.concatenate %308, %309, %310, %311, %312, %313, %314, %315, %316 in 0 : vector<8x725xf32>, vector<8x725xf32>, vector<8x725xf32>, vector<8x725xf32>, vector<8x725xf32>, vector<8x725xf32>, vector<8x725xf32>, vector<8x725xf32>, vector<8x725xf32> -> vector<72x725xf32>
    %319 = tpu.concatenate %317, %318 in 0 : vector<128x725xf32>, vector<72x725xf32> -> vector<200x725xf32>
    %cst_83 = arith.constant dense<0.000000e+00> : vector<8x725xf32>
    %320 = tpu.matmul %291, %319, %cst_83 {dimension_numbers = #tpu.dot_dimension_numbers<[1], [0], [0], [1], [0, 0, 1, 1], [], []>} : vector<8x200xf32>, vector<200x725xf32>, vector<8x725xf32> -> vector<8x725xf32>
    %321 = vector.extract_strided_slice %320 {offsets = [0, 0], sizes = [1, 725], strides = [1, 1]} : vector<8x725xf32> to vector<1x725xf32>
    %322 = arith.negf %321 : vector<1x725xf32>
    %323 = math.exp %322 : vector<1x725xf32>
    %cst_84 = arith.constant 1.000000e+00 : f32
    %324 = vector.broadcast %cst_84 : f32 to vector<1x725xf32>
    %325 = arith.addf %324, %323 : vector<1x725xf32>
    %326 = arith.divf %324, %325 : vector<1x725xf32>
    %c1_85 = arith.constant 1 : index
    %c0_86 = arith.constant 0 : index
    %327 = vector.load %arg15[%c1_85, %c0_86] : memref<2x725xf32, #tpu.memory_space<vmem>>, vector<1x725xf32>
    tpu.vector_store %arg15[%c1_85, %c0_86], %326 {strides = array<i32>} : memref<2x725xf32, #tpu.memory_space<vmem>>, vector<1x725xf32>,
    return
  }
}

</mosaic_0001>

<bundles_post_ra>
// kernel: gan_generator_forward.1
= control target key start
LH: loop header
LB: loop body
LE: loop exit
PB: predicated region body
PF: predicated region fallthrough
CT: control target
= control target key end

     0   :  { %vm63_vm0 = vcmask 1040384   ;;  %v13830_v3 = vmov 0.0   ;;  %vm59_vm1 = vcmask 203776   ;;  %vm226_vm2 = vcmask 1043456   ;;  %s6706_s26 = smov 24   ;;  %s6708_s27 = smov 106   ;;  %s13812_s0 = inlined_call_operand.vmem [shape: f32[2,25,196], index: 0, kind: input, shape index: {}]   ;;  %s13813_s6 = inlined_call_operand.vmem [shape: f32[196,344], index: 6, kind: input, shape index: {}]   ;;  %s13814_s2 = inlined_call_operand.vmem [shape: f32[8,25], index: 2, kind: input, shape index: {}]   ;;  %s13815_s3 = inlined_call_operand.vmem [shape: f32[16,200], index: 3, kind: input, shape index: {}]   ;;  %s13816_s1 = inlined_call_operand.vmem [shape: f32[8,2], index: 1, kind: input, shape index: {}]   ;;  %s13817_s13 = inlined_call_operand.vmem [shape: f32[1,63], index: 13, kind: input, shape index: {}]   ;;  %s13818_s10 = inlined_call_operand.vmem [shape: f32[63,296], index: 10, kind: input, shape index: {}]   ;;  %s13819_s4 = inlined_call_operand.vmem [shape: f32[16,1], index: 4, kind: input, shape index: {}]   ;;  %s13820_s5 = inlined_call_operand.vmem [shape: f32[16,1], index: 5, kind: input, shape index: {}]   ;;  %s13821_s7 = inlined_call_operand.vmem [shape: f32[8,600], index: 7, kind: input, shape index: {}]   ;;  %s13822_s14 = inlined_call_operand.vmem [shape: f32[1,221], index: 14, kind: input, shape index: {}]   ;;  %s13823_s12 = inlined_call_operand.vmem [shape: f32[221,848], index: 12, kind: input, shape index: {}]   ;;  %s13824_s8 = inlined_call_operand.vmem [shape: f32[8,1], index: 8, kind: input, shape index: {}]   ;;  %s13825_s9 = inlined_call_operand.vmem [shape: f32[8,1], index: 9, kind: input, shape index: {}]   ;;  %s13826_s11 = inlined_call_operand.vmem [shape: f32[8,200], index: 11, kind: input, shape index: {}]   ;;  %s13827_s15 = inlined_call_operand.vmem [shape: f32[2,725], index: 15, kind: output, shape index: {}]  }
   0x1   :  { %v58_v0 = vld [vmem:[%s13812_s0 + $0x38] sm:$0x1]  ;;  %v57_v1 = vld [vmem:[%s13812_s0 + $0x30] sm:$0x1]  ;;  %v56_v2 = vld [vmem:[%s13812_s0 + $0x28] sm:$0xff]  ;;  %134 = vmatprep.mubr.f32.mxu1 %v13830_v3  ;;  %307 = vmatprep.subr.mxu0 %v13830_v3  ;;  %vm13901_vm5 = vcmask 556032  }
   0x2   :  { %6405 = vmatprep.subr.msk.mxu1 %vm63_vm0, %v58_v0  ;;  %v55_v4 = vld [vmem:[%s13812_s0 + $0x20] sm:$0xff]  ;;  %v54_v5 = vld [vmem:[%s13812_s0 + $0x18] sm:$0xff]  ;;  %v53_v6 = vld [vmem:[%s13812_s0 + $0x10] sm:$0xff]  ;;  %s6709_s28 = smov 105   ;;  %s6710_s29 = smov 127   ;;  %vm476_vm8 = vcmask 195584  }
   0x3   :  { %6406 = vmatpush1.msk.msra.mxu1 %vm63_vm0, %v57_v1  ;;  %v6862_v7 = vld [vmem:[%s13813_s6 + $0x178] sm:$0xff]  ;;  %v52_v8 = vld [vmem:[%s13812_s0 + $0x8] sm:$0xff]  ;;  %v6871_v9 = vld [vmem:[%s13813_s6 + $0x160] sm:$0xff]  ;;  %s6711_s30 = smov 37   ;;  %s6712_s16 = smov 79   ;;  %vm13900_vm9 = vcmask 588800  }
   0x4   :  { %96 = vmatprep.subr.mxu1 %v56_v2  ;;  %308 = vmatpush1.msra.mxu0 %v6862_v7  ;;  %v51_v10 = vld [vmem:[%s13812_s0] sm:$0xff]  ;;  %v6880_v11 = vld [vmem:[%s13813_s6 + $0x148] sm:$0xff]  ;;  %v6890_v13 = vld [vmem:[%s13813_s6 + $0x170] sm:$0xff]  ;;  %s13852_s17 = smov 118   ;;  %s13855_s18 = smov 38   ;;  %vm13966_vm10 = vcmask 1039360  }
   0x5   :  { %97 = vmatpush1.msra.mxu1 %v55_v4  ;;  %309 = vmatprep.subr.mxu0 %v13830_v3  ;;  %v6885_v12 = vld [vmem:[%s13814_s2] sm:$0xff]  ;;  %v6896_v14 = vld [vmem:[%s13813_s6 + $0x168] sm:$0xff]  ;;  %v6902_v15 = vld [vmem:[%s13813_s6 + $0x158] sm:$0xff]  ;;  %s6713_s2 = smov 117   ;;  %s13857_s19 = smov 12   ;;  %vm444_vm11 = vcmask 302080  }
   0x6   :  { %98 = vmatprep.subr.mxu1 %v54_v5  ;;  %310 = vmatpush1.msra.mxu0 %v6871_v9  ;;  %v6908_v16 = vld [vmem:[%s13813_s6 + $0x130] sm:$0xff]  ;;  %v6922_v18 = vld [vmem:[%s13813_s6 + $0x140] sm:$0xff]  ;;  %v6928_v19 = vld [vmem:[%s13813_s6 + $0x118] sm:$0xff]  ;;  %s6717_s20 = smov 80   ;;  %s13865_s21 = smov 46   ;;  %vm434_vm12 = vcmask 310272  }
   0x7   :  { %99 = vmatpush1.msra.mxu1 %v53_v6  ;;  %311 = vmatprep.subr.mxu0 %v13830_v3  ;;  %v6916_v17 = vld [vmem:[%s13813_s6 + $0x150] sm:$0xff]  ;;  %13979 = vst [vmem:[#allocation2_spill] sm:$0xff] %v6928_v19  ;;  %v6934_v20 = vld [vmem:[%s13813_s6 + $0x138] sm:$0xff]  ;;  %v6941_v21 = vld [vmem:[%s13813_s6 + $0x128] sm:$0xff]  ;;  %s13851_s22 = smov 119   ;;  %s6720_s23 = smov 85  }
   0x8   :  { %100 = vmatprep.subr.mxu1 %v52_v8  ;;  %312 = vmatpush1.msra.mxu0 %v6880_v11  ;;  %v6947_v22 = vld [vmem:[%s13813_s6 + $0x100] sm:$0xff]  ;;  %v6960_v24 = vld [vmem:[%s13813_s6 + $0x110] sm:$0xff]  ;;  %v6966_v25 = vld [vmem:[%s13813_s6 + $0xe8] sm:$0xff]  ;;  %s6721_s24 = smov 13   ;;  %s13853_s25 = smov 126   ;;  %vm421_vm13 = vcmask 97280  }
   0x9   :  { %101 = vmatpush1.msra.mxu1 %v51_v10  ;;  %313 = vmatprep.subr.mxu0 %v13830_v3  ;;  %13980 = vst [vmem:[#allocation3_spill] sm:$0xff] %v6947_v22  ;;  %v6953_v23 = vld [vmem:[%s13813_s6 + $0x120] sm:$0xff]  ;;  %13981 = vst [vmem:[#allocation4_spill] sm:$0xff] %v6966_v25  ;;  %v6972_v26 = vld [vmem:[%s13813_s6 + $0x108] sm:$0xff]  ;;  %vm411_vm14 = vcmask 105472   ;;  %vm397_vm15 = vcmask 375808  }
   0xa   :  { %6407 = vmatmul.mubr.msk.f32.vlgmr.msra.gmra.mxu1 %vm59_vm1, %v6885_v12  ;;  %236 = vmatprep.subr.mxu1 %v6890_v13  ;;  %v6979_v27 = vld [vmem:[%s13813_s6 + $0xf8] sm:$0xff]  ;;  %v6985_v28 = vld [vmem:[%s13813_s6 + $0xd0] sm:$0xff]  ;;  %v6998_v30 = vld [vmem:[%s13813_s6 + $0xe0] sm:$0xff] }
   0xb   :  { %237 = vmatpush1.msra.mxu1 %v6896_v14  ;;  %314 = vmatpush1.msra.mxu0 %v6908_v16  ;;  %13982 = vst [vmem:[#allocation5_spill] sm:$0xff] %v6985_v28  ;;  %v6991_v29 = vld [vmem:[%s13813_s6 + $0xf0] sm:$0xff]  ;;  %v7004_v31 = vld [vmem:[%s13813_s6 + $0xb8] sm:$0xff]  ;;  %v7017_v33 = vld [vmem:[%s13813_s6 + $0xc8] sm:$0xff] }
   0xc   :  { %238 = vmatprep.subr.mxu1 %v6902_v15  ;;  %315 = vmatprep.subr.mxu0 %v13830_v3  ;;  %13983 = vst [vmem:[#allocation6_spill] sm:$0xff] %v7004_v31  ;;  %v7010_v32 = vld [vmem:[%s13813_s6 + $0xd8] sm:$0xff]  ;;  %v7023_v34 = vld [vmem:[%s13813_s6 + $0xa0] sm:$0xff]  ;;  %v7036_v36 = vld [vmem:[%s13813_s6 + $0xb0] sm:$0xff] }
   0xd   :  { %239 = vmatpush1.msra.mxu1 %v6916_v17  ;;  %316 = vmatpush1.msra.mxu0 %v6928_v19  ;;  %13984 = vst [vmem:[#allocation7_spill] sm:$0xff] %v7023_v34  ;;  %v7029_v35 = vld [vmem:[%s13813_s6 + $0xc0] sm:$0xff]  ;;  %v7042_v37 = vld [vmem:[%s13813_s6 + $0x88] sm:$0xff]  ;;  %v7055_v39 = vld [vmem:[%s13813_s6 + $0x98] sm:$0xff] }
   0xe   :  { %240 = vmatprep.subr.mxu1 %v6922_v18  ;;  %317 = vmatprep.subr.mxu0 %v13830_v3  ;;  %13985 = vst [vmem:[#allocation8_spill] sm:$0xff] %v7042_v37  ;;  %v7048_v38 = vld [vmem:[%s13813_s6 + $0xa8] sm:$0xff]  ;;  %v7061_v40 = vld [vmem:[%s13813_s6 + $0x70] sm:$0xff]  ;;  %v7074_v42 = vld [vmem:[%s13813_s6 + $0x80] sm:$0xff] }
   0xf   :  { %241 = vmatpush1.msra.mxu1 %v6934_v20  ;;  %318 = vmatpush1.msra.mxu0 %v6947_v22  ;;  %13986 = vst [vmem:[#allocation9_spill] sm:$0xff] %v7061_v40  ;;  %v7067_v41 = vld [vmem:[%s13813_s6 + $0x90] sm:$0xff]  ;;  %v7080_v43 = vld [vmem:[%s13813_s6 + $0x58] sm:$0xff]  ;;  %v7093_v45 = vld [vmem:[%s13813_s6 + $0x68] sm:$0xff] }
  0x10   :  { %242 = vmatprep.subr.mxu1 %v6941_v21  ;;  %319 = vmatprep.subr.mxu0 %v13830_v3  ;;  %13987 = vst [vmem:[#allocation10_spill] sm:$0xff] %v7080_v43  ;;  %v7086_v44 = vld [vmem:[%s13813_s6 + $0x78] sm:$0xff]  ;;  %v7099_v46 = vld [vmem:[%s13813_s6 + $0x40] sm:$0xff]  ;;  %v7112_v48 = vld [vmem:[%s13813_s6 + $0x50] sm:$0xff] }
  0x11   :  { %243 = vmatpush1.msra.mxu1 %v6953_v23  ;;  %320 = vmatpush1.msra.mxu0 %v6966_v25  ;;  %13988 = vst [vmem:[#allocation11_spill] sm:$0xff] %v7099_v46  ;;  %v7105_v47 = vld [vmem:[%s13813_s6 + $0x60] sm:$0xff]  ;;  %v7118_v49 = vld [vmem:[%s13813_s6 + $0x28] sm:$0xff]  ;;  %v7131_v51 = vld [vmem:[%s13813_s6 + $0x38] sm:$0xff] }
  0x12   :  { %244 = vmatprep.subr.mxu1 %v6960_v24  ;;  %321 = vmatprep.subr.mxu0 %v13830_v3  ;;  %13989 = vst [vmem:[#allocation12_spill] sm:$0xff] %v7118_v49  ;;  %v7124_v50 = vld [vmem:[%s13813_s6 + $0x48] sm:$0xff]  ;;  %v7137_v52 = vld [vmem:[%s13813_s6 + $0x10] sm:$0xff]  ;;  %v7150_v54 = vld [vmem:[%s13813_s6 + $0x20] sm:$0xff] }
  0x13   :  { %245 = vmatpush1.msra.mxu1 %v6972_v26  ;;  %322 = vmatpush1.msra.mxu0 %v6985_v28  ;;  %13990 = vst [vmem:[#allocation13_spill] sm:$0xff] %v7137_v52  ;;  %v7143_v53 = vld [vmem:[%s13813_s6 + $0x30] sm:$0xff]  ;;  %v7162_v56 = vld [vmem:[%s13813_s6 + $0x18] sm:$0xff]  ;;  %v7169_v57 = vld [vmem:[%s13813_s6 + $0x8] sm:$0xff] }
  0x14   :  { %246 = vmatprep.subr.mxu1 %v6979_v27  ;;  %323 = vmatprep.subr.mxu0 %v13830_v3  ;;  %v7156_v55 = vld [vmem:[%s13813_s6 + $0x250] sm:$0xf]  ;;  %v7175_v58 = vld [vmem:[%s13813_s6 + $0x238] sm:$0xff]  ;;  %v7181_v59 = vld [vmem:[%s13813_s6] sm:$0xff] }
  0x15   :  { %247 = vmatpush1.msra.mxu1 %v6991_v29  ;;  %324 = vmatpush1.msra.mxu0 %v7004_v31  ;;  %13991 = vst [vmem:[#allocation14_spill] sm:$0xff] %v7156_v55  ;;  %13992 = vst [vmem:[#allocation15_spill] sm:$0xff] %v7175_v58  ;;  %v7189_v60 = vld [vmem:[%s13813_s6 + $0x248] sm:$0xf]  ;;  %v7195_v61 = vld [vmem:[%s13813_s6 + $0x220] sm:$0xff] }
  0x16   :  { %248 = vmatprep.subr.mxu1 %v6998_v30  ;;  %325 = vmatprep.subr.mxu0 %v13830_v3  ;;  %13993 = vst [vmem:[#allocation16_spill] sm:$0xff] %v7195_v61  ;;  %v7201_v62 = vld [vmem:[%s13813_s6 + $0x240] sm:$0xf]  ;;  %v7208_v63 = vld [vmem:[%s13813_s6 + $0x230] sm:$0xff]  ;;  %v7214_v0 = vld [vmem:[%s13813_s6 + $0x208] sm:$0xff] }
  0x17   :  { %249 = vmatpush1.msra.mxu1 %v7010_v32  ;;  %326 = vmatpush1.msra.mxu0 %v7023_v34  ;;  %13994 = vst [vmem:[#allocation17_spill] sm:$0xff] %v7214_v0  ;;  %v7221_v1 = vld [vmem:[%s13813_s6 + $0x228] sm:$0xff]  ;;  %v7229_v2 = vld [vmem:[%s13813_s6 + $0x218] sm:$0xff]  ;;  %v7235_v4 = vld [vmem:[%s13813_s6 + $0x1f0] sm:$0xff] }
  0x18   :  { %250 = vmatprep.subr.mxu1 %v7017_v33  ;;  %327 = vmatprep.subr.mxu0 %v13830_v3  ;;  %13995 = vst [vmem:[#allocation18_spill] sm:$0xff] %v7235_v4  ;;  %v7241_v5 = vld [vmem:[%s13813_s6 + $0x210] sm:$0xff]  ;;  %v7248_v6 = vld [vmem:[%s13813_s6 + $0x200] sm:$0xff]  ;;  %v7255_v8 = vld [vmem:[%s13813_s6 + $0x1f8] sm:$0xff] }
  0x19   :  { %251 = vmatpush1.msra.mxu1 %v7029_v35  ;;  %328 = vmatpush1.msra.mxu0 %v7042_v37  ;;  %v7262_v10 = vld [vmem:[%s13813_s6 + $0x1e8] sm:$0xff]  ;;  %v7345_v37 = vld [vmem:[%s13813_s6 + $0x190] sm:$0xff] }
  0x1a   :  { %252 = vmatprep.subr.mxu1 %v7036_v36  ;;  %329 = vmatprep.subr.mxu0 %v13830_v3  ;;  %14000 = vst [vmem:[#allocation22_spill] sm:$0xff] %v7345_v37  ;;  %v6421_v19 = vld [vmem:[%s13812_s0 + $0x70] sm:$0x1] }
  0x1b   :  { %253 = vmatpush1.msra.mxu1 %v7048_v38  ;;  %330 = vmatpush1.msra.mxu0 %v7061_v40  ;;  %v7338_v40 = vld [vmem:[%s13813_s6 + $0x180] sm:$0xff] }
  0x1c   :  { %254 = vmatprep.subr.mxu1 %v7055_v39  ;;  %331 = vmatprep.subr.mxu0 %v13830_v3 }
  0x1d   :  { %255 = vmatpush1.msra.mxu1 %v7067_v41  ;;  %332 = vmatpush1.msra.mxu0 %v7080_v43  ;;  %v7326_v43 = vld [vmem:[%s13813_s6 + $0x1a8] sm:$0xff] }
  0x1e   :  { %256 = vmatprep.subr.mxu1 %v7074_v42  ;;  %333 = vmatprep.subr.mxu0 %v13830_v3  ;;  %13999 = vst [vmem:[#allocation21_spill] sm:$0xff] %v7326_v43 }
  0x1f   :  { %257 = vmatpush1.msra.mxu1 %v7086_v44  ;;  %334 = vmatpush1.msra.mxu0 %v7099_v46  ;;  %v7321_v46 = vld [vmem:[%s13813_s6 + $0x198] sm:$0xff] }
  0x20   :  { %258 = vmatprep.subr.mxu1 %v7093_v45  ;;  %335 = vmatprep.subr.mxu0 %v13830_v3 }
  0x21   :  { %259 = vmatpush1.msra.mxu1 %v7105_v47  ;;  %336 = vmatpush1.msra.mxu0 %v7118_v49  ;;  %v7307_v49 = vld [vmem:[%s13813_s6 + $0x1c0] sm:$0xff] }
  0x22   :  { %260 = vmatprep.subr.mxu1 %v7112_v48  ;;  %337 = vmatprep.subr.mxu0 %v13830_v3  ;;  %13998 = vst [vmem:[#allocation20_spill] sm:$0xff] %v7307_v49 }
  0x23   :  { %261 = vmatpush1.msra.mxu1 %v7124_v50  ;;  %338 = vmatpush1.msra.mxu0 %v7137_v52  ;;  %v7302_v52 = vld [vmem:[%s13813_s6 + $0x1b0] sm:$0xff] }
  0x24   :  { %262 = vmatprep.subr.mxu1 %v7131_v51  ;;  %353 = vmatprep.subr.mxu0 %v13830_v3 }
  0x25   :  { %263 = vmatpush1.msra.mxu1 %v7143_v53  ;;  %6411 = vmatpush2.msk.msra.mxu0 %vm226_vm2, %v7156_v55  ;;  %v13997_v55 = vmov 0.0  }
  0x26   :  { %264 = vmatprep.subr.mxu1 %v7150_v54  ;;  %355 = vmatprep.subr.mxu0 %v13830_v3 }
  0x27   :  { %265 = vmatpush1.msra.mxu1 %v7162_v56  ;;  %356 = vmatpush2.msra.mxu0 %v7175_v58  ;;  %v7295_v58 = vld [vmem:[%s13813_s6 + $0x1b8] sm:$0xff] }
  0x28   :  { %266 = vmatprep.subr.mxu1 %v7169_v57  ;;  %357 = vmatprep.subr.mxu0 %v13830_v3 }
  0x29   :  { %267 = vmatpush1.msra.mxu1 %v7181_v59  ;;  %358 = vmatpush2.msra.mxu0 %v7195_v61  ;;  %v7288_v61 = vld [vmem:[%s13813_s6 + $0x1d8] sm:$0xff] }
  0x2a   :  { %6408 = vmatprep.subr.msk.mxu1 %vm226_vm2, %v7189_v60  ;;  %359 = vmatprep.subr.mxu0 %v13830_v3  ;;  %13996 = vst [vmem:[#allocation19_spill] sm:$0xff] %v7288_v61 }
  0x2b   :  { %6409 = vmatpush2.msk.msra.mxu1 %vm226_vm2, %v7201_v62  ;;  %360 = vmatpush2.msra.mxu0 %v7214_v0  ;;  %v7269_v0 = vld [vmem:[%s13813_s6 + $0x1e0] sm:$0xff] }
  0x2c   :  { %284 = vmatprep.subr.mxu1 %v7208_v63  ;;  %361 = vmatprep.subr.mxu0 %v13830_v3 }
  0x2d   :  { %285 = vmatpush2.msra.mxu1 %v7221_v1  ;;  %362 = vmatpush2.msra.mxu0 %v7235_v4  ;;  %v7275_v4 = vld [vmem:[%s13813_s6 + $0x1d0] sm:$0xff] }
  0x2e   :  { %286 = vmatprep.subr.mxu1 %v7229_v2  ;;  %363 = vmatprep.subr.mxu0 %v13830_v3  ;;  %v7283_v3 = vld [vmem:[%s13813_s6 + $0x1c8] sm:$0xff] }
  0x2f   :  { %287 = vmatpush2.msra.mxu1 %v7241_v5  ;;  %364 = vmatpush2.msra.mxu0 %v7288_v61  ;;  %v7314_v61 = vld [vmem:[%s13813_s6 + $0x1a0] sm:$0xff] }
  0x30   :  { %288 = vmatprep.subr.mxu1 %v7248_v6  ;;  %365 = vmatprep.subr.mxu0 %v13997_v55 }
  0x31   :  { %289 = vmatpush2.msra.mxu1 %v7255_v8  ;;  %366 = vmatpush2.msra.mxu0 %v7307_v49  ;;  %v7331_v49 = vld [vmem:[%s13813_s6 + $0x188] sm:$0xff]  ;;  %s6707_s6 = smov 25  }
  0x32   :  { %290 = vmatprep.subr.mxu1 %v7262_v10  ;;  %367 = vmatprep.subr.mxu0 %v13997_v55 }
  0x33   :  { %291 = vmatpush2.msra.mxu1 %v7269_v0  ;;  %368 = vmatpush2.msra.mxu0 %v7326_v43 }
  0x34   :  { %292 = vmatprep.subr.mxu1 %v7275_v4  ;;  %369 = vmatprep.subr.mxu0 %v13997_v55 }
  0x35   :  { %293 = vmatpush2.msra.mxu1 %v7283_v3  ;;  %370 = vmatpush2.msra.mxu0 %v7345_v37  ;;  %v6422_v37 = vld [vmem:[%s13812_s0 + $0x78] sm:$0x1] }
  0x36   :  { %294 = vmatprep.subr.mxu1 %v7295_v58  ;;  %6423 = vmatprep.subr.msk.mxu0 %vm63_vm0, %v6422_v37 }
  0x37   :  { %295 = vmatpush2.msra.mxu1 %v7302_v52 }
  0x38   :  { %296 = vmatprep.subr.mxu1 %v7314_v61 }
  0x39   :  { %297 = vmatpush2.msra.mxu1 %v7321_v46 }
  0x3a   :  { %298 = vmatprep.subr.mxu1 %v7331_v49 }
  0x3b   :  { %299 = vmatpush2.msra.mxu1 %v7338_v40 }
  0x3c   :  { %527 = vmatprep.subr.mxu1 %v13997_v55 }
  0xca   :  { %v136_v43 = vpop.f32.mrf.mxu1 }
  0xcb   :  { %v143_v34 = vmul.f32 0.2, %v136_v43  ;;  %vm141_vm3 = vcmp.ge.f32.partialorder %v136_v43, 0.0 }
  0xcc   :  { %v138_v31 = vpop.f32.mrf.mxu1 }
  0xcd   :  { %vm142_vm4 = vcmp.ge.f32.partialorder %v138_v31, 0.0  ;;  %v144_v28 = vmul.f32 0.2, %v138_v31  ;;  %v145_v22 = vsel %vm141_vm3, %v136_v43, %v143_v34  ;;  %v6416_v34 = vld [vmem:[%s13812_s0 + $0x48] sm:$0xff]  ;;  %vm506_vm3 = vcmask 31744  }
  0xcf   :  { %v146_v25 = vsel %vm142_vm4, %v138_v31, %v144_v28  ;;  %v6420_v28 = vld [vmem:[%s13812_s0 + $0x68] sm:$0xff]  ;;  %v6417_v31 = vld [vmem:[%s13812_s0 + $0x50] sm:$0xff]  ;;  %vm6730_vm4 = vmmov 0  }
  0xd0   :  { %6410 = vmatprep.mubr.msk.f32.mxu1 %vm13901_vm5, %v146_v25  ;;  %6412 = vmatprep.mubr.msk.f32.mxu0 %vm13901_vm5, %v146_v25  ;;  %v6418_v25 = vld [vmem:[%s13812_s0 + $0x58] sm:$0xff] }
  0xd1   :  { %301 = vmatmul.mubr.f32.vlgmr.msra.gmra.mxu1 %v145_v22  ;;  %372 = vmatmul.mubr.f32.vlgmr.msra.gmra.mxu0 %v145_v22  ;;  %v6419_v22 = vld [vmem:[%s13812_s0 + $0x60] sm:$0xff] }
  0xd2   :  { %681 = vmatprep.mubr.f32.mxu0 %v13997_v55  ;;  %6424 = vmatpush1.msk.msra.mxu0 %vm63_vm0, %v6421_v19  ;;  %v6415_v19 = vld [vmem:[%s13812_s0 + $0x40] sm:$0xff]  ;;  %s6705_s0 = smov 104   ;;  %vm387_vm0 = vcmask 384000  }
  0xd3   :  { %643 = vmatprep.subr.mxu0 %v6420_v28 }
  0xd4   :  { %644 = vmatpush1.msra.mxu0 %v6419_v22 }
  0xd5   :  { %645 = vmatprep.subr.mxu0 %v6418_v25 }
  0xd6   :  { %646 = vmatpush1.msra.mxu0 %v6417_v31 }
  0xd7   :  { %647 = vmatprep.subr.mxu0 %v6416_v34 }
  0xd8   :  { %648 = vmatpush1.msra.mxu0 %v6415_v19 }
  0xd9   :  { %6425 = vmatmul.mubr.msk.f32.vlgmr.msra.gmra.mxu0 %vm59_vm1, %v6885_v12  ;;  %697 = vmatprep.subr.mxu0 %v6890_v13 }
  0xda   :  { %698 = vmatpush1.msra.mxu0 %v6896_v14 }
  0xdb   :  { %699 = vmatprep.subr.mxu0 %v6902_v15 }
  0xdc   :  { %700 = vmatpush1.msra.mxu0 %v6916_v17 }
  0xdd   :  { %701 = vmatprep.subr.mxu0 %v6922_v18 }
  0xde   :  { %702 = vmatpush1.msra.mxu0 %v6934_v20 }
  0xdf   :  { %703 = vmatprep.subr.mxu0 %v6941_v21 }
  0xe0   :  { %704 = vmatpush1.msra.mxu0 %v6953_v23 }
  0xe1   :  { %705 = vmatprep.subr.mxu0 %v6960_v24 }
  0xe2   :  { %706 = vmatpush1.msra.mxu0 %v6972_v26 }
  0xe3   :  { %707 = vmatprep.subr.mxu0 %v6979_v27 }
  0xe4   :  { %708 = vmatpush1.msra.mxu0 %v6991_v29 }
  0xe5   :  { %709 = vmatprep.subr.mxu0 %v6998_v30 }
  0xe6   :  { %710 = vmatpush1.msra.mxu0 %v7010_v32 }
  0xe7   :  { %711 = vmatprep.subr.mxu0 %v7017_v33 }
  0xe8   :  { %712 = vmatpush1.msra.mxu0 %v7029_v35 }
  0xe9   :  { %713 = vmatprep.subr.mxu0 %v7036_v36 }
  0xea   :  { %714 = vmatpush1.msra.mxu0 %v7048_v38 }
  0xeb   :  { %715 = vmatprep.subr.mxu0 %v7055_v39 }
  0xec   :  { %716 = vmatpush1.msra.mxu0 %v7067_v41 }
  0xed   :  { %717 = vmatprep.subr.mxu0 %v7074_v42 }
  0xee   :  { %718 = vmatpush1.msra.mxu0 %v7086_v44  ;;  %v378_v44 = vld [vmem:[%s13815_s3 + $0x8] sm:$0xff] }
  0xef   :  { %719 = vmatprep.subr.mxu0 %v7093_v45  ;;  %6413 = vmatprep.mubr.msk.f32.mxu1 %vm13900_vm9, %v378_v44 }
  0xf0   :  { %720 = vmatpush1.msra.mxu0 %v7105_v47 }
  0xf1   :  { %721 = vmatprep.subr.mxu0 %v7112_v48 }
  0xf2   :  { %722 = vmatpush1.msra.mxu0 %v7124_v50 }
  0xf3   :  { %723 = vmatprep.subr.mxu0 %v7131_v51 }
  0xf4   :  { %724 = vmatpush1.msra.mxu0 %v7143_v53 }
  0xf5   :  { %725 = vmatprep.subr.mxu0 %v7150_v54 }
  0xf6   :  { %726 = vmatpush1.msra.mxu0 %v7162_v56 }
  0xf7   :  { %727 = vmatprep.subr.mxu0 %v7169_v57 }
  0xf8   :  { %728 = vmatpush1.msra.mxu0 %v7181_v59 }
  0xf9   :  { %6426 = vmatprep.subr.msk.mxu0 %vm226_vm2, %v7189_v60 }
  0xfa   :  { %6427 = vmatpush2.msk.msra.mxu0 %vm226_vm2, %v7201_v62 }
  0xfb   :  { %745 = vmatprep.subr.mxu0 %v7208_v63 }
  0xfc   :  { %746 = vmatpush2.msra.mxu0 %v7221_v1 }
  0xfd   :  { %747 = vmatprep.subr.mxu0 %v7229_v2 }
  0xfe   :  { %748 = vmatpush2.msra.mxu0 %v7241_v5 }
  0xff   :  { %749 = vmatprep.subr.mxu0 %v7248_v6 }
 0x100   :  { %750 = vmatpush2.msra.mxu0 %v7255_v8 }
 0x101   :  { %751 = vmatprep.subr.mxu0 %v7262_v10 }
 0x102   :  { %752 = vmatpush2.msra.mxu0 %v7269_v0 }
 0x103   :  { %753 = vmatprep.subr.mxu0 %v7275_v4 }
 0x104   :  { %754 = vmatpush2.msra.mxu0 %v7283_v3 }
 0x105   :  { %755 = vmatprep.subr.mxu0 %v7295_v58 }
 0x106   :  { %756 = vmatpush2.msra.mxu0 %v7302_v52 }
 0x107   :  { %757 = vmatprep.subr.mxu0 %v7314_v61 }
 0x108   :  { %758 = vmatpush2.msra.mxu0 %v7321_v46 }
 0x109   :  { %759 = vmatprep.subr.mxu0 %v7331_v49 }
 0x10a   :  { %760 = vmatpush2.msra.mxu0 %v7338_v40 }
 0x10b   :  { %968 = vmatprep.subr.mxu0 %v13997_v55 }
 0x191   :  { %v7434_v12 = vpop.f32.mrf.mxu1  ;;  %v7436_v13 = vpop.f32.mrf.mxu0 }
 0x192   :  { %478 = vrot.lane.b32.xlu1 %v7434_v12, %s6705_s0  ;;  %472 = vrot.lane.b32.xlu0 %v7434_v12, %s6706_s26 }
 0x193   :  { %v375_v3 = vpop.f32.mrf.mxu0  ;;  %v7450_v14 = vpop.f32.mrf.mxu1 }
 0x196   :  { %465 = vrot.lane.b32.xlu1 %v7434_v12, %s6707_s6  ;;  %463 = vrot.lane.b32.xlu0 %v7434_v12, %s6708_s27 }
 0x199   :  { %v683_v15 = vpop.f32.mrf.mxu0 }
 0x19a   :  { %470 = vrot.lane.b32.xlu1 %v7434_v12, %s6709_s28  ;;  %457 = vrot.lane.b32.xlu0 %v7436_v13, %s6710_s29  ;;  %v690_v17 = vmul.f32 0.2, %v683_v15  ;;  %vm688_vm6 = vcmp.ge.f32.partialorder %v683_v15, 0.0 }
 0x19b   :  { %v685_v18 = vpop.f32.mrf.mxu0 }
 0x19c   :  { %vm689_vm7 = vcmp.ge.f32.partialorder %v685_v18, 0.0  ;;  %v691_v20 = vmul.f32 0.2, %v685_v18  ;;  %v7510_v26 = vsel %vm688_vm6, %v683_v15, %v690_v17 }
 0x19e   :  { %440 = vrot.lane.b32.xlu1 %v7434_v12, %s6711_s30  ;;  %474 = vrot.lane.b32.xlu0 %v7450_v14, %s6706_s26  ;;  %v7506_v24 = vsel %vm689_vm7, %v685_v18, %v691_v20 }
 0x19f   :  { %6428 = vmatprep.mubr.msk.f32.mxu0 %vm13901_vm5, %v7506_v24 }
 0x1a0   :  { %762 = vmatmul.mubr.f32.vlgmr.msra.gmra.mxu0 %v7510_v26 }
 0x1a1   :  { %6431 = vmatprep.mubr.msk.f32.mxu0 %vm13900_vm9, %v378_v44  ;;  %v14017_v44 = vld [vmem:[#allocation18_spill] sm:$0xff] }
 0x1a2   :  { %455 = vrot.lane.b32.xlu1 %v7450_v14, %s6710_s29  ;;  %467 = vrot.lane.b32.xlu0 %v7450_v14, %s6707_s6 }
 0x1a6   :  { %461 = vrot.lane.b32.xlu1 %v7450_v14, %s6712_s16  ;;  %447 = vrot.lane.b32.xlu0 %v7434_v12, %s6713_s2 }
 0x1aa   :  { %437 = vrot.lane.b32.xlu1 %v7434_v12, %s13852_s17  ;;  %430 = vrot.lane.b32.xlu0 %v7434_v12, %s13855_s18  ;;  %s13861_s17 = smov 47  }
 0x1ae   :  { %419 = vrot.lane.b32.xlu1 %v7436_v13, %s13857_s19  ;;  %453 = vrot.lane.b32.xlu0 %v7450_v14, %s6717_s20 }
 0x1b2   :  { %393 = vrot.lane.b32.xlu1 %v7434_v12, %s13865_s21  ;;  %427 = vrot.lane.b32.xlu0 %v7434_v12, %s13851_s22  ;;  %s6723_s22 = smov 92  }
 0x1b6   :  { %450 = vrot.lane.b32.xlu1 %v7450_v14, %s6720_s23  ;;  %409 = vrot.lane.b32.xlu0 %v7436_v13, %s6721_s24 }
 0x1ba   :  { %390 = vrot.lane.b32.xlu1 %v7434_v12, %s6710_s29  ;;  %400 = vrot.lane.b32.xlu0 %v7434_v12, %s13853_s25  ;;  %s13911_s25 = smov 94  }
 0x1be   :  { %432 = vrot.lane.b32.xlu1 %v7450_v14, %s13855_s18  ;;  %442 = vrot.lane.b32.xlu0 %v7450_v14, %s6711_s30  ;;  %s13859_s18 = smov 93  }
 0x1c2   :  { %424 = vrot.lane.b32.xlu1 %v7450_v14, %s6723_s22  ;;  %383 = vrot.lane.b32.xlu0 %v7434_v12, %s13861_s17 }
 0x1c6   :  { %407 = vrot.lane.b32.xlu1 %v7450_v14, %s6721_s24  ;;  %417 = vrot.lane.b32.xlu0 %v7450_v14, %s13857_s19  ;;  %s13863_s19 = smov 4  }
 0x1ca   :  { %403 = vrot.lane.b32.xlu1 %v7450_v14, %s13911_s25  ;;  %414 = vrot.lane.b32.xlu0 %v7450_v14, %s13859_s18  ;;  %s6748_s18 = smov 68  }
 0x1ce   :  { %385 = vrot.lane.b32.xlu1 %v7450_v14, %s13861_s17  ;;  %395 = vrot.lane.b32.xlu0 %v7450_v14, %s13865_s21  ;;  %s6741_s21 = smov 76   ;;  %s6746_s17 = smov 67  }
 0x204   :  { %v479_v21 = vpop.permute.xlu1 %478  ;;  %v473_v23 = vpop.permute.xlu0 %472 }
 0x205   :  { %500 = vrot.lane.b32.xlu1 %v473_v23, %s13863_s19  ;;  %504 = vrot.lane.b32.xlu0 %v479_v21, %s13863_s19 }
 0x208   :  { %v466_v27 = vpop.permute.xlu1 %465  ;;  %v464_v29 = vpop.permute.xlu0 %463 }
 0x209   :  { %494 = vrot.lane.b32.xlu0 %v466_v27, %s13863_s19 }
 0x20c   :  { %v471_v30 = vpop.permute.xlu1 %470  ;;  %v458_v32 = vpop.permute.xlu0 %457 }
 0x20d   :  { %498 = vrot.lane.b32.xlu1 %v471_v30, %s13863_s19  ;;  %v7587_v30 = vld [vmem:[%s13815_s3 + $0x10] sm:$0xff] }
 0x210   :  { %v441_v33 = vpop.permute.xlu1 %440  ;;  %v475_v35 = vpop.permute.xlu0 %474 }
 0x211   :  { %v477_v36 = vsel %vm476_vm8, %v473_v23, %v475_v35  ;;  %v7570_v23 = vld [vmem:[%s13815_s3] sm:$0xff]  ;;  %v14008_v35 = vld [vmem:[#allocation9_spill] sm:$0xff] }
 0x212   :  { %502 = vrot.lane.b32.xlu0 %v477_v36, %s13863_s19  ;;  %v14009_v36 = vld [vmem:[#allocation10_spill] sm:$0xff] }
 0x214   :  { %v456_v37 = vpop.permute.xlu1 %455  ;;  %v468_v38 = vpop.permute.xlu0 %467 }
 0x215   :  { %v469_v39 = vsel %vm59_vm1, %v466_v27, %v468_v38  ;;  %v460_v49 = vsel %vm13966_vm10, %v456_v37, %v458_v32  ;;  %v14010_v37 = vld [vmem:[#allocation11_spill] sm:$0xff]  ;;  %v14011_v38 = vld [vmem:[#allocation12_spill] sm:$0xff] }
 0x216   :  { %492 = vrot.lane.b32.xlu0 %v464_v29, %s13863_s19  ;;  %496 = vrot.lane.b32.xlu1 %v469_v39, %s13863_s19  ;;  %v7577_v29 = vld [vmem:[%s13815_s3 + $0x18] sm:$0xff]  ;;  %s14022_s3 = smov 118  }
 0x217   :  { %v14012_v39 = vld [vmem:[#allocation13_spill] sm:$0xff] }
 0x218   :  { %v462_v40 = vpop.permute.xlu1 %461  ;;  %v448_v41 = vpop.permute.xlu0 %447 }
 0x21a   :  { %490 = vrot.lane.b32.xlu1 %v462_v40, %s13863_s19  ;;  %v14013_v40 = vld [vmem:[#allocation14_spill] sm:$0xff] }
 0x21c   :  { %v438_v42 = vpop.permute.xlu1 %437  ;;  %v431_v43 = vpop.permute.xlu0 %430 }
 0x21e   :  { %488 = vrot.lane.b32.xlu1 %v458_v32, %s13863_s19  ;;  %v14003_v32 = vld [vmem:[#allocation4_spill] sm:$0xff] }
 0x220   :  { %v420_v45 = vpop.permute.xlu1 %419  ;;  %v454_v46 = vpop.permute.xlu0 %453 }
 0x221   :  { %484 = vrot.lane.b32.xlu0 %v454_v46, %s13863_s19  ;;  %v14018_v46 = vld [vmem:[#allocation19_spill] sm:$0xff] }
 0x222   :  { %480 = vrot.lane.b32.xlu1 %v7450_v14, %s13863_s19 }
 0x224   :  { %v394_v47 = vpop.permute.xlu1 %393  ;;  %v428_v48 = vpop.permute.xlu0 %427 }
 0x225   :  { %486 = vrot.lane.b32.xlu0 %v460_v49, %s13863_s19 }
 0x228   :  { %v451_v50 = vpop.permute.xlu1 %450  ;;  %v410_v51 = vpop.permute.xlu0 %409 }
 0x229   :  { %528 = vmatpush1.msra.mxu1 %v451_v50  ;;  %482 = vrot.lane.b32.xlu0 %v7436_v13, %s13863_s19  ;;  %v14021_v50 = vld [vmem:[#allocation22_spill] sm:$0xff]  ;;  %s6738_s19 = smov 90  }
 0x22a   :  { %529 = vmatprep.subr.mxu1 %v13997_v55 }
 0x22b   :  { %530 = vmatpush1.msra.mxu1 %v448_v41  ;;  %v14014_v41 = vld [vmem:[#allocation15_spill] sm:$0xff] }
 0x22c   :  { %v391_v52 = vpop.permute.xlu1 %390  ;;  %v401_v53 = vpop.permute.xlu0 %400  ;;  %531 = vmatprep.subr.mxu1 %v13997_v55 }
 0x230   :  { %v433_v54 = vpop.permute.xlu1 %432  ;;  %v443_v56 = vpop.permute.xlu0 %442 }
 0x231   :  { %v445_v57 = vsel %vm444_vm11, %v441_v33, %v443_v56  ;;  %v435_v60 = vsel %vm434_vm12, %v431_v43, %v433_v54  ;;  %v14007_v33 = vld [vmem:[#allocation8_spill] sm:$0xff]  ;;  %v14016_v43 = vld [vmem:[#allocation17_spill] sm:$0xff] }
 0x232   :  { %532 = vmatpush1.msra.mxu1 %v445_v57 }
 0x233   :  { %533 = vmatprep.subr.mxu1 %v13997_v55 }
 0x234   :  { %v425_v58 = vpop.permute.xlu1 %424  ;;  %534 = vmatpush1.msra.mxu1 %v438_v42  ;;  %v384_v59 = vpop.permute.xlu0 %383  ;;  %v14015_v42 = vld [vmem:[#allocation16_spill] sm:$0xff] }
 0x235   :  { %535 = vmatprep.subr.mxu1 %v13997_v55 }
 0x236   :  { %536 = vmatpush1.msra.mxu1 %v435_v60 }
 0x237   :  { %537 = vmatprep.subr.mxu1 %v13997_v55 }
 0x238   :  { %538 = vmatpush1.msra.mxu1 %v428_v48  ;;  %v418_v61 = vpop.permute.xlu0 %417  ;;  %v408_v62 = vpop.permute.xlu1 %407  ;;  %v14020_v48 = vld [vmem:[#allocation21_spill] sm:$0xff] }
 0x239   :  { %539 = vmatprep.subr.mxu1 %v13997_v55  ;;  %v422_v63 = vsel %vm421_vm13, %v418_v61, %v420_v45  ;;  %v412_v1 = vsel %vm411_vm14, %v408_v62, %v410_v51 }
 0x23a   :  { %540 = vmatpush1.msra.mxu1 %v425_v58 }
 0x23b   :  { %541 = vmatprep.subr.mxu1 %v13997_v55 }
 0x23c   :  { %542 = vmatpush1.msra.mxu1 %v422_v63  ;;  %v415_v0 = vpop.permute.xlu0 %414  ;;  %v404_v2 = vpop.permute.xlu1 %403 }
 0x23d   :  { %543 = vmatprep.subr.mxu1 %v13997_v55 }
 0x23e   :  { %544 = vmatpush1.msra.mxu1 %v415_v0 }
 0x23f   :  { %545 = vmatprep.subr.mxu1 %v13997_v55 }
 0x240   :  { %546 = vmatpush1.msra.mxu1 %v412_v1  ;;  %v396_v4 = vpop.permute.xlu0 %395  ;;  %v386_v6 = vpop.permute.xlu1 %385 }
 0x241   :  { %547 = vmatprep.subr.mxu1 %v13997_v55  ;;  %v398_v5 = vsel %vm397_vm15, %v394_v47, %v396_v4  ;;  %v388_v8 = vsel %vm387_vm0, %v384_v59, %v386_v6  ;;  %v14019_v47 = vld [vmem:[#allocation20_spill] sm:$0xff] }
 0x242   :  { %548 = vmatpush1.msra.mxu1 %v404_v2 }
 0x243   :  { %549 = vmatprep.subr.mxu1 %v13997_v55 }
 0x244   :  { %550 = vmatpush1.msra.mxu1 %v401_v53 }
 0x245   :  { %551 = vmatprep.subr.mxu1 %v13997_v55 }
 0x246   :  { %552 = vmatpush1.msra.mxu1 %v398_v5 }
 0x247   :  { %553 = vmatprep.subr.mxu1 %v13997_v55 }
 0x248   :  { %554 = vmatpush1.msra.mxu1 %v391_v52 }
 0x249   :  { %555 = vmatprep.subr.mxu1 %v13997_v55 }
 0x24a   :  { %556 = vmatpush1.msra.mxu1 %v388_v8 }
 0x24b   :  { %557 = vmatprep.subr.mxu1 %v13997_v55 }
 0x24c   :  { %558 = vmatpush1.msra.mxu1 %v7434_v12 }
 0x24d   :  { %573 = vmatprep.subr.mxu1 %v13997_v55 }
 0x260   :  { %v7633_v45 = vpop.f32.mrf.mxu0 }
 0x261   :  { %915 = vrot.lane.b32.xlu0 %v7633_v45, %s6707_s6  ;;  %922 = vrot.lane.b32.xlu1 %v7633_v45, %s6706_s26 }
 0x262   :  { %v7647_v49 = vpop.f32.mrf.mxu0 }
 0x265   :  { %920 = vrot.lane.b32.xlu0 %v7633_v45, %s6709_s28  ;;  %927 = vrot.lane.b32.xlu1 %v7633_v45, %s6705_s0  ;;  %s14023_s0 = smov 38   ;;  %s14027_s28 = smov 119  }
 0x269   :  { %924 = vrot.lane.b32.xlu0 %v7647_v49, %s6706_s26  ;;  %913 = vrot.lane.b32.xlu1 %v7633_v45, %s6708_s27  ;;  %s14024_s26 = smov 12   ;;  %s14026_s27 = smov 47  }
 0x26d   :  { %892 = vrot.lane.b32.xlu0 %v7633_v45, %s6711_s30  ;;  %898 = vrot.lane.b32.xlu1 %v7633_v45, %s6713_s2  ;;  %s14029_s2 = smov 93  }
 0x271   :  { %906 = vrot.lane.b32.xlu0 %v7647_v49, %s6710_s29  ;;  %917 = vrot.lane.b32.xlu1 %v7647_v49, %s6707_s6  ;;  %s14025_s6 = smov 46  }
 0x275   :  { %911 = vrot.lane.b32.xlu0 %v7647_v49, %s6712_s16  ;;  %904 = vrot.lane.b32.xlu1 %v7647_v49, %s6717_s20  ;;  %s14028_s16 = smov 4   ;;  %s6739_s20 = smov 91  }
 0x277   :  { %v505_v10 = vpop.permute.xlu0 %504  ;;  %v501_v28 = vpop.permute.xlu1 %500 }
 0x278   :  { %574 = vmatpush2.msra.mxu1 %v505_v10 }
 0x279   :  { %575 = vmatprep.subr.mxu1 %v13997_v55  ;;  %901 = vrot.lane.b32.xlu0 %v7647_v49, %s6720_s23  ;;  %s6744_s23 = smov 41  }
 0x27b   :  { %v495_v22 = vpop.permute.xlu0 %494 }
 0x27d   :  { %889 = vrot.lane.b32.xlu0 %v7633_v45, %s14022_s3  ;;  %s6749_s3 = smov 69  }
 0x27f   :  { %v499_v25 = vpop.permute.xlu1 %498 }
 0x281   :  { %885 = vrot.lane.b32.xlu0 %v7647_v49, %s14023_s0 }
 0x284   :  { %v503_v31 = vpop.permute.xlu0 %502 }
 0x285   :  { %v510_v34 = vsel %vm506_vm3, %v501_v28, %v503_v31  ;;  %877 = vrot.lane.b32.xlu0 %v7647_v49, %s6723_s22 }
 0x286   :  { %576 = vmatpush2.msra.mxu1 %v510_v34  ;;  %v6728_v34 = vmov 0  }
 0x287   :  { %577 = vmatprep.subr.mxu1 %v13997_v55  ;;  %6620 = vset.pattern.permute.xlu1 %v6728_v34 }
 0x288   :  { %v497_v19 = vpop.permute.xlu1 %496  ;;  %578 = vmatpush2.msra.mxu1 %v499_v25  ;;  %v493_v13 = vpop.permute.xlu0 %492 }
 0x289   :  { %v509_v12 = vsel %vm506_vm3, %v495_v22, %v497_v19  ;;  %579 = vmatprep.subr.mxu1 %v13997_v55  ;;  %862 = vrot.lane.b32.xlu0 %v7647_v49, %s6721_s24 }
 0x28a   :  { %580 = vmatpush2.msra.mxu1 %v509_v12 }
 0x28b   :  { %581 = vmatprep.subr.mxu1 %v13997_v55 }
 0x28c   :  { %v491_v3 = vpop.permute.xlu1 %490  ;;  %582 = vmatpush2.msra.mxu1 %v493_v13 }
 0x28d   :  { %583 = vmatprep.subr.mxu1 %v13997_v55  ;;  %858 = vrot.lane.b32.xlu0 %v7647_v49, %s13911_s25 }
 0x28e   :  { %584 = vmatpush2.msra.mxu1 %v491_v3 }
 0x28f   :  { %585 = vmatprep.subr.mxu1 %v13997_v55 }
 0x290   :  { %v489_v15 = vpop.permute.xlu1 %488 }
 0x293   :  { %v485_v14 = vpop.permute.xlu0 %484 }
 0x294   :  { %v481_v20 = vpop.permute.xlu1 %480 }
 0x297   :  { %v487_v17 = vpop.permute.xlu0 %486 }
 0x298   :  { %v508_v18 = vsel %vm506_vm3, %v487_v17, %v489_v15 }
 0x299   :  { %586 = vmatpush2.msra.mxu1 %v508_v18 }
 0x29a   :  { %587 = vmatprep.subr.mxu1 %v13997_v55 }
 0x29b   :  { %588 = vmatpush2.msra.mxu1 %v485_v14  ;;  %v483_v21 = vpop.permute.xlu0 %482  ;;  %v7737_v14 = vld [vmem:[%s13816_s1] sm:$0xff]  ;;  %s6740_s1 = smov 77  }
 0x29c   :  { %v507_v27 = vsel %vm506_vm3, %v481_v20, %v483_v21  ;;  %589 = vmatprep.subr.mxu1 %v13997_v55 }
 0x29d   :  { %590 = vmatpush2.msra.mxu1 %v507_v27 }
 0x29e   :  { %592 = vmatmul.mubr.f32.vlgmr.msra.gmra.mxu1 %v7570_v23  ;;  %768 = vmatprep.subr.mxu1 %v13997_v55 }
 0x29f   :  { %769 = vmatpush1.msra.mxu1 %v6862_v7  ;;  %6414 = vmatprep.mubr.msk.f32.mxu1 %vm13900_vm9, %v7577_v29  ;;  %v14001_v7 = vld [vmem:[#allocation2_spill] sm:$0xff] }
 0x2a0   :  { %770 = vmatprep.subr.mxu1 %v13997_v55 }
 0x2a1   :  { %771 = vmatpush1.msra.mxu1 %v6871_v9  ;;  %v14002_v9 = vld [vmem:[#allocation3_spill] sm:$0xff] }
 0x2a2   :  { %772 = vmatprep.subr.mxu1 %v13997_v55  ;;  %597 = vmatmul.mubr.f32.gmra.mxu1 %v7587_v30 }
 0x2a3   :  { %773 = vmatpush1.msra.mxu1 %v6880_v11  ;;  %6430 = vmatprep.mubr.msk.f32.mxu1 %vm13901_vm5, %v7506_v24  ;;  %v14004_v11 = vld [vmem:[#allocation5_spill] sm:$0xff]  ;;  %v14005_v24 = vld [vmem:[#allocation6_spill] sm:$0xff]  ;;  %vm13904_vm5 = vcmask 752640  }
 0x2a4   :  { %774 = vmatprep.subr.mxu1 %v13997_v55 }
 0x2a5   :  { %775 = vmatpush1.msra.mxu1 %v6908_v16  ;;  %v14006_v16 = vld [vmem:[#allocation7_spill] sm:$0xff] }
 0x2a6   :  { %776 = vmatprep.subr.mxu1 %v13997_v55 }
 0x2a7   :  { %777 = vmatpush1.msra.mxu1 %v14001_v7 }
 0x2a8   :  { %778 = vmatprep.subr.mxu1 %v13997_v55 }
 0x2a9   :  { %779 = vmatpush1.msra.mxu1 %v14002_v9 }
 0x2aa   :  { %780 = vmatprep.subr.mxu1 %v13997_v55 }
 0x2ab   :  { %781 = vmatpush1.msra.mxu1 %v14003_v32 }
 0x2ac   :  { %782 = vmatprep.subr.mxu1 %v13997_v55 }
 0x2ad   :  { %783 = vmatpush1.msra.mxu1 %v14004_v11 }
 0x2ae   :  { %784 = vmatprep.subr.mxu1 %v13997_v55 }
 0x2af   :  { %785 = vmatpush1.msra.mxu1 %v14005_v24 }
 0x2b0   :  { %786 = vmatprep.subr.mxu1 %v13997_v55 }
 0x2b1   :  { %787 = vmatpush1.msra.mxu1 %v14006_v16 }
 0x2b2   :  { %788 = vmatprep.subr.mxu1 %v13997_v55 }
 0x2b3   :  { %789 = vmatpush1.msra.mxu1 %v14007_v33 }
 0x2b4   :  { %790 = vmatprep.subr.mxu1 %v13997_v55 }
 0x2b5   :  { %791 = vmatpush1.msra.mxu1 %v14008_v35 }
 0x2b6   :  { %792 = vmatprep.subr.mxu1 %v13997_v55 }
 0x2b7   :  { %793 = vmatpush1.msra.mxu1 %v14009_v36 }
 0x2b8   :  { %794 = vmatprep.subr.mxu1 %v13997_v55 }
 0x2b9   :  { %795 = vmatpush1.msra.mxu1 %v14010_v37 }
 0x2ba   :  { %796 = vmatprep.subr.mxu1 %v13997_v55 }
 0x2bb   :  { %797 = vmatpush1.msra.mxu1 %v14011_v38 }
 0x2bc   :  { %798 = vmatprep.subr.mxu1 %v13997_v55 }
 0x2bd   :  { %799 = vmatpush1.msra.mxu1 %v14012_v39 }
 0x2be   :  { %814 = vmatprep.subr.mxu1 %v13997_v55 }
 0x2bf   :  { %6429 = vmatpush2.msk.msra.mxu1 %vm226_vm2, %v14013_v40  ;;  %vm1169_vm2 = vcmask 1046528  }
 0x2c0   :  { %816 = vmatprep.subr.mxu1 %v13997_v55 }
 0x2c1   :  { %817 = vmatpush2.msra.mxu1 %v14014_v41 }
 0x2c2   :  { %818 = vmatprep.subr.mxu1 %v13997_v55 }
 0x2c3   :  { %819 = vmatpush2.msra.mxu1 %v14015_v42 }
 0x2c4   :  { %820 = vmatprep.subr.mxu1 %v13997_v55 }
 0x2c5   :  { %821 = vmatpush2.msra.mxu1 %v14016_v43 }
 0x2c6   :  { %822 = vmatprep.subr.mxu1 %v13997_v55 }
 0x2c7   :  { %823 = vmatpush2.msra.mxu1 %v14017_v44 }
 0x2c8   :  { %824 = vmatprep.subr.mxu1 %v13997_v55 }
 0x2c9   :  { %825 = vmatpush2.msra.mxu1 %v14018_v46 }
 0x2ca   :  { %826 = vmatprep.subr.mxu1 %v13997_v55 }
 0x2cb   :  { %827 = vmatpush2.msra.mxu1 %v14019_v47 }
 0x2cc   :  { %828 = vmatprep.subr.mxu1 %v13997_v55 }
 0x2cd   :  { %829 = vmatpush2.msra.mxu1 %v14020_v48 }
 0x2ce   :  { %830 = vmatprep.subr.mxu1 %v13997_v55 }
 0x2cf   :  { %831 = vmatpush2.msra.mxu1 %v14021_v50 }
 0x2d0   :  { %833 = vmatmul.mubr.f32.vlgmr.msra.gmra.mxu1 %v7510_v26 }
 0x2d1   :  { %1243 = vmatprep.mubr.f32.mxu1 %v13997_v55 }
 0x2d3   :  { %v916_v26 = vpop.permute.xlu0 %915  ;;  %v923_v53 = vpop.permute.xlu1 %922 }
 0x2d7   :  { %v921_v51 = vpop.permute.xlu0 %920  ;;  %v928_v56 = vpop.permute.xlu1 %927 }
 0x2db   :  { %v925_v52 = vpop.permute.xlu0 %924  ;;  %v914_v59 = vpop.permute.xlu1 %913 }
 0x2dc   :  { %v926_v8 = vsel %vm476_vm8, %v923_v53, %v925_v52  ;;  %vm1452_vm8 = vcmask 908288  }
 0x2df   :  { %v893_v54 = vpop.permute.xlu0 %892  ;;  %v899_v61 = vpop.permute.xlu1 %898 }
 0x2e3   :  { %v907_v57 = vpop.permute.xlu0 %906  ;;  %v918_v5 = vpop.permute.xlu1 %917 }
 0x2e4   :  { %v919_v6 = vsel %vm59_vm1, %v916_v26, %v918_v5  ;;  %vm1056_vm1 = vcmask 515072  }
 0x2e7   :  { %v912_v58 = vpop.permute.xlu0 %911  ;;  %v905_v10 = vpop.permute.xlu1 %904 }
 0x2eb   :  { %v902_v60 = vpop.permute.xlu0 %901 }
 0x2ec   :  { %969 = vmatpush1.msra.mxu0 %v902_v60 }
 0x2ed   :  { %970 = vmatprep.subr.mxu0 %v13997_v55 }
 0x2ee   :  { %971 = vmatpush1.msra.mxu0 %v899_v61 }
 0x2ef   :  { %972 = vmatprep.subr.mxu0 %v13997_v55  ;;  %v890_v28 = vpop.permute.xlu0 %889 }
 0x2f3   :  { %v886_v22 = vpop.permute.xlu0 %885 }
 0x2f7   :  { %v878_v25 = vpop.permute.xlu0 %877 }
 0x2fb   :  { %v863_v12 = vpop.permute.xlu0 %862 }
 0x2ff   :  { %v859_v18 = vpop.permute.xlu0 %858 }
 0x35e   :  { %v7685_v62 = vpop.f32.mrf.mxu1 }
 0x360   :  { %v595_v63 = vpop.f32.mrf.mxu1 }
 0x362   :  { %v7687_v0 = vpop.f32.mrf.mxu1 }
 0x364   :  { %v600_v1 = vpop.f32.mrf.mxu1 }
 0x390   :  { %v834_v2 = vpop.f32.mrf.mxu1 }
 0x391   :  { %873 = vrot.lane.b32.xlu0 %v834_v2, %s14024_s26  ;;  %908 = vrot.lane.b32.xlu1 %v834_v2, %s6710_s29 }
 0x392   :  { %v836_v4 = vpop.f32.mrf.mxu1 }
 0x395   :  { %849 = vrot.lane.b32.xlu0 %v7633_v45, %s14025_s6  ;;  %894 = vrot.lane.b32.xlu1 %v7647_v49, %s6711_s30  ;;  %s14030_s30 = smov 126  }
 0x399   :  { %846 = vrot.lane.b32.xlu0 %v7633_v45, %s6710_s29  ;;  %883 = vrot.lane.b32.xlu1 %v7633_v45, %s14023_s0  ;;  %s14156_s0 = smov 107  }
 0x39d   :  { %842 = vrot.lane.b32.xlu0 %v7647_v49, %s14026_s27  ;;  %880 = vrot.lane.b32.xlu1 %v7633_v45, %s14027_s28  ;;  %s6735_s28 = smov 125  }
 0x3a1   :  { %871 = vrot.lane.b32.xlu1 %v7647_v49, %s14024_s26  ;;  %949 = vrot.lane.b32.xlu0 %v923_v53, %s14028_s16  ;;  %s6732_s26 = smov 111  }
 0x3a5   :  { %868 = vrot.lane.b32.xlu1 %v7647_v49, %s14029_s2  ;;  %947 = vrot.lane.b32.xlu0 %v921_v51, %s14028_s16 }
 0x3a9   :  { %855 = vrot.lane.b32.xlu1 %v7633_v45, %s14030_s30  ;;  %945 = vrot.lane.b32.xlu0 %v919_v6, %s14028_s16 }
 0x3ad   :  { %851 = vrot.lane.b32.xlu1 %v7647_v49, %s14025_s6  ;;  %939 = vrot.lane.b32.xlu0 %v912_v58, %s14028_s16  ;;  %v6433_v58 = vld [vmem:[%s13817_s13] ss:$0 sm:$0xff]  ;;  %s6733_s6 = smov 124   ;;  %s13909_s13 = smov 107  }
 0x3ae   :  { %v1050_v60 = vmul.f32 %v6433_v58, %v7685_v62 }
 0x3b1   :  { %864 = vrot.lane.b32.xlu1 %v834_v2, %s6721_s24  ;;  %s6745_s24 = smov 66  }
 0x3b5   :  { %840 = vrot.lane.b32.xlu1 %v7633_v45, %s14026_s27  ;;  %s6734_s27 = smov 108  }
 0x3b9   :  { %953 = vrot.lane.b32.xlu1 %v928_v56, %s14028_s16 }
 0x3bd   :  { %951 = vrot.lane.b32.xlu1 %v926_v8, %s14028_s16 }
 0x3c1   :  { %943 = vrot.lane.b32.xlu1 %v916_v26, %s14028_s16 }
 0x3c5   :  { %941 = vrot.lane.b32.xlu1 %v914_v59, %s14028_s16 }
 0x3c9   :  { %933 = vrot.lane.b32.xlu1 %v905_v10, %s14028_s16 }
 0x403   :  { %v909_v31 = vpop.permute.xlu1 %908  ;;  %v874_v21 = vpop.permute.xlu0 %873 }
 0x404   :  { %937 = vrot.lane.b32.xlu0 %v909_v31, %s14028_s16  ;;  %v910_v19 = vsel %vm13966_vm10, %v907_v57, %v909_v31  ;;  %v6729_v57 = vmov 1  }
 0x405   :  { %935 = vrot.lane.b32.xlu1 %v910_v19, %s14028_s16  ;;  %6621 = vset.pattern.permute.xlu0 %v6729_v57  ;;  %v1096_v57 = vld [vmem:[%s13820_s5] sm:$0xff] }
 0x407   :  { %v895_v13 = vpop.permute.xlu1 %894  ;;  %v850_v9 = vpop.permute.xlu0 %849 }
 0x408   :  { %v896_v3 = vsel %vm444_vm11, %v893_v54, %v895_v13  ;;  %929 = vrot.lane.b32.xlu0 %v7647_v49, %s14028_s16  ;;  %vm1766_vm11 = vcmask 916480  }
 0x409   :  { %931 = vrot.lane.b32.xlu1 %v834_v2, %s14028_s16  ;;  %973 = vmatpush1.msra.mxu0 %v896_v3  ;;  %s6736_s16 = smov 109  }
 0x40a   :  { %974 = vmatprep.subr.mxu0 %v13997_v55 }
 0x40b   :  { %v884_v15 = vpop.permute.xlu1 %883  ;;  %975 = vmatpush1.msra.mxu0 %v890_v28  ;;  %v847_v24 = vpop.permute.xlu0 %846 }
 0x40c   :  { %v887_v17 = vsel %vm434_vm12, %v884_v15, %v886_v22  ;;  %976 = vmatprep.subr.mxu0 %v13997_v55  ;;  %vm1518_vm12 = vcmask 883712  }
 0x40d   :  { %977 = vmatpush1.msra.mxu0 %v887_v17  ;;  %1135 = vperm.xlu1 %6620, %v7737_v14  }
 0x40e   :  { %978 = vmatprep.subr.mxu0 %v13997_v55 }
 0x40f   :  { %v881_v20 = vpop.permute.xlu1 %880  ;;  %v843_v33 = vpop.permute.xlu0 %842 }
 0x410   :  { %979 = vmatpush1.msra.mxu0 %v881_v20 }
 0x411   :  { %980 = vmatprep.subr.mxu0 %v13997_v55 }
 0x412   :  { %981 = vmatpush1.msra.mxu0 %v878_v25 }
 0x413   :  { %v872_v27 = vpop.permute.xlu1 %871  ;;  %982 = vmatprep.subr.mxu0 %v13997_v55  ;;  %v950_v38 = vpop.permute.xlu0 %949 }
 0x414   :  { %v875_v7 = vsel %vm421_vm13, %v872_v27, %v874_v21  ;;  %vm1408_vm13 = vcmask 1022976  }
 0x415   :  { %983 = vmatpush1.msra.mxu0 %v875_v7 }
 0x416   :  { %984 = vmatprep.subr.mxu0 %v13997_v55 }
 0x417   :  { %v869_v32 = vpop.permute.xlu1 %868  ;;  %v948_v41 = vpop.permute.xlu0 %947 }
 0x418   :  { %985 = vmatpush1.msra.mxu0 %v869_v32 }
 0x419   :  { %986 = vmatprep.subr.mxu0 %v13997_v55 }
 0x41b   :  { %v856_v11 = vpop.permute.xlu1 %855  ;;  %v946_v46 = vpop.permute.xlu0 %945 }
 0x41f   :  { %v852_v16 = vpop.permute.xlu1 %851 }
 0x420   :  { %v853_v39 = vsel %vm397_vm15, %v850_v9, %v852_v16  ;;  %v1160_v16 = vld [vmem:[%s13818_s10 + $0xb8] sm:$0x7f]  ;;  %vm1474_vm15 = vcmask 900096  }
 0x423   :  { %v865_v35 = vpop.permute.xlu1 %864 }
 0x424   :  { %v866_v36 = vsel %vm411_vm14, %v863_v12, %v865_v35  ;;  %v1155_v35 = vld [vmem:[%s13818_s10 + $0x90] sm:$0xff]  ;;  %vm1496_vm14 = vcmask 891904  }
 0x425   :  { %987 = vmatpush1.msra.mxu0 %v866_v36  ;;  %v1157_v36 = vld [vmem:[%s13818_s10 + $0xa0] sm:$0xff] }
 0x426   :  { %988 = vmatprep.subr.mxu0 %v13997_v55 }
 0x427   :  { %v841_v37 = vpop.permute.xlu1 %840  ;;  %989 = vmatpush1.msra.mxu0 %v859_v18 }
 0x428   :  { %990 = vmatprep.subr.mxu0 %v13997_v55  ;;  %v844_v42 = vsel %vm387_vm0, %v841_v37, %v843_v33  ;;  %v1156_v33 = vld [vmem:[%s13818_s10 + $0x98] sm:$0xff]  ;;  %v1153_v37 = vld [vmem:[%s13818_s10 + $0x80] sm:$0xff]  ;;  %vm1386_vm0 = vcmask 1031168  }
 0x429   :  { %991 = vmatpush1.msra.mxu0 %v856_v11  ;;  %v1159_v11 = vld [vmem:[%s13818_s10 + $0xb0] sm:$0x7f] }
 0x42a   :  { %992 = vmatprep.subr.mxu0 %v13997_v55  ;;  %6434 = vmatprep.subr.msk.mxu1 %vm1169_vm2, %v1159_v11 }
 0x42b   :  { %993 = vmatpush1.msra.mxu0 %v853_v39  ;;  %v954_v40 = vpop.permute.xlu1 %953  ;;  %v1152_v39 = vld [vmem:[%s13818_s10 + $0x78] sm:$0xff] }
 0x42c   :  { %994 = vmatprep.subr.mxu0 %v13997_v55 }
 0x42d   :  { %995 = vmatpush1.msra.mxu0 %v847_v24  ;;  %v1158_v24 = vld [vmem:[%s13818_s10 + $0xa8] sm:$0x7f] }
 0x42e   :  { %996 = vmatprep.subr.mxu0 %v13997_v55  ;;  %6435 = vmatpush1.msk.msra.mxu1 %vm1169_vm2, %v1158_v24 }
 0x42f   :  { %997 = vmatpush1.msra.mxu0 %v844_v42  ;;  %v952_v43 = vpop.permute.xlu1 %951  ;;  %1197 = vmatprep.subr.mxu1 %v1156_v33 }
 0x430   :  { %998 = vmatprep.subr.mxu0 %v13997_v55  ;;  %v958_v44 = vsel %vm506_vm3, %v950_v38, %v952_v43  ;;  %v1154_v38 = vld [vmem:[%s13818_s10 + $0x88] sm:$0xff]  ;;  %1198 = vmatpush1.msra.mxu1 %v1155_v35 }
 0x431   :  { %999 = vmatpush1.msra.mxu0 %v7633_v45  ;;  %v940_v45 = vpop.permute.xlu0 %939  ;;  %1199 = vmatprep.subr.mxu1 %v1153_v37 }
 0x432   :  { %1014 = vmatprep.subr.mxu0 %v13997_v55  ;;  %1200 = vmatpush1.msra.mxu1 %v1152_v39 }
 0x433   :  { %1015 = vmatpush2.msra.mxu0 %v954_v40  ;;  %v944_v47 = vpop.permute.xlu1 %943  ;;  %v1150_v40 = vld [vmem:[%s13818_s10 + $0x68] sm:$0xff] }
 0x434   :  { %1016 = vmatprep.subr.mxu0 %v13997_v55  ;;  %v957_v48 = vsel %vm506_vm3, %v944_v47, %v946_v46  ;;  %1201 = vmatprep.subr.mxu1 %v1150_v40 }
 0x435   :  { %1017 = vmatpush2.msra.mxu0 %v958_v44 }
 0x436   :  { %1018 = vmatprep.subr.mxu0 %v13997_v55 }
 0x437   :  { %1019 = vmatpush2.msra.mxu0 %v948_v41  ;;  %v942_v49 = vpop.permute.xlu1 %941 }
 0x438   :  { %1020 = vmatprep.subr.mxu0 %v13997_v55 }
 0x439   :  { %1021 = vmatpush2.msra.mxu0 %v957_v48 }
 0x43a   :  { %1022 = vmatprep.subr.mxu0 %v13997_v55 }
 0x43b   :  { %1023 = vmatpush2.msra.mxu0 %v942_v49  ;;  %v934_v50 = vpop.permute.xlu1 %933  ;;  %v1088_v49 = vld [vmem:[%s13819_s4] sm:$0xff] }
 0x43c   :  { %1024 = vmatprep.subr.mxu0 %v13997_v55 }
 0x43d   :  { %1025 = vmatpush2.msra.mxu0 %v940_v45  ;;  %v1149_v45 = vld [vmem:[%s13818_s10 + $0x60] sm:$0xff] }
 0x43e   :  { %1026 = vmatprep.subr.mxu0 %v13997_v55  ;;  %1202 = vmatpush1.msra.mxu1 %v1149_v45 }
 0x476   :  { %v938_v26 = vpop.permute.xlu0 %937 }
 0x477   :  { %v936_v51 = vpop.permute.xlu1 %935 }
 0x478   :  { %v956_v52 = vsel %vm506_vm3, %v936_v51, %v938_v26  ;;  %v1147_v26 = vld [vmem:[%s13818_s10 + $0x50] sm:$0xff]  ;;  %v1146_v51 = vld [vmem:[%s13818_s10 + $0x48] sm:$0xff] }
 0x479   :  { %1027 = vmatpush2.msra.mxu0 %v956_v52  ;;  %v1148_v52 = vld [vmem:[%s13818_s10 + $0x58] sm:$0xff]  ;;  %1203 = vmatprep.subr.mxu1 %v1147_v26 }
 0x47a   :  { %1028 = vmatprep.subr.mxu0 %v13997_v55  ;;  %v930_v53 = vpop.permute.xlu0 %929  ;;  %1204 = vmatpush1.msra.mxu1 %v1146_v51 }
 0x47b   :  { %v932_v54 = vpop.permute.xlu1 %931  ;;  %1029 = vmatpush2.msra.mxu0 %v934_v50  ;;  %v1151_v50 = vld [vmem:[%s13818_s10 + $0x70] sm:$0xff] }
 0x47c   :  { %v955_v56 = vsel %vm506_vm3, %v930_v53, %v932_v54  ;;  %1030 = vmatprep.subr.mxu0 %v13997_v55  ;;  %v1144_v54 = vld [vmem:[%s13818_s10 + $0x38] sm:$0xff]  ;;  %vm1430_vm3 = vcmask 1014784  }
 0x47d   :  { %1031 = vmatpush2.msra.mxu0 %v955_v56  ;;  %1205 = vmatprep.subr.mxu1 %v1144_v54 }
 0x47e   :  { %1033 = vmatmul.mubr.f32.vlgmr.msra.gmra.mxu0 %v7570_v23  ;;  %6517 = vmatprep.subr.mxu0 %v13997_v55 }
 0x47f   :  { %6432 = vmatprep.mubr.msk.f32.mxu0 %vm13900_vm9, %v7577_v29  ;;  %v1051_v29 = vmul.f32 %v6433_v58, %v7687_v0  ;;  %6518 = vmatpush3.msk.msra.mxu0 %vm1169_vm2, %v1160_v16  ;;  %vm13902_vm9 = vcmask 744448  }
 0x480   :  { %6519 = vmatprep.subr.mxu0 %v13997_v55 }
 0x481   :  { %6520 = vmatpush3.msra.mxu0 %v1157_v36 }
 0x482   :  { %1038 = vmatmul.mubr.f32.gmra.mxu0 %v7587_v30  ;;  %6521 = vmatprep.subr.mxu0 %v13997_v55 }
 0x483   :  { %6522 = vmatpush3.msra.mxu0 %v1154_v38  ;;  %6533 = vmatprep.mubr.msk.f32.mxu0 %vm6730_vm4, %v13997_v55 }
 0x484   :  { %6523 = vmatprep.subr.mxu0 %v13997_v55 }
 0x485   :  { %6524 = vmatpush3.msra.mxu0 %v1151_v50 }
 0x486   :  { %6525 = vmatprep.subr.mxu0 %v13997_v55 }
 0x487   :  { %6526 = vmatpush3.msra.mxu0 %v1148_v52 }
 0x488   :  { %v7791_v8 = vpop.permute.xlu1 %1135  ;;  %6527 = vmatprep.subr.mxu0 %v13997_v55 }
 0x53e   :  { %v7779_v59 = vpop.f32.mrf.mxu0 }
 0x53f   :  { %14031 = vst [vmem:[#allocation2_spill] sm:$0xff] %v7779_v59  ;;  %v1052_v61 = vmul.f32 %v6433_v58, %v7779_v59 }
 0x540   :  { %v1036_v23 = vpop.f32.mrf.mxu0 }
 0x541   :  { %v1054_v63 = vadd.f32 %v1052_v61, %v1050_v60  ;;  %v1143_v60 = vld [vmem:[%s13818_s10 + $0x30] sm:$0xff]  ;;  %v1145_v61 = vld [vmem:[%s13818_s10 + $0x40] sm:$0xff] }
 0x542   :  { %v7783_v1 = vpop.f32.mrf.mxu0  ;;  %1206 = vmatpush1.msra.mxu1 %v1143_v60  ;;  %6528 = vmatpush3.msra.mxu0 %v1145_v61 }
 0x543   :  { %14032 = vst [vmem:[#allocation3_spill] sm:$0xff] %v7783_v1  ;;  %v1053_v30 = vmul.f32 %v6433_v58, %v7783_v1  ;;  %v1057_v2 = vsel %vm1056_vm1, %v1054_v63, 0.0  ;;  %v1141_v63 = vld [vmem:[%s13818_s10 + $0x20] sm:$0xff]  ;;  %6529 = vmatprep.subr.mxu0 %v13997_v55 }
 0x544   :  { %1058 = vadd.xlane.f32.xlu0 %v1057_v2  ;;  %v1041_v4 = vpop.f32.mrf.mxu0  ;;  %1207 = vmatprep.subr.mxu1 %v1141_v63  ;;  %v1142_v2 = vld [vmem:[%s13818_s10 + $0x28] sm:$0xff] }
 0x545   :  { %v1055_v5 = vadd.f32 %v1053_v30, %v1051_v29  ;;  %v1140_v30 = vld [vmem:[%s13818_s10 + $0x18] sm:$0xff]  ;;  %6530 = vmatpush3.msra.mxu0 %v1142_v2 }
 0x546   :  { %1208 = vmatpush1.msra.mxu1 %v1140_v30  ;;  %6531 = vmatprep.subr.mxu0 %v13997_v55 }
 0x547   :  { %v1060_v6 = vsel %vm1056_vm1, %v1055_v5, 0.0 }
 0x548   :  { %1061 = vadd.xlane.f32.xlu1 %v1060_v6  ;;  %v1138_v6 = vld [vmem:[%s13818_s10 + $0x8] sm:$0xff] }
 0x549   :  { %1209 = vmatprep.subr.mxu1 %v1138_v6 }
 0x55a   :  { %2308 = vperm.xlu0 %6621, %v7737_v14  }
 0x55e   :  { %6622 = vset.pattern.permute.xlu0 %v6728_v34 }
 0x5cd   :  { %v1059_v10 = vpop.xlane.xlu0 %1058 }
 0x5ce   :  { %v7793_v28 = vmul.f32 0.010204081, %v1059_v10  ;;  %v1097_v10 = vld [vmem:[%s13820_s5 + $0x8] sm:$0xff]  ;;  %s6731_s5 = smov 112  }
 0x5d0   :  { %v1066_v22 = vsub.f32 %v7685_v62, %v7793_v28  ;;  %v1072_v25 = vsub.f32 %v7779_v59, %v7793_v28 }
 0x5d1   :  { %v1062_v31 = vpop.xlane.xlu1 %1061 }
 0x5d2   :  { %v7799_v19 = vmul.f32 0.010204081, %v1062_v31  ;;  %v1068_v12 = vmul.f32 %v1066_v22, %v1066_v22  ;;  %v1074_v13 = vmul.f32 %v1072_v25, %v1072_v25  ;;  %v1139_v22 = vld [vmem:[%s13818_s10 + $0x10] sm:$0xff] }
 0x5d3   :  { %6532 = vmatpush3.msra.mxu0 %v1139_v22 }
 0x5d4   :  { %v1067_v3 = vsub.f32 %v7687_v0, %v7799_v19  ;;  %v1073_v34 = vsub.f32 %v7783_v1, %v7799_v19  ;;  %v1070_v14 = vmul.f32 %v6433_v58, %v1068_v12  ;;  %v1076_v15 = vmul.f32 %v6433_v58, %v1074_v13 }
 0x5d5   :  { %v7843_v41 = vpop.permute.xlu0 %2308 }
 0x5d6   :  { %v1078_v17 = vadd.f32 %v1076_v15, %v1070_v14  ;;  %v1069_v18 = vmul.f32 %v1067_v3, %v1067_v3  ;;  %v1075_v20 = vmul.f32 %v1073_v34, %v1073_v34  ;;  %14033 = vst [vmem:[#allocation4_spill] sm:$0xff] %v7843_v41 }
 0x5d8   :  { %v1080_v21 = vsel %vm1056_vm1, %v1078_v17, 0.0  ;;  %v1071_v27 = vmul.f32 %v6433_v58, %v1069_v18  ;;  %v1077_v7 = vmul.f32 %v6433_v58, %v1075_v20  ;;  %v1089_v58 = vld [vmem:[%s13819_s4 + $0x8] sm:$0xff]  ;;  %s6737_s4 = smov 110  }
 0x5d9   :  { %1081 = vadd.xlane.f32.xlu0 %v1080_v21 }
 0x5da   :  { %v1079_v9 = vadd.f32 %v1077_v7, %v1071_v27 }
 0x5dc   :  { %v1083_v32 = vsel %vm1056_vm1, %v1079_v9, 0.0 }
 0x5dd   :  { %1084 = vadd.xlane.f32.xlu0 %v1083_v32 }
 0x662   :  { %v1082_v42 = vpop.xlane.xlu0 %1081 }
 0x663   :  { %v1086_v43 = vmul.f32 0.010204081, %v1082_v42 }
 0x665   :  { %v1090_v44 = vadd.f32 1e-05, %v1086_v43 }
 0x666   :  { %v1085_v46 = vpop.xlane.xlu0 %1084 }
 0x667   :  { %6623 = vrsqrt.f32 %v1090_v44  ;;  %v1087_v47 = vmul.f32 0.010204081, %v1085_v46 }
 0x669   :  { %v1091_v48 = vadd.f32 1e-05, %v1087_v47 }
 0x66b   :  { %6625 = vrsqrt.f32 %v1091_v48 }
 0x674   :  { %v6624_v53 = vpop.eup %6623 }
 0x675   :  { %v1094_v56 = vmul.f32 %v6624_v53, %v1088_v49 }
 0x677   :  { %v1098_v23 = vmul.f32 %v1094_v56, %v7793_v28  ;;  %1104 = vperm.xlu1 %6620, %v1094_v56   ;;  %v1137_v28 = vld [vmem:[%s13818_s10] sm:$0xff] }
 0x678   :  { %v6626_v29 = vpop.eup %6625  ;;  %1210 = vmatpush1.msra.mxu1 %v1137_v28 }
 0x679   :  { %v1100_v4 = vsub.f32 %v1096_v57, %v1098_v23  ;;  %v1095_v5 = vmul.f32 %v6626_v29, %v1089_v58 }
 0x67b   :  { %1116 = vperm.xlu0 %6622, %v1100_v4   ;;  %1109 = vperm.xlu1 %6620, %v1095_v5   ;;  %v1099_v25 = vmul.f32 %v1095_v5, %v7799_v19 }
 0x67d   :  { %v1101_v31 = vsub.f32 %v1097_v10, %v1099_v25 }
 0x67f   :  { %1121 = vperm.xlu1 %6620, %v1101_v31  }
 0x6f2   :  { %v7907_v12 = vpop.permute.xlu1 %1104 }
 0x6f3   :  { %14034 = vst [vmem:[#allocation5_spill] sm:$0xff] %v7907_v12  ;;  %v1112_v13 = vmul.f32 %v7907_v12, %v7685_v62 }
 0x6f6   :  { %v7911_v3 = vpop.permute.xlu0 %1116  ;;  %v7913_v34 = vpop.permute.xlu1 %1109 }
 0x6f7   :  { %14035 = vst [vmem:[#allocation6_spill] sm:$0xff] %v7911_v3  ;;  %14036 = vst [vmem:[#allocation7_spill] sm:$0xff] %v7913_v34  ;;  %v1124_v19 = vadd.f32 %v7911_v3, %v1112_v13  ;;  %v1113_v15 = vmul.f32 %v7913_v34, %v7687_v0 }
 0x6f9   :  { %v1128_v14 = vmul.f32 0.2, %v1124_v19  ;;  %vm1126_vm6 = vcmp.ge.f32.partialorder %v1124_v19, 0.0 }
 0x6fa   :  { %v7918_v17 = vpop.permute.xlu1 %1121 }
 0x6fb   :  { %14037 = vst [vmem:[#allocation8_spill] sm:$0xff] %v7918_v17  ;;  %v1125_v18 = vadd.f32 %v7918_v17, %v1113_v15  ;;  %v1130_v20 = vsel %vm1126_vm6, %v1124_v19, %v1128_v14  ;;  %vm13905_vm6 = vcmask 629760  }
 0x6fc   :  { %6436 = vmatmul.mubr.msk.f32.vlgmr.msra.gmra.mxu1 %vm1056_vm1, %v1130_v20  ;;  %6534 = vmatmul.mubr.msk.f32.vlgmr.msra.gmra.mxu0 %vm1056_vm1, %v1130_v20 }
 0x6fd   :  { %1249 = vmatprep.mubr.f32.mxu1 %v13997_v55  ;;  %6536 = vmatprep.mubr.msk.f32.mxu0 %vm6730_vm4, %v13997_v55  ;;  %vm1127_vm7 = vcmp.ge.f32.partialorder %v1125_v18, 0.0  ;;  %v1129_v62 = vmul.f32 0.2, %v1125_v18 }
 0x6ff   :  { %v1131_v21 = vsel %vm1127_vm7, %v1125_v18, %v1129_v62  ;;  %vm13903_vm7 = vcmask 736256  }
 0x700   :  { %6437 = vmatmul.mubr.msk.f32.gmra.mxu1 %vm1056_vm1, %v1131_v21  ;;  %6537 = vmatmul.mubr.msk.f32.gmra.mxu0 %vm1056_vm1, %v1131_v21 }
 0x701   :  { %1255 = vmatprep.mubr.f32.mxu1 %v13997_v55  ;;  %6539 = vmatprep.mubr.msk.f32.mxu0 %vm6730_vm4, %v13997_v55 }
 0x704   :  { %6438 = vmatmul.mubr.msk.f32.gmra.mxu1 %vm1056_vm1, %v7791_v8  ;;  %6540 = vmatmul.mubr.msk.f32.gmra.mxu0 %vm1056_vm1, %v7791_v8 }
 0x7bc   :  { %v7935_v0 = vpop.f32.mrf.mxu1  ;;  %v1328_v27 = vpop.f32.mrf.mxu0 }
 0x7bd   :  { %14038 = vst [vmem:[#allocation9_spill] sm:$0xff] %v7935_v0  ;;  %1748 = vrot.lane.b32.xlu0 %v7935_v0, %s6731_s5  ;;  %1773 = vrot.lane.b32.xlu1 %v1328_v27, %s6732_s26 }
 0x7be   :  { %v6535_v7 = vpop.f32.mrf.mxu0  ;;  %v7978_v24 = vpop.f32.mrf.mxu1 }
 0x7bf   :  { %14039 = vst [vmem:[#allocation10_spill] sm:$0xff] %v7978_v24 }
 0x7c0   :  { %v7940_v9 = vpop.f32.mrf.mxu0  ;;  %v8018_v16 = vpop.f32.mrf.mxu1 }
 0x7c1   :  { %1418 = vrot.lane.b32.xlu0 %v7935_v0, %s6733_s6  ;;  %1440 = vrot.lane.b32.xlu1 %v7935_v0, %s6732_s26  ;;  %14040 = vst [vmem:[#allocation11_spill] sm:$0xff] %v8018_v16 }
 0x7c2   :  { %v6538_v8 = vpop.f32.mrf.mxu0  ;;  %v8100_v45 = vpop.f32.mrf.mxu1 }
 0x7c3   :  { %14041 = vst [vmem:[#allocation12_spill] sm:$0xff] %v8100_v45 }
 0x7c4   :  { %v7946_v32 = vpop.f32.mrf.mxu0  ;;  %v8166_v4 = vpop.f32.mrf.mxu1 }
 0x7c5   :  { %1800 = vrot.lane.b32.xlu0 %v1328_v27, %s6734_s27  ;;  %1752 = vrot.lane.b32.xlu1 %v1328_v27, %s6731_s5  ;;  %14051 = vst [vmem:[#allocation22_spill] sm:$0xff] %v8166_v4 }
 0x7c6   :  { %v6541_v11 = vpop.f32.mrf.mxu0  ;;  %v8279_v59 = vpop.f32.mrf.mxu1 }
 0x7c7   :  { %14061 = vst [vmem:[#allocation32_spill] sm:$0xff] %v8279_v59 }
 0x7c9   :  { %1506 = vrot.lane.b32.xlu0 %v7935_v0, %s6734_s27  ;;  %1739 = vrot.lane.b32.xlu1 %v1328_v27, %s6735_s28 }
 0x7cd   :  { %1791 = vrot.lane.b32.xlu0 %v1328_v27, %s6736_s16  ;;  %1396 = vrot.lane.b32.xlu1 %v7935_v0, %s6735_s28 }
 0x7d1   :  { %1484 = vrot.lane.b32.xlu0 %v7935_v0, %s6736_s16  ;;  %1730 = vrot.lane.b32.xlu1 %v1328_v27, %s14030_s30 }
 0x7d5   :  { %1782 = vrot.lane.b32.xlu0 %v1328_v27, %s6737_s4  ;;  %1374 = vrot.lane.b32.xlu1 %v7935_v0, %s14030_s30 }
 0x7d9   :  { %1659 = vrot.lane.b32.xlu0 %v7935_v0, %s6738_s19  ;;  %1721 = vrot.lane.b32.xlu1 %v1328_v27, %s6710_s29 }
 0x7dd   :  { %1550 = vrot.lane.b32.xlu0 %v7935_v0, %s13911_s25  ;;  %1353 = vrot.lane.b32.xlu1 %v7935_v0, %s6710_s29 }
 0x7e1   :  { %1632 = vrot.lane.b32.xlu0 %v1328_v27, %s6739_s20  ;;  %1462 = vrot.lane.b32.xlu1 %v7935_v0, %s6737_s4 }
 0x7e5   :  { %1597 = vrot.lane.b32.xlu0 %v7935_v0, %s6723_s22  ;;  %1694 = vrot.lane.b32.xlu1 %v1328_v27, %s6740_s1 }
 0x7e9   :  { %1813 = vrot.lane.b32.xlu0 %v1328_v27, %s6741_s21  ;;  %1690 = vrot.lane.b32.xlu1 %v7935_v0, %s6740_s1 }
 0x7ed   :  { %1750 = vrot.lane.b32.xlu0 %v7978_v24, %s6731_s5  ;;  %1663 = vrot.lane.b32.xlu1 %v1328_v27, %s6738_s19 }
 0x7f1   :  { %1508 = vrot.lane.b32.xlu0 %v7978_v24, %s6734_s27  ;;  %1628 = vrot.lane.b32.xlu1 %v7935_v0, %s6739_s20 }
 0x7f5   :  { %1486 = vrot.lane.b32.xlu0 %v7978_v24, %s6736_s16  ;;  %1528 = vrot.lane.b32.xlu1 %v7935_v0, %s13909_s13 }
 0x7f9   :  { %1464 = vrot.lane.b32.xlu0 %v7978_v24, %s6737_s4  ;;  %1601 = vrot.lane.b32.xlu1 %v1328_v27, %s6723_s22 }
 0x7fd   :  { %1692 = vrot.lane.b32.xlu0 %v7978_v24, %s6740_s1  ;;  %1572 = vrot.lane.b32.xlu1 %v7935_v0, %s14029_s2 }
 0x801   :  { %1661 = vrot.lane.b32.xlu0 %v7978_v24, %s6738_s19  ;;  %1809 = vrot.lane.b32.xlu1 %v7935_v0, %s6741_s21 }
 0x805   :  { %1530 = vrot.lane.b32.xlu0 %v7978_v24, %s13909_s13  ;;  %1442 = vrot.lane.b32.xlu1 %v7978_v24, %s6732_s26 }
 0x809   :  { %1599 = vrot.lane.b32.xlu0 %v7978_v24, %s6723_s22  ;;  %1398 = vrot.lane.b32.xlu1 %v7978_v24, %s6735_s28 }
 0x80d   :  { %1574 = vrot.lane.b32.xlu0 %v7978_v24, %s14029_s2  ;;  %1420 = vrot.lane.b32.xlu1 %v7978_v24, %s6733_s6 }
 0x811   :  { %1376 = vrot.lane.b32.xlu1 %v7978_v24, %s14030_s30  ;;  %1758 = vrot.lane.b32.xlu0 %v7940_v9, %s6731_s5 }
 0x815   :  { %1355 = vrot.lane.b32.xlu1 %v7978_v24, %s6710_s29  ;;  %1400 = vrot.lane.b32.xlu0 %v8018_v16, %s6735_s28 }
 0x819   :  { %1552 = vrot.lane.b32.xlu1 %v7978_v24, %s13911_s25  ;;  %1422 = vrot.lane.b32.xlu0 %v8018_v16, %s6733_s6 }
 0x81d   :  { %1630 = vrot.lane.b32.xlu1 %v7978_v24, %s6739_s20  ;;  %1802 = vrot.lane.b32.xlu0 %v7940_v9, %s6734_s27 }
 0x821   :  { %1811 = vrot.lane.b32.xlu1 %v7978_v24, %s6741_s21  ;;  %1510 = vrot.lane.b32.xlu0 %v8018_v16, %s6734_s27 }
 0x825   :  { %1754 = vrot.lane.b32.xlu1 %v8018_v16, %s6731_s5  ;;  %1793 = vrot.lane.b32.xlu0 %v7940_v9, %s6736_s16 }
 0x829   :  { %1741 = vrot.lane.b32.xlu1 %v7940_v9, %s6735_s28  ;;  %1488 = vrot.lane.b32.xlu0 %v8018_v16, %s6736_s16 }
 0x82d   :  { %1732 = vrot.lane.b32.xlu1 %v7940_v9, %s14030_s30  ;;  %1784 = vrot.lane.b32.xlu0 %v7940_v9, %s6737_s4 }
 0x82f   :  { %v8048_v33 = vpop.permute.xlu0 %1748  ;;  %v8050_v35 = vpop.permute.xlu1 %1773 }
 0x831   :  { %1378 = vrot.lane.b32.xlu1 %v8018_v16, %s14030_s30  ;;  %1775 = vrot.lane.b32.xlu0 %v7940_v9, %s6732_s26 }
 0x833   :  { %v8056_v36 = vpop.permute.xlu0 %1418  ;;  %v8058_v37 = vpop.permute.xlu1 %1440 }
 0x835   :  { %1723 = vrot.lane.b32.xlu1 %v7940_v9, %s6710_s29  ;;  %1669 = vrot.lane.b32.xlu0 %v7940_v9, %s6738_s19 }
 0x837   :  { %v8064_v38 = vpop.permute.xlu0 %1800  ;;  %v8066_v39 = vpop.permute.xlu1 %1752 }
 0x839   :  { %1357 = vrot.lane.b32.xlu1 %v8018_v16, %s6710_s29  ;;  %1634 = vrot.lane.b32.xlu0 %v8018_v16, %s6739_s20 }
 0x83b   :  { %v8072_v40 = vpop.permute.xlu0 %1506  ;;  %v8074_v42 = vpop.permute.xlu1 %1739 }
 0x83d   :  { %1466 = vrot.lane.b32.xlu1 %v8018_v16, %s6737_s4  ;;  %1532 = vrot.lane.b32.xlu0 %v8018_v16, %s13909_s13 }
 0x83f   :  { %v8080_v43 = vpop.permute.xlu0 %1791  ;;  %v8082_v44 = vpop.permute.xlu1 %1396 }
 0x841   :  { %1700 = vrot.lane.b32.xlu1 %v7940_v9, %s6740_s1  ;;  %1607 = vrot.lane.b32.xlu0 %v7940_v9, %s6723_s22 }
 0x843   :  { %v8088_v46 = vpop.permute.xlu0 %1484  ;;  %v8090_v47 = vpop.permute.xlu1 %1730 }
 0x845   :  { %1696 = vrot.lane.b32.xlu1 %v8018_v16, %s6740_s1  ;;  %1819 = vrot.lane.b32.xlu0 %v7940_v9, %s6741_s21 }
 0x847   :  { %v8096_v48 = vpop.permute.xlu0 %1782  ;;  %v8098_v49 = vpop.permute.xlu1 %1374 }
 0x849   :  { %1444 = vrot.lane.b32.xlu1 %v8018_v16, %s6732_s26  ;;  %1402 = vrot.lane.b32.xlu0 %v8100_v45, %s6735_s28 }
 0x84b   :  { %v8106_v50 = vpop.permute.xlu0 %1659  ;;  %v8108_v26 = vpop.permute.xlu1 %1721 }
 0x84c   :  { %14042 = vst [vmem:[#allocation13_spill] sm:$0xff] %v8106_v50 }
 0x84d   :  { %1665 = vrot.lane.b32.xlu1 %v8018_v16, %s6738_s19  ;;  %1512 = vrot.lane.b32.xlu0 %v8100_v45, %s6734_s27 }
 0x84f   :  { %v8114_v51 = vpop.permute.xlu0 %1550  ;;  %v8116_v52 = vpop.permute.xlu1 %1353 }
 0x850   :  { %14043 = vst [vmem:[#allocation14_spill] sm:$0xff] %v8114_v51 }
 0x851   :  { %1554 = vrot.lane.b32.xlu1 %v8018_v16, %s13911_s25  ;;  %1490 = vrot.lane.b32.xlu0 %v8100_v45, %s6736_s16 }
 0x853   :  { %v8122_v53 = vpop.permute.xlu0 %1632  ;;  %v8124_v54 = vpop.permute.xlu1 %1462 }
 0x854   :  { %14044 = vst [vmem:[#allocation15_spill] sm:$0xff] %v8122_v53 }
 0x855   :  { %1638 = vrot.lane.b32.xlu1 %v7940_v9, %s6739_s20  ;;  %1698 = vrot.lane.b32.xlu0 %v8100_v45, %s6740_s1 }
 0x857   :  { %v8130_v56 = vpop.permute.xlu0 %1597  ;;  %v8132_v57 = vpop.permute.xlu1 %1694 }
 0x858   :  { %14045 = vst [vmem:[#allocation16_spill] sm:$0xff] %v8130_v56 }
 0x859   :  { %1603 = vrot.lane.b32.xlu1 %v8018_v16, %s6723_s22  ;;  %1446 = vrot.lane.b32.xlu0 %v8100_v45, %s6732_s26 }
 0x85b   :  { %v8138_v58 = vpop.permute.xlu0 %1813  ;;  %v8140_v60 = vpop.permute.xlu1 %1690 }
 0x85c   :  { %14046 = vst [vmem:[#allocation17_spill] sm:$0xff] %v8138_v58 }
 0x85d   :  { %1576 = vrot.lane.b32.xlu1 %v8018_v16, %s14029_s2  ;;  %1556 = vrot.lane.b32.xlu0 %v8100_v45, %s13911_s25 }
 0x85f   :  { %v8146_v61 = vpop.permute.xlu0 %1750  ;;  %v8148_v23 = vpop.permute.xlu1 %1663 }
 0x861   :  { %1815 = vrot.lane.b32.xlu1 %v8018_v16, %s6741_s21  ;;  %1636 = vrot.lane.b32.xlu0 %v8100_v45, %s6739_s20 }
 0x863   :  { %v8154_v63 = vpop.permute.xlu0 %1508  ;;  %v8156_v29 = vpop.permute.xlu1 %1628 }
 0x864   :  { %14047 = vst [vmem:[#allocation18_spill] sm:$0xff] %v8154_v63  ;;  %14048 = vst [vmem:[#allocation19_spill] sm:$0xff] %v8156_v29 }
 0x865   :  { %1756 = vrot.lane.b32.xlu1 %v8100_v45, %s6731_s5  ;;  %1578 = vrot.lane.b32.xlu0 %v8100_v45, %s14029_s2 }
 0x867   :  { %v8162_v30 = vpop.permute.xlu0 %1486  ;;  %v8164_v2 = vpop.permute.xlu1 %1528 }
 0x868   :  { %14049 = vst [vmem:[#allocation20_spill] sm:$0xff] %v8162_v30  ;;  %14050 = vst [vmem:[#allocation21_spill] sm:$0xff] %v8164_v2 }
 0x869   :  { %1424 = vrot.lane.b32.xlu1 %v8100_v45, %s6733_s6  ;;  %1760 = vrot.lane.b32.xlu0 %v8166_v4, %s6731_s5 }
 0x86b   :  { %v8172_v5 = vpop.permute.xlu0 %1464  ;;  %v8174_v6 = vpop.permute.xlu1 %1601 }
 0x86c   :  { %14052 = vst [vmem:[#allocation23_spill] sm:$0xff] %v8174_v6 }
 0x86d   :  { %1380 = vrot.lane.b32.xlu1 %v8100_v45, %s14030_s30  ;;  %1743 = vrot.lane.b32.xlu0 %v7946_v32, %s6735_s28 }
 0x86f   :  { %v8180_v10 = vpop.permute.xlu0 %1692  ;;  %v8182_v28 = vpop.permute.xlu1 %1572 }
 0x870   :  { %14053 = vst [vmem:[#allocation24_spill] sm:$0xff] %v8182_v28 }
 0x871   :  { %1359 = vrot.lane.b32.xlu1 %v8100_v45, %s6710_s29  ;;  %1804 = vrot.lane.b32.xlu0 %v7946_v32, %s6734_s27 }
 0x873   :  { %v8188_v22 = vpop.permute.xlu0 %1661  ;;  %v8190_v25 = vpop.permute.xlu1 %1809 }
 0x874   :  { %14054 = vst [vmem:[#allocation25_spill] sm:$0xff] %v8190_v25 }
 0x875   :  { %1468 = vrot.lane.b32.xlu1 %v8100_v45, %s6737_s4  ;;  %1514 = vrot.lane.b32.xlu0 %v8166_v4, %s6734_s27 }
 0x877   :  { %v8196_v31 = vpop.permute.xlu0 %1530  ;;  %v8198_v13 = vpop.permute.xlu1 %1442 }
 0x878   :  { %14055 = vst [vmem:[#allocation26_spill] sm:$0xff] %v8196_v31  ;;  %2084 = vmatprep.subr.mxu1 %v8198_v13  ;;  %v8204_v19 = vsel %vm1452_vm8, %v8058_v37, %v8198_v13  ;;  %v1779_v50 = vsel %vm1452_vm8, %v8198_v13, %v8050_v35 }
 0x879   :  { %2085 = vmatpush1.msra.mxu1 %v8204_v19  ;;  %1667 = vrot.lane.b32.xlu1 %v8100_v45, %s6738_s19 }
 0x87a   :  { %1795 = vrot.lane.b32.xlu0 %v7946_v32, %s6736_s16 }
 0x87b   :  { %v8211_v14 = vpop.permute.xlu0 %1599  ;;  %v8213_v15 = vpop.permute.xlu1 %1398 }
 0x87c   :  { %14056 = vst [vmem:[#allocation27_spill] sm:$0xff] %v8211_v14  ;;  %v8478_v13 = vsel %vm1408_vm13, %v8082_v44, %v8213_v15  ;;  %v1806_v44 = vsel %vm1518_vm12, %v8154_v63, %v8064_v38 }
 0x87d   :  { %1534 = vrot.lane.b32.xlu1 %v8100_v45, %s13909_s13 }
 0x87e   :  { %1492 = vrot.lane.b32.xlu0 %v8166_v4, %s6736_s16 }
 0x87f   :  { %v8219_v18 = vpop.permute.xlu0 %1574  ;;  %v8221_v20 = vpop.permute.xlu1 %1420 }
 0x880   :  { %14057 = vst [vmem:[#allocation28_spill] sm:$0xff] %v8219_v18 }
 0x881   :  { %1605 = vrot.lane.b32.xlu1 %v8100_v45, %s6723_s22 }
 0x882   :  { %1786 = vrot.lane.b32.xlu0 %v7946_v32, %s6737_s4 }
 0x883   :  { %v8227_v62 = vpop.permute.xlu1 %1376  ;;  %v8229_v21 = vpop.permute.xlu0 %1758 }
 0x885   :  { %1817 = vrot.lane.b32.xlu1 %v8100_v45, %s6741_s21 }
 0x886   :  { %1470 = vrot.lane.b32.xlu0 %v8166_v4, %s6737_s4 }
 0x887   :  { %v8235_v27 = vpop.permute.xlu1 %1355  ;;  %v8237_v7 = vpop.permute.xlu0 %1400 }
 0x889   :  { %1764 = vrot.lane.b32.xlu1 %v7946_v32, %s6731_s5 }
 0x88a   :  { %1777 = vrot.lane.b32.xlu0 %v7946_v32, %s6732_s26 }
 0x88b   :  { %v8243_v9 = vpop.permute.xlu1 %1552  ;;  %v8245_v8 = vpop.permute.xlu0 %1422 }
 0x88c   :  { %14058 = vst [vmem:[#allocation29_spill] sm:$0xff] %v8243_v9 }
 0x88d   :  { %1404 = vrot.lane.b32.xlu1 %v8166_v4, %s6735_s28 }
 0x88e   :  { %1671 = vrot.lane.b32.xlu0 %v8166_v4, %s6738_s19 }
 0x88f   :  { %v8251_v11 = vpop.permute.xlu1 %1630  ;;  %v8253_v37 = vpop.permute.xlu0 %1802 }
 0x890   :  { %14059 = vst [vmem:[#allocation30_spill] sm:$0xff] %v8251_v11 }
 0x891   :  { %1426 = vrot.lane.b32.xlu1 %v8166_v4, %s6733_s6 }
 0x892   :  { %1644 = vrot.lane.b32.xlu0 %v7946_v32, %s6739_s20 }
 0x893   :  { %v8259_v41 = vpop.permute.xlu1 %1811  ;;  %v8261_v17 = vpop.permute.xlu0 %1510 }
 0x894   :  { %14060 = vst [vmem:[#allocation31_spill] sm:$0xff] %v8259_v41 }
 0x895   :  { %1734 = vrot.lane.b32.xlu1 %v7946_v32, %s14030_s30 }
 0x896   :  { %1609 = vrot.lane.b32.xlu0 %v8166_v4, %s6723_s22 }
 0x897   :  { %v8267_v34 = vpop.permute.xlu1 %1754  ;;  %v8269_v1 = vpop.permute.xlu0 %1793 }
 0x899   :  { %1382 = vrot.lane.b32.xlu1 %v8166_v4, %s14030_s30 }
 0x89a   :  { %1825 = vrot.lane.b32.xlu0 %v7946_v32, %s6741_s21 }
 0x89b   :  { %v8275_v3 = vpop.permute.xlu1 %1741  ;;  %v8277_v12 = vpop.permute.xlu0 %1488 }
 0x89d   :  { %1725 = vrot.lane.b32.xlu1 %v7946_v32, %s6710_s29 }
 0x89e   :  { %1428 = vrot.lane.b32.xlu0 %v8279_v59, %s6733_s6 }
 0x89f   :  { %v8285_v25 = vpop.permute.xlu1 %1732  ;;  %v8287_v41 = vpop.permute.xlu0 %1784 }
 0x8a1   :  { %1361 = vrot.lane.b32.xlu1 %v8166_v4, %s6710_s29 }
 0x8a2   :  { %1516 = vrot.lane.b32.xlu0 %v8279_v59, %s6734_s27 }
 0x8a3   :  { %v8293_v58 = vpop.permute.xlu1 %1378  ;;  %v8295_v55 = vpop.permute.xlu0 %1775 }
 0x8a5   :  { %1706 = vrot.lane.b32.xlu1 %v7946_v32, %s6740_s1 }
 0x8a6   :  { %1494 = vrot.lane.b32.xlu0 %v8279_v59, %s6736_s16 }
 0x8a7   :  { %v8301_v2 = vpop.permute.xlu1 %1723  ;;  %v8303_v31 = vpop.permute.xlu0 %1669 }
 0x8a9   :  { %1702 = vrot.lane.b32.xlu1 %v8166_v4, %s6740_s1 }
 0x8aa   :  { %1472 = vrot.lane.b32.xlu0 %v8279_v59, %s6737_s4 }
 0x8ab   :  { %v8309_v28 = vpop.permute.xlu1 %1357  ;;  %v8311_v18 = vpop.permute.xlu0 %1634 }
 0x8ac   :  { %14062 = vst [vmem:[#allocation33_spill] sm:$0xff] %v8309_v28  ;;  %14063 = vst [vmem:[#allocation34_spill] sm:$0xff] %v8311_v18 }
 0x8ad   :  { %1448 = vrot.lane.b32.xlu1 %v8166_v4, %s6732_s26 }
 0x8ae   :  { %1704 = vrot.lane.b32.xlu0 %v8279_v59, %s6740_s1 }
 0x8af   :  { %v8317_v51 = vpop.permute.xlu1 %1466  ;;  %v8319_v9 = vpop.permute.xlu0 %1532 }
 0x8b0   :  { %14064 = vst [vmem:[#allocation35_spill] sm:$0xff] %v8319_v9 }
 0x8b1   :  { %1675 = vrot.lane.b32.xlu1 %v7946_v32, %s6738_s19 }
 0x8b2   :  { %1450 = vrot.lane.b32.xlu0 %v8279_v59, %s6732_s26 }
 0x8b3   :  { %v8325_v56 = vpop.permute.xlu1 %1700  ;;  %v8327_v0 = vpop.permute.xlu0 %1607 }
 0x8b4   :  { %14065 = vst [vmem:[#allocation36_spill] sm:$0xff] %v8327_v0 }
 0x8b5   :  { %1640 = vrot.lane.b32.xlu1 %v8166_v4, %s6739_s20 }
 0x8b6   :  { %1673 = vrot.lane.b32.xlu0 %v8279_v59, %s6738_s19 }
 0x8b7   :  { %v8333_v14 = vpop.permute.xlu1 %1696  ;;  %v8335_v6 = vpop.permute.xlu0 %1819 }
 0x8b8   :  { %14066 = vst [vmem:[#allocation37_spill] sm:$0xff] %v8335_v6 }
 0x8b9   :  { %1536 = vrot.lane.b32.xlu1 %v8166_v4, %s13909_s13 }
 0x8ba   :  { %1538 = vrot.lane.b32.xlu0 %v8279_v59, %s13909_s13  ;;  %s6747_s13 = smov 97  }
 0x8bb   :  { %v8341_v9 = vpop.permute.xlu1 %1444  ;;  %v8343_v24 = vpop.permute.xlu0 %1402 }
 0x8bc   :  { %14067 = vst [vmem:[#allocation38_spill] sm:$0xff] %v8341_v9 }
 0x8bd   :  { %1613 = vrot.lane.b32.xlu1 %v7946_v32, %s6723_s22 }
 0x8be   :  { %1611 = vrot.lane.b32.xlu0 %v8279_v59, %s6723_s22 }
 0x8bf   :  { %v8349_v16 = vpop.permute.xlu1 %1665  ;;  %v8351_v0 = vpop.permute.xlu0 %1512 }
 0x8c1   :  { %1580 = vrot.lane.b32.xlu1 %v8166_v4, %s14029_s2 }
 0x8c2   :  { %1582 = vrot.lane.b32.xlu0 %v8279_v59, %s14029_s2 }
 0x8c3   :  { %v8357_v6 = vpop.permute.xlu1 %1554  ;;  %v8359_v45 = vpop.permute.xlu0 %1490 }
 0x8c4   :  { %14068 = vst [vmem:[#allocation39_spill] sm:$0xff] %v8357_v6 }
 0x8c5   :  { %1558 = vrot.lane.b32.xlu1 %v8166_v4, %s13911_s25 }
 0x8c6   :  { %1560 = vrot.lane.b32.xlu0 %v8279_v59, %s13911_s25  ;;  %s6743_s25 = smov 96  }
 0x8c7   :  { %v8365_v32 = vpop.permute.xlu1 %1638  ;;  %v8367_v29 = vpop.permute.xlu0 %1698 }
 0x8c8   :  { %14069 = vst [vmem:[#allocation40_spill] sm:$0xff] %v8365_v32 }
 0x8c9   :  { %1821 = vrot.lane.b32.xlu1 %v8166_v4, %s6741_s21 }
 0x8ca   :  { %1903 = vrot.lane.b32.xlu0 %v8050_v35, %s6741_s21 }
 0x8cb   :  { %v8373_v11 = vpop.permute.xlu1 %1603  ;;  %v8375_v6 = vpop.permute.xlu0 %1446 }
 0x8cc   :  { %14070 = vst [vmem:[#allocation41_spill] sm:$0xff] %v8373_v11  ;;  %14071 = vst [vmem:[#allocation42_spill] sm:$0xff] %v8375_v6  ;;  %v1768_v6 = vsel %vm1766_vm11, %v8146_v61, %v8066_v39 }
 0x8cd   :  { %1762 = vrot.lane.b32.xlu1 %v8279_v59, %s6731_s5 }
 0x8ce   :  { %1867 = vrot.lane.b32.xlu0 %v8074_v42, %s6741_s21 }
 0x8cf   :  { %v8381_v53 = vpop.permute.xlu1 %1576  ;;  %v8383_v18 = vpop.permute.xlu0 %1556 }
 0x8d0   :  { %14072 = vst [vmem:[#allocation43_spill] sm:$0xff] %v8381_v53  ;;  %14073 = vst [vmem:[#allocation44_spill] sm:$0xff] %v8383_v18 }
 0x8d1   :  { %1406 = vrot.lane.b32.xlu1 %v8279_v59, %s6735_s28 }
 0x8d2   :  { %1957 = vrot.lane.b32.xlu0 %v8064_v38, %s6741_s21 }
 0x8d3   :  { %v8389_v4 = vpop.permute.xlu1 %1815  ;;  %v8391_v11 = vpop.permute.xlu0 %1636 }
 0x8d4   :  { %14074 = vst [vmem:[#allocation45_spill] sm:$0xff] %v8389_v4  ;;  %14075 = vst [vmem:[#allocation46_spill] sm:$0xff] %v8391_v11 }
 0x8d5   :  { %1384 = vrot.lane.b32.xlu1 %v8279_v59, %s14030_s30 }
 0x8d6   :  { %1849 = vrot.lane.b32.xlu0 %v8090_v47, %s6741_s21 }
 0x8d7   :  { %v8397_v32 = vpop.permute.xlu1 %1756  ;;  %v8399_v53 = vpop.permute.xlu0 %1578 }
 0x8d8   :  { %14076 = vst [vmem:[#allocation47_spill] sm:$0xff] %v8399_v53 }
 0x8d9   :  { %1363 = vrot.lane.b32.xlu1 %v8279_v59, %s6710_s29 }
 0x8da   :  { %1939 = vrot.lane.b32.xlu0 %v8080_v43, %s6741_s21 }
 0x8db   :  { %v8405_v18 = vpop.permute.xlu1 %1424  ;;  %v8407_v4 = vpop.permute.xlu0 %1760 }
 0x8dc   :  { %14077 = vst [vmem:[#allocation48_spill] sm:$0xff] %v8407_v4 }
 0x8dd   :  { %1642 = vrot.lane.b32.xlu1 %v8279_v59, %s6739_s20 }
 0x8de   :  { %1831 = vrot.lane.b32.xlu0 %v8108_v26, %s6741_s21 }
 0x8df   :  { %v8413_v11 = vpop.permute.xlu1 %1380  ;;  %v8415_v9 = vpop.permute.xlu0 %1743 }
 0x8e1   :  { %1823 = vrot.lane.b32.xlu1 %v8279_v59, %s6741_s21 }
 0x8e2   :  { %1921 = vrot.lane.b32.xlu0 %v8096_v48, %s6741_s21 }
 0x8e3   :  { %v8421_v53 = vpop.permute.xlu1 %1359  ;;  %v8423_v4 = vpop.permute.xlu0 %1804 }
 0x8e4   :  { %14078 = vst [vmem:[#allocation49_spill] sm:$0xff] %v8421_v53  ;;  %v1767_v53 = vsel %vm1766_vm11, %v8048_v33, %v8146_v61 }
 0x8e5   :  { %1885 = vrot.lane.b32.xlu1 %v8066_v39, %s6741_s21 }
 0x8e6   :  { %1883 = vrot.lane.b32.xlu0 %v1768_v6, %s6741_s21 }
 0x8e7   :  { %v8431_v28 = vpop.permute.xlu1 %1468  ;;  %v8433_v59 = vpop.permute.xlu0 %1514 }
 0x8e8   :  { %14079 = vst [vmem:[#allocation50_spill] sm:$0xff] %v8433_v59  ;;  %v8450_v59 = vsel %vm1518_vm12, %v8072_v40, %v8154_v63  ;;  %v8466_v40 = vsel %vm1496_vm14, %v8088_v46, %v8162_v30  ;;  %v1727_v63 = vsel %vm13966_vm10, %v8235_v27, %v8108_v26 }
 0x8e9   :  { %1901 = vrot.lane.b32.xlu1 %v1779_v50, %s6741_s21  ;;  %14080 = vst [vmem:[#allocation51_spill] sm:$0xff] %v8450_v59  ;;  %v1745_v50 = vsel %vm1408_vm13, %v8213_v15, %v8074_v42  ;;  %14082 = vst [vmem:[#allocation53_spill] sm:$0xff] %v8466_v40  ;;  %v8483_v42 = vsel %vm1474_vm15, %v8124_v54, %v8172_v5 }
 0x8ea   :  { %1881 = vrot.lane.b32.xlu0 %v1767_v53, %s6741_s21  ;;  %14084 = vst [vmem:[#allocation55_spill] sm:$0xff] %v8483_v42 }
 0x8eb   :  { %v8443_v39 = vpop.permute.xlu1 %1667 }
 0x8ec   :  { %v8445_v6 = vpop.permute.xlu0 %1795 }
 0x8ed   :  { %1899 = vrot.lane.b32.xlu1 %v8204_v19, %s6741_s21 }
 0x8ee   :  { %1953 = vrot.lane.b32.xlu0 %v8450_v59, %s6741_s21 }
 0x8ef   :  { %v8456_v33 = vpop.permute.xlu1 %1534 }
 0x8f0   :  { %14081 = vst [vmem:[#allocation52_spill] sm:$0xff] %v8456_v33  ;;  %v8458_v35 = vpop.permute.xlu0 %1492 }
 0x8f1   :  { %1865 = vrot.lane.b32.xlu1 %v1745_v50, %s6741_s21 }
 0x8f2   :  { %1935 = vrot.lane.b32.xlu0 %v8466_v40, %s6741_s21  ;;  %v1797_v40 = vsel %vm1496_vm14, %v8162_v30, %v8080_v43  ;;  %v1788_v30 = vsel %vm1474_vm15, %v8172_v5, %v8096_v48  ;;  %v1746_v48 = vsel %vm1408_vm13, %v8343_v24, %v8275_v3 }
 0x8f3   :  { %v8471_v53 = vpop.permute.xlu1 %1605 }
 0x8f4   :  { %14083 = vst [vmem:[#allocation54_spill] sm:$0xff] %v8471_v53  ;;  %v8473_v61 = vpop.permute.xlu0 %1786 }
 0x8f5   :  { %1863 = vrot.lane.b32.xlu1 %v8478_v13, %s6741_s21 }
 0x8f6   :  { %1917 = vrot.lane.b32.xlu0 %v8483_v42, %s6741_s21  ;;  %v8516_v42 = vsel %vm1386_vm0, %v8098_v49, %v8227_v62 }
 0x8f7   :  { %v8489_v46 = vpop.permute.xlu1 %1817 }
 0x8f8   :  { %14085 = vst [vmem:[#allocation56_spill] sm:$0xff] %v8489_v46  ;;  %v8491_v19 = vpop.permute.xlu0 %1470  ;;  %v1736_v46 = vsel %vm1386_vm0, %v8227_v62, %v8090_v47 }
 0x8f9   :  { %1955 = vrot.lane.b32.xlu1 %v1806_v44, %s6741_s21 }
 0x8fa   :  { %1891 = vrot.lane.b32.xlu0 %v8229_v21, %s6741_s21 }
 0x8fb   :  { %v8499_v54 = vpop.permute.xlu1 %1764 }
 0x8fc   :  { %v8501_v50 = vpop.permute.xlu0 %1777 }
 0x8fd   :  { %1847 = vrot.lane.b32.xlu1 %v1736_v46, %s6741_s21 }
 0x8fe   :  { %1963 = vrot.lane.b32.xlu0 %v8253_v37, %s6741_s21 }
 0x8ff   :  { %v8509_v38 = vpop.permute.xlu1 %1404 }
 0x900   :  { %v8511_v44 = vpop.permute.xlu0 %1671 }
 0x901   :  { %1845 = vrot.lane.b32.xlu1 %v8516_v42, %s6741_s21 }
 0x902   :  { %1855 = vrot.lane.b32.xlu0 %v8285_v25, %s6741_s21 }
 0x903   :  { %v1427_v47 = vpop.permute.xlu1 %1426 }
 0x904   :  { %v8522_v46 = vpop.permute.xlu0 %1644 }
 0x905   :  { %1937 = vrot.lane.b32.xlu1 %v1797_v40, %s6741_s21  ;;  %v8547_v40 = vsel %vm13966_vm10, %v8116_v52, %v8235_v27 }
 0x906   :  { %1945 = vrot.lane.b32.xlu0 %v8269_v1, %s6741_s21 }
 0x907   :  { %v8530_v49 = vpop.permute.xlu1 %1734 }
 0x908   :  { %v8532_v59 = vpop.permute.xlu0 %1609 }
 0x909   :  { %14086 = vst [vmem:[#allocation57_spill] sm:$0xff] %v8532_v59  ;;  %1829 = vrot.lane.b32.xlu1 %v1727_v63, %s6741_s21 }
 0x90a   :  { %1837 = vrot.lane.b32.xlu0 %v8301_v2, %s6741_s21 }
 0x90b   :  { %v8540_v33 = vpop.permute.xlu1 %1382 }
 0x90c   :  { %v8542_v43 = vpop.permute.xlu0 %1825 }
 0x90d   :  { %14087 = vst [vmem:[#allocation58_spill] sm:$0xff] %v8542_v43  ;;  %1827 = vrot.lane.b32.xlu1 %v8547_v40, %s6741_s21  ;;  %v1432_v43 = vsel %vm1430_vm3, %v8245_v8, %v8405_v18 }
 0x90e   :  { %1927 = vrot.lane.b32.xlu0 %v8287_v41, %s6741_s21 }
 0x90f   :  { %v8553_v26 = vpop.permute.xlu1 %1725 }
 0x910   :  { %v1429_v63 = vpop.permute.xlu0 %1428 }
 0x911   :  { %2086 = vmatprep.subr.mxu1 %v1429_v63  ;;  %1919 = vrot.lane.b32.xlu1 %v1788_v30, %s6741_s21  ;;  %v1433_v52 = vsel %vm1430_vm3, %v1427_v47, %v1429_v63  ;;  %v1431_v30 = vsel %vm1430_vm3, %v8056_v36, %v8221_v20  ;;  %v1770_v47 = vsel %vm1766_vm11, %v8397_v32, %v8229_v21 }
 0x912   :  { %1909 = vrot.lane.b32.xlu0 %v8295_v55, %s6741_s21  ;;  %2087 = vmatpush1.msra.mxu1 %v1433_v52  ;;  %v8601_v21 = vsel %vm1518_vm12, %v8261_v17, %v8351_v0  ;;  %v1807_v52 = vsel %vm1518_vm12, %v8351_v0, %v8253_v37  ;;  %v1712_v37 = vsel %vm13905_vm6, %v8367_v29, %v8325_v56 }
 0x913   :  { %2088 = vmatprep.subr.mxu1 %v8405_v18  ;;  %v8566_v53 = vpop.permute.xlu1 %1361  ;;  %v1710_v56 = vsel %vm13905_vm6, %v8180_v10, %v8132_v57 }
 0x914   :  { %v8568_v59 = vpop.permute.xlu0 %1516  ;;  %2089 = vmatpush1.msra.mxu1 %v1432_v43  ;;  %v8588_v43 = vsel %vm1408_vm13, %v8237_v7, %v8343_v24 }
 0x915   :  { %2090 = vmatprep.subr.mxu1 %v8221_v20  ;;  %1873 = vrot.lane.b32.xlu1 %v8275_v3, %s6741_s21  ;;  %v1769_v20 = vsel %vm1766_vm11, %v8267_v34, %v8397_v32  ;;  %v8614_v34 = vsel %vm1496_vm14, %v8277_v12, %v8359_v45  ;;  %v1711_v12 = vsel %vm13905_vm6, %v8333_v14, %v8367_v29 }
 0x916   :  { %1871 = vrot.lane.b32.xlu0 %v1746_v48, %s6741_s21  ;;  %2091 = vmatpush1.msra.mxu1 %v1431_v30  ;;  %v1709_v29 = vsel %vm13905_vm6, %v8140_v60, %v8180_v10  ;;  %v1681_v60 = vsel %vm13903_vm7, %v8443_v39, %v8303_v31  ;;  %v1679_v31 = vsel %vm13903_vm7, %v8188_v22, %v8148_v23 }
 0x917   :  { %v1707_v18 = vpop.permute.xlu1 %1706 }
 0x918   :  { %v8580_v8 = vpop.permute.xlu0 %1494 }
 0x919   :  { %1889 = vrot.lane.b32.xlu1 %v1770_v47, %s6741_s21  ;;  %v8635_v47 = vsel %vm1474_vm15, %v8317_v51, %v8431_v28  ;;  %v8651_v51 = vsel %vm1386_vm0, %v8293_v58, %v8413_v11 }
 0x91a   :  { %1869 = vrot.lane.b32.xlu0 %v8588_v43, %s6741_s21 }
 0x91b   :  { %v1703_v3 = vpop.permute.xlu1 %1702 }
 0x91c   :  { %v8593_v36 = vpop.permute.xlu0 %1472 }
 0x91d   :  { %1887 = vrot.lane.b32.xlu1 %v1769_v20, %s6741_s21  ;;  %v1680_v20 = vsel %vm13903_vm7, %v8349_v16, %v8443_v39 }
 0x91e   :  { %1959 = vrot.lane.b32.xlu0 %v8601_v21, %s6741_s21 }
 0x91f   :  { %v8606_v7 = vpop.permute.xlu1 %1448 }
 0x920   :  { %v1705_v63 = vpop.permute.xlu0 %1704 }
 0x921   :  { %1961 = vrot.lane.b32.xlu1 %v1807_v52, %s6741_s21  ;;  %v1714_v17 = vsel %vm13905_vm6, %v1705_v63, %v1707_v18  ;;  %v1713_v32 = vsel %vm13905_vm6, %v1703_v3, %v1705_v63  ;;  %v1737_v18 = vsel %vm1386_vm0, %v8413_v11, %v8285_v25  ;;  %v14088_v63 = vld [vmem:[#allocation13_spill] sm:$0xff]  ;;  %vm1971_vm6 = vcmask 621568  }
 0x922   :  { %1941 = vrot.lane.b32.xlu0 %v8614_v34, %s6741_s21  ;;  %2155 = vmatprep.subr.mxu0 %v1714_v17  ;;  %v1678_v52 = vsel %vm13903_vm7, %v14088_v63, %v8188_v22  ;;  %v14090_v22 = vld [vmem:[#allocation33_spill] sm:$0xff]  ;;  %v8749_v63 = vld [vmem:[%s13821_s7 + $0x8] sm:$0xff] }
 0x923   :  { %2156 = vmatpush1.msra.mxu0 %v1713_v32  ;;  %v1676_v48 = vpop.permute.xlu1 %1675  ;;  %14093 = vst [vmem:[#allocation13_spill] sm:$0xff] %v8749_v63  ;;  %2148 = vmatprep.mubr.f32.mxu1 %v8749_v63 }
 0x924   :  { %v8624_v30 = vpop.permute.xlu0 %1450  ;;  %2157 = vmatprep.subr.mxu0 %v1712_v37 }
 0x925   :  { %2158 = vmatpush1.msra.mxu0 %v1711_v12  ;;  %1853 = vrot.lane.b32.xlu1 %v1737_v18, %s6741_s21  ;;  %v1789_v12 = vsel %vm1474_vm15, %v8431_v28, %v8287_v41 }
 0x926   :  { %1923 = vrot.lane.b32.xlu0 %v8635_v47, %s6741_s21  ;;  %2159 = vmatprep.subr.mxu0 %v1710_v56 }
 0x927   :  { %2160 = vmatpush1.msra.mxu0 %v1709_v29  ;;  %v8646_v25 = vpop.permute.xlu1 %1640  ;;  %v14091_v29 = vld [vmem:[#allocation42_spill] sm:$0xff] }
 0x928   :  { %v1674_v14 = vpop.permute.xlu0 %1673 }
 0x929   :  { %1851 = vrot.lane.b32.xlu1 %v8651_v51, %s6741_s21  ;;  %v1683_v57 = vsel %vm13903_vm7, %v1674_v14, %v1676_v48  ;;  %v1682_v3 = vsel %vm13903_vm7, %v8511_v44, %v1674_v14  ;;  %v1798_v44 = vsel %vm1496_vm14, %v8359_v45, %v8269_v1  ;;  %v14089_v1 = vld [vmem:[#allocation49_spill] sm:$0xff]  ;;  %v1780_v14 = vsel %vm1452_vm8, %v14091_v29, %v8295_v55 }
 0x92a   :  { %1879 = vrot.lane.b32.xlu0 %v8415_v9, %s6741_s21  ;;  %2161 = vmatprep.subr.mxu0 %v1683_v57  ;;  %v1728_v17 = vsel %vm13966_vm10, %v14089_v1, %v8301_v2  ;;  %v8699_v37 = vsel %vm13966_vm10, %v14090_v22, %v14089_v1  ;;  %vm13959_vm7 = vcmask 760832  }
 0x92b   :  { %2162 = vmatpush1.msra.mxu0 %v1682_v3  ;;  %v8663_v58 = vpop.permute.xlu1 %1536  ;;  %v14092_v3 = vld [vmem:[#allocation38_spill] sm:$0xff] }
 0x92c   :  { %v8665_v10 = vpop.permute.xlu0 %1538  ;;  %2163 = vmatprep.subr.mxu0 %v1681_v60  ;;  %v8730_v60 = vsel %vm1452_vm8, %v14092_v3, %v14091_v29 }
 0x92d   :  { %2164 = vmatpush1.msra.mxu0 %v1680_v20  ;;  %1943 = vrot.lane.b32.xlu1 %v1798_v44, %s6741_s21 }
 0x92e   :  { %1969 = vrot.lane.b32.xlu0 %v8423_v4, %s6741_s21  ;;  %2165 = vmatprep.subr.mxu0 %v1679_v31 }
 0x92f   :  { %2166 = vmatpush1.msra.mxu0 %v1678_v52  ;;  %v8682_v16 = vpop.permute.xlu1 %1613 }
 0x930   :  { %v8684_v39 = vpop.permute.xlu0 %1611 }
 0x931   :  { %1835 = vrot.lane.b32.xlu1 %v1728_v17, %s6741_s21  ;;  %v14094_v17 = vld [vmem:[#allocation48_spill] sm:$0xff] }
 0x932   :  { %1861 = vrot.lane.b32.xlu0 %v8530_v49, %s6741_s21 }
 0x933   :  { %v8692_v23 = vpop.permute.xlu1 %1580 }
 0x934   :  { %v8694_v32 = vpop.permute.xlu0 %1582 }
 0x935   :  { %1833 = vrot.lane.b32.xlu1 %v8699_v37, %s6741_s21 }
 0x936   :  { %1951 = vrot.lane.b32.xlu0 %v8445_v6, %s6741_s21 }
 0x937   :  { %v8705_v2 = vpop.permute.xlu1 %1558 }
 0x938   :  { %v8707_v48 = vpop.permute.xlu0 %1560 }
 0x939   :  { %1925 = vrot.lane.b32.xlu1 %v1789_v12, %s6741_s21 }
 0x93a   :  { %1843 = vrot.lane.b32.xlu0 %v8553_v26, %s6741_s21 }
 0x93b   :  { %v8715_v18 = vpop.permute.xlu1 %1821 }
 0x93c   :  { %v8717_v56 = vpop.permute.xlu0 %1903 }
 0x93d   :  { %1907 = vrot.lane.b32.xlu1 %v1780_v14, %s6741_s21  ;;  %v8799_v14 = vsel %vm1496_vm14, %v8458_v35, %v8580_v8  ;;  %v14098_v35 = vld [vmem:[#allocation34_spill] sm:$0xff] }
 0x93e   :  { %1933 = vrot.lane.b32.xlu0 %v8473_v61, %s6741_s21 }
 0x93f   :  { %v1763_v57 = vpop.permute.xlu1 %1762 }
 0x940   :  { %v8725_v41 = vpop.permute.xlu0 %1867  ;;  %v1772_v31 = vsel %vm1766_vm11, %v1763_v57, %v8499_v54 }
 0x941   :  { %1905 = vrot.lane.b32.xlu1 %v8730_v60, %s6741_s21 }
 0x942   :  { %1915 = vrot.lane.b32.xlu0 %v8501_v50, %s6741_s21 }
 0x943   :  { %v1407_v55 = vpop.permute.xlu1 %1406 }
 0x944   :  { %v8736_v20 = vpop.permute.xlu0 %1957  ;;  %2092 = vmatprep.subr.mxu1 %v1407_v55  ;;  %v1411_v44 = vsel %vm1408_vm13, %v8509_v38, %v1407_v55 }
 0x945   :  { %1897 = vrot.lane.b32.xlu1 %v8499_v54, %s6741_s21  ;;  %2093 = vmatpush1.msra.mxu1 %v1411_v44  ;;  %v1747_v54 = vsel %vm1408_vm13, %v1407_v55, %v8415_v9  ;;  %v14095_v9 = vld [vmem:[#allocation50_spill] sm:$0xff] }
 0x946   :  { %1895 = vrot.lane.b32.xlu0 %v1772_v31, %s6741_s21  ;;  %2094 = vmatprep.subr.mxu1 %v8343_v24  ;;  %v1771_v24 = vsel %vm1766_vm11, %v14094_v17, %v1763_v57  ;;  %v8773_v12 = vsel %vm1518_vm12, %v14095_v9, %v8568_v59  ;;  %v1621_v17 = vsel %vm13904_vm5, %v8684_v39, %v8682_v16  ;;  %v14106_v16 = vld [vmem:[#allocation36_spill] sm:$0xff] }
 0x947   :  { %2095 = vmatpush1.msra.mxu1 %v8588_v43  ;;  %v1385_v52 = vpop.permute.xlu1 %1384 }
 0x948   :  { %v8753_v38 = vpop.permute.xlu0 %1849  ;;  %2096 = vmatprep.subr.mxu1 %v8213_v15  ;;  %v1389_v43 = vsel %vm1386_vm0, %v8540_v33, %v1385_v52  ;;  %v1738_v55 = vsel %vm1386_vm0, %v1385_v52, %v8530_v49  ;;  %v14102_v49 = vld [vmem:[#allocation32_spill] sm:$0xff] }
 0x949   :  { %1877 = vrot.lane.b32.xlu1 %v1747_v54, %s6741_s21  ;;  %2097 = vmatpush1.msra.mxu1 %v8478_v13 }
 0x94a   :  { %1893 = vrot.lane.b32.xlu0 %v1771_v24, %s6741_s21  ;;  %2098 = vmatprep.subr.mxu1 %v1385_v52  ;;  %v14103_v24 = vld [vmem:[#allocation22_spill] sm:$0xff] }
 0x94b   :  { %2099 = vmatpush1.msra.mxu1 %v1389_v43  ;;  %v8765_v22 = vpop.permute.xlu1 %1363 }
 0x94c   :  { %v8767_v15 = vpop.permute.xlu0 %1939  ;;  %2100 = vmatprep.subr.mxu1 %v8413_v11  ;;  %v1808_v11 = vsel %vm1518_vm12, %v8568_v59, %v8423_v4  ;;  %v14096_v4 = vld [vmem:[#allocation40_spill] sm:$0xff] }
 0x94d   :  { %1875 = vrot.lane.b32.xlu1 %v1411_v44, %s6741_s21  ;;  %2101 = vmatpush1.msra.mxu1 %v8651_v51  ;;  %v8790_v51 = vsel %vm13966_vm10, %v8566_v53, %v8765_v22  ;;  %v14097_v53 = vld [vmem:[#allocation46_spill] sm:$0xff] }
 0x94e   :  { %1965 = vrot.lane.b32.xlu0 %v8773_v12, %s6741_s21  ;;  %2102 = vmatprep.subr.mxu1 %v8227_v62  ;;  %v1649_v3 = vsel %vm13902_vm9, %v14098_v35, %v14097_v53  ;;  %v14100_v44 = vld [vmem:[#allocation30_spill] sm:$0xff] }
 0x94f   :  { %2103 = vmatpush1.msra.mxu1 %v8516_v42  ;;  %v1643_v33 = vpop.permute.xlu1 %1642 }
 0x950   :  { %v8781_v13 = vpop.permute.xlu0 %1831  ;;  %2104 = vmatprep.subr.mxu1 %v8765_v22  ;;  %v1652_v62 = vsel %vm13902_vm9, %v1643_v33, %v8522_v46  ;;  %v1651_v42 = vsel %vm13902_vm9, %v8646_v25, %v1643_v33  ;;  %v1650_v46 = vsel %vm13902_vm9, %v14097_v53, %v14096_v4  ;;  %v14105_v33 = vld [vmem:[#allocation12_spill] sm:$0xff]  ;;  %v14108_v53 = vld [vmem:[#allocation11_spill] sm:$0xff] }
 0x951   :  { %1967 = vrot.lane.b32.xlu1 %v1808_v11, %s6741_s21  ;;  %2105 = vmatpush1.msra.mxu1 %v8790_v51  ;;  %v8851_v11 = vsel %vm1452_vm8, %v8606_v7, %v8624_v30  ;;  %v14110_v7 = vld [vmem:[#allocation10_spill] sm:$0xff] }
 0x952   :  { %1947 = vrot.lane.b32.xlu0 %v8799_v14, %s6741_s21  ;;  %2167 = vmatprep.subr.mxu0 %v1652_v62  ;;  %v14107_v62 = vld [vmem:[#allocation54_spill] sm:$0xff] }
 0x953   :  { %2106 = vmatprep.subr.mxu1 %v14089_v1  ;;  %2168 = vmatpush1.msra.mxu0 %v1651_v42  ;;  %v8809_v25 = vpop.permute.xlu1 %1823  ;;  %v8821_v1 = vsel %vm1474_vm15, %v8491_v19, %v8593_v36  ;;  %v1619_v42 = vsel %vm13904_vm5, %v14107_v62, %v14106_v16 }
 0x954   :  { %v8811_v57 = vpop.permute.xlu0 %1921  ;;  %2107 = vmatpush1.msra.mxu1 %v8699_v37  ;;  %2169 = vmatprep.subr.mxu0 %v1650_v46  ;;  %v14099_v37 = vld [vmem:[#allocation15_spill] sm:$0xff] }
 0x955   :  { %2108 = vmatprep.subr.mxu1 %v8235_v27  ;;  %2170 = vmatpush1.msra.mxu0 %v1649_v3  ;;  %v1648_v31 = vsel %vm13902_vm9, %v14100_v44, %v14099_v37  ;;  %v14101_v27 = vld [vmem:[#allocation19_spill] sm:$0xff]  ;;  %v14113_v37 = vld [vmem:[#allocation9_spill] sm:$0xff] }
 0x956   :  { %1929 = vrot.lane.b32.xlu0 %v8821_v1, %s6741_s21  ;;  %1859 = vrot.lane.b32.xlu1 %v1738_v55, %s6741_s21  ;;  %v1647_v19 = vsel %vm13902_vm9, %v14101_v27, %v14100_v44  ;;  %v14111_v3 = vld [vmem:[#allocation23_spill] sm:$0xff]  ;;  %vm1562_vm9 = vcmask 769024   ;;  %v14114_v44 = vld [vmem:[#allocation16_spill] sm:$0xff] }
 0x957   :  { %2109 = vmatpush1.msra.mxu1 %v8547_v40  ;;  %2171 = vmatprep.subr.mxu0 %v1648_v31  ;;  %v8835_v54 = vpop.permute.xlu1 %1885  ;;  %v14104_v40 = vld [vmem:[#allocation57_spill] sm:$0xff]  ;;  %v14112_v55 = vld [vmem:[#allocation27_spill] sm:$0xff]  ;;  %v14115_v27 = vld [vmem:[#allocation44_spill] sm:$0xff] }
 0x958   :  { %2110 = vmatprep.subr.mxu1 %v14102_v49  ;;  %2172 = vmatpush1.msra.mxu0 %v1647_v19  ;;  %v8838_v52 = vpop.permute.xlu0 %1883  ;;  %v1620_v9 = vsel %vm13904_vm5, %v14104_v40, %v8684_v39  ;;  %v14109_v39 = vld [vmem:[#allocation41_spill] sm:$0xff]  ;;  %v1616_v31 = vsel %vm13904_vm5, %v14114_v44, %v14112_v55  ;;  %v1799_v19 = vsel %vm1496_vm14, %v8580_v8, %v8445_v6  ;;  %v14116_v49 = vld [vmem:[#allocation39_spill] sm:$0xff]  ;;  %v14118_v6 = vld [vmem:[#allocation14_spill] sm:$0xff] }
 0x959   :  { %2111 = vmatpush1.msra.mxu1 %v14103_v24  ;;  %2173 = vmatprep.subr.mxu0 %v1621_v17  ;;  %v1618_v46 = vsel %vm13904_vm5, %v14109_v39, %v14107_v62  ;;  %v1564_v17 = vsel %vm1562_vm9, %v14116_v49, %v14115_v27  ;;  %v14119_v62 = vld [vmem:[#allocation47_spill] sm:$0xff]  ;;  %v14126_v44 = vld [vmem:[#allocation21_spill] sm:$0xff] }
 0x95a   :  { %2112 = vmatprep.subr.mxu1 %v14105_v33  ;;  %2174 = vmatpush1.msra.mxu0 %v1620_v9  ;;  %v1587_v9 = vsel %vm13959_vm7, %v8692_v23, %v8694_v32  ;;  %v14117_v33 = vld [vmem:[#allocation29_spill] sm:$0xff]  ;;  %v1729_v23 = vsel %vm13966_vm10, %v8765_v22, %v8553_v26  ;;  %v14124_v26 = vld [vmem:[#allocation35_spill] sm:$0xff] }
 0x95b   :  { %1911 = vrot.lane.b32.xlu0 %v8851_v11, %s6741_s21  ;;  %1857 = vrot.lane.b32.xlu1 %v1389_v43, %s6741_s21  ;;  %v1902_v4 = vpop.permute.xlu1 %1901  ;;  %v1617_v43 = vsel %vm13904_vm5, %v14112_v55, %v14111_v3  ;;  %v1563_v16 = vsel %vm1562_vm9, %v14118_v6, %v14117_v33  ;;  %vm13908_vm5 = vcmask 875520   ;;  %v14122_v3 = vld [vmem:[#allocation24_spill] sm:$0xff] }
 0x95c   :  { %2113 = vmatpush1.msra.mxu1 %v14108_v53  ;;  %2175 = vmatprep.subr.mxu0 %v1619_v42  ;;  %v8863_v35 = vpop.permute.xlu0 %1881  ;;  %v14120_v42 = vld [vmem:[#allocation43_spill] sm:$0xff]  ;;  %v1543_v39 = vsel %vm13908_vm5, %v8663_v58, %v8665_v10  ;;  %v1565_v58 = vsel %vm1562_vm9, %v8705_v2, %v8707_v48  ;;  %v2003_v2 = vsel %vm1971_vm6, %v1902_v4, %v8717_v56 }
 0x95d   :  { %2114 = vmatprep.subr.mxu1 %v14110_v7  ;;  %2176 = vmatpush1.msra.mxu0 %v1618_v46  ;;  %v1586_v53 = vsel %vm13959_vm7, %v14120_v42, %v14119_v62  ;;  %v14121_v7 = vld [vmem:[#allocation28_spill] sm:$0xff]  ;;  %v1790_v56 = vsel %vm1474_vm15, %v8593_v36, %v8473_v61 }
 0x95e   :  { %2115 = vmatpush1.msra.mxu1 %v14113_v37  ;;  %2177 = vmatprep.subr.mxu0 %v1617_v43  ;;  %v1585_v55 = vsel %vm13959_vm7, %v14122_v3, %v14121_v7  ;;  %v14123_v43 = vld [vmem:[#allocation52_spill] sm:$0xff]  ;;  %v14125_v37 = vld [vmem:[#allocation26_spill] sm:$0xff] }
 0x95f   :  { %2116 = vmatprep.subr.mxu1 %v14115_v27  ;;  %2178 = vmatpush1.msra.mxu0 %v1616_v31  ;;  %v1900_v24 = vpop.permute.xlu1 %1899  ;;  %v1542_v22 = vsel %vm13908_vm5, %v14124_v26, %v14123_v43  ;;  %v1541_v31 = vsel %vm13908_vm5, %v14126_v44, %v14125_v37  ;;  %vm13913_vm5 = vcmask 719872  }
 0x960   :  { %1949 = vrot.lane.b32.xlu1 %v1799_v19, %s6741_s21  ;;  %2117 = vmatpush2.msra.mxu1 %v1564_v17  ;;  %v8881_v40 = vpop.permute.xlu0 %1953  ;;  %v2002_v19 = vsel %vm1971_vm6, %v1900_v24, %v1902_v4  ;;  %v14129_v4 = vld [vmem:[#allocation51_spill] sm:$0xff]  ;;  %v14130_v17 = vld [vmem:[#allocation20_spill] sm:$0xff] }
 0x961   :  { %2179 = vmatprep.subr.mxu0 %v8694_v32  ;;  %2118 = vmatprep.subr.mxu1 %v14117_v33 }
 0x962   :  { %2180 = vmatpush1.msra.mxu0 %v1587_v9  ;;  %2119 = vmatpush2.msra.mxu1 %v1563_v16 }
 0x963   :  { %2181 = vmatprep.subr.mxu0 %v14119_v62  ;;  %2120 = vmatprep.subr.mxu1 %v8665_v10  ;;  %v8899_v32 = vpop.permute.xlu1 %1865 }
 0x964   :  { %2182 = vmatpush1.msra.mxu0 %v1586_v53  ;;  %1841 = vrot.lane.b32.xlu1 %v1729_v23, %s6741_s21  ;;  %v8905_v46 = vpop.permute.xlu0 %1935 }
 0x965   :  { %2121 = vmatpush2.msra.mxu1 %v1543_v39  ;;  %2183 = vmatprep.subr.mxu0 %v14121_v7 }
 0x966   :  { %2122 = vmatprep.subr.mxu1 %v14123_v43  ;;  %2184 = vmatpush1.msra.mxu0 %v1585_v55 }
 0x967   :  { %2123 = vmatpush2.msra.mxu1 %v1542_v22  ;;  %2185 = vmatprep.subr.mxu0 %v8707_v48  ;;  %v8919_v10 = vpop.permute.xlu1 %1863  ;;  %v8934_v48 = vld [vmem:[%s13821_s7 + $0x18] sm:$0xff] }
 0x968   :  { %2124 = vmatprep.subr.mxu1 %v14125_v37  ;;  %2186 = vmatpush1.msra.mxu0 %v1565_v58  ;;  %v8925_v27 = vpop.permute.xlu0 %1917  ;;  %14127 = vst [vmem:[#allocation49_spill] sm:$0xff] %v8934_v48 }
 0x969   :  { %1839 = vrot.lane.b32.xlu1 %v8790_v51, %s6741_s21  ;;  %2125 = vmatpush2.msra.mxu1 %v1541_v31 }
 0x96a   :  { %2187 = vmatprep.subr.mxu0 %v2003_v2  ;;  %2126 = vmatprep.subr.mxu1 %v8568_v59  ;;  %v14128_v59 = vld [vmem:[#allocation18_spill] sm:$0xff] }
 0x96b   :  { %2188 = vmatpush2.msra.mxu0 %v2002_v19  ;;  %2127 = vmatpush2.msra.mxu1 %v8773_v12  ;;  %v8939_v49 = vpop.permute.xlu1 %1955 }
 0x96c   :  { %2128 = vmatprep.subr.mxu1 %v8351_v0  ;;  %v8945_v51 = vpop.permute.xlu0 %1891  ;;  %2219 = vmatprep.mubr.f32.mxu0 %v8934_v48  ;;  %v1781_v0 = vsel %vm1452_vm8, %v8624_v30, %v8501_v50 }
 0x96d   :  { %1931 = vrot.lane.b32.xlu1 %v1790_v56, %s6741_s21  ;;  %2129 = vmatpush2.msra.mxu1 %v8601_v21 }
 0x96e   :  { %2130 = vmatprep.subr.mxu1 %v14128_v59 }
 0x96f   :  { %2131 = vmatpush2.msra.mxu1 %v14129_v4  ;;  %v8952_v12 = vpop.permute.xlu1 %1847 }
 0x970   :  { %2132 = vmatprep.subr.mxu1 %v8580_v8  ;;  %v8958_v61 = vpop.permute.xlu0 %1963  ;;  %v14131_v8 = vld [vmem:[#allocation53_spill] sm:$0xff] }
 0x971   :  { %1913 = vrot.lane.b32.xlu1 %v1781_v0, %s6741_s21  ;;  %2133 = vmatpush2.msra.mxu1 %v8799_v14 }
 0x972   :  { %2134 = vmatprep.subr.mxu1 %v8359_v45  ;;  %v14132_v45 = vld [vmem:[#allocation55_spill] sm:$0xff] }
 0x973   :  { %2135 = vmatpush2.msra.mxu1 %v8614_v34  ;;  %v8964_v21 = vpop.permute.xlu1 %1845 }
 0x974   :  { %2136 = vmatprep.subr.mxu1 %v14130_v17  ;;  %v8967_v24 = vpop.permute.xlu0 %1855 }
 0x975   :  { %2137 = vmatpush2.msra.mxu1 %v14131_v8 }
 0x976   :  { %2138 = vmatprep.subr.mxu1 %v8593_v36 }
 0x977   :  { %2139 = vmatpush2.msra.mxu1 %v8821_v1  ;;  %v8972_v50 = vpop.permute.xlu1 %1937 }
 0x978   :  { %2140 = vmatprep.subr.mxu1 %v8431_v28  ;;  %v8975_v14 = vpop.permute.xlu0 %1945  ;;  %v1342_v28 = vld [vmem:[%s13821_s7] sm:$0xff] }
 0x979   :  { %2141 = vmatpush2.msra.mxu1 %v8635_v47  ;;  %v14133_v47 = vmov 0.0  }
 0x97a   :  { %2142 = vmatprep.subr.mxu1 %v8172_v5 }
 0x97b   :  { %2143 = vmatpush2.msra.mxu1 %v14132_v45  ;;  %v8980_v34 = vpop.permute.xlu1 %1829 }
 0x97c   :  { %2144 = vmatprep.subr.mxu1 %v8624_v30  ;;  %v8983_v9 = vpop.permute.xlu0 %1837 }
 0x97d   :  { %2145 = vmatpush2.msra.mxu1 %v8851_v11 }
 0x97e   :  { %2146 = vmatprep.subr.mxu1 %v14091_v29 }
 0x97f   :  { %2147 = vmatpush2.msra.mxu1 %v8730_v60  ;;  %v8991_v36 = vpop.permute.xlu1 %1827 }
 0x980   :  { %v8993_v5 = vpop.permute.xlu0 %1927  ;;  %2149 = vmatmul.mubr.f32.vlgmr.msra.gmra.mxu1 %v1342_v28 }
 0x981   :  { %2290 = vmatprep.mubr.f32.mxu1 %v14133_v47  ;;  %v1997_v47 = vsel %vm1971_vm6, %v8838_v52, %v8835_v54 }
 0x983   :  { %v8996_v30 = vpop.permute.xlu1 %1919 }
 0x984   :  { %v8998_v1 = vpop.permute.xlu0 %1909 }
 0x987   :  { %v1874_v11 = vpop.permute.xlu1 %1873 }
 0x988   :  { %v1872_v33 = vpop.permute.xlu0 %1871 }
 0x98b   :  { %v1890_v6 = vpop.permute.xlu1 %1889 }
 0x98c   :  { %v1870_v16 = vpop.permute.xlu0 %1869  ;;  %v1999_v28 = vsel %vm1971_vm6, %v1890_v6, %v8945_v51 }
 0x98f   :  { %v1888_v62 = vpop.permute.xlu1 %1887 }
 0x990   :  { %v1960_v42 = vpop.permute.xlu0 %1959  ;;  %v1998_v48 = vsel %vm1971_vm6, %v1888_v62, %v1890_v6 }
 0x993   :  { %v1962_v29 = vpop.permute.xlu1 %1961 }
 0x994   :  { %v9000_v53 = vpop.permute.xlu0 %1941 }
 0x997   :  { %v9002_v60 = vpop.permute.xlu1 %1853 }
 0x998   :  { %v9004_v23 = vpop.permute.xlu0 %1923 }
 0x99b   :  { %v9006_v39 = vpop.permute.xlu1 %1851 }
 0x99c   :  { %v1880_v7 = vpop.permute.xlu0 %1879 }
 0x99f   :  { %v9008_v3 = vpop.permute.xlu1 %1943 }
 0x9a0   :  { %v1970_v55 = vpop.permute.xlu0 %1969 }
 0x9a3   :  { %v9010_v43 = vpop.permute.xlu1 %1835 }
 0x9a4   :  { %v1862_v26 = vpop.permute.xlu0 %1861 }
 0x9a7   :  { %v9012_v22 = vpop.permute.xlu1 %1833 }
 0x9a8   :  { %v9014_v58 = vpop.permute.xlu0 %1951 }
 0x9ab   :  { %v9016_v37 = vpop.permute.xlu1 %1925 }
 0x9ac   :  { %v9018_v44 = vpop.permute.xlu0 %1843 }
 0x9af   :  { %v9020_v31 = vpop.permute.xlu1 %1907 }
 0x9b0   :  { %v9022_v2 = vpop.permute.xlu0 %1933 }
 0x9b3   :  { %v9024_v19 = vpop.permute.xlu1 %1905 }
 0x9b4   :  { %v9026_v56 = vpop.permute.xlu0 %1915 }
 0x9b7   :  { %v1898_v59 = vpop.permute.xlu1 %1897 }
 0x9b8   :  { %v1896_v4 = vpop.permute.xlu0 %1895 }
 0x9b9   :  { %v2001_v0 = vsel %vm1971_vm6, %v1896_v4, %v1898_v59  ;;  %v1996_v59 = vsel %vm1971_vm6, %v8863_v35, %v8838_v52  ;;  %v1991_v52 = vsel %vm1971_vm6, %v8899_v32, %v8725_v41  ;;  %v1990_v35 = vsel %vm1971_vm6, %v8919_v10, %v8899_v32 }
 0x9ba   :  { %2189 = vmatprep.subr.mxu0 %v2001_v0 }
 0x9bb   :  { %v1878_v17 = vpop.permute.xlu1 %1877 }
 0x9bc   :  { %v1894_v8 = vpop.permute.xlu0 %1893 }
 0x9bd   :  { %v2000_v45 = vsel %vm1971_vm6, %v1894_v8, %v1896_v4  ;;  %v1995_v4 = vsel %vm1971_vm6, %v1878_v17, %v1880_v7  ;;  %v1992_v8 = vsel %vm1971_vm6, %v1870_v16, %v1872_v33  ;;  %v1987_v16 = vsel %vm1971_vm6, %v9002_v60, %v8967_v24 }
 0x9be   :  { %2190 = vmatpush2.msra.mxu0 %v2000_v45 }
 0x9bf   :  { %2191 = vmatprep.subr.mxu0 %v1999_v28  ;;  %v1876_v63 = vpop.permute.xlu1 %1875  ;;  %v2010_v28 = vsel %vm1971_vm6, %v9004_v23, %v9016_v37  ;;  %v2008_v23 = vsel %vm1971_vm6, %v8925_v27, %v8996_v30  ;;  %v2005_v27 = vsel %vm1971_vm6, %v9020_v31, %v8998_v1  ;;  %v6678_v1 = vld [vmem:[%s13818_s10 + $0xa8] sm:$0x7f] }
 0x9c0   :  { %2192 = vmatpush2.msra.mxu0 %v1998_v48  ;;  %v1966_v0 = vpop.permute.xlu0 %1965  ;;  %v1994_v51 = vsel %vm1971_vm6, %v1876_v63, %v1878_v17  ;;  %v1993_v48 = vsel %vm1971_vm6, %v1872_v33, %v1874_v11  ;;  %v2023_v63 = vsel %vm1971_vm6, %v1962_v29, %v8958_v61  ;;  %v2021_v33 = vsel %vm1971_vm6, %v8939_v49, %v8736_v20  ;;  %v14136_v17 = vld [vmem:[#allocation56_spill] sm:$0xff] }
 0x9c1   :  { %2193 = vmatprep.subr.mxu0 %v1997_v47  ;;  %v2022_v47 = vsel %vm1971_vm6, %v1960_v42, %v1962_v29  ;;  %v2020_v61 = vsel %vm1971_vm6, %v8881_v40, %v8939_v49  ;;  %v1986_v20 = vsel %vm1971_vm6, %v9006_v39, %v9002_v60  ;;  %v1985_v40 = vsel %vm1971_vm6, %v8952_v12, %v8753_v38 }
 0x9c2   :  { %2194 = vmatpush2.msra.mxu0 %v1996_v59  ;;  %v1984_v49 = vsel %vm1971_vm6, %v8964_v21, %v8952_v12  ;;  %v2017_v60 = vsel %vm1971_vm6, %v9008_v3, %v8975_v14  ;;  %v2016_v12 = vsel %vm1971_vm6, %v9000_v53, %v9008_v3  ;;  %v2015_v39 = vsel %vm1971_vm6, %v8972_v50, %v8767_v15  ;;  %v14137_v59 = vld [vmem:[#allocation45_spill] sm:$0xff] }
 0x9c3   :  { %2195 = vmatprep.subr.mxu0 %v1995_v4  ;;  %v1968_v6 = vpop.permute.xlu1 %1967  ;;  %v2014_v14 = vsel %vm1971_vm6, %v8905_v46, %v8972_v50  ;;  %v1981_v53 = vsel %vm1971_vm6, %v9010_v43, %v8983_v9  ;;  %v1980_v3 = vsel %vm1971_vm6, %v9012_v22, %v9010_v43  ;;  %v1979_v46 = vsel %vm1971_vm6, %v8980_v34, %v8781_v13  ;;  %v14134_v43 = vld [vmem:[#allocation58_spill] sm:$0xff]  ;;  %v14139_v4 = vld [vmem:[#allocation31_spill] sm:$0xff] }
 0x9c4   :  { %2196 = vmatpush2.msra.mxu0 %v1994_v51  ;;  %v2025_v62 = vsel %vm1971_vm6, %v1968_v6, %v1970_v55  ;;  %v2024_v54 = vsel %vm1971_vm6, %v1966_v0, %v1968_v6  ;;  %v1948_v42 = vpop.permute.xlu0 %1947  ;;  %v1978_v50 = vsel %vm1971_vm6, %v8991_v36, %v8980_v34  ;;  %v1977_v22 = vsel %vm1971_vm6, %v8809_v25, %v14134_v43  ;;  %v14140_v6 = vld [vmem:[#allocation25_spill] sm:$0xff]  ;;  %v14148_v43 = vld [vmem:[#allocation4_spill] sm:$0xff] }
 0x9c5   :  { %2197 = vmatprep.subr.mxu0 %v1993_v48  ;;  %2236 = vmatprep.subr.mxu1 %v2025_v62  ;;  %v1976_v13 = vsel %vm1971_vm6, %v8715_v18, %v8809_v25  ;;  %v2011_v34 = vsel %vm1971_vm6, %v9016_v37, %v8993_v5  ;;  %v1974_v18 = vsel %vm1971_vm6, %v14137_v59, %v14136_v17  ;;  %v14138_v5 = vld [vmem:[#allocation17_spill] sm:$0xff]  ;;  %v1344_v37 = vld [vmem:[%s13821_s7 + $0x10] sm:$0xff] }
 0x9c6   :  { %2198 = vmatpush2.msra.mxu0 %v1992_v8  ;;  %2237 = vmatpush1.msra.mxu1 %v2024_v54  ;;  %v2009_v25 = vsel %vm1971_vm6, %v8996_v30, %v8811_v57  ;;  %v1973_v0 = vsel %vm1971_vm6, %v14139_v4, %v14138_v5  ;;  %v1972_v57 = vsel %vm1971_vm6, %v14140_v6, %v14139_v4  ;;  %v1346_v30 = vld [vmem:[%s13821_s7 + $0x20] sm:$0xff]  ;;  %v6679_v8 = vld [vmem:[%s13818_s10 + $0x98] sm:$0xff] }
 0x9c7   :  { %2199 = vmatprep.subr.mxu0 %v1991_v52  ;;  %2238 = vmatprep.subr.mxu1 %v2023_v63  ;;  %v2004_v54 = vsel %vm1971_vm6, %v9024_v19, %v9020_v31  ;;  %v6680_v31 = vld [vmem:[%s13818_s10 + $0x90] sm:$0xff]  ;;  %v14141_v19 = vmov 0.0   ;;  %v6681_v52 = vld [vmem:[%s13818_s10 + $0x80] sm:$0xff]  ;;  %v6682_v63 = vld [vmem:[%s13818_s10 + $0xb8] sm:$0x7f] }
 0x9c8   :  { %2200 = vmatpush2.msra.mxu0 %v1990_v35  ;;  %v1860_v11 = vpop.permute.xlu1 %1859  ;;  %2239 = vmatpush1.msra.mxu1 %v2022_v47  ;;  %v1930_v15 = vpop.permute.xlu0 %1929  ;;  %v14142_v35 = vld [vmem:[#allocation2_spill] sm:$0xff]  ;;  %v14143_v47 = vld [vmem:[#allocation5_spill] sm:$0xff] }
 0x9c9   :  { %v1989_v41 = vsel %vm1971_vm6, %v1860_v11, %v1862_v26  ;;  %2240 = vmatprep.subr.mxu1 %v2021_v33  ;;  %v6683_v33 = vld [vmem:[%s13818_s10 + $0x78] sm:$0xff] }
 0x9ca   :  { %2201 = vmatprep.subr.mxu0 %v1989_v41  ;;  %2241 = vmatpush1.msra.mxu1 %v2020_v61  ;;  %v6684_v41 = vld [vmem:[%s13818_s10 + $0x68] sm:$0xff]  ;;  %v6685_v61 = vld [vmem:[%s13818_s10 + $0xa0] sm:$0xff] }
 0x9cd   :  { %v1858_v32 = vpop.permute.xlu1 %1857  ;;  %v1912_v51 = vpop.permute.xlu0 %1911 }
 0x9ce   :  { %v1988_v10 = vsel %vm1971_vm6, %v1858_v32, %v1860_v11  ;;  %v2297_v11 = vmul.f32 %v14143_v47, %v14142_v35  ;;  %v14144_v32 = vld [vmem:[#allocation6_spill] sm:$0xff] }
 0x9cf   :  { %2202 = vmatpush2.msra.mxu0 %v1988_v10 }
 0x9d0   :  { %2203 = vmatprep.subr.mxu0 %v1987_v16  ;;  %v2299_v10 = vadd.f32 %v2297_v11, %v14144_v32  ;;  %v6686_v16 = vld [vmem:[%s13818_s10 + $0x60] sm:$0xff] }
 0x9d1   :  { %2204 = vmatpush2.msra.mxu0 %v1986_v20  ;;  %v6687_v20 = vld [vmem:[%s13818_s10 + $0x50] sm:$0xff] }
 0x9d2   :  { %v1950_v29 = vpop.permute.xlu1 %1949  ;;  %2205 = vmatprep.subr.mxu0 %v1985_v40  ;;  %v6688_v40 = vld [vmem:[%s13818_s10 + $0x88] sm:$0xff] }
 0x9d3   :  { %2206 = vmatpush2.msra.mxu0 %v1984_v49  ;;  %v2019_v24 = vsel %vm1971_vm6, %v1950_v29, %v9014_v58  ;;  %v2018_v7 = vsel %vm1971_vm6, %v1948_v42, %v1950_v29  ;;  %v14145_v49 = vld [vmem:[#allocation3_spill] sm:$0xff] }
 0x9d4   :  { %2242 = vmatprep.subr.mxu1 %v2019_v24  ;;  %v14146_v42 = vld [vmem:[#allocation7_spill] sm:$0xff] }
 0x9d5   :  { %2243 = vmatpush1.msra.mxu1 %v2018_v7  ;;  %v2298_v29 = vmul.f32 %v14146_v42, %v14145_v49  ;;  %v6689_v24 = vld [vmem:[%s13818_s10 + $0x48] sm:$0xff]  ;;  %v6690_v7 = vld [vmem:[%s13818_s10 + $0x38] sm:$0xff] }
 0x9d6   :  { %2244 = vmatprep.subr.mxu1 %v2017_v60  ;;  %v1842_v38 = vpop.permute.xlu1 %1841  ;;  %v6691_v60 = vld [vmem:[%s13818_s10 + $0x70] sm:$0xff] }
 0x9d7   :  { %2245 = vmatpush1.msra.mxu1 %v2016_v12  ;;  %v1983_v21 = vsel %vm1971_vm6, %v1842_v38, %v9018_v44  ;;  %v14147_v12 = vld [vmem:[#allocation8_spill] sm:$0xff] }
 0x9d8   :  { %2207 = vmatprep.subr.mxu0 %v1983_v21  ;;  %2246 = vmatprep.subr.mxu1 %v2015_v39  ;;  %v2300_v21 = vadd.f32 %v2298_v29, %v14147_v12  ;;  %v6692_v39 = vld [vmem:[%s13818_s10 + $0x30] sm:$0xff] }
 0x9d9   :  { %2247 = vmatpush1.msra.mxu1 %v2014_v14  ;;  %v6693_v14 = vld [vmem:[%s13818_s10 + $0x20] sm:$0xff] }
 0x9db   :  { %v1840_v55 = vpop.permute.xlu1 %1839 }
 0x9dc   :  { %v1982_v26 = vsel %vm1971_vm6, %v1840_v55, %v1842_v38  ;;  %v2303_v38 = vmul.f32 0.2, %v2299_v10  ;;  %v6694_v55 = vld [vmem:[%s13818_s10 + $0x58] sm:$0xff] }
 0x9dd   :  { %2208 = vmatpush2.msra.mxu0 %v1982_v26  ;;  %v6695_v26 = vld [vmem:[%s13818_s10 + $0x18] sm:$0xff] }
 0x9de   :  { %2209 = vmatprep.subr.mxu0 %v1981_v53  ;;  %v6696_v53 = vld [vmem:[%s13818_s10 + $0x8] sm:$0xff] }
 0x9df   :  { %2210 = vmatpush2.msra.mxu0 %v1980_v3  ;;  %v1932_v58 = vpop.permute.xlu1 %1931  ;;  %v6697_v3 = vld [vmem:[%s13818_s10 + $0x40] sm:$0xff] }
 0x9e0   :  { %2211 = vmatprep.subr.mxu0 %v1979_v46  ;;  %v2013_v9 = vsel %vm1971_vm6, %v1932_v58, %v9022_v2  ;;  %v2012_v44 = vsel %vm1971_vm6, %v1930_v15, %v1932_v58  ;;  %v14135_v2 = vld [vmem:[#allocation37_spill] sm:$0xff]  ;;  %v6698_v15 = vld [vmem:[%s13818_s10] sm:$0xff]  ;;  %v2304_v46 = vmul.f32 0.2, %v2300_v21 }
 0x9e1   :  { %2212 = vmatpush2.msra.mxu0 %v1978_v50  ;;  %2248 = vmatprep.subr.mxu1 %v2013_v9  ;;  %v1975_v45 = vsel %vm1971_vm6, %v14136_v17, %v14135_v2  ;;  %v6699_v50 = vld [vmem:[%s13818_s10 + $0x28] sm:$0xff]  ;;  %v6700_v9 = vld [vmem:[%s13818_s10 + $0x10] sm:$0xff] }
 0x9e2   :  { %2213 = vmatprep.subr.mxu0 %v1977_v22  ;;  %2249 = vmatpush1.msra.mxu1 %v2012_v44  ;;  %v14149_v22 = vld [vmem:[#allocation13_spill] sm:$0xff] }
 0x9e3   :  { %2214 = vmatpush2.msra.mxu0 %v1976_v13  ;;  %2250 = vmatprep.subr.mxu1 %v2011_v34  ;;  %v1914_v36 = vpop.permute.xlu1 %1913  ;;  %v14150_v13 = vld [vmem:[#allocation49_spill] sm:$0xff] }
 0x9e4   :  { %2215 = vmatprep.subr.mxu0 %v1975_v45  ;;  %2251 = vmatpush1.msra.mxu1 %v2010_v28  ;;  %v2007_v48 = vsel %vm1971_vm6, %v1914_v36, %v9026_v56  ;;  %v2006_v62 = vsel %vm1971_vm6, %v1912_v51, %v1914_v36  ;;  %v6677_v56 = vld [vmem:[%s13818_s10 + $0xb0] sm:$0x7f]  ;;  %s14155_s10 = smov 94  }
 0x9e5   :  { %2216 = vmatpush2.msra.mxu0 %v1974_v18  ;;  %2252 = vmatprep.subr.mxu1 %v2009_v25 }
 0x9e6   :  { %2217 = vmatprep.subr.mxu0 %v1973_v0  ;;  %2253 = vmatpush1.msra.mxu1 %v2008_v23 }
 0x9e7   :  { %2218 = vmatpush2.msra.mxu0 %v1972_v57  ;;  %2254 = vmatprep.subr.mxu1 %v2007_v48 }
 0x9e8   :  { %2220 = vmatmul.mubr.f32.vlgmr.msra.gmra.mxu0 %v1344_v37  ;;  %2255 = vmatpush1.msra.mxu1 %v2006_v62 }
 0x9e9   :  { %6444 = vmatprep.subr.msk.mxu0 %vm1169_vm2, %v6677_v56  ;;  %2256 = vmatprep.subr.mxu1 %v2005_v27 }
 0x9ea   :  { %6445 = vmatpush1.msk.msra.mxu0 %vm1169_vm2, %v6678_v1  ;;  %2257 = vmatpush1.msra.mxu1 %v2004_v54 }
 0x9eb   :  { %2336 = vmatprep.subr.mxu0 %v6679_v8  ;;  %6443 = vmatmul.mubr.msk.f32.vlgmr.msra.gmra.mxu1 %vm13913_vm5, %v1346_v30  ;;  %vm2302_vm5 = vcmp.ge.f32.partialorder %v2300_v21, 0.0 }
 0x9ec   :  { %2337 = vmatpush1.msra.mxu0 %v6680_v31  ;;  %6542 = vmatprep.subr.mxu1 %v14141_v19  ;;  %v2306_v44 = vsel %vm2302_vm5, %v2300_v21, %v2304_v46  ;;  %vm14207_vm5 = vcmask 629760  }
 0x9ed   :  { %2338 = vmatprep.subr.mxu0 %v6681_v52  ;;  %6543 = vmatpush3.msk.msra.mxu1 %vm1169_vm2, %v6682_v63  ;;  %vm2301_vm2 = vcmp.ge.f32.partialorder %v2299_v10, 0.0 }
 0x9ee   :  { %2339 = vmatpush1.msra.mxu0 %v6683_v33  ;;  %6544 = vmatprep.subr.mxu1 %v14141_v19  ;;  %v2305_v58 = vsel %vm2301_vm2, %v2299_v10, %v2303_v38 }
 0x9ef   :  { %2340 = vmatprep.subr.mxu0 %v6684_v41  ;;  %6545 = vmatpush3.msra.mxu1 %v6685_v61 }
 0x9f0   :  { %2341 = vmatpush1.msra.mxu0 %v6686_v16  ;;  %6546 = vmatprep.subr.mxu1 %v14141_v19 }
 0x9f1   :  { %2342 = vmatprep.subr.mxu0 %v6687_v20  ;;  %6547 = vmatpush3.msra.mxu1 %v6688_v40 }
 0x9f2   :  { %2343 = vmatpush1.msra.mxu0 %v6689_v24  ;;  %6548 = vmatprep.subr.mxu1 %v14141_v19 }
 0x9f3   :  { %2344 = vmatprep.subr.mxu0 %v6690_v7  ;;  %6549 = vmatpush3.msra.mxu1 %v6691_v60 }
 0x9f4   :  { %2345 = vmatpush1.msra.mxu0 %v6692_v39  ;;  %6550 = vmatprep.subr.mxu1 %v14141_v19 }
 0x9f5   :  { %2346 = vmatprep.subr.mxu0 %v6693_v14  ;;  %6551 = vmatpush3.msra.mxu1 %v6694_v55 }
 0x9f6   :  { %2347 = vmatpush1.msra.mxu0 %v6695_v26  ;;  %6552 = vmatprep.subr.mxu1 %v14141_v19 }
 0x9f7   :  { %2348 = vmatprep.subr.mxu0 %v6696_v53  ;;  %6553 = vmatpush3.msra.mxu1 %v6697_v3 }
 0x9f8   :  { %2349 = vmatpush1.msra.mxu0 %v6698_v15  ;;  %2382 = vmatprep.mubr.f32.mxu0 %v14141_v19 }
 0x9f9   :  { %6554 = vmatprep.subr.mxu1 %v14141_v19  ;;  %6446 = vmatmul.mubr.msk.f32.vlgmr.msra.gmra.mxu0 %vm1056_vm1, %v2305_v58 }
 0x9fa   :  { %6555 = vmatpush3.msra.mxu1 %v6699_v50  ;;  %6558 = vmatprep.mubr.msk.f32.mxu1 %vm6730_vm4, %v14141_v19 }
 0x9fb   :  { %6556 = vmatprep.subr.mxu1 %v14141_v19  ;;  %2388 = vmatprep.mubr.f32.mxu0 %v14141_v19 }
 0x9fc   :  { %6557 = vmatpush3.msra.mxu1 %v6700_v9 }
 0x9fd   :  { %6559 = vmatmul.mubr.msk.f32.vlgmr.msra.gmra.mxu1 %vm1056_vm1, %v2305_v58  ;;  %6447 = vmatmul.mubr.msk.f32.gmra.mxu0 %vm1056_vm1, %v2306_v44 }
 0x9fe   :  { %6561 = vmatprep.mubr.msk.f32.mxu1 %vm6730_vm4, %v14141_v19  ;;  %2394 = vmatprep.mubr.f32.mxu0 %v14141_v19 }
 0xa01   :  { %6562 = vmatmul.mubr.msk.f32.gmra.mxu1 %vm1056_vm1, %v2306_v44  ;;  %6448 = vmatmul.mubr.msk.f32.gmra.mxu0 %vm1056_vm1, %v14148_v43 }
 0xa02   :  { %6564 = vmatprep.mubr.msk.f32.mxu1 %vm6730_vm4, %v14141_v19  ;;  %3262 = vmatprep.mubr.f32.mxu0 %v14149_v22 }
 0xa05   :  { %6565 = vmatmul.mubr.msk.f32.gmra.mxu1 %vm1056_vm1, %v14148_v43  ;;  %vm14208_vm1 = vmmov %vm14207_vm5 }
 0xa06   :  { %3333 = vmatprep.mubr.f32.mxu1 %v14150_v13  ;;  %vm14209_vm4 = vmmov %vm14208_vm1 }
 0xa07   :  { %vm14210_vm2 = vmmov %vm14208_vm1 }
 0xa40   :  { %v2150_v34 = vpop.f32.mrf.mxu1 }
 0xa42   :  { %v2152_v2 = vpop.f32.mrf.mxu1 }
 0xaa8   :  { %v2221_v36 = vpop.f32.mrf.mxu0 }
 0xaa9   :  { %v2222_v17 = vadd.f32 %v2221_v36, %v2150_v34 }
 0xaaa   :  { %v2223_v45 = vpop.f32.mrf.mxu0 }
 0xaab   :  { %v2224_v28 = vadd.f32 %v2223_v45, %v2152_v2  ;;  %v2292_v59 = vpop.f32.mrf.mxu1 }
 0xaac   :  { %v9261_v18 = vadd.f32 %v2292_v59, %v2222_v17 }
 0xaad   :  { %v2294_v25 = vpop.f32.mrf.mxu1 }
 0xaae   :  { %14151 = vst [vmem:[#allocation33_spill] sm:$0xff] %v9261_v18  ;;  %v9263_v5 = vadd.f32 %v2294_v25, %v2224_v28 }
 0xab0   :  { %14152 = vst [vmem:[#allocation42_spill] sm:$0xff] %v9263_v5 }
 0xab9   :  { %v9303_v57 = vpop.f32.mrf.mxu0 }
 0xaba   :  { %14154 = vst [vmem:[#allocation48_spill] sm:$0xff] %v9303_v57 }
 0xabb   :  { %v9351_v48 = vpop.f32.mrf.mxu0 }
 0xabd   :  { %v9265_v4 = vpop.f32.mrf.mxu1  ;;  %v9397_v35 = vpop.f32.mrf.mxu0 }
 0xabe   :  { %14153 = vst [vmem:[#allocation38_spill] sm:$0xff] %v9265_v4  ;;  %2872 = vrot.lane.b32.xlu0 %v9265_v4, %s6731_s5  ;;  %2892 = vrot.lane.b32.xlu1 %v9265_v4, %s6732_s26  ;;  %14158 = vst [vmem:[#allocation40_spill] sm:$0xff] %v9397_v35 }
 0xabf   :  { %v6560_v0 = vpop.f32.mrf.mxu1  ;;  %v9479_v14 = vpop.f32.mrf.mxu0 }
 0xac0   :  { %14165 = vst [vmem:[#allocation22_spill] sm:$0xff] %v9479_v14 }
 0xac1   :  { %v2472_v23 = vpop.f32.mrf.mxu1  ;;  %v9545_v17 = vpop.f32.mrf.mxu0 }
 0xac2   :  { %2859 = vrot.lane.b32.xlu0 %v9265_v4, %s6735_s28  ;;  %2919 = vrot.lane.b32.xlu1 %v9265_v4, %s6734_s27  ;;  %14169 = vst [vmem:[#allocation54_spill] sm:$0xff] %v9545_v17 }
 0xac3   :  { %v6563_v37 = vpop.f32.mrf.mxu1  ;;  %v9602_v19 = vpop.f32.mrf.mxu0 }
 0xac4   :  { %14178 = vst [vmem:[#allocation39_spill] sm:$0xff] %v9602_v19 }
 0xac5   :  { %v2477_v51 = vpop.f32.mrf.mxu1 }
 0xac6   :  { %2850 = vrot.lane.b32.xlu0 %v9265_v4, %s14030_s30  ;;  %2910 = vrot.lane.b32.xlu1 %v9265_v4, %s6736_s16 }
 0xac7   :  { %v6566_v6 = vpop.f32.mrf.mxu1 }
 0xaca   :  { %2841 = vrot.lane.b32.xlu0 %v9265_v4, %s6710_s29  ;;  %2901 = vrot.lane.b32.xlu1 %v9265_v4, %s6737_s4 }
 0xace   :  { %2815 = vrot.lane.b32.xlu0 %v9265_v4, %s6740_s1  ;;  %2755 = vrot.lane.b32.xlu1 %v9265_v4, %s6739_s20 }
 0xad2   :  { %2785 = vrot.lane.b32.xlu0 %v9265_v4, %s6738_s19  ;;  %2878 = vrot.lane.b32.xlu1 %v2472_v23, %s6731_s5 }
 0xad6   :  { %2725 = vrot.lane.b32.xlu0 %v9265_v4, %s6723_s22  ;;  %2921 = vrot.lane.b32.xlu1 %v2472_v23, %s6734_s27 }
 0xada   :  { %2861 = vrot.lane.b32.xlu0 %v2472_v23, %s6735_s28  ;;  %2912 = vrot.lane.b32.xlu1 %v2472_v23, %s6736_s16 }
 0xade   :  { %2852 = vrot.lane.b32.xlu0 %v2472_v23, %s14030_s30  ;;  %2903 = vrot.lane.b32.xlu1 %v2472_v23, %s6737_s4 }
 0xae2   :  { %2843 = vrot.lane.b32.xlu0 %v2472_v23, %s6710_s29  ;;  %2894 = vrot.lane.b32.xlu1 %v2472_v23, %s6732_s26 }
 0xae6   :  { %2821 = vrot.lane.b32.xlu0 %v2472_v23, %s6740_s1  ;;  %2791 = vrot.lane.b32.xlu1 %v2472_v23, %s6738_s19 }
 0xaea   :  { %2761 = vrot.lane.b32.xlu0 %v2472_v23, %s6739_s20  ;;  %2731 = vrot.lane.b32.xlu1 %v2472_v23, %s6723_s22 }
 0xaee   :  { %2938 = vrot.lane.b32.xlu1 %v2472_v23, %s6741_s21  ;;  %2571 = vrot.lane.b32.xlu0 %v9303_v57, %s6732_s26 }
 0xaf2   :  { %2868 = vrot.lane.b32.xlu1 %v9303_v57, %s6731_s5  ;;  %2884 = vrot.lane.b32.xlu0 %v2477_v51, %s6731_s5 }
 0xaf6   :  { %2863 = vrot.lane.b32.xlu1 %v2477_v51, %s6735_s28  ;;  %2529 = vrot.lane.b32.xlu0 %v9303_v57, %s6735_s28 }
 0xafa   :  { %2923 = vrot.lane.b32.xlu1 %v2477_v51, %s6734_s27  ;;  %2854 = vrot.lane.b32.xlu0 %v2477_v51, %s14030_s30 }
 0xafe   :  { %2550 = vrot.lane.b32.xlu1 %v9303_v57, %s6733_s6  ;;  %2508 = vrot.lane.b32.xlu0 %v9303_v57, %s14030_s30 }
 0xb02   :  { %2634 = vrot.lane.b32.xlu1 %v9303_v57, %s6734_s27  ;;  %2845 = vrot.lane.b32.xlu0 %v2477_v51, %s6710_s29 }
 0xb06   :  { %2914 = vrot.lane.b32.xlu1 %v2477_v51, %s6736_s16  ;;  %2487 = vrot.lane.b32.xlu0 %v9303_v57, %s6710_s29 }
 0xb0a   :  { %2613 = vrot.lane.b32.xlu1 %v9303_v57, %s6736_s16  ;;  %2827 = vrot.lane.b32.xlu0 %v2477_v51, %s6740_s1 }
 0xb0e   :  { %2905 = vrot.lane.b32.xlu1 %v2477_v51, %s6737_s4  ;;  %2592 = vrot.lane.b32.xlu0 %v9303_v57, %s6737_s4 }
 0xb12   :  { %2896 = vrot.lane.b32.xlu1 %v2477_v51, %s6732_s26  ;;  %2811 = vrot.lane.b32.xlu0 %v9303_v57, %s6740_s1 }
 0xb16   :  { %2781 = vrot.lane.b32.xlu1 %v9303_v57, %s6738_s19  ;;  %2797 = vrot.lane.b32.xlu0 %v2477_v51, %s6738_s19 }
 0xb1a   :  { %2767 = vrot.lane.b32.xlu1 %v2477_v51, %s6739_s20  ;;  %2751 = vrot.lane.b32.xlu0 %v9303_v57, %s6739_s20 }
 0xb1e   :  { %2676 = vrot.lane.b32.xlu1 %v9303_v57, %s14155_s10  ;;  %2737 = vrot.lane.b32.xlu0 %v2477_v51, %s6723_s22 }
 0xb22   :  { %2721 = vrot.lane.b32.xlu1 %v9303_v57, %s6723_s22  ;;  %2655 = vrot.lane.b32.xlu0 %v9303_v57, %s14156_s0 }
 0xb26   :  { %2944 = vrot.lane.b32.xlu1 %v2477_v51, %s6741_s21  ;;  %2697 = vrot.lane.b32.xlu0 %v9303_v57, %s14029_s2 }
 0xb2a   :  { %2531 = vrot.lane.b32.xlu0 %v9351_v48, %s6735_s28  ;;  %2573 = vrot.lane.b32.xlu1 %v9351_v48, %s6732_s26 }
 0xb2e   :  { %2552 = vrot.lane.b32.xlu0 %v9351_v48, %s6733_s6  ;;  %2870 = vrot.lane.b32.xlu1 %v9351_v48, %s6731_s5 }
 0xb30   :  { %v9361_v62 = vpop.permute.xlu0 %2872  ;;  %v9363_v27 = vpop.permute.xlu1 %2892 }
 0xb32   :  { %2510 = vrot.lane.b32.xlu0 %v9351_v48, %s14030_s30  ;;  %2636 = vrot.lane.b32.xlu1 %v9351_v48, %s6734_s27 }
 0xb34   :  { %v9369_v30 = vpop.permute.xlu0 %2859  ;;  %v9371_v54 = vpop.permute.xlu1 %2919 }
 0xb36   :  { %2489 = vrot.lane.b32.xlu0 %v9351_v48, %s6710_s29  ;;  %2615 = vrot.lane.b32.xlu1 %v9351_v48, %s6736_s16 }
 0xb38   :  { %v9377_v56 = vpop.permute.xlu0 %2850  ;;  %v9379_v1 = vpop.permute.xlu1 %2910 }
 0xb3a   :  { %2678 = vrot.lane.b32.xlu0 %v9351_v48, %s14155_s10  ;;  %2594 = vrot.lane.b32.xlu1 %v9351_v48, %s6737_s4 }
 0xb3c   :  { %v9385_v8 = vpop.permute.xlu0 %2841  ;;  %v9387_v31 = vpop.permute.xlu1 %2901 }
 0xb3e   :  { %2753 = vrot.lane.b32.xlu0 %v9351_v48, %s6739_s20  ;;  %2813 = vrot.lane.b32.xlu1 %v9351_v48, %s6740_s1 }
 0xb40   :  { %v9393_v52 = vpop.permute.xlu0 %2815  ;;  %v9395_v63 = vpop.permute.xlu1 %2755 }
 0xb41   :  { %14157 = vst [vmem:[#allocation50_spill] sm:$0xff] %v9395_v63 }
 0xb42   :  { %2783 = vrot.lane.b32.xlu1 %v9351_v48, %s6738_s19  ;;  %2874 = vrot.lane.b32.xlu0 %v9397_v35, %s6731_s5 }
 0xb44   :  { %v9403_v47 = vpop.permute.xlu0 %2785  ;;  %v9405_v11 = vpop.permute.xlu1 %2878 }
 0xb46   :  { %2657 = vrot.lane.b32.xlu1 %v9351_v48, %s14156_s0  ;;  %2512 = vrot.lane.b32.xlu0 %v9397_v35, %s14030_s30 }
 0xb48   :  { %v9411_v33 = vpop.permute.xlu0 %2725  ;;  %v9413_v41 = vpop.permute.xlu1 %2921 }
 0xb49   :  { %14159 = vst [vmem:[#allocation46_spill] sm:$0xff] %v9411_v33 }
 0xb4a   :  { %2723 = vrot.lane.b32.xlu1 %v9351_v48, %s6723_s22  ;;  %2491 = vrot.lane.b32.xlu0 %v9397_v35, %s6710_s29 }
 0xb4c   :  { %v9419_v61 = vpop.permute.xlu0 %2861  ;;  %v9421_v32 = vpop.permute.xlu1 %2912 }
 0xb4e   :  { %2699 = vrot.lane.b32.xlu1 %v9351_v48, %s14029_s2  ;;  %2596 = vrot.lane.b32.xlu0 %v9397_v35, %s6737_s4 }
 0xb50   :  { %v9427_v10 = vpop.permute.xlu0 %2852  ;;  %v9429_v16 = vpop.permute.xlu1 %2903 }
 0xb52   :  { %2533 = vrot.lane.b32.xlu1 %v9397_v35, %s6735_s28  ;;  %2817 = vrot.lane.b32.xlu0 %v9397_v35, %s6740_s1 }
 0xb54   :  { %v9435_v20 = vpop.permute.xlu0 %2843  ;;  %v9437_v40 = vpop.permute.xlu1 %2894 }
 0xb55   :  { %14160 = vst [vmem:[#allocation34_spill] sm:$0xff] %v9437_v40 }
 0xb56   :  { %2554 = vrot.lane.b32.xlu1 %v9397_v35, %s6733_s6  ;;  %2575 = vrot.lane.b32.xlu0 %v9397_v35, %s6732_s26 }
 0xb58   :  { %v9443_v49 = vpop.permute.xlu0 %2821  ;;  %v9445_v42 = vpop.permute.xlu1 %2791 }
 0xb5a   :  { %2638 = vrot.lane.b32.xlu1 %v9397_v35, %s6734_s27  ;;  %2787 = vrot.lane.b32.xlu0 %v9397_v35, %s6738_s19 }
 0xb5c   :  { %v9451_v29 = vpop.permute.xlu0 %2761  ;;  %v9453_v24 = vpop.permute.xlu1 %2731 }
 0xb5d   :  { %14161 = vst [vmem:[#allocation15_spill] sm:$0xff] %v9451_v29  ;;  %14162 = vst [vmem:[#allocation30_spill] sm:$0xff] %v9453_v24 }
 0xb5e   :  { %2617 = vrot.lane.b32.xlu1 %v9397_v35, %s6736_s16  ;;  %2680 = vrot.lane.b32.xlu0 %v9397_v35, %s14155_s10 }
 0xb60   :  { %v9459_v7 = vpop.permute.xlu1 %2938  ;;  %v9461_v60 = vpop.permute.xlu0 %2571 }
 0xb61   :  { %14163 = vst [vmem:[#allocation19_spill] sm:$0xff] %v9459_v7 }
 0xb62   :  { %2757 = vrot.lane.b32.xlu1 %v9397_v35, %s6739_s20  ;;  %2727 = vrot.lane.b32.xlu0 %v9397_v35, %s6723_s22 }
 0xb64   :  { %v9467_v38 = vpop.permute.xlu1 %2868  ;;  %v9469_v12 = vpop.permute.xlu0 %2884 }
 0xb65   :  { %14164 = vst [vmem:[#allocation32_spill] sm:$0xff] %v9469_v12 }
 0xb66   :  { %2659 = vrot.lane.b32.xlu1 %v9397_v35, %s14156_s0  ;;  %2701 = vrot.lane.b32.xlu0 %v9397_v35, %s14029_s2 }
 0xb68   :  { %v9475_v21 = vpop.permute.xlu1 %2863  ;;  %v9477_v39 = vpop.permute.xlu0 %2529 }
 0xb6a   :  { %2934 = vrot.lane.b32.xlu0 %v9397_v35, %s6741_s21  ;;  %2535 = vrot.lane.b32.xlu1 %v9479_v14, %s6735_s28 }
 0xb6c   :  { %v9485_v55 = vpop.permute.xlu1 %2923  ;;  %v9487_v26 = vpop.permute.xlu0 %2854 }
 0xb6e   :  { %2640 = vrot.lane.b32.xlu1 %v9479_v14, %s6734_s27  ;;  %2876 = vrot.lane.b32.xlu0 %v9479_v14, %s6731_s5 }
 0xb70   :  { %v9493_v53 = vpop.permute.xlu1 %2550  ;;  %v9495_v3 = vpop.permute.xlu0 %2508 }
 0xb72   :  { %2619 = vrot.lane.b32.xlu1 %v9479_v14, %s6736_s16  ;;  %2556 = vrot.lane.b32.xlu0 %v9479_v14, %s6733_s6 }
 0xb74   :  { %v9501_v15 = vpop.permute.xlu1 %2634  ;;  %v9503_v58 = vpop.permute.xlu0 %2845 }
 0xb76   :  { %2819 = vrot.lane.b32.xlu1 %v9479_v14, %s6740_s1  ;;  %2514 = vrot.lane.b32.xlu0 %v9479_v14, %s14030_s30 }
 0xb78   :  { %v9509_v46 = vpop.permute.xlu1 %2914  ;;  %v9511_v50 = vpop.permute.xlu0 %2487 }
 0xb7a   :  { %2577 = vrot.lane.b32.xlu1 %v9479_v14, %s6732_s26  ;;  %2493 = vrot.lane.b32.xlu0 %v9479_v14, %s6710_s29 }
 0xb7c   :  { %v9517_v9 = vpop.permute.xlu1 %2613  ;;  %v9519_v44 = vpop.permute.xlu0 %2827 }
 0xb7e   :  { %2682 = vrot.lane.b32.xlu1 %v9479_v14, %s14155_s10  ;;  %2598 = vrot.lane.b32.xlu0 %v9479_v14, %s6737_s4 }
 0xb80   :  { %v9525_v43 = vpop.permute.xlu1 %2905  ;;  %v9527_v22 = vpop.permute.xlu0 %2592 }
 0xb81   :  { %14166 = vst [vmem:[#allocation57_spill] sm:$0xff] %v9527_v22 }
 0xb82   :  { %2759 = vrot.lane.b32.xlu1 %v9479_v14, %s6739_s20  ;;  %2789 = vrot.lane.b32.xlu0 %v9479_v14, %s6738_s19 }
 0xb84   :  { %v9533_v13 = vpop.permute.xlu1 %2896  ;;  %v9535_v34 = vpop.permute.xlu0 %2811 }
 0xb85   :  { %14167 = vst [vmem:[#allocation12_spill] sm:$0xff] %v9533_v13 }
 0xb86   :  { %2703 = vrot.lane.b32.xlu1 %v9479_v14, %s14029_s2  ;;  %2661 = vrot.lane.b32.xlu0 %v9479_v14, %s14156_s0 }
 0xb88   :  { %v9541_v36 = vpop.permute.xlu1 %2781  ;;  %v9543_v2 = vpop.permute.xlu0 %2797 }
 0xb89   :  { %14168 = vst [vmem:[#allocation36_spill] sm:$0xff] %v9541_v36 }
 0xb8a   :  { %2729 = vrot.lane.b32.xlu0 %v9479_v14, %s6723_s22  ;;  %2880 = vrot.lane.b32.xlu1 %v9545_v17, %s6731_s5 }
 0xb8c   :  { %v9551_v45 = vpop.permute.xlu1 %2767  ;;  %v9553_v28 = vpop.permute.xlu0 %2751 }
 0xb8d   :  { %14170 = vst [vmem:[#allocation11_spill] sm:$0xff] %v9551_v45  ;;  %14171 = vst [vmem:[#allocation41_spill] sm:$0xff] %v9553_v28 }
 0xb8e   :  { %2936 = vrot.lane.b32.xlu0 %v9479_v14, %s6741_s21  ;;  %2642 = vrot.lane.b32.xlu1 %v9545_v17, %s6734_s27 }
 0xb90   :  { %v9559_v59 = vpop.permute.xlu1 %2676  ;;  %v9561_v25 = vpop.permute.xlu0 %2737 }
 0xb91   :  { %14172 = vst [vmem:[#allocation10_spill] sm:$0xff] %v9559_v59  ;;  %14173 = vst [vmem:[#allocation23_spill] sm:$0xff] %v9561_v25 }
 0xb92   :  { %2537 = vrot.lane.b32.xlu0 %v9545_v17, %s6735_s28  ;;  %2621 = vrot.lane.b32.xlu1 %v9545_v17, %s6736_s16 }
 0xb94   :  { %v9567_v0 = vpop.permute.xlu1 %2721  ;;  %v9569_v23 = vpop.permute.xlu0 %2655 }
 0xb95   :  { %14174 = vst [vmem:[#allocation27_spill] sm:$0xff] %v9567_v0  ;;  %14175 = vst [vmem:[#allocation9_spill] sm:$0xff] %v9569_v23 }
 0xb96   :  { %2558 = vrot.lane.b32.xlu0 %v9545_v17, %s6733_s6  ;;  %2600 = vrot.lane.b32.xlu1 %v9545_v17, %s6737_s4 }
 0xb98   :  { %v9575_v37 = vpop.permute.xlu1 %2944  ;;  %v9577_v51 = vpop.permute.xlu0 %2697 }
 0xb99   :  { %14176 = vst [vmem:[#allocation16_spill] sm:$0xff] %v9575_v37  ;;  %14177 = vst [vmem:[#allocation44_spill] sm:$0xff] %v9577_v51 }
 0xb9a   :  { %2516 = vrot.lane.b32.xlu0 %v9545_v17, %s14030_s30  ;;  %2793 = vrot.lane.b32.xlu1 %v9545_v17, %s6738_s19 }
 0xb9c   :  { %v9583_v6 = vpop.permute.xlu0 %2531  ;;  %v9585_v18 = vpop.permute.xlu1 %2573 }
 0xb9d   :  { %3198 = vmatprep.subr.mxu0 %v9585_v18  ;;  %v9591_v5 = vsel %vm1452_vm8, %v9461_v60, %v9585_v18 }
 0xb9e   :  { %3199 = vmatpush1.msra.mxu0 %v9591_v5  ;;  %2495 = vrot.lane.b32.xlu0 %v9545_v17, %s6710_s29 }
 0xb9f   :  { %2733 = vrot.lane.b32.xlu1 %v9545_v17, %s6723_s22 }
 0xba0   :  { %v9598_v7 = vpop.permute.xlu0 %2552  ;;  %v9600_v37 = vpop.permute.xlu1 %2870 }
 0xba2   :  { %2823 = vrot.lane.b32.xlu0 %v9545_v17, %s6740_s1 }
 0xba3   :  { %2882 = vrot.lane.b32.xlu1 %v9602_v19, %s6731_s5  ;;  %s6754_s5 = smov 40  }
 0xba4   :  { %v9608_v60 = vpop.permute.xlu0 %2510  ;;  %v9610_v40 = vpop.permute.xlu1 %2636 }
 0xba6   :  { %2579 = vrot.lane.b32.xlu0 %v9545_v17, %s6732_s26 }
 0xba7   :  { %2560 = vrot.lane.b32.xlu1 %v9602_v19, %s6733_s6 }
 0xba8   :  { %v9616_v13 = vpop.permute.xlu0 %2489  ;;  %v9618_v23 = vpop.permute.xlu1 %2615 }
 0xbaa   :  { %2763 = vrot.lane.b32.xlu0 %v9545_v17, %s6739_s20 }
 0xbab   :  { %2644 = vrot.lane.b32.xlu1 %v9602_v19, %s6734_s27 }
 0xbac   :  { %v9624_v51 = vpop.permute.xlu0 %2678  ;;  %v9626_v4 = vpop.permute.xlu1 %2594 }
 0xbad   :  { %14179 = vst [vmem:[#allocation29_spill] sm:$0xff] %v9624_v51  ;;  %14180 = vst [vmem:[#allocation14_spill] sm:$0xff] %v9626_v4 }
 0xbae   :  { %2663 = vrot.lane.b32.xlu0 %v9545_v17, %s14156_s0 }
 0xbaf   :  { %2623 = vrot.lane.b32.xlu1 %v9602_v19, %s6736_s16 }
 0xbb0   :  { %v9632_v59 = vpop.permute.xlu0 %2753  ;;  %v9634_v22 = vpop.permute.xlu1 %2813 }
 0xbb1   :  { %14181 = vst [vmem:[#allocation47_spill] sm:$0xff] %v9632_v59 }
 0xbb2   :  { %2705 = vrot.lane.b32.xlu0 %v9545_v17, %s14029_s2 }
 0xbb3   :  { %2602 = vrot.lane.b32.xlu1 %v9602_v19, %s6737_s4 }
 0xbb4   :  { %v9640_v0 = vpop.permute.xlu1 %2783  ;;  %v9642_v51 = vpop.permute.xlu0 %2874 }
 0xbb6   :  { %2684 = vrot.lane.b32.xlu0 %v9545_v17, %s14155_s10 }
 0xbb7   :  { %2825 = vrot.lane.b32.xlu1 %v9602_v19, %s6740_s1 }
 0xbb8   :  { %v9648_v57 = vpop.permute.xlu1 %2657  ;;  %v9650_v33 = vpop.permute.xlu0 %2512 }
 0xbb9   :  { %14182 = vst [vmem:[#allocation43_spill] sm:$0xff] %v9648_v57 }
 0xbba   :  { %2940 = vrot.lane.b32.xlu0 %v9545_v17, %s6741_s21 }
 0xbbb   :  { %2581 = vrot.lane.b32.xlu1 %v9602_v19, %s6732_s26 }
 0xbbc   :  { %v9656_v24 = vpop.permute.xlu1 %2723  ;;  %v9658_v35 = vpop.permute.xlu0 %2491 }
 0xbbd   :  { %14183 = vst [vmem:[#allocation28_spill] sm:$0xff] %v9656_v24 }
 0xbbe   :  { %2539 = vrot.lane.b32.xlu0 %v9602_v19, %s6735_s28 }
 0xbbf   :  { %2795 = vrot.lane.b32.xlu1 %v9602_v19, %s6738_s19 }
 0xbc0   :  { %v9664_v14 = vpop.permute.xlu1 %2699  ;;  %v9666_v57 = vpop.permute.xlu0 %2596 }
 0xbc1   :  { %14184 = vst [vmem:[#allocation24_spill] sm:$0xff] %v9664_v14  ;;  %14185 = vst [vmem:[#allocation52_spill] sm:$0xff] %v9666_v57 }
 0xbc2   :  { %2518 = vrot.lane.b32.xlu0 %v9602_v19, %s14030_s30 }
 0xbc3   :  { %2665 = vrot.lane.b32.xlu1 %v9602_v19, %s14156_s0  ;;  %s6751_s0 = smov 70  }
 0xbc4   :  { %v9672_v17 = vpop.permute.xlu1 %2533  ;;  %v9674_v24 = vpop.permute.xlu0 %2817 }
 0xbc6   :  { %2497 = vrot.lane.b32.xlu0 %v9602_v19, %s6710_s29 }
 0xbc7   :  { %2735 = vrot.lane.b32.xlu1 %v9602_v19, %s6723_s22  ;;  %s6752_s22 = smov 95  }
 0xbc8   :  { %v9680_v25 = vpop.permute.xlu1 %2554  ;;  %v9682_v14 = vpop.permute.xlu0 %2575 }
 0xbc9   :  { %14186 = vst [vmem:[#allocation35_spill] sm:$0xff] %v9682_v14 }
 0xbca   :  { %2765 = vrot.lane.b32.xlu0 %v9602_v19, %s6739_s20 }
 0xbcb   :  { %2707 = vrot.lane.b32.xlu1 %v9602_v19, %s14029_s2  ;;  %s6753_s2 = smov 99  }
 0xbcc   :  { %v9688_v28 = vpop.permute.xlu1 %2638  ;;  %v9690_v59 = vpop.permute.xlu0 %2787 }
 0xbce   :  { %2942 = vrot.lane.b32.xlu0 %v9602_v19, %s6741_s21 }
 0xbcf   :  { %2686 = vrot.lane.b32.xlu1 %v9602_v19, %s14155_s10  ;;  %s6750_s10 = smov 98  }
 0xbd0   :  { %v9696_v63 = vpop.permute.xlu1 %2617  ;;  %v9698_v29 = vpop.permute.xlu0 %2680 }
 0xbd1   :  { %14187 = vst [vmem:[#allocation26_spill] sm:$0xff] %v9696_v63  ;;  %14188 = vst [vmem:[#allocation21_spill] sm:$0xff] %v9698_v29  ;;  %v2925_v63 = vsel %vm1518_vm12, %v9610_v40, %v9371_v54 }
 0xbd2   :  { %3004 = vrot.lane.b32.xlu0 %v9361_v62, %s6741_s21 }
 0xbd3   :  { %3022 = vrot.lane.b32.xlu1 %v9363_v27, %s6741_s21 }
 0xbd4   :  { %v9704_v14 = vpop.permute.xlu1 %2757  ;;  %v9706_v57 = vpop.permute.xlu0 %2727 }
 0xbd5   :  { %14189 = vst [vmem:[#allocation18_spill] sm:$0xff] %v9704_v14  ;;  %14190 = vst [vmem:[#allocation51_spill] sm:$0xff] %v9706_v57  ;;  %v2898_v57 = vsel %vm1452_vm8, %v9585_v18, %v9363_v27  ;;  %v2865_v18 = vsel %vm1408_vm13, %v9583_v6, %v9369_v30 }
 0xbd6   :  { %2992 = vrot.lane.b32.xlu0 %v9419_v61, %s6741_s21 }
 0xbd7   :  { %2986 = vrot.lane.b32.xlu1 %v9369_v30, %s6741_s21 }
 0xbd8   :  { %v9712_v19 = vpop.permute.xlu1 %2659  ;;  %v9714_v45 = vpop.permute.xlu0 %2701 }
 0xbd9   :  { %14191 = vst [vmem:[#allocation20_spill] sm:$0xff] %v9712_v19  ;;  %14192 = vst [vmem:[#allocation53_spill] sm:$0xff] %v9714_v45 }
 0xbda   :  { %3016 = vrot.lane.b32.xlu0 %v9469_v12, %s6741_s21 }
 0xbdb   :  { %3076 = vrot.lane.b32.xlu1 %v9371_v54, %s6741_s21 }
 0xbdc   :  { %v9720_v29 = vpop.permute.xlu0 %2934  ;;  %v9722_v14 = vpop.permute.xlu1 %2535 }
 0xbdd   :  { %14193 = vst [vmem:[#allocation55_spill] sm:$0xff] %v9720_v29 }
 0xbde   :  { %3020 = vrot.lane.b32.xlu0 %v2898_v57, %s6741_s21 }
 0xbdf   :  { %2968 = vrot.lane.b32.xlu1 %v9377_v56, %s6741_s21 }
 0xbe0   :  { %v9730_v19 = vpop.permute.xlu1 %2640  ;;  %v2877_v45 = vpop.permute.xlu0 %2876 }
 0xbe2   :  { %3018 = vrot.lane.b32.xlu0 %v9591_v5, %s6741_s21  ;;  %v9753_v5 = vsel %vm1408_vm13, %v9477_v39, %v9583_v6 }
 0xbe3   :  { %3058 = vrot.lane.b32.xlu1 %v9379_v1, %s6741_s21  ;;  %14194 = vst [vmem:[#allocation58_spill] sm:$0xff] %v9753_v5 }
 0xbe4   :  { %v9736_v29 = vpop.permute.xlu1 %2619  ;;  %v9738_v12 = vpop.permute.xlu0 %2556 }
 0xbe6   :  { %2984 = vrot.lane.b32.xlu0 %v2865_v18, %s6741_s21 }
 0xbe7   :  { %2950 = vrot.lane.b32.xlu1 %v9385_v8, %s6741_s21 }
 0xbe8   :  { %v9746_v57 = vpop.permute.xlu1 %2819  ;;  %v9748_v27 = vpop.permute.xlu0 %2514 }
 0xbea   :  { %2982 = vrot.lane.b32.xlu0 %v9753_v5, %s6741_s21  ;;  %v2856_v5 = vsel %vm1386_vm0, %v9608_v60, %v9377_v56 }
 0xbeb   :  { %3040 = vrot.lane.b32.xlu1 %v9387_v31, %s6741_s21 }
 0xbec   :  { %v9759_v30 = vpop.permute.xlu1 %2577  ;;  %v9761_v18 = vpop.permute.xlu0 %2493 }
 0xbed   :  { %14195 = vst [vmem:[#allocation37_spill] sm:$0xff] %v9759_v30 }
 0xbee   :  { %3074 = vrot.lane.b32.xlu0 %v2925_v63, %s6741_s21  ;;  %v9786_v63 = vsel %vm1386_vm0, %v9495_v3, %v9608_v60 }
 0xbef   :  { %3010 = vrot.lane.b32.xlu1 %v9405_v11, %s6741_s21  ;;  %14198 = vst [vmem:[#allocation17_spill] sm:$0xff] %v9786_v63 }
 0xbf0   :  { %v9769_v39 = vpop.permute.xlu1 %2682  ;;  %v9771_v36 = vpop.permute.xlu0 %2598 }
 0xbf1   :  { %14196 = vst [vmem:[#allocation56_spill] sm:$0xff] %v9769_v39  ;;  %v2916_v39 = vsel %vm1496_vm14, %v9618_v23, %v9379_v1 }
 0xbf2   :  { %2966 = vrot.lane.b32.xlu0 %v2856_v5, %s6741_s21 }
 0xbf3   :  { %3082 = vrot.lane.b32.xlu1 %v9413_v41, %s6741_s21 }
 0xbf4   :  { %v9779_v30 = vpop.permute.xlu1 %2759  ;;  %v9781_v54 = vpop.permute.xlu0 %2789 }
 0xbf5   :  { %14197 = vst [vmem:[#allocation45_spill] sm:$0xff] %v9779_v30 }
 0xbf6   :  { %2964 = vrot.lane.b32.xlu0 %v9786_v63, %s6741_s21  ;;  %v2847_v63 = vsel %vm13966_vm10, %v9616_v13, %v9385_v8 }
 0xbf7   :  { %2974 = vrot.lane.b32.xlu1 %v9427_v10, %s6741_s21 }
 0xbf8   :  { %v9792_v56 = vpop.permute.xlu1 %2703  ;;  %v9794_v5 = vpop.permute.xlu0 %2661 }
 0xbf9   :  { %14199 = vst [vmem:[#allocation31_spill] sm:$0xff] %v9792_v56  ;;  %14200 = vst [vmem:[#allocation25_spill] sm:$0xff] %v9794_v5  ;;  %v2889_v56 = vsel %vm1766_vm11, %v2877_v45, %v9405_v11 }
 0xbfa   :  { %3056 = vrot.lane.b32.xlu0 %v2916_v39, %s6741_s21  ;;  %v9819_v39 = vsel %vm13966_vm10, %v9511_v50, %v9616_v13 }
 0xbfb   :  { %3064 = vrot.lane.b32.xlu1 %v9421_v32, %s6741_s21 }
 0xbfc   :  { %v9802_v3 = vpop.permute.xlu0 %2729  ;;  %v9804_v30 = vpop.permute.xlu1 %2880 }
 0xbfd   :  { %14201 = vst [vmem:[#allocation2_spill] sm:$0xff] %v9802_v3 }
 0xbfe   :  { %2948 = vrot.lane.b32.xlu0 %v2847_v63, %s6741_s21 }
 0xbff   :  { %2956 = vrot.lane.b32.xlu1 %v9435_v20, %s6741_s21 }
 0xc00   :  { %v9812_v5 = vpop.permute.xlu0 %2936  ;;  %v9814_v1 = vpop.permute.xlu1 %2642 }
 0xc01   :  { %14202 = vst [vmem:[#allocation5_spill] sm:$0xff] %v9812_v5  ;;  %14203 = vst [vmem:[#allocation6_spill] sm:$0xff] %v9814_v1  ;;  %v2907_v5 = vsel %vm1474_vm15, %v9626_v4, %v9387_v31  ;;  %v2888_v31 = vsel %vm1766_vm11, %v9642_v51, %v2877_v45  ;;  %v2857_v51 = vsel %vm1386_vm0, %v9748_v27, %v9427_v10 }
 0xc02   :  { %2946 = vrot.lane.b32.xlu0 %v9819_v39, %s6741_s21 }
 0xc03   :  { %3046 = vrot.lane.b32.xlu1 %v9429_v16, %s6741_s21 }
 0xc04   :  { %v9825_v8 = vpop.permute.xlu0 %2537  ;;  %v9827_v63 = vpop.permute.xlu1 %2621 }
 0xc05   :  { %14204 = vst [vmem:[#allocation3_spill] sm:$0xff] %v9827_v63 }
 0xc06   :  { %3038 = vrot.lane.b32.xlu0 %v2907_v5, %s6741_s21 }
 0xc07   :  { %2998 = vrot.lane.b32.xlu1 %v9475_v21, %s6741_s21 }
 0xc08   :  { %v2559_v50 = vpop.permute.xlu0 %2558  ;;  %v9835_v1 = vpop.permute.xlu1 %2600 }
 0xc09   :  { %14205 = vst [vmem:[#allocation7_spill] sm:$0xff] %v9835_v1 }
 0xc0a   :  { %3008 = vrot.lane.b32.xlu0 %v2889_v56, %s6741_s21  ;;  %v2926_v56 = vsel %vm1518_vm12, %v9730_v19, %v9413_v41 }
 0xc0b   :  { %3088 = vrot.lane.b32.xlu1 %v9485_v55, %s6741_s21 }
 0xc0c   :  { %v9842_v63 = vpop.permute.xlu0 %2516  ;;  %v9844_v3 = vpop.permute.xlu1 %2793 }
 0xc0e   :  { %3006 = vrot.lane.b32.xlu0 %v2888_v31, %s6741_s21 }
 0xc0f   :  { %2980 = vrot.lane.b32.xlu1 %v9487_v26, %s6741_s21 }
 0xc10   :  { %v9851_v5 = vpop.permute.xlu0 %2495 }
 0xc11   :  { %v9853_v11 = vpop.permute.xlu1 %2733 }
 0xc12   :  { %3080 = vrot.lane.b32.xlu0 %v2926_v56, %s6741_s21  ;;  %v9874_v56 = vsel %vm1386_vm0, %v9650_v33, %v9748_v27 }
 0xc13   :  { %3070 = vrot.lane.b32.xlu1 %v9509_v46, %s6741_s21 }
 0xc14   :  { %v2824_v1 = vpop.permute.xlu0 %2823 }
 0xc15   :  { %v9861_v45 = vpop.permute.xlu1 %2882 }
 0xc16   :  { %2972 = vrot.lane.b32.xlu0 %v2857_v51, %s6741_s21  ;;  %v2563_v51 = vsel %vm1430_vm3, %v9680_v25, %v9738_v12 }
 0xc17   :  { %2962 = vrot.lane.b32.xlu1 %v9503_v58, %s6741_s21 }
 0xc18   :  { %v9869_v31 = vpop.permute.xlu0 %2579 }
 0xc19   :  { %14206 = vst [vmem:[#allocation8_spill] sm:$0xff] %v9869_v31  ;;  %v2561_v41 = vpop.permute.xlu1 %2560  ;;  %v2917_v31 = vsel %vm1496_vm14, %v9736_v29, %v9421_v32  ;;  %v2848_v32 = vsel %vm13966_vm10, %v9761_v18, %v9435_v20  ;;  %v9927_v20 = vsel %vm1518_vm12, %v9501_v15, %v9610_v40 }
 0xc1a   :  { %3200 = vmatprep.subr.mxu0 %v2561_v41  ;;  %2970 = vrot.lane.b32.xlu0 %v9874_v56, %s6741_s21  ;;  %v2564_v4 = vsel %vm1430_vm3, %v2559_v50, %v2561_v41  ;;  %v2562_v50 = vsel %vm1430_vm3, %v9493_v53, %v9598_v7  ;;  %v2908_v41 = vsel %vm1474_vm15, %v9771_v36, %v9429_v16 }
 0xc1b   :  { %3052 = vrot.lane.b32.xlu1 %v9525_v43, %s6741_s21  ;;  %3201 = vmatpush1.msra.mxu0 %v2564_v4  ;;  %v2887_v4 = vsel %vm1766_vm11, %v9600_v37, %v9361_v62  ;;  %v2886_v62 = vsel %vm1766_vm11, %v9467_v38, %v9600_v37  ;;  %v2832_v16 = vsel %vm14209_vm4, %v9746_v57, %v9443_v49  ;;  %vm14212_vm4 = vcmask 736256  }
 0xc1c   :  { %3202 = vmatprep.subr.mxu0 %v9738_v12  ;;  %v9882_v10 = vpop.permute.xlu0 %2763  ;;  %v2829_v49 = vsel %vm14208_vm1, %v9535_v34, %v9634_v22 }
 0xc1d   :  { %3203 = vmatpush1.msra.mxu0 %v2563_v51  ;;  %v9887_v33 = vpop.permute.xlu1 %2644 }
 0xc1e   :  { %3204 = vmatprep.subr.mxu0 %v9598_v7  ;;  %3062 = vrot.lane.b32.xlu0 %v2917_v31, %s6741_s21  ;;  %v9920_v31 = vsel %vm13966_vm10, %v9658_v35, %v9761_v18  ;;  %v9940_v35 = vsel %vm1496_vm14, %v9517_v9, %v9618_v23  ;;  %v2831_v9 = vsel %vm14210_vm2, %v9674_v24, %v9746_v57  ;;  %vm14213_vm2 = vmmov %vm14212_vm4 }
 0xc1f   :  { %3002 = vrot.lane.b32.xlu1 %v2887_v4, %s6741_s21  ;;  %3205 = vmatpush1.msra.mxu0 %v2562_v50 }
 0xc20   :  { %v9901_v12 = vpop.permute.xlu0 %2663 }
 0xc21   :  { %v9903_v25 = vpop.permute.xlu1 %2623 }
 0xc22   :  { %2954 = vrot.lane.b32.xlu0 %v2848_v32, %s6741_s21 }
 0xc23   :  { %3000 = vrot.lane.b32.xlu1 %v2886_v62, %s6741_s21 }
 0xc24   :  { %v9913_v7 = vpop.permute.xlu0 %2705 }
 0xc25   :  { %v9915_v53 = vpop.permute.xlu1 %2602 }
 0xc26   :  { %2952 = vrot.lane.b32.xlu0 %v9920_v31, %s6741_s21 }
 0xc27   :  { %3072 = vrot.lane.b32.xlu1 %v9927_v20, %s6741_s21 }
 0xc28   :  { %v9931_v38 = vpop.permute.xlu0 %2684 }
 0xc29   :  { %v2826_v37 = vpop.permute.xlu1 %2825 }
 0xc2a   :  { %3044 = vrot.lane.b32.xlu0 %v2908_v41, %s6741_s21  ;;  %v2834_v15 = vsel %vm14207_vm5, %v2826_v37, %v9519_v44  ;;  %v2833_v51 = vsel %vm14208_vm1, %v2824_v1, %v2826_v37  ;;  %v2866_v44 = vsel %vm1408_vm13, %v9722_v14, %v9419_v61  ;;  %vm14211_vm5 = vmmov %vm14208_vm1  ;;  %v14220_v37 = vld [vmem:[#allocation26_spill] sm:$0xff] }
 0xc2b   :  { %3054 = vrot.lane.b32.xlu1 %v9940_v35, %s6741_s21  ;;  %3269 = vmatprep.subr.mxu1 %v2834_v15  ;;  %v2830_v1 = vsel %vm14211_vm5, %v9634_v22, %v9393_v52  ;;  %v2542_v52 = vsel %vm1408_vm13, %v9672_v17, %v9722_v14  ;;  %vm14214_vm5 = vmmov %vm14213_vm2  ;;  %v14221_v15 = vld [vmem:[#allocation11_spill] sm:$0xff] }
 0xc2c   :  { %3270 = vmatpush1.msra.mxu1 %v2833_v51  ;;  %v9947_v4 = vpop.permute.xlu0 %2940  ;;  %vm14215_vm1 = vmmov %vm14213_vm2 }
 0xc2d   :  { %3271 = vmatprep.subr.mxu1 %v2832_v16  ;;  %v9952_v50 = vpop.permute.xlu1 %2581  ;;  %v14224_v16 = vld [vmem:[#allocation52_spill] sm:$0xff] }
 0xc2e   :  { %3272 = vmatpush1.msra.mxu1 %v2831_v9  ;;  %2930 = vrot.lane.b32.xlu0 %v9351_v48, %s6741_s21  ;;  %v10033_v9 = vsel %vm1474_vm15, %v14224_v16, %v9771_v36  ;;  %v14252_v16 = vld [vmem:[#allocation27_spill] sm:$0xff] }
 0xc2f   :  { %2990 = vrot.lane.b32.xlu1 %v2866_v44, %s6741_s21  ;;  %3273 = vmatprep.subr.mxu1 %v2830_v1  ;;  %v14227_v1 = vld [vmem:[#allocation45_spill] sm:$0xff] }
 0xc30   :  { %3274 = vmatpush1.msra.mxu1 %v2829_v49  ;;  %v2540_v24 = vpop.permute.xlu0 %2539 }
 0xc31   :  { %v2796_v57 = vpop.permute.xlu1 %2795  ;;  %3206 = vmatprep.subr.mxu0 %v2540_v24  ;;  %v2867_v32 = vsel %vm1408_vm13, %v2540_v24, %v9475_v21  ;;  %v2543_v61 = vsel %vm1408_vm13, %v9825_v8, %v2540_v24  ;;  %v2802_v8 = vsel %vm14214_vm5, %v9781_v54, %v9445_v42  ;;  %vm14222_vm5 = vcmask 744448  }
 0xc32   :  { %2996 = vrot.lane.b32.xlu0 %v2867_v32, %s6741_s21  ;;  %3207 = vmatpush1.msra.mxu0 %v2543_v61  ;;  %v2804_v22 = vsel %vm14212_vm4, %v2796_v57, %v9543_v2  ;;  %v2803_v34 = vsel %vm14213_vm2, %v9844_v3, %v2796_v57  ;;  %v2801_v2 = vsel %vm14215_vm1, %v9690_v59, %v9781_v54  ;;  %vm14216_vm4 = vmmov %vm14215_vm1  ;;  %v14217_v3 = vld [vmem:[#allocation58_spill] sm:$0xff]  ;;  %v14218_v59 = vld [vmem:[#allocation36_spill] sm:$0xff] }
 0xc33   :  { %2988 = vrot.lane.b32.xlu1 %v2542_v52, %s6741_s21  ;;  %3275 = vmatprep.subr.mxu1 %v2804_v22  ;;  %v2800_v42 = vsel %vm14216_vm4, %v9640_v0, %v9403_v47  ;;  %vm14219_vm2 = vmmov %vm14215_vm1  ;;  %v10014_v47 = vsel %vm1496_vm14, %v14220_v37, %v9736_v29  ;;  %v14231_v57 = vld [vmem:[#allocation32_spill] sm:$0xff]  ;;  %v14232_v32 = vld [vmem:[#allocation50_spill] sm:$0xff]  ;;  %v2918_v37 = vsel %vm1496_vm14, %v9903_v25, %v9509_v46 }
 0xc34   :  { %3208 = vmatprep.subr.mxu0 %v9722_v14  ;;  %3276 = vmatpush1.msra.mxu1 %v2803_v34  ;;  %v2519_v21 = vpop.permute.xlu0 %2518  ;;  %v9995_v14 = vsel %vm1518_vm12, %v9688_v28, %v9730_v19  ;;  %vm14225_vm1 = vmmov %vm14222_vm5 }
 0xc35   :  { %3209 = vmatpush1.msra.mxu0 %v2542_v52  ;;  %3277 = vmatprep.subr.mxu1 %v2802_v8  ;;  %v9986_v17 = vpop.permute.xlu1 %2665  ;;  %v2522_v28 = vsel %vm1386_vm0, %v9842_v63, %v2519_v21  ;;  %vm14228_vm4 = vmmov %vm14225_vm1  ;;  %v14237_v8 = vld [vmem:[#allocation23_spill] sm:$0xff] }
 0xc36   :  { %3210 = vmatprep.subr.mxu0 %v9583_v6  ;;  %3278 = vmatpush1.msra.mxu1 %v2801_v2  ;;  %v2799_v6 = vsel %vm14219_vm2, %v14218_v59, %v9640_v0  ;;  %v2927_v0 = vsel %vm1518_vm12, %v9887_v33, %v9485_v55  ;;  %vm14230_vm2 = vmmov %vm14225_vm1  ;;  %v14239_v2 = vld [vmem:[#allocation54_spill] sm:$0xff]  ;;  %v2890_v59 = vsel %vm1766_vm11, %v9804_v30, %v9861_v45  ;;  %v14246_v30 = vld [vmem:[#allocation51_spill] sm:$0xff] }
 0xc37   :  { %2994 = vrot.lane.b32.xlu0 %v2543_v61, %s6741_s21  ;;  %3078 = vrot.lane.b32.xlu1 %v9995_v14, %s6741_s21  ;;  %v14233_v61 = vld [vmem:[#allocation47_spill] sm:$0xff] }
 0xc38   :  { %3211 = vmatpush1.msra.mxu0 %v14217_v3  ;;  %3279 = vmatprep.subr.mxu1 %v2800_v42  ;;  %v10007_v54 = vpop.permute.xlu0 %2497  ;;  %v14241_v3 = vld [vmem:[#allocation22_spill] sm:$0xff] }
 0xc39   :  { %3212 = vmatprep.subr.mxu0 %v2519_v21  ;;  %3280 = vmatpush1.msra.mxu1 %v2799_v6  ;;  %v2736_v62 = vpop.permute.xlu1 %2735 }
 0xc3a   :  { %3213 = vmatpush1.msra.mxu0 %v2522_v28 }
 0xc3b   :  { %3214 = vmatprep.subr.mxu0 %v9748_v27  ;;  %3060 = vrot.lane.b32.xlu1 %v10014_v47, %s6741_s21  ;;  %v14223_v27 = vld [vmem:[#allocation17_spill] sm:$0xff] }
 0xc3c   :  { %3215 = vmatpush1.msra.mxu0 %v9874_v56  ;;  %3086 = vrot.lane.b32.xlu0 %v2927_v0, %s6741_s21  ;;  %v2766_v63 = vpop.permute.xlu0 %2765  ;;  %v2858_v56 = vsel %vm1386_vm0, %v2519_v21, %v9487_v26  ;;  %v14229_v26 = vld [vmem:[#allocation18_spill] sm:$0xff]  ;;  %v14236_v21 = vld [vmem:[#allocation39_spill] sm:$0xff] }
 0xc3d   :  { %3216 = vmatprep.subr.mxu0 %v9608_v60  ;;  %v10025_v41 = vpop.permute.xlu1 %2707  ;;  %v2774_v51 = vsel %vm14222_vm5, %v2766_v63, %v14221_v15  ;;  %v2773_v55 = vsel %vm14225_vm1, %v9882_v10, %v2766_v63  ;;  %v10043_v60 = vsel %vm13966_vm10, %v9851_v5, %v10007_v54  ;;  %v14226_v10 = vld [vmem:[#allocation15_spill] sm:$0xff]  ;;  %v2771_v5 = vsel %vm14230_vm2, %v14229_v26, %v14227_v1  ;;  %vm14234_vm5 = vmmov %vm14225_vm1  ;;  %v14243_v0 = vld [vmem:[#allocation30_spill] sm:$0xff] }
 0xc3e   :  { %3217 = vmatpush1.msra.mxu0 %v14223_v27  ;;  %3281 = vmatprep.subr.mxu1 %v2774_v51  ;;  %v2772_v49 = vsel %vm14228_vm4, %v14227_v1, %v14226_v10  ;;  %vm14238_vm4 = vcmask 752640   ;;  %v14244_v63 = vld [vmem:[#allocation2_spill] sm:$0xff]  ;;  %v14249_v51 = vld [vmem:[#allocation28_spill] sm:$0xff]  ;;  %v14257_v26 = vld [vmem:[#allocation21_spill] sm:$0xff] }
 0xc3f   :  { %3218 = vmatprep.subr.mxu0 %v10007_v54  ;;  %3042 = vrot.lane.b32.xlu1 %v10033_v9, %s6741_s21  ;;  %vm14240_vm2 = vmmov %vm14238_vm4  ;;  %v14248_v15 = vld [vmem:[#allocation46_spill] sm:$0xff]  ;;  %v14251_v27 = vld [vmem:[#allocation48_spill] sm:$0xff] }
 0xc40   :  { %3219 = vmatpush1.msra.mxu0 %v10043_v60  ;;  %2978 = vrot.lane.b32.xlu0 %v2858_v56, %s6741_s21  ;;  %v10049_v44 = vpop.permute.xlu0 %2942  ;;  %v2743_v42 = vsel %vm14240_vm2, %v9853_v11, %v2736_v62  ;;  %v14254_v10 = vld [vmem:[#allocation56_spill] sm:$0xff]  ;;  %v14255_v1 = vld [vmem:[#allocation14_spill] sm:$0xff] }
 0xc41   :  { %3220 = vmatprep.subr.mxu0 %v9761_v18  ;;  %3282 = vmatpush1.msra.mxu1 %v2773_v55  ;;  %v10055_v24 = vpop.permute.xlu1 %2686  ;;  %v2891_v18 = vsel %vm1766_vm11, %v9861_v45, %v14231_v57  ;;  %vm14247_vm11 = vmmov %vm14240_vm2 }
 0xc42   :  { %3221 = vmatpush1.msra.mxu0 %v9920_v31  ;;  %3283 = vmatprep.subr.mxu1 %v2772_v49  ;;  %v2770_v31 = vsel %vm14234_vm5, %v14233_v61, %v14232_v32  ;;  %vm14245_vm5 = vmmov %vm14240_vm2  ;;  %v2741_v45 = vsel %vm14247_vm11, %v14246_v30, %v14244_v63  ;;  %v14256_v49 = vld [vmem:[#allocation57_spill] sm:$0xff] }
 0xc43   :  { %3222 = vmatprep.subr.mxu0 %v9616_v13  ;;  %3284 = vmatpush1.msra.mxu1 %v2771_v5  ;;  %v14235_v13 = vld [vmem:[#allocation41_spill] sm:$0xff]  ;;  %v2742_v11 = vsel %vm14245_vm5, %v14244_v63, %v14243_v0  ;;  %v2689_v5 = vsel %vm1562_vm9, %v14257_v26, %v14254_v10  ;;  %v14269_v63 = vld [vmem:[#allocation43_spill] sm:$0xff] }
 0xc44   :  { %3014 = vrot.lane.b32.xlu1 %v2891_v18, %s6741_s21  ;;  %3223 = vmatpush1.msra.mxu0 %v9819_v39  ;;  %v10070_v52 = vpop.permute.xlu0 %3004  ;;  %v2769_v22 = vsel %vm14225_vm1, %v14235_v13, %v14233_v61  ;;  %v2744_v39 = vsel %vm14238_vm4, %v2736_v62, %v14237_v8  ;;  %vm14250_vm1 = vmmov %vm14240_vm2  ;;  %v2711_v18 = vsel %vm13959_vm7, %v9913_v7, %v10025_v41  ;;  %v14258_v32 = vld [vmem:[#allocation29_spill] sm:$0xff]  ;;  %v14259_v61 = vld [vmem:[#allocation10_spill] sm:$0xff]  ;;  %vm14263_vm2 = vcmask 875520  }
 0xc45   :  { %2976 = vrot.lane.b32.xlu0 %v2522_v28, %s6741_s21  ;;  %3285 = vmatprep.subr.mxu1 %v2770_v31  ;;  %v3023_v34 = vpop.permute.xlu1 %3022  ;;  %v14242_v28 = vld [vmem:[#allocation40_spill] sm:$0xff]  ;;  %v2740_v46 = vsel %vm14250_vm1, %v14249_v51, %v14248_v15  ;;  %vm14253_vm4 = vmmov %vm14250_vm1  ;;  %v2688_v31 = vsel %vm1562_vm9, %v14259_v61, %v14258_v32  ;;  %v2849_v7 = vsel %vm13966_vm10, %v10007_v54, %v9503_v58  ;;  %v14271_v15 = vld [vmem:[#allocation9_spill] sm:$0xff]  ;;  %vm4296_vm1 = vcmask 547840  }
 0xc46   :  { %3224 = vmatprep.subr.mxu0 %v14236_v21  ;;  %3286 = vmatpush1.msra.mxu1 %v2769_v22  ;;  %v2739_v55 = vsel %vm14253_vm4, %v14252_v16, %v14249_v51  ;;  %v14260_v22 = vld [vmem:[#allocation31_spill] sm:$0xff]  ;;  %v14261_v21 = vld [vmem:[#allocation53_spill] sm:$0xff]  ;;  %v14267_v58 = vld [vmem:[#allocation20_spill] sm:$0xff]  ;;  %vm4243_vm4 = vcmask 564224  }
 0xc47   :  { %3225 = vmatpush1.msra.mxu0 %v14239_v2  ;;  %3287 = vmatprep.subr.mxu1 %v2744_v39  ;;  %v2710_v8 = vsel %vm13959_vm7, %v14261_v21, %v14260_v22  ;;  %v2669_v2 = vsel %vm14263_vm2, %v9901_v12, %v9986_v17  ;;  %vm14268_vm5 = vmmov %vm14263_vm2  ;;  %v2690_v12 = vsel %vm1562_vm9, %v9931_v38, %v10055_v24  ;;  %v14273_v51 = vld [vmem:[#allocation3_spill] sm:$0xff]  ;;  %v14275_v16 = vld [vmem:[#allocation34_spill] sm:$0xff]  ;;  %vm14287_vm9 = vcmask 719872  }
 0xc48   :  { %3226 = vmatprep.subr.mxu0 %v14241_v3  ;;  %3288 = vmatpush1.msra.mxu1 %v2743_v42  ;;  %v10086_v6 = vpop.permute.xlu0 %2992  ;;  %v14264_v42 = vld [vmem:[#allocation24_spill] sm:$0xff]  ;;  %vm14272_vm11 = vmmov %vm14263_vm2  ;;  %v14279_v26 = vld [vmem:[#allocation35_spill] sm:$0xff]  ;;  %vm14302_vm2 = vcmask 556032  }
 0xc49   :  { %3012 = vrot.lane.b32.xlu1 %v2890_v59, %s6741_s21  ;;  %3227 = vmatpush1.msra.mxu0 %v14242_v28  ;;  %v10096_v62 = vpop.permute.xlu1 %2986  ;;  %v14265_v3 = vld [vmem:[#allocation44_spill] sm:$0xff]  ;;  %v2667_v38 = vsel %vm14272_vm11, %v14271_v15, %v14269_v63  ;;  %vm4216_vm11 = vcmask 572416  }
 0xc4a   :  { %3068 = vrot.lane.b32.xlu0 %v2918_v37, %s6741_s21  ;;  %3289 = vmatprep.subr.mxu1 %v2742_v11  ;;  %v2709_v59 = vsel %vm13959_vm7, %v14265_v3, %v14264_v42  ;;  %v14266_v37 = vld [vmem:[#allocation25_spill] sm:$0xff]  ;;  %v14270_v11 = vld [vmem:[#allocation6_spill] sm:$0xff] }
 0xc4b   :  { %3228 = vmatprep.subr.mxu0 %v9351_v48  ;;  %3290 = vmatpush1.msra.mxu1 %v2741_v45  ;;  %v10116_v48 = vsel %vm1474_vm15, %v14256_v49, %v14255_v1  ;;  %v2668_v54 = vsel %vm14268_vm5, %v14267_v58, %v14266_v37  ;;  %v2648_v30 = vsel %vm1518_vm12, %v14270_v11, %v9887_v33  ;;  %vm13960_vm12 = vcmask 334848   ;;  %vm14303_vm5 = vmmov %vm14302_vm2 }
 0xc4c   :  { %3229 = vmatpush1.msra.mxu0 %v14251_v27  ;;  %3291 = vmatprep.subr.mxu1 %v2740_v46  ;;  %v10110_v56 = vpop.permute.xlu0 %3016  ;;  %v2627_v46 = vsel %vm1496_vm14, %v14273_v51, %v9903_v25  ;;  %vm4165_vm14 = vcmask 785408  }
 0xc4d   :  { %3230 = vmatprep.subr.mxu0 %v14254_v10  ;;  %3292 = vmatpush1.msra.mxu1 %v2739_v55  ;;  %v10121_v57 = vpop.permute.xlu1 %3076  ;;  %v14276_v55 = vld [vmem:[#allocation37_spill] sm:$0xff] }
 0xc4e   :  { %3036 = vrot.lane.b32.xlu1 %v10116_v48, %s6741_s21  ;;  %3231 = vmatpush2.msra.mxu0 %v2689_v5  ;;  %v2584_v5 = vsel %vm1452_vm8, %v14279_v26, %v14276_v55 }
 0xc4f   :  { %2928 = vrot.lane.b32.xlu0 %v14251_v27, %s6741_s21  ;;  %3293 = vmatprep.subr.mxu1 %v10025_v41  ;;  %v14262_v41 = vld [vmem:[#allocation38_spill] sm:$0xff] }
 0xc50   :  { %3232 = vmatprep.subr.mxu0 %v14258_v32  ;;  %3294 = vmatpush1.msra.mxu1 %v2711_v18  ;;  %v3021_v13 = vpop.permute.xlu0 %3020 }
 0xc51   :  { %3233 = vmatpush2.msra.mxu0 %v2688_v31  ;;  %3295 = vmatprep.subr.mxu1 %v14260_v22  ;;  %v10139_v39 = vpop.permute.xlu1 %2968 }
 0xc52   :  { %3234 = vmatprep.subr.mxu0 %v9986_v17  ;;  %3296 = vmatpush1.msra.mxu1 %v2710_v8  ;;  %v3121_v17 = vsel %vm1971_vm6, %v3021_v13, %v3023_v34 }
 0xc53   :  { %2932 = vrot.lane.b32.xlu1 %v14262_v41, %s6741_s21  ;;  %2960 = vrot.lane.b32.xlu0 %v2849_v7, %s6741_s21 }
 0xc54   :  { %3235 = vmatpush2.msra.mxu0 %v2669_v2  ;;  %3297 = vmatprep.subr.mxu1 %v14264_v42  ;;  %v3019_v28 = vpop.permute.xlu0 %3018 }
 0xc55   :  { %3236 = vmatprep.subr.mxu0 %v14266_v37  ;;  %3298 = vmatpush1.msra.mxu1 %v2709_v59  ;;  %v10159_v0 = vpop.permute.xlu1 %3058  ;;  %v3120_v45 = vsel %vm1971_vm6, %v3019_v28, %v3021_v13 }
 0xc56   :  { %3237 = vmatpush2.msra.mxu0 %v2668_v54  ;;  %3299 = vmatprep.subr.mxu1 %v10055_v24 }
 0xc57   :  { %3238 = vmatprep.subr.mxu0 %v14269_v63  ;;  %3300 = vmatpush1.msra.mxu1 %v2690_v12 }
 0xc58   :  { %3084 = vrot.lane.b32.xlu1 %v2648_v30, %s6741_s21  ;;  %2958 = vrot.lane.b32.xlu0 %v10043_v60, %s6741_s21  ;;  %v10177_v24 = vpop.permute.xlu0 %2984  ;;  %v2909_v60 = vsel %vm1474_vm15, %v9915_v53, %v9525_v43  ;;  %v2899_v43 = vsel %vm1452_vm8, %v14276_v55, %v14275_v16 }
 0xc59   :  { %3239 = vmatpush2.msra.mxu0 %v2667_v38  ;;  %3301 = vmatprep.subr.mxu1 %v3121_v17  ;;  %v10179_v34 = vpop.permute.xlu1 %2950 }
 0xc5a   :  { %3240 = vmatprep.subr.mxu0 %v9887_v33  ;;  %3302 = vmatpush2.msra.mxu1 %v3120_v45 }
 0xc5b   :  { %3241 = vmatpush2.msra.mxu0 %v2648_v30 }
 0xc5c   :  { %3242 = vmatprep.subr.mxu0 %v9730_v19  ;;  %3066 = vrot.lane.b32.xlu1 %v2627_v46, %s6741_s21  ;;  %v10190_v27 = vpop.permute.xlu0 %2982  ;;  %v14274_v19 = vld [vmem:[#allocation12_spill] sm:$0xff] }
 0xc5d   :  { %3050 = vrot.lane.b32.xlu0 %v2909_v60, %s6741_s21  ;;  %3243 = vmatpush2.msra.mxu0 %v9995_v14  ;;  %v10194_v33 = vpop.permute.xlu1 %3040 }
 0xc5e   :  { %3244 = vmatprep.subr.mxu0 %v9610_v40  ;;  %v14277_v40 = vld [vmem:[#allocation7_spill] sm:$0xff] }
 0xc5f   :  { %3245 = vmatpush2.msra.mxu0 %v9927_v20  ;;  %v2900_v20 = vsel %vm1452_vm8, %v9952_v50, %v14274_v19 }
 0xc60   :  { %3246 = vmatprep.subr.mxu0 %v9903_v25  ;;  %3034 = vrot.lane.b32.xlu1 %v14274_v19, %s6741_s21  ;;  %v10204_v10 = vpop.permute.xlu0 %3074  ;;  %v2606_v25 = vsel %vm1474_vm15, %v14277_v40, %v9915_v53  ;;  %vm4141_vm15 = vcmask 793600  }
 0xc61   :  { %3026 = vrot.lane.b32.xlu0 %v2899_v43, %s6741_s21  ;;  %3247 = vmatpush2.msra.mxu0 %v2627_v46  ;;  %v10207_v14 = vpop.permute.xlu1 %3010 }
 0xc62   :  { %3248 = vmatprep.subr.mxu0 %v9736_v29 }
 0xc63   :  { %3249 = vmatpush2.msra.mxu0 %v10014_v47  ;;  %v14278_v47 = vld [vmem:[#allocation8_spill] sm:$0xff] }
 0xc64   :  { %3250 = vmatprep.subr.mxu0 %v9618_v23  ;;  %3048 = vrot.lane.b32.xlu1 %v2606_v25, %s6741_s21  ;;  %v10219_v49 = vpop.permute.xlu0 %2966  ;;  %v2585_v23 = vsel %vm1452_vm8, %v14278_v47, %v9952_v50  ;;  %vm13958_vm8 = vcmask 1044480  }
 0xc65   :  { %3032 = vrot.lane.b32.xlu0 %v2900_v20, %s6741_s21  ;;  %3251 = vmatpush2.msra.mxu0 %v9940_v35  ;;  %v10223_v29 = vpop.permute.xlu1 %3082 }
 0xc66   :  { %3252 = vmatprep.subr.mxu0 %v9915_v53 }
 0xc67   :  { %3253 = vmatpush2.msra.mxu0 %v2606_v25 }
 0xc68   :  { %3254 = vmatprep.subr.mxu0 %v9771_v36  ;;  %3030 = vrot.lane.b32.xlu1 %v2585_v23, %s6741_s21  ;;  %v10234_v18 = vpop.permute.xlu0 %2964 }
 0xc69   :  { %3024 = vrot.lane.b32.xlu0 %v2584_v5, %s6741_s21  ;;  %3255 = vmatpush2.msra.mxu0 %v10033_v9  ;;  %v10238_v53 = vpop.permute.xlu1 %2974 }
 0xc6a   :  { %3256 = vmatprep.subr.mxu0 %v14255_v1  ;;  %v6701_v1 = vld [vmem:[%s13821_s7] sm:$0xff] }
 0xc6b   :  { %3257 = vmatpush2.msra.mxu0 %v10116_v48 }
 0xc6c   :  { %3258 = vmatprep.subr.mxu0 %v9952_v50  ;;  %3028 = vrot.lane.b32.xlu1 %v14275_v16, %s6741_s21  ;;  %v10245_v36 = vpop.permute.xlu0 %3056  ;;  %v14280_v50 = vmov 0.0  }
 0xc6d   :  { %3259 = vmatpush2.msra.mxu0 %v2585_v23  ;;  %v10247_v35 = vpop.permute.xlu1 %3064 }
 0xc6e   :  { %3260 = vmatprep.subr.mxu0 %v14276_v55 }
 0xc6f   :  { %3261 = vmatpush2.msra.mxu0 %v2584_v5 }
 0xc70   :  { %v10250_v9 = vpop.permute.xlu0 %2948  ;;  %3263 = vmatmul.mubr.f32.vlgmr.msra.gmra.mxu0 %v6701_v1 }
 0xc71   :  { %v10255_v48 = vpop.permute.xlu1 %2956  ;;  %3404 = vmatprep.mubr.f32.mxu0 %v14280_v50 }
 0xc74   :  { %v10258_v32 = vpop.permute.xlu0 %2946 }
 0xc75   :  { %v10260_v61 = vpop.permute.xlu1 %3046 }
 0xc78   :  { %v10262_v31 = vpop.permute.xlu0 %3038 }
 0xc79   :  { %14281 = vst [vmem:[#allocation4_spill] sm:$0xff] %v10262_v31  ;;  %v2999_v13 = vpop.permute.xlu1 %2998 }
 0xc7c   :  { %v3009_v22 = vpop.permute.xlu0 %3008 }
 0xc7d   :  { %v3089_v21 = vpop.permute.xlu1 %3088  ;;  %v3117_v1 = vsel %vm1971_vm6, %v3009_v22, %v10207_v14 }
 0xc80   :  { %v3007_v8 = vpop.permute.xlu0 %3006 }
 0xc81   :  { %v2981_v7 = vpop.permute.xlu1 %2980 }
 0xc84   :  { %v10264_v41 = vpop.permute.xlu0 %3080 }
 0xc85   :  { %v10266_v2 = vpop.permute.xlu1 %3070 }
 0xc88   :  { %v2973_v42 = vpop.permute.xlu0 %2972 }
 0xc89   :  { %v10268_v3 = vpop.permute.xlu1 %2962 }
 0xc8c   :  { %v2971_v59 = vpop.permute.xlu0 %2970 }
 0xc8d   :  { %v10270_v28 = vpop.permute.xlu1 %3052 }
 0xc90   :  { %v10272_v37 = vpop.permute.xlu0 %3062 }
 0xc91   :  { %v3003_v58 = vpop.permute.xlu1 %3002 }
 0xc94   :  { %v10274_v54 = vpop.permute.xlu0 %2954 }
 0xc95   :  { %v3001_v12 = vpop.permute.xlu1 %3000 }
 0xc96   :  { %v3114_v50 = vsel %vm1971_vm6, %v3001_v12, %v3003_v58  ;;  %v3105_v12 = vsel %vm1971_vm6, %v2973_v42, %v10238_v53  ;;  %v3141_v53 = vsel %vm1971_vm6, %v10264_v41, %v10223_v29 }
 0xc98   :  { %v10276_v17 = vpop.permute.xlu0 %2952 }
 0xc99   :  { %v10278_v63 = vpop.permute.xlu1 %3072 }
 0xc9a   :  { %v3138_v29 = vsel %vm1971_vm6, %v10278_v63, %v10204_v10 }
 0xc9c   :  { %v10280_v11 = vpop.permute.xlu0 %3044 }
 0xc9d   :  { %v10282_v30 = vpop.permute.xlu1 %3054 }
 0xca0   :  { %v10284_v45 = vpop.permute.xlu0 %2930 }
 0xca1   :  { %v2991_v15 = vpop.permute.xlu1 %2990 }
 0xca2   :  { %v3111_v14 = vsel %vm1971_vm6, %v2991_v15, %v10086_v6 }
 0xca4   :  { %v2997_v38 = vpop.permute.xlu0 %2996 }
 0xca5   :  { %v2989_v51 = vpop.permute.xlu1 %2988 }
 0xca9   :  { %v2995_v46 = vpop.permute.xlu0 %2994  ;;  %v3079_v60 = vpop.permute.xlu1 %3078 }
 0xcad   :  { %v10286_v19 = vpop.permute.xlu1 %3060 }
 0xcae   :  { %v3087_v16 = vpop.permute.xlu0 %3086 }
 0xcaf   :  { %v3143_v55 = vsel %vm1971_vm6, %v3087_v16, %v3089_v21  ;;  %v3116_v21 = vsel %vm1971_vm6, %v3007_v8, %v3009_v22  ;;  %v3110_v22 = vsel %vm1971_vm6, %v2989_v51, %v2991_v15  ;;  %v3104_v15 = vsel %vm1971_vm6, %v2971_v59, %v2973_v42 }
 0xcb0   :  { %3350 = vmatprep.subr.mxu0 %v3143_v55  ;;  %v3115_v55 = vsel %vm1971_vm6, %v3003_v58, %v10070_v52 }
 0xcb1   :  { %v10289_v43 = vpop.permute.xlu1 %3042 }
 0xcb2   :  { %v2979_v40 = vpop.permute.xlu0 %2978 }
 0xcb3   :  { %v3107_v58 = vsel %vm1971_vm6, %v2979_v40, %v2981_v7  ;;  %v3140_v7 = vsel %vm1971_vm6, %v3079_v60, %v10264_v41  ;;  %v3099_v41 = vsel %vm1971_vm6, %v10274_v54, %v10255_v48  ;;  %v3096_v48 = vsel %vm1971_vm6, %v10258_v32, %v10250_v9  ;;  %v14282_v60 = vld [vmem:[#allocation16_spill] sm:$0xff] }
 0xcb4   :  { %v3132_v32 = vsel %vm1971_vm6, %v10282_v30, %v10245_v36 }
 0xcb6   :  { %v3015_v25 = vpop.permute.xlu1 %3014 }
 0xcb7   :  { %v2977_v20 = vpop.permute.xlu0 %2976  ;;  %v3119_v47 = vsel %vm1971_vm6, %v3015_v25, %v10110_v56 }
 0xcb8   :  { %3303 = vmatprep.subr.mxu1 %v3119_v47  ;;  %v3112_v47 = vsel %vm1971_vm6, %v2995_v46, %v2997_v38  ;;  %v3106_v6 = vsel %vm1971_vm6, %v2977_v20, %v2979_v40  ;;  %v14285_v20 = vld [vmem:[#allocation55_spill] sm:$0xff] }
 0xcbb   :  { %v3013_v23 = vpop.permute.xlu1 %3012 }
 0xcbc   :  { %v3069_v26 = vpop.permute.xlu0 %3068  ;;  %v3118_v5 = vsel %vm1971_vm6, %v3013_v23, %v3015_v25  ;;  %v3113_v25 = vsel %vm1971_vm6, %v2997_v38, %v2999_v13  ;;  %v3108_v13 = vsel %vm1971_vm6, %v10190_v27, %v10177_v24  ;;  %v3102_v27 = vsel %vm1971_vm6, %v10234_v18, %v10219_v49 }
 0xcbd   :  { %3304 = vmatpush2.msra.mxu1 %v3118_v5 }
 0xcbe   :  { %3305 = vmatprep.subr.mxu1 %v3117_v1  ;;  %v14286_v1 = vld [vmem:[#allocation4_spill] sm:$0xff] }
 0xcbf   :  { %3306 = vmatpush2.msra.mxu1 %v3116_v21  ;;  %v3127_v21 = vsel %vm1971_vm6, %v14286_v1, %v10194_v33 }
 0xcc0   :  { %v10300_v31 = vpop.permute.xlu1 %3036  ;;  %3307 = vmatprep.subr.mxu1 %v3115_v55 }
 0xcc1   :  { %v10302_v56 = vpop.permute.xlu0 %2928  ;;  %3308 = vmatpush2.msra.mxu1 %v3114_v50  ;;  %v3109_v50 = vsel %vm1971_vm6, %v10177_v24, %v10096_v62  ;;  %v3103_v24 = vsel %vm1971_vm6, %v10219_v49, %v10139_v39  ;;  %v3139_v49 = vsel %vm1971_vm6, %v10204_v10, %v10121_v57  ;;  %v3137_v57 = vsel %vm1971_vm6, %v3069_v26, %v10266_v2 }
 0xcc2   :  { %3309 = vmatprep.subr.mxu1 %v3113_v25  ;;  %v3097_v10 = vsel %vm1971_vm6, %v10250_v9, %v10179_v34  ;;  %v3134_v2 = vsel %vm1971_vm6, %v10286_v19, %v10272_v37  ;;  %v3095_v34 = vsel %vm1971_vm6, %v10049_v44, %v14282_v60  ;;  %v3133_v9 = vsel %vm1971_vm6, %v10245_v36, %v10159_v0  ;;  %v14284_v19 = vld [vmem:[#allocation5_spill] sm:$0xff] }
 0xcc3   :  { %3310 = vmatpush2.msra.mxu1 %v3112_v47  ;;  %v3090_v30 = vsel %vm1971_vm6, %v10302_v56, %v10284_v45  ;;  %v13944_v47 = vlaneseq }
 0xcc4   :  { %3311 = vmatprep.subr.mxu1 %v3111_v14 }
 0xcc5   :  { %v2961_v52 = vpop.permute.xlu0 %2960  ;;  %v10309_v8 = vpop.permute.xlu1 %2932  ;;  %3312 = vmatpush2.msra.mxu1 %v3110_v22  ;;  %v10415_v14 = vshrl.u32 %v13944_v47, 7 }
 0xcc6   :  { %3313 = vmatprep.subr.mxu1 %v3109_v50  ;;  %v3101_v42 = vsel %vm1971_vm6, %v2961_v52, %v10268_v3  ;;  %v3098_v3 = vsel %vm1971_vm6, %v10276_v17, %v10274_v54  ;;  %v3135_v54 = vsel %vm1971_vm6, %v10272_v37, %v10247_v35  ;;  %v3094_v35 = vsel %vm1971_vm6, %v9947_v4, %v10049_v44  ;;  %v14283_v37 = vld [vmem:[#allocation19_spill] sm:$0xff] }
 0xcc7   :  { %3314 = vmatpush2.msra.mxu1 %v3108_v13  ;;  %v3092_v4 = vsel %vm1971_vm6, %v14285_v20, %v14284_v19  ;;  %v3091_v36 = vsel %vm1971_vm6, %v10284_v45, %v10309_v8  ;;  %v6702_v45 = vld [vmem:[%s13821_s7 + $0x10] sm:$0xff]  ;;  %14288 = vst [vmem:[#allocation13_spill] sm:$0xff] %v10415_v14  ;;  %v3419_v8 = vsub.s32 1, %v10415_v14  ;;  %v3415_v50 = vsub.s32 0, %v10415_v14 }
 0xcc8   :  { %3315 = vmatprep.subr.mxu1 %v3107_v58 }
 0xcc9   :  { %3316 = vmatpush2.msra.mxu1 %v3106_v6  ;;  %v3411_v6 = vld [vmem:[%s13822_s14] sm:$0x3] }
 0xcca   :  { %v2959_v38 = vpop.permute.xlu0 %2958  ;;  %v3085_v51 = vpop.permute.xlu1 %3084  ;;  %3317 = vmatprep.subr.mxu1 %v3105_v12 }
 0xccb   :  { %v3142_v62 = vsel %vm1971_vm6, %v3085_v51, %v3087_v16  ;;  %3318 = vmatpush2.msra.mxu1 %v3104_v15  ;;  %v3100_v39 = vsel %vm1971_vm6, %v2959_v38, %v2961_v52  ;;  %v3093_v16 = vsel %vm1971_vm6, %v14284_v19, %v14283_v37  ;;  %v3420_v38 = vrot.slane %v3411_v6, %v3419_v8  ;;  %v3550_v8 = vld [vmem:[%s13823_s12 + $0x248] sm:$0xff] }
 0xccc   :  { %3351 = vmatpush1.msra.mxu0 %v3142_v62  ;;  %3319 = vmatprep.subr.mxu1 %v3103_v24  ;;  %v3416_v24 = vrot.slane %v3411_v6, %v3415_v50  ;;  %v3547_v50 = vld [vmem:[%s13823_s12 + $0x230] sm:$0xff] }
 0xccd   :  { %3352 = vmatprep.subr.mxu0 %v3141_v53  ;;  %3320 = vmatpush2.msra.mxu1 %v3102_v27  ;;  %v3543_v6 = vld [vmem:[%s13823_s12 + $0x210] sm:$0xff] }
 0xcce   :  { %3353 = vmatpush1.msra.mxu0 %v3140_v7  ;;  %v3067_v59 = vpop.permute.xlu1 %3066  ;;  %3321 = vmatprep.subr.mxu1 %v3101_v42  ;;  %v14291_v42 = vld [vmem:[#allocation42_spill] sm:$0xff] }
 0xccf   :  { %v3051_v18 = vpop.permute.xlu0 %3050  ;;  %3354 = vmatprep.subr.mxu0 %v3139_v49  ;;  %3322 = vmatpush2.msra.mxu1 %v3100_v39  ;;  %v3136_v46 = vsel %vm1971_vm6, %v3067_v59, %v3069_v26  ;;  %v3128_v26 = vsel %vm1971_vm6, %v10289_v43, %v10280_v11  ;;  %v3424_v39 = vmul.f32 %v3420_v38, %v14291_v42  ;;  %v14292_v49 = vld [vmem:[#allocation33_spill] sm:$0xff] }
 0xcd0   :  { %3355 = vmatpush1.msra.mxu0 %v3138_v29  ;;  %3323 = vmatprep.subr.mxu1 %v3099_v41  ;;  %v3131_v0 = vsel %vm1971_vm6, %v3051_v18, %v10270_v28  ;;  %v3129_v28 = vsel %vm1971_vm6, %v10280_v11, %v10260_v61  ;;  %v3126_v61 = vsel %vm1971_vm6, %v10300_v31, %v14286_v1  ;;  %v6703_v31 = vld [vmem:[%s13821_s7 + $0x20] sm:$0xff] }
 0xcd1   :  { %3356 = vmatprep.subr.mxu0 %v3137_v57  ;;  %3324 = vmatpush2.msra.mxu1 %v3098_v3  ;;  %v3423_v29 = vmul.f32 %v3416_v24, %v14292_v49  ;;  %v3569_v1 = vld [vmem:[%s13823_s12 + $0x2e0] sm:$0xff] }
 0xcd2   :  { %3357 = vmatpush1.msra.mxu0 %v3136_v46  ;;  %v3035_v63 = vpop.permute.xlu1 %3034  ;;  %3325 = vmatprep.subr.mxu1 %v3097_v10 }
 0xcd3   :  { %v3027_v17 = vpop.permute.xlu0 %3026  ;;  %3358 = vmatprep.subr.mxu0 %v3135_v54  ;;  %3326 = vmatpush2.msra.mxu1 %v3096_v48 }
 0xcd4   :  { %3359 = vmatpush1.msra.mxu0 %v3134_v2  ;;  %3327 = vmatprep.subr.mxu1 %v3095_v34 }
 0xcd5   :  { %3360 = vmatprep.subr.mxu0 %v3133_v9  ;;  %3328 = vmatpush2.msra.mxu1 %v3094_v35 }
 0xcd6   :  { %3361 = vmatpush1.msra.mxu0 %v3132_v32  ;;  %v3049_v40 = vpop.permute.xlu1 %3048  ;;  %3329 = vmatprep.subr.mxu1 %v3093_v16 }
 0xcd7   :  { %v3033_v44 = vpop.permute.xlu0 %3032  ;;  %v3130_v23 = vsel %vm1971_vm6, %v3049_v40, %v3051_v18  ;;  %3362 = vmatprep.subr.mxu0 %v3131_v0  ;;  %3330 = vmatpush2.msra.mxu1 %v3092_v4  ;;  %v3583_v4 = vld [vmem:[%s13823_s12 + $0x350] sm:$0xff] }
 0xcd8   :  { %3363 = vmatpush1.msra.mxu0 %v3130_v23  ;;  %3331 = vmatprep.subr.mxu1 %v3091_v36  ;;  %v3125_v11 = vsel %vm1971_vm6, %v3033_v44, %v3035_v63  ;;  %v3582_v23 = vld [vmem:[%s13823_s12 + $0x348] sm:$0xff]  ;;  %v3584_v36 = vld [vmem:[%s13823_s12 + $0x358] sm:$0xff] }
 0xcd9   :  { %3364 = vmatprep.subr.mxu0 %v3129_v28  ;;  %3332 = vmatpush2.msra.mxu1 %v3090_v30  ;;  %v3576_v30 = vld [vmem:[%s13823_s12 + $0x318] sm:$0xff]  ;;  %v3578_v28 = vld [vmem:[%s13823_s12 + $0x328] sm:$0xff] }
 0xcda   :  { %3365 = vmatpush1.msra.mxu0 %v3128_v26  ;;  %v3031_v5 = vpop.permute.xlu1 %3030  ;;  %3334 = vmatmul.mubr.f32.vlgmr.msra.gmra.mxu1 %v6702_v45  ;;  %v3575_v26 = vld [vmem:[%s13823_s12 + $0x310] sm:$0xff]  ;;  %v3568_v45 = vld [vmem:[%s13823_s12 + $0x2d8] sm:$0xff] }
 0xcdb   :  { %3366 = vmatprep.subr.mxu0 %v3127_v21  ;;  %v3025_v43 = vpop.permute.xlu0 %3024  ;;  %v3124_v55 = vsel %vm1971_vm6, %v3031_v5, %v3033_v44  ;;  %v3585_v44 = vld [vmem:[%s13823_s12 + $0x360] sm:$0xff]  ;;  %3698 = vmatprep.subr.mxu1 %v3583_v4  ;;  %v3571_v21 = vld [vmem:[%s13823_s12 + $0x2f0] sm:$0xff] }
 0xcdc   :  { %3367 = vmatpush1.msra.mxu0 %v3126_v61  ;;  %v3122_v25 = vsel %vm1971_vm6, %v3025_v43, %v3027_v17  ;;  %3699 = vmatpush1.msra.mxu1 %v3582_v23  ;;  %v3577_v5 = vld [vmem:[%s13823_s12 + $0x320] sm:$0xff]  ;;  %v3570_v61 = vld [vmem:[%s13823_s12 + $0x2e8] sm:$0xff]  ;;  %v3564_v43 = vld [vmem:[%s13823_s12 + $0x2b8] sm:$0xff] }
 0xcdd   :  { %3368 = vmatprep.subr.mxu0 %v3125_v11  ;;  %3700 = vmatprep.subr.mxu1 %v3576_v30  ;;  %v3562_v11 = vld [vmem:[%s13823_s12 + $0x2a8] sm:$0xff]  ;;  %v3487_v4 = vld [vmem:[%s13823_s12 + $0x50] sm:$0xff]  ;;  %v3480_v30 = vld [vmem:[%s13823_s12 + $0x18] sm:$0xff] }
 0xcde   :  { %3369 = vmatpush1.msra.mxu0 %v3124_v55  ;;  %v3029_v56 = vpop.permute.xlu1 %3028  ;;  %3701 = vmatpush1.msra.mxu1 %v3575_v26  ;;  %v3561_v55 = vld [vmem:[%s13823_s12 + $0x2a0] sm:$0xff]  ;;  %v3486_v23 = vld [vmem:[%s13823_s12 + $0x48] sm:$0xff]  ;;  %v3479_v26 = vld [vmem:[%s13823_s12 + $0x10] sm:$0xff] }
 0xcdf   :  { %v3123_v33 = vsel %vm1971_vm6, %v3027_v17, %v3029_v56  ;;  %3702 = vmatprep.subr.mxu1 %v3569_v1  ;;  %v3563_v56 = vld [vmem:[%s13823_s12 + $0x2b0] sm:$0xff]  ;;  %v3669_v1 = vld [vmem:[%s13823_s12 + $0x600] sm:$0x1f]  ;;  %vm4323_vm6 = vcmask 539648  }
 0xce0   :  { %3370 = vmatprep.subr.mxu0 %v3123_v33  ;;  %3703 = vmatpush1.msra.mxu1 %v3568_v45  ;;  %v3555_v33 = vld [vmem:[%s13823_s12 + $0x270] sm:$0xff]  ;;  %v3668_v45 = vld [vmem:[%s13823_s12 + $0x5f8] sm:$0x1f] }
 0xce1   :  { %3371 = vmatpush1.msra.mxu0 %v3122_v25  ;;  %v3557_v25 = vld [vmem:[%s13823_s12 + $0x280] sm:$0xff]  ;;  %3704 = vmatprep.subr.mxu1 %v3562_v11  ;;  %v3662_v11 = vld [vmem:[%s13823_s12 + $0x5c8] sm:$0xff] }
 0xce2   :  { %6453 = vmatmul.mubr.msk.f32.vlgmr.msra.gmra.mxu0 %vm14287_vm9, %v6703_v31  ;;  %3769 = vmatprep.subr.mxu0 %v3585_v44  ;;  %v3554_v31 = vld [vmem:[%s13823_s12 + $0x268] sm:$0xff]  ;;  %v3484_v44 = vld [vmem:[%s13823_s12 + $0x38] sm:$0xff]  ;;  %vm4189_vm9 = vcmask 777216  }
 0xce3   :  { %3770 = vmatpush1.msra.mxu0 %v3584_v36  ;;  %3705 = vmatpush1.msra.mxu1 %v3561_v55  ;;  %v3478_v36 = vld [vmem:[%s13823_s12 + $0x8] sm:$0xff]  ;;  %v3661_v55 = vld [vmem:[%s13823_s12 + $0x5c0] sm:$0xff] }
 0xce4   :  { %3771 = vmatprep.subr.mxu0 %v3578_v28  ;;  %3706 = vmatprep.subr.mxu1 %v3555_v33  ;;  %v3477_v28 = vld [vmem:[%s13823_s12] sm:$0xff]  ;;  %v3655_v33 = vld [vmem:[%s13823_s12 + $0x590] sm:$0xff] }
 0xce5   :  { %3772 = vmatpush1.msra.mxu0 %v3577_v5  ;;  %3707 = vmatpush1.msra.mxu1 %v3554_v31  ;;  %v3667_v5 = vld [vmem:[%s13823_s12 + $0x5f0] sm:$0x1f]  ;;  %v3654_v31 = vld [vmem:[%s13823_s12 + $0x588] sm:$0xff] }
 0xce6   :  { %3773 = vmatprep.subr.mxu0 %v3571_v21  ;;  %v3666_v21 = vld [vmem:[%s13823_s12 + $0x5e8] sm:$0x1f] }
 0xce7   :  { %3774 = vmatpush1.msra.mxu0 %v3570_v61  ;;  %v3660_v61 = vld [vmem:[%s13823_s12 + $0x5b8] sm:$0xff] }
 0xce8   :  { %3775 = vmatprep.subr.mxu0 %v3564_v43  ;;  %v3659_v43 = vld [vmem:[%s13823_s12 + $0x5b0] sm:$0xff] }
 0xce9   :  { %3776 = vmatpush1.msra.mxu0 %v3563_v56  ;;  %v3653_v56 = vld [vmem:[%s13823_s12 + $0x580] sm:$0xff] }
 0xcea   :  { %3777 = vmatprep.subr.mxu0 %v3557_v25  ;;  %v3652_v25 = vld [vmem:[%s13823_s12 + $0x578] sm:$0xff] }
 0xd30   :  { %v3264_v22 = vpop.f32.mrf.mxu0 }
 0xd32   :  { %v3266_v13 = vpop.f32.mrf.mxu0 }
 0xd9a   :  { %v3335_v52 = vpop.f32.mrf.mxu1 }
 0xd9b   :  { %v3336_v12 = vadd.f32 %v3335_v52, %v3264_v22  ;;  %v3556_v22 = vld [vmem:[%s13823_s12 + $0x278] sm:$0xff] }
 0xd9c   :  { %v3337_v58 = vpop.f32.mrf.mxu1  ;;  %v3548_v52 = vld [vmem:[%s13823_s12 + $0x238] sm:$0xff]  ;;  %3778 = vmatpush1.msra.mxu0 %v3556_v22  ;;  %v3646_v22 = vld [vmem:[%s13823_s12 + $0x548] sm:$0xff] }
 0xd9d   :  { %v3338_v51 = vadd.f32 %v3337_v58, %v3266_v13  ;;  %v3549_v13 = vld [vmem:[%s13823_s12 + $0x240] sm:$0xff]  ;;  %3708 = vmatprep.subr.mxu1 %v3548_v52  ;;  %3779 = vmatprep.subr.mxu0 %v3550_v8  ;;  %v3648_v52 = vld [vmem:[%s13823_s12 + $0x558] sm:$0xff] }
 0xd9e   :  { %v3541_v58 = vld [vmem:[%s13823_s12 + $0x200] sm:$0xff]  ;;  %3709 = vmatpush1.msra.mxu1 %v3547_v50  ;;  %3780 = vmatpush1.msra.mxu0 %v3549_v13  ;;  %v3647_v50 = vld [vmem:[%s13823_s12 + $0x550] sm:$0xff] }
 0xd9f   :  { %3710 = vmatprep.subr.mxu1 %v3541_v58  ;;  %3781 = vmatprep.subr.mxu0 %v3543_v6  ;;  %v3645_v8 = vld [vmem:[%s13823_s12 + $0x540] sm:$0xff]  ;;  %v3639_v13 = vld [vmem:[%s13823_s12 + $0x510] sm:$0xff]  ;;  %v3638_v6 = vld [vmem:[%s13823_s12 + $0x508] sm:$0xff] }
 0xda0   :  { %v3641_v58 = vld [vmem:[%s13823_s12 + $0x520] sm:$0xff] }
 0xda2   :  { %v3406_v15 = vpop.f32.mrf.mxu0 }
 0xda3   :  { %v10422_v62 = vadd.f32 %v3406_v15, %v3336_v12  ;;  %v3540_v12 = vld [vmem:[%s13823_s12 + $0x1f8] sm:$0xff]  ;;  %v3542_v15 = vld [vmem:[%s13823_s12 + $0x208] sm:$0xff] }
 0xda4   :  { %v3408_v27 = vpop.f32.mrf.mxu0  ;;  %3711 = vmatpush1.msra.mxu1 %v3540_v12  ;;  %3782 = vmatpush1.msra.mxu0 %v3542_v15  ;;  %v3640_v12 = vld [vmem:[%s13823_s12 + $0x518] sm:$0xff] }
 0xda5   :  { %14289 = vst [vmem:[#allocation49_spill] sm:$0xff] %v10422_v62  ;;  %v10424_v53 = vadd.f32 %v3408_v27, %v3338_v51  ;;  %v3425_v7 = vmul.f32 %v3416_v24, %v10422_v62  ;;  %v3536_v51 = vld [vmem:[%s13823_s12 + $0x1d8] sm:$0xff]  ;;  %v3535_v27 = vld [vmem:[%s13823_s12 + $0x1d0] sm:$0xff] }
 0xda6   :  { %3783 = vmatprep.subr.mxu0 %v3536_v51  ;;  %v3632_v15 = vld [vmem:[%s13823_s12 + $0x4d8] sm:$0xff]  ;;  %v3631_v51 = vld [vmem:[%s13823_s12 + $0x4d0] sm:$0xff] }
 0xda7   :  { %14290 = vst [vmem:[#allocation58_spill] sm:$0xff] %v10424_v53  ;;  %v3426_v59 = vmul.f32 %v3420_v38, %v10424_v53  ;;  %v3427_v41 = vadd.f32 %v3425_v7, %v3423_v29  ;;  %v3527_v7 = vld [vmem:[%s13823_s12 + $0x190] sm:$0xff]  ;;  %v3528_v29 = vld [vmem:[%s13823_s12 + $0x198] sm:$0xff]  ;;  %3784 = vmatpush1.msra.mxu0 %v3535_v27  ;;  %v3625_v27 = vld [vmem:[%s13823_s12 + $0x4a0] sm:$0xff] }
 0xda9   :  { %v3428_v18 = vadd.f32 %v3426_v59, %v3424_v39  ;;  %v3529_v39 = vld [vmem:[%s13823_s12 + $0x1a0] sm:$0xff]  ;;  %v3526_v59 = vld [vmem:[%s13823_s12 + $0x188] sm:$0xff] }
 0xdaa   :  { %3785 = vmatprep.subr.mxu0 %v3529_v39  ;;  %v3624_v39 = vld [vmem:[%s13823_s12 + $0x498] sm:$0xff] }
 0xdab   :  { %v3429_v3 = vsel %vm13959_vm7, %v3428_v18, 0.0  ;;  %v3520_v18 = vld [vmem:[%s13823_s12 + $0x158] sm:$0xff]  ;;  %3786 = vmatpush1.msra.mxu0 %v3528_v29  ;;  %v3618_v29 = vld [vmem:[%s13823_s12 + $0x468] sm:$0xff] }
 0xdac   :  { %v3430_v57 = vadd.f32 %v3429_v3, %v3427_v41  ;;  %v3522_v41 = vld [vmem:[%s13823_s12 + $0x168] sm:$0xff]  ;;  %v3519_v3 = vld [vmem:[%s13823_s12 + $0x150] sm:$0xff] }
 0xdad   :  { %3787 = vmatprep.subr.mxu0 %v3522_v41  ;;  %v3617_v41 = vld [vmem:[%s13823_s12 + $0x460] sm:$0xff] }
 0xdae   :  { %3431 = vadd.xlane.f32.xlu1 %v3430_v57  ;;  %v3521_v57 = vld [vmem:[%s13823_s12 + $0x160] sm:$0xff] }
 0xdaf   :  { %3788 = vmatpush1.msra.mxu0 %v3521_v57 }
 0xe37   :  { %v3432_v46 = vpop.xlane.xlu1 %3431 }
 0xe38   :  { %v10431_v10 = vmul.f32 0.00295858, %v3432_v46  ;;  %v3513_v46 = vld [vmem:[%s13823_s12 + $0x120] sm:$0xff] }
 0xe3a   :  { %v3435_v48 = vsub.f32 %v14292_v49, %v10431_v10  ;;  %v3436_v63 = vsub.f32 %v14291_v42, %v10431_v10  ;;  %v3441_v54 = vsub.f32 %v10422_v62, %v10431_v10  ;;  %v3442_v2 = vsub.f32 %v10424_v53, %v10431_v10 }
 0xe3c   :  { %v3437_v17 = vmul.f32 %v3435_v48, %v3435_v48  ;;  %v3438_v60 = vmul.f32 %v3436_v63, %v3436_v63  ;;  %v3443_v34 = vmul.f32 %v3441_v54, %v3441_v54  ;;  %v3444_v9 = vmul.f32 %v3442_v2, %v3442_v2  ;;  %v3515_v48 = vld [vmem:[%s13823_s12 + $0x130] sm:$0xff]  ;;  %v3512_v63 = vld [vmem:[%s13823_s12 + $0x118] sm:$0xff]  ;;  %v3514_v54 = vld [vmem:[%s13823_s12 + $0x128] sm:$0xff] }
 0xe3d   :  { %v3506_v2 = vld [vmem:[%s13823_s12 + $0xe8] sm:$0xff]  ;;  %3789 = vmatprep.subr.mxu0 %v3515_v48 }
 0xe3e   :  { %v3439_v35 = vmul.f32 %v3437_v17, %v3416_v24  ;;  %v3440_v32 = vmul.f32 %v3438_v60, %v3420_v38  ;;  %v3445_v37 = vmul.f32 %v3443_v34, %v3416_v24  ;;  %v3446_v19 = vmul.f32 %v3444_v9, %v3420_v38  ;;  %v3534_v38 = vld [vmem:[%s13823_s12 + $0x1c8] sm:$0xff]  ;;  %v3533_v24 = vld [vmem:[%s13823_s12 + $0x1c0] sm:$0xff]  ;;  %v3508_v17 = vld [vmem:[%s13823_s12 + $0xf8] sm:$0xff]  ;;  %3790 = vmatpush1.msra.mxu0 %v3514_v54 }
 0xe3f   :  { %3712 = vmatprep.subr.mxu1 %v3534_v38  ;;  %v3505_v60 = vld [vmem:[%s13823_s12 + $0xe0] sm:$0xff]  ;;  %v3507_v34 = vld [vmem:[%s13823_s12 + $0xf0] sm:$0xff]  ;;  %3791 = vmatprep.subr.mxu0 %v3508_v17  ;;  %v3634_v38 = vld [vmem:[%s13823_s12 + $0x4e8] sm:$0xff] }
 0xe40   :  { %v3447_v16 = vadd.f32 %v3445_v37, %v3439_v35  ;;  %v3448_v40 = vadd.f32 %v3446_v19, %v3440_v32  ;;  %3713 = vmatpush1.msra.mxu1 %v3533_v24  ;;  %v3499_v9 = vld [vmem:[%s13823_s12 + $0xb0] sm:$0xff]  ;;  %v3501_v35 = vld [vmem:[%s13823_s12 + $0xc0] sm:$0xff]  ;;  %v3498_v32 = vld [vmem:[%s13823_s12 + $0xa8] sm:$0xff]  ;;  %3792 = vmatpush1.msra.mxu0 %v3507_v34 }
 0xe41   :  { %3714 = vmatprep.subr.mxu1 %v3527_v7  ;;  %v3500_v37 = vld [vmem:[%s13823_s12 + $0xb8] sm:$0xff]  ;;  %3793 = vmatprep.subr.mxu0 %v3501_v35  ;;  %v3633_v24 = vld [vmem:[%s13823_s12 + $0x4e0] sm:$0xff]  ;;  %v3627_v7 = vld [vmem:[%s13823_s12 + $0x4b0] sm:$0xff] }
 0xe42   :  { %v3449_v0 = vsel %vm13959_vm7, %v3448_v40, 0.0  ;;  %3715 = vmatpush1.msra.mxu1 %v3526_v59  ;;  %v3492_v19 = vld [vmem:[%s13823_s12 + $0x78] sm:$0xff]  ;;  %v3491_v40 = vld [vmem:[%s13823_s12 + $0x70] sm:$0xff]  ;;  %3794 = vmatpush1.msra.mxu0 %v3500_v37  ;;  %v3626_v59 = vld [vmem:[%s13823_s12 + $0x4a8] sm:$0xff] }
 0xe43   :  { %v3450_v20 = vadd.f32 %v3449_v0, %v3447_v16  ;;  %3716 = vmatprep.subr.mxu1 %v3520_v18  ;;  %v3494_v16 = vld [vmem:[%s13823_s12 + $0x88] sm:$0xff]  ;;  %v3493_v0 = vld [vmem:[%s13823_s12 + $0x80] sm:$0xff]  ;;  %v3620_v18 = vld [vmem:[%s13823_s12 + $0x478] sm:$0xff] }
 0xe44   :  { %3717 = vmatpush1.msra.mxu1 %v3519_v3  ;;  %3795 = vmatprep.subr.mxu0 %v3494_v16  ;;  %v3619_v3 = vld [vmem:[%s13823_s12 + $0x470] sm:$0xff]  ;;  %v3610_v17 = vld [vmem:[%s13823_s12 + $0x428] sm:$0xff]  ;;  %v3612_v34 = vld [vmem:[%s13823_s12 + $0x438] sm:$0xff] }
 0xe45   :  { %3451 = vadd.xlane.f32.xlu0 %v3450_v20  ;;  %3718 = vmatprep.subr.mxu1 %v3513_v46  ;;  %v3485_v20 = vld [vmem:[%s13823_s12 + $0x40] sm:$0xff]  ;;  %v3611_v54 = vld [vmem:[%s13823_s12 + $0x430] sm:$0xff]  ;;  %v3606_v35 = vld [vmem:[%s13823_s12 + $0x408] sm:$0xff] }
 0xe46   :  { %3719 = vmatpush1.msra.mxu1 %v3512_v63  ;;  %3796 = vmatpush1.msra.mxu0 %v3493_v0  ;;  %v3454_v63 = vld [vmem:[%s13824_s8] sm:$0xff]  ;;  %v3599_v0 = vld [vmem:[%s13823_s12 + $0x3d0] sm:$0xff] }
 0xe47   :  { %3720 = vmatprep.subr.mxu1 %v3506_v2  ;;  %3797 = vmatprep.subr.mxu0 %v3487_v4  ;;  %v3613_v2 = vld [vmem:[%s13823_s12 + $0x440] sm:$0xff] }
 0xe48   :  { %3721 = vmatpush1.msra.mxu1 %v3505_v60  ;;  %3798 = vmatpush1.msra.mxu0 %v3486_v23  ;;  %v3458_v37 = vld [vmem:[%s13825_s9] sm:$0xff]  ;;  %v3590_v23 = vld [vmem:[%s13823_s12 + $0x388] sm:$0xff]  ;;  %s6755_s9 = smov 100  }
 0xe49   :  { %3722 = vmatprep.subr.mxu1 %v3499_v9  ;;  %3799 = vmatprep.subr.mxu0 %v3480_v30  ;;  %v3604_v9 = vld [vmem:[%s13823_s12 + $0x3f8] sm:$0xff]  ;;  %v3605_v16 = vld [vmem:[%s13823_s12 + $0x400] sm:$0xff] }
 0xe4a   :  { %3723 = vmatpush1.msra.mxu1 %v3498_v32  ;;  %3800 = vmatpush1.msra.mxu0 %v3479_v26  ;;  %v3587_v26 = vld [vmem:[%s13823_s12 + $0x370] sm:$0xff] }
 0xe4b   :  { %3724 = vmatprep.subr.mxu1 %v3492_v19  ;;  %6457 = vmatprep.subr.msk.mxu0 %vm13958_vm8, %v3669_v1  ;;  %v3603_v19 = vld [vmem:[%s13823_s12 + $0x3f0] sm:$0xff] }
 0xe4c   :  { %3725 = vmatpush1.msra.mxu1 %v3491_v40  ;;  %6458 = vmatpush2.msk.msra.mxu0 %vm13958_vm8, %v3668_v45  ;;  %v3597_v40 = vld [vmem:[%s13823_s12 + $0x3c0] sm:$0xff] }
 0xe4d   :  { %3726 = vmatprep.subr.mxu1 %v3485_v20  ;;  %3811 = vmatprep.subr.mxu0 %v3662_v11  ;;  %v3596_v20 = vld [vmem:[%s13823_s12 + $0x3b8] sm:$0xff] }
 0xe4e   :  { %3727 = vmatpush1.msra.mxu1 %v3484_v44  ;;  %3812 = vmatpush2.msra.mxu0 %v3661_v55  ;;  %v3598_v44 = vld [vmem:[%s13823_s12 + $0x3c8] sm:$0xff] }
 0xe4f   :  { %3728 = vmatprep.subr.mxu1 %v3478_v36  ;;  %3813 = vmatprep.subr.mxu0 %v3655_v33  ;;  %v3592_v36 = vld [vmem:[%s13823_s12 + $0x398] sm:$0xff]  ;;  %v3586_v33 = vld [vmem:[%s13823_s12 + $0x368] sm:$0xff] }
 0xe50   :  { %3729 = vmatpush1.msra.mxu1 %v3477_v28  ;;  %3814 = vmatpush2.msra.mxu0 %v3654_v31  ;;  %v3591_v28 = vld [vmem:[%s13823_s12 + $0x390] sm:$0xff]  ;;  %v3581_v31 = vld [vmem:[%s13823_s12 + $0x340] sm:$0xff] }
 0xe51   :  { %6454 = vmatprep.subr.msk.mxu1 %vm13958_vm8, %v3667_v5  ;;  %3815 = vmatprep.subr.mxu0 %v3648_v52  ;;  %v14293_v5 = vmov 0.0   ;;  %v3572_v52 = vld [vmem:[%s13823_s12 + $0x2f8] sm:$0xff] }
 0xe52   :  { %6455 = vmatpush2.msk.msra.mxu1 %vm13958_vm8, %v3666_v21  ;;  %3816 = vmatpush2.msra.mxu0 %v3647_v50  ;;  %v3566_v50 = vld [vmem:[%s13823_s12 + $0x2c8] sm:$0xff] }
 0xe53   :  { %3740 = vmatprep.subr.mxu1 %v3660_v61  ;;  %3817 = vmatprep.subr.mxu0 %v3641_v58  ;;  %v3567_v58 = vld [vmem:[%s13823_s12 + $0x2d0] sm:$0xff] }
 0xe54   :  { %3741 = vmatpush2.msra.mxu1 %v3659_v43  ;;  %3818 = vmatpush2.msra.mxu0 %v3640_v12  ;;  %v3558_v12 = vld [vmem:[%s13823_s12 + $0x288] sm:$0xff] }
 0xe55   :  { %3742 = vmatprep.subr.mxu1 %v3653_v56  ;;  %3819 = vmatprep.subr.mxu0 %v3634_v38  ;;  %v3552_v38 = vld [vmem:[%s13823_s12 + $0x258] sm:$0xff] }
 0xe56   :  { %3743 = vmatpush2.msra.mxu1 %v3652_v25  ;;  %3820 = vmatpush2.msra.mxu0 %v3633_v24  ;;  %v3579_v25 = vld [vmem:[%s13823_s12 + $0x330] sm:$0xff]  ;;  %v3553_v24 = vld [vmem:[%s13823_s12 + $0x260] sm:$0xff] }
 0xe57   :  { %3744 = vmatprep.subr.mxu1 %v3646_v22  ;;  %3821 = vmatprep.subr.mxu0 %v3627_v7  ;;  %v3573_v22 = vld [vmem:[%s13823_s12 + $0x300] sm:$0xff]  ;;  %v3544_v7 = vld [vmem:[%s13823_s12 + $0x218] sm:$0xff] }
 0xe58   :  { %3745 = vmatpush2.msra.mxu1 %v3645_v8  ;;  %3822 = vmatpush2.msra.mxu0 %v3626_v59  ;;  %v3574_v8 = vld [vmem:[%s13823_s12 + $0x308] sm:$0xff] }
 0xe59   :  { %3746 = vmatprep.subr.mxu1 %v3639_v13  ;;  %3823 = vmatprep.subr.mxu0 %v3620_v18  ;;  %v3565_v13 = vld [vmem:[%s13823_s12 + $0x2c0] sm:$0xff]  ;;  %v3538_v59 = vld [vmem:[%s13823_s12 + $0x1e8] sm:$0xff]  ;;  %v3539_v18 = vld [vmem:[%s13823_s12 + $0x1f0] sm:$0xff] }
 0xe5a   :  { %3747 = vmatpush2.msra.mxu1 %v3638_v6  ;;  %3824 = vmatpush2.msra.mxu0 %v3619_v3  ;;  %v3559_v6 = vld [vmem:[%s13823_s12 + $0x290] sm:$0xff]  ;;  %v3530_v3 = vld [vmem:[%s13823_s12 + $0x1a8] sm:$0xff] }
 0xe5b   :  { %3748 = vmatprep.subr.mxu1 %v3632_v15  ;;  %3825 = vmatprep.subr.mxu0 %v3613_v2  ;;  %v3560_v15 = vld [vmem:[%s13823_s12 + $0x298] sm:$0xff] }
 0xe5c   :  { %3749 = vmatpush2.msra.mxu1 %v3631_v51  ;;  %3826 = vmatpush2.msra.mxu0 %v3612_v34  ;;  %v3551_v51 = vld [vmem:[%s13823_s12 + $0x250] sm:$0xff]  ;;  %v3516_v2 = vld [vmem:[%s13823_s12 + $0x138] sm:$0xff]  ;;  %v3509_v34 = vld [vmem:[%s13823_s12 + $0x100] sm:$0xff] }
 0xe5d   :  { %3750 = vmatprep.subr.mxu1 %v3625_v27  ;;  %3827 = vmatprep.subr.mxu0 %v3606_v35  ;;  %v3545_v27 = vld [vmem:[%s13823_s12 + $0x220] sm:$0xff]  ;;  %v3503_v35 = vld [vmem:[%s13823_s12 + $0xd0] sm:$0xff] }
 0xe5e   :  { %3751 = vmatpush2.msra.mxu1 %v3624_v39  ;;  %3828 = vmatpush2.msra.mxu0 %v3605_v16  ;;  %v3546_v39 = vld [vmem:[%s13823_s12 + $0x228] sm:$0xff]  ;;  %v3495_v16 = vld [vmem:[%s13823_s12 + $0x90] sm:$0xff] }
 0xe5f   :  { %3752 = vmatprep.subr.mxu1 %v3618_v29  ;;  %3829 = vmatprep.subr.mxu0 %v3599_v0  ;;  %v3537_v29 = vld [vmem:[%s13823_s12 + $0x1e0] sm:$0xff] }
 0xe60   :  { %3753 = vmatpush2.msra.mxu1 %v3617_v41  ;;  %3830 = vmatpush2.msra.mxu0 %v3598_v44  ;;  %v3531_v41 = vld [vmem:[%s13823_s12 + $0x1b0] sm:$0xff]  ;;  %v3489_v0 = vld [vmem:[%s13823_s12 + $0x60] sm:$0xff]  ;;  %v3482_v44 = vld [vmem:[%s13823_s12 + $0x28] sm:$0xff] }
 0xe61   :  { %3754 = vmatprep.subr.mxu1 %v3611_v54  ;;  %3831 = vmatprep.subr.mxu0 %v3592_v36  ;;  %v3517_v54 = vld [vmem:[%s13823_s12 + $0x140] sm:$0xff]  ;;  %v3483_v36 = vld [vmem:[%s13823_s12 + $0x30] sm:$0xff] }
 0xe62   :  { %3755 = vmatpush2.msra.mxu1 %v3610_v17  ;;  %3832 = vmatpush2.msra.mxu0 %v3591_v28  ;;  %v3518_v17 = vld [vmem:[%s13823_s12 + $0x148] sm:$0xff]  ;;  %v3672_v28 = vld [vmem:[%s13823_s12 + $0x618] sm:$0x1f] }
 0xe63   :  { %3756 = vmatprep.subr.mxu1 %v3604_v9  ;;  %3911 = vmatprep.subr.mxu0 %v14293_v5  ;;  %v3511_v9 = vld [vmem:[%s13823_s12 + $0x110] sm:$0xff] }
 0xe64   :  { %3757 = vmatpush2.msra.mxu1 %v3603_v19  ;;  %v3496_v19 = vld [vmem:[%s13823_s12 + $0x98] sm:$0xff] }
 0xe65   :  { %3758 = vmatprep.subr.mxu1 %v3597_v40  ;;  %v3497_v40 = vld [vmem:[%s13823_s12 + $0xa0] sm:$0xff] }
 0xe66   :  { %3759 = vmatpush2.msra.mxu1 %v3596_v20  ;;  %v3488_v20 = vld [vmem:[%s13823_s12 + $0x58] sm:$0xff] }
 0xe67   :  { %3760 = vmatprep.subr.mxu1 %v3590_v23  ;;  %v3481_v23 = vld [vmem:[%s13823_s12 + $0x20] sm:$0xff] }
 0xece   :  { %v3452_v57 = vpop.xlane.xlu0 %3451 }
 0xecf   :  { %v3453_v46 = vmul.f32 0.00295858, %v3452_v57  ;;  %v3532_v57 = vld [vmem:[%s13823_s12 + $0x1b8] sm:$0xff] }
 0xed1   :  { %v3455_v48 = vadd.f32 1e-05, %v3453_v46  ;;  %v3524_v46 = vld [vmem:[%s13823_s12 + $0x178] sm:$0xff] }
 0xed3   :  { %6627 = vrsqrt.f32 %v3455_v48  ;;  %v3523_v48 = vld [vmem:[%s13823_s12 + $0x170] sm:$0xff] }
 0xee0   :  { %v6628_v60 = vpop.eup %6627 }
 0xee1   :  { %v3457_v32 = vmul.f32 %v6628_v60, %v3454_v63  ;;  %v3525_v63 = vld [vmem:[%s13823_s12 + $0x180] sm:$0xff]  ;;  %v3510_v60 = vld [vmem:[%s13823_s12 + $0x108] sm:$0xff] }
 0xee3   :  { %3463 = vperm.xlu0 %6622, %v3457_v32   ;;  %v3459_v4 = vmul.f32 %v3457_v32, %v10431_v10  ;;  %v3589_v10 = vld [vmem:[%s13823_s12 + $0x380] sm:$0xff]  ;;  %v3502_v32 = vld [vmem:[%s13823_s12 + $0xc8] sm:$0xff] }
 0xee4   :  { %3761 = vmatpush2.msra.mxu1 %v3589_v10  ;;  %v3670_v10 = vld [vmem:[%s13823_s12 + $0x608] sm:$0x1f] }
 0xee5   :  { %v3460_v30 = vsub.f32 %v3458_v37, %v3459_v4  ;;  %3840 = vmatprep.subr.mxu1 %v3587_v26  ;;  %v3504_v37 = vld [vmem:[%s13823_s12 + $0xd8] sm:$0xff]  ;;  %v3490_v4 = vld [vmem:[%s13823_s12 + $0x68] sm:$0xff] }
 0xee6   :  { %v3664_v26 = vld [vmem:[%s13823_s12 + $0x5d8] sm:$0xff] }
 0xee7   :  { %3470 = vperm.xlu1 %6620, %v3460_v30   ;;  %v3671_v30 = vld [vmem:[%s13823_s12 + $0x610] sm:$0x1f] }
 0xf5e   :  { %v10793_v1 = vpop.permute.xlu0 %3463 }
 0xf5f   :  { %14294 = vst [vmem:[#allocation36_spill] sm:$0xff] %v10793_v1  ;;  %v3466_v21 = vmul.f32 %v10793_v1, %v14292_v49  ;;  %v3467_v45 = vmul.f32 %v10793_v1, %v14291_v42  ;;  %v3588_v49 = vld [vmem:[%s13823_s12 + $0x378] sm:$0xff] }
 0xf60   :  { %v3580_v42 = vld [vmem:[%s13823_s12 + $0x338] sm:$0xff] }
 0xf62   :  { %v10799_v61 = vpop.permute.xlu1 %3470 }
 0xf63   :  { %14295 = vst [vmem:[#allocation26_spill] sm:$0xff] %v10799_v61  ;;  %v3474_v11 = vadd.f32 %v10799_v61, %v3467_v45  ;;  %v3473_v43 = vadd.f32 %v10799_v61, %v3466_v21  ;;  %v3663_v21 = vld [vmem:[%s13823_s12 + $0x5d0] sm:$0xff]  ;;  %v3665_v45 = vld [vmem:[%s13823_s12 + $0x5e0] sm:$0xff] }
 0xf65   :  { %v3476_v55 = vmax.f32 %v3474_v11, 0.0  ;;  %v10803_v56 = vmax.f32 %v3473_v43, 0.0  ;;  %v3657_v11 = vld [vmem:[%s13823_s12 + $0x5a0] sm:$0xff]  ;;  %v3656_v43 = vld [vmem:[%s13823_s12 + $0x598] sm:$0xff] }
 0xf67   :  { %6456 = vmatprep.mubr.msk.f32.mxu1 %vm13959_vm7, %v3476_v55  ;;  %6459 = vmatprep.mubr.msk.f32.mxu0 %vm13959_vm7, %v3476_v55 }
 0xf68   :  { %3763 = vmatmul.mubr.f32.vlgmr.msra.gmra.mxu1 %v10803_v56  ;;  %3834 = vmatmul.mubr.f32.vlgmr.msra.gmra.mxu0 %v10803_v56 }
 0xf69   :  { %3841 = vmatpush1.msra.mxu1 %v3586_v33  ;;  %3912 = vmatpush1.msra.mxu0 %v3588_v49  ;;  %v3650_v33 = vld [vmem:[%s13823_s12 + $0x568] sm:$0xff]  ;;  %v3649_v49 = vld [vmem:[%s13823_s12 + $0x560] sm:$0xff] }
 0xf6a   :  { %3842 = vmatprep.subr.mxu1 %v3580_v42  ;;  %6462 = vmatprep.mubr.msk.f32.mxu1 %vm13959_vm7, %v3476_v55  ;;  %v3651_v42 = vld [vmem:[%s13823_s12 + $0x570] sm:$0xff] }
 0xf6b   :  { %3913 = vmatprep.subr.mxu0 %v14293_v5  ;;  %6464 = vmatprep.mubr.msk.f32.mxu0 %vm13959_vm7, %v3476_v55  ;;  %v3658_v55 = vld [vmem:[%s13823_s12 + $0x5a8] sm:$0xff]  ;;  %vm14305_vm7 = vcmask 588800  }
 0xf6c   :  { %3843 = vmatpush1.msra.mxu1 %v3579_v25  ;;  %3914 = vmatpush1.msra.mxu0 %v3581_v31  ;;  %v3643_v25 = vld [vmem:[%s13823_s12 + $0x530] sm:$0xff]  ;;  %v3642_v31 = vld [vmem:[%s13823_s12 + $0x528] sm:$0xff] }
 0xf6d   :  { %3844 = vmatprep.subr.mxu1 %v3573_v22  ;;  %3915 = vmatprep.subr.mxu0 %v14293_v5  ;;  %v3644_v22 = vld [vmem:[%s13823_s12 + $0x538] sm:$0xff] }
 0xf6e   :  { %3845 = vmatpush1.msra.mxu1 %v3572_v52  ;;  %3916 = vmatpush1.msra.mxu0 %v3574_v8  ;;  %v3636_v52 = vld [vmem:[%s13823_s12 + $0x4f8] sm:$0xff]  ;;  %v3635_v8 = vld [vmem:[%s13823_s12 + $0x4f0] sm:$0xff] }
 0xf6f   :  { %3846 = vmatprep.subr.mxu1 %v3566_v50  ;;  %3917 = vmatprep.subr.mxu0 %v14293_v5  ;;  %v3637_v50 = vld [vmem:[%s13823_s12 + $0x500] sm:$0xff] }
 0xf70   :  { %3847 = vmatpush1.msra.mxu1 %v3565_v13  ;;  %3918 = vmatpush1.msra.mxu0 %v3567_v58  ;;  %v3629_v13 = vld [vmem:[%s13823_s12 + $0x4c0] sm:$0xff]  ;;  %v3628_v58 = vld [vmem:[%s13823_s12 + $0x4b8] sm:$0xff] }
 0xf71   :  { %3848 = vmatprep.subr.mxu1 %v3559_v6  ;;  %3919 = vmatprep.subr.mxu0 %v14293_v5  ;;  %v3630_v6 = vld [vmem:[%s13823_s12 + $0x4c8] sm:$0xff] }
 0xf72   :  { %3849 = vmatpush1.msra.mxu1 %v3558_v12  ;;  %3920 = vmatpush1.msra.mxu0 %v3560_v15  ;;  %v3622_v12 = vld [vmem:[%s13823_s12 + $0x488] sm:$0xff]  ;;  %v3621_v15 = vld [vmem:[%s13823_s12 + $0x480] sm:$0xff] }
 0xf73   :  { %3850 = vmatprep.subr.mxu1 %v3552_v38  ;;  %3921 = vmatprep.subr.mxu0 %v14293_v5  ;;  %v3623_v38 = vld [vmem:[%s13823_s12 + $0x490] sm:$0xff] }
 0xf74   :  { %3851 = vmatpush1.msra.mxu1 %v3551_v51  ;;  %3922 = vmatpush1.msra.mxu0 %v3553_v24  ;;  %v3615_v51 = vld [vmem:[%s13823_s12 + $0x450] sm:$0xff]  ;;  %v3614_v24 = vld [vmem:[%s13823_s12 + $0x448] sm:$0xff] }
 0xf75   :  { %3852 = vmatprep.subr.mxu1 %v3545_v27  ;;  %3923 = vmatprep.subr.mxu0 %v14293_v5  ;;  %v3616_v27 = vld [vmem:[%s13823_s12 + $0x458] sm:$0xff] }
 0xf76   :  { %3853 = vmatpush1.msra.mxu1 %v3544_v7  ;;  %3924 = vmatpush1.msra.mxu0 %v3546_v39  ;;  %v3608_v7 = vld [vmem:[%s13823_s12 + $0x418] sm:$0xff]  ;;  %v3607_v39 = vld [vmem:[%s13823_s12 + $0x410] sm:$0xff] }
 0xf77   :  { %3854 = vmatprep.subr.mxu1 %v3538_v59  ;;  %3925 = vmatprep.subr.mxu0 %v14293_v5  ;;  %v3609_v59 = vld [vmem:[%s13823_s12 + $0x420] sm:$0xff] }
 0xf78   :  { %3855 = vmatpush1.msra.mxu1 %v3537_v29  ;;  %3926 = vmatpush1.msra.mxu0 %v3539_v18  ;;  %v3601_v29 = vld [vmem:[%s13823_s12 + $0x3e0] sm:$0xff]  ;;  %v3600_v18 = vld [vmem:[%s13823_s12 + $0x3d8] sm:$0xff] }
 0xf79   :  { %3856 = vmatprep.subr.mxu1 %v3531_v41  ;;  %3927 = vmatprep.subr.mxu0 %v14293_v5  ;;  %v3602_v41 = vld [vmem:[%s13823_s12 + $0x3e8] sm:$0xff] }
 0xf7a   :  { %3857 = vmatpush1.msra.mxu1 %v3530_v3  ;;  %3928 = vmatpush1.msra.mxu0 %v3532_v57  ;;  %v3594_v3 = vld [vmem:[%s13823_s12 + $0x3a8] sm:$0xff]  ;;  %v3593_v57 = vld [vmem:[%s13823_s12 + $0x3a0] sm:$0xff] }
 0xf7b   :  { %3858 = vmatprep.subr.mxu1 %v3524_v46  ;;  %3929 = vmatprep.subr.mxu0 %v14293_v5  ;;  %v3595_v46 = vld [vmem:[%s13823_s12 + $0x3b0] sm:$0xff] }
 0xf7c   :  { %3859 = vmatpush1.msra.mxu1 %v3523_v48  ;;  %3930 = vmatpush1.msra.mxu0 %v3525_v63 }
 0xf7d   :  { %3860 = vmatprep.subr.mxu1 %v3517_v54  ;;  %3931 = vmatprep.subr.mxu0 %v14293_v5 }
 0xf7e   :  { %3861 = vmatpush1.msra.mxu1 %v3516_v2  ;;  %3932 = vmatpush1.msra.mxu0 %v3518_v17 }
 0xf7f   :  { %3862 = vmatprep.subr.mxu1 %v3510_v60  ;;  %3933 = vmatprep.subr.mxu0 %v14293_v5 }
 0xf80   :  { %3863 = vmatpush1.msra.mxu1 %v3509_v34  ;;  %3934 = vmatpush1.msra.mxu0 %v3511_v9 }
 0xf81   :  { %3864 = vmatprep.subr.mxu1 %v3503_v35  ;;  %3935 = vmatprep.subr.mxu0 %v14293_v5 }
 0xf82   :  { %3865 = vmatpush1.msra.mxu1 %v3502_v32  ;;  %3936 = vmatpush1.msra.mxu0 %v3504_v37 }
 0xf83   :  { %3866 = vmatprep.subr.mxu1 %v3496_v19  ;;  %3937 = vmatprep.subr.mxu0 %v14293_v5 }
 0xf84   :  { %3867 = vmatpush1.msra.mxu1 %v3495_v16  ;;  %3938 = vmatpush1.msra.mxu0 %v3497_v40 }
 0xf85   :  { %3868 = vmatprep.subr.mxu1 %v3489_v0  ;;  %3939 = vmatprep.subr.mxu0 %v14293_v5 }
 0xf86   :  { %3869 = vmatpush1.msra.mxu1 %v3488_v20  ;;  %3940 = vmatpush1.msra.mxu0 %v3490_v4 }
 0xf87   :  { %3870 = vmatprep.subr.mxu1 %v3482_v44  ;;  %3941 = vmatprep.subr.mxu0 %v14293_v5 }
 0xf88   :  { %3871 = vmatpush1.msra.mxu1 %v3481_v23  ;;  %3942 = vmatpush1.msra.mxu0 %v3483_v36 }
 0xf89   :  { %6460 = vmatprep.subr.msk.mxu1 %vm13958_vm8, %v3671_v30  ;;  %3951 = vmatprep.subr.mxu0 %v14293_v5 }
 0xf8a   :  { %6461 = vmatpush2.msk.msra.mxu1 %vm13958_vm8, %v3670_v10  ;;  %6463 = vmatpush2.msk.msra.mxu0 %vm13958_vm8, %v3672_v28  ;;  %vm13965_vm8 = vcmask 818176  }
 0xf8b   :  { %3882 = vmatprep.subr.mxu1 %v3664_v26  ;;  %3953 = vmatprep.subr.mxu0 %v14293_v5 }
 0xf8c   :  { %3883 = vmatpush2.msra.mxu1 %v3663_v21  ;;  %3954 = vmatpush2.msra.mxu0 %v3665_v45 }
 0xf8d   :  { %3884 = vmatprep.subr.mxu1 %v3657_v11  ;;  %3955 = vmatprep.subr.mxu0 %v14293_v5 }
 0xf8e   :  { %3885 = vmatpush2.msra.mxu1 %v3656_v43  ;;  %3956 = vmatpush2.msra.mxu0 %v3658_v55 }
 0xf8f   :  { %3886 = vmatprep.subr.mxu1 %v3650_v33  ;;  %3957 = vmatprep.subr.mxu0 %v14293_v5 }
 0xf90   :  { %3887 = vmatpush2.msra.mxu1 %v3649_v49  ;;  %3958 = vmatpush2.msra.mxu0 %v3651_v42 }
 0xf91   :  { %3888 = vmatprep.subr.mxu1 %v3643_v25  ;;  %3959 = vmatprep.subr.mxu0 %v14293_v5 }
 0xf92   :  { %3889 = vmatpush2.msra.mxu1 %v3642_v31  ;;  %3960 = vmatpush2.msra.mxu0 %v3644_v22 }
 0xf93   :  { %3890 = vmatprep.subr.mxu1 %v3636_v52  ;;  %3961 = vmatprep.subr.mxu0 %v14293_v5 }
 0xf94   :  { %3891 = vmatpush2.msra.mxu1 %v3635_v8  ;;  %3962 = vmatpush2.msra.mxu0 %v3637_v50 }
 0xf95   :  { %3892 = vmatprep.subr.mxu1 %v3629_v13  ;;  %3963 = vmatprep.subr.mxu0 %v14293_v5 }
 0xf96   :  { %3893 = vmatpush2.msra.mxu1 %v3628_v58  ;;  %3964 = vmatpush2.msra.mxu0 %v3630_v6 }
 0xf97   :  { %3894 = vmatprep.subr.mxu1 %v3622_v12  ;;  %3965 = vmatprep.subr.mxu0 %v14293_v5 }
 0xf98   :  { %3895 = vmatpush2.msra.mxu1 %v3621_v15  ;;  %3966 = vmatpush2.msra.mxu0 %v3623_v38 }
 0xf99   :  { %3896 = vmatprep.subr.mxu1 %v3615_v51  ;;  %3967 = vmatprep.subr.mxu0 %v14293_v5 }
 0xf9a   :  { %3897 = vmatpush2.msra.mxu1 %v3614_v24  ;;  %3968 = vmatpush2.msra.mxu0 %v3616_v27 }
 0xf9b   :  { %3898 = vmatprep.subr.mxu1 %v3608_v7  ;;  %3969 = vmatprep.subr.mxu0 %v14293_v5 }
 0xf9c   :  { %3899 = vmatpush2.msra.mxu1 %v3607_v39  ;;  %3970 = vmatpush2.msra.mxu0 %v3609_v59 }
 0xf9d   :  { %3900 = vmatprep.subr.mxu1 %v3601_v29  ;;  %3971 = vmatprep.subr.mxu0 %v14293_v5 }
 0xf9e   :  { %3901 = vmatpush2.msra.mxu1 %v3600_v18  ;;  %3972 = vmatpush2.msra.mxu0 %v3602_v41 }
 0xf9f   :  { %3902 = vmatprep.subr.mxu1 %v3594_v3  ;;  %3973 = vmatprep.subr.mxu0 %v14293_v5 }
 0xfa0   :  { %3903 = vmatpush2.msra.mxu1 %v3593_v57  ;;  %3974 = vmatpush2.msra.mxu0 %v3595_v46 }
 0xfa1   :  { %3905 = vmatmul.mubr.f32.vlgmr.msra.gmra.mxu1 %v10803_v56  ;;  %3976 = vmatmul.mubr.f32.vlgmr.msra.gmra.mxu0 %v10803_v56 }
0x1028   :  { %v11092_v48 = vpop.f32.mrf.mxu1  ;;  %v11094_v63 = vpop.f32.mrf.mxu0 }
0x1029   :  { %14296 = vst [vmem:[#allocation11_spill] sm:$0xff] %v11094_v63  ;;  %4157 = vrot.lane.b32.xlu1 %v11094_v63, %s6743_s25  ;;  %4336 = vrot.lane.b32.xlu0 %v11092_v48, %s6744_s23 }
0x102a   :  { %v11132_v56 = vpop.f32.mrf.mxu0  ;;  %v11138_v54 = vpop.f32.mrf.mxu1 }
0x102d   :  { %4313 = vrot.lane.b32.xlu0 %v11094_v63, %s6745_s24  ;;  %4153 = vrot.lane.b32.xlu1 %v11092_v48, %s6743_s25 }
0x1031   :  { %4282 = vrot.lane.b32.xlu0 %v11092_v48, %s6746_s17  ;;  %4133 = vrot.lane.b32.xlu1 %v11094_v63, %s6747_s13 }
0x1035   :  { %4260 = vrot.lane.b32.xlu0 %v11094_v63, %s6748_s18  ;;  %4129 = vrot.lane.b32.xlu1 %v11092_v48, %s6747_s13 }
0x1039   :  { %4229 = vrot.lane.b32.xlu0 %v11092_v48, %s6749_s3  ;;  %4109 = vrot.lane.b32.xlu1 %v11094_v63, %s6750_s10 }
0x103d   :  { %4206 = vrot.lane.b32.xlu0 %v11094_v63, %s6751_s0  ;;  %4105 = vrot.lane.b32.xlu1 %v11092_v48, %s6750_s10 }
0x1041   :  { %4177 = vrot.lane.b32.xlu0 %v11092_v48, %s6752_s22  ;;  %4085 = vrot.lane.b32.xlu1 %v11094_v63, %s6753_s2 }
0x1045   :  { %4062 = vrot.lane.b32.xlu0 %v11094_v63, %s6733_s6  ;;  %4081 = vrot.lane.b32.xlu1 %v11092_v48, %s6753_s2 }
0x1049   :  { %4405 = vrot.lane.b32.xlu0 %v11092_v48, %s6754_s5  ;;  %4376 = vrot.lane.b32.xlu1 %v11094_v63, %s6755_s9 }
0x104d   :  { %4135 = vrot.lane.b32.xlu0 %v11132_v56, %s6747_s13  ;;  %4372 = vrot.lane.b32.xlu1 %v11092_v48, %s6755_s9 }
0x1051   :  { %4039 = vrot.lane.b32.xlu1 %v11094_v63, %s6735_s28  ;;  %4107 = vrot.lane.b32.xlu0 %v11138_v54, %s6750_s10 }
0x1055   :  { %4035 = vrot.lane.b32.xlu1 %v11092_v48, %s6735_s28  ;;  %4111 = vrot.lane.b32.xlu0 %v11132_v56, %s6750_s10 }
0x1059   :  { %4016 = vrot.lane.b32.xlu1 %v11094_v63, %s14030_s30  ;;  %4083 = vrot.lane.b32.xlu0 %v11138_v54, %s6753_s2 }
0x105d   :  { %4012 = vrot.lane.b32.xlu1 %v11092_v48, %s14030_s30  ;;  %4087 = vrot.lane.b32.xlu0 %v11132_v56, %s6753_s2 }
0x1061   :  { %v11156_v2 = vpop.f32.mrf.mxu0  ;;  %3993 = vrot.lane.b32.xlu1 %v11094_v63, %s6710_s29  ;;  %4374 = vrot.lane.b32.xlu0 %v11138_v54, %s6755_s9  ;;  %v11222_v9 = vpop.f32.mrf.mxu1 }
0x1062   :  { %14297 = vst [vmem:[#allocation17_spill] sm:$0xff] %v11156_v2  ;;  %14298 = vst [vmem:[#allocation52_spill] sm:$0xff] %v11222_v9 }
0x1063   :  { %v3979_v17 = vpop.f32.mrf.mxu0  ;;  %v11374_v27 = vpop.f32.mrf.mxu1 }
0x1065   :  { %3989 = vrot.lane.b32.xlu1 %v11092_v48, %s6710_s29  ;;  %4378 = vrot.lane.b32.xlu0 %v11132_v56, %s6755_s9 }
0x1069   :  { %4340 = vrot.lane.b32.xlu1 %v11094_v63, %s6744_s23  ;;  %4037 = vrot.lane.b32.xlu0 %v11138_v54, %s6735_s28 }
0x106d   :  { %4309 = vrot.lane.b32.xlu1 %v11092_v48, %s6745_s24  ;;  %4041 = vrot.lane.b32.xlu0 %v11132_v56, %s6735_s28 }
0x1071   :  { %4286 = vrot.lane.b32.xlu1 %v11094_v63, %s6746_s17  ;;  %4014 = vrot.lane.b32.xlu0 %v11138_v54, %s14030_s30 }
0x1075   :  { %4256 = vrot.lane.b32.xlu1 %v11092_v48, %s6748_s18  ;;  %4018 = vrot.lane.b32.xlu0 %v11132_v56, %s14030_s30 }
0x1079   :  { %4233 = vrot.lane.b32.xlu1 %v11094_v63, %s6749_s3  ;;  %3991 = vrot.lane.b32.xlu0 %v11138_v54, %s6710_s29 }
0x107d   :  { %4202 = vrot.lane.b32.xlu1 %v11092_v48, %s6751_s0  ;;  %3995 = vrot.lane.b32.xlu0 %v11132_v56, %s6710_s29 }
0x1081   :  { %4181 = vrot.lane.b32.xlu1 %v11094_v63, %s6752_s22  ;;  %4338 = vrot.lane.b32.xlu0 %v11138_v54, %s6744_s23 }
0x1085   :  { %4058 = vrot.lane.b32.xlu1 %v11092_v48, %s6733_s6  ;;  %4284 = vrot.lane.b32.xlu0 %v11138_v54, %s6746_s17 }
0x1089   :  { %4409 = vrot.lane.b32.xlu1 %v11094_v63, %s6754_s5  ;;  %4231 = vrot.lane.b32.xlu0 %v11138_v54, %s6749_s3 }
0x108d   :  { %4179 = vrot.lane.b32.xlu0 %v11138_v54, %s6752_s22  ;;  %4155 = vrot.lane.b32.xlu1 %v11138_v54, %s6743_s25 }
0x1091   :  { %4315 = vrot.lane.b32.xlu0 %v11132_v56, %s6745_s24  ;;  %4159 = vrot.lane.b32.xlu1 %v11132_v56, %s6743_s25 }
0x1095   :  { %4407 = vrot.lane.b32.xlu0 %v11138_v54, %s6754_s5  ;;  %4131 = vrot.lane.b32.xlu1 %v11138_v54, %s6747_s13 }
0x1099   :  { %4064 = vrot.lane.b32.xlu0 %v11132_v56, %s6733_s6  ;;  %4311 = vrot.lane.b32.xlu1 %v11138_v54, %s6745_s24 }
0x109b   :  { %v11218_v60 = vpop.permute.xlu1 %4157  ;;  %v11220_v34 = vpop.permute.xlu0 %4336 }
0x109d   :  { %4258 = vrot.lane.b32.xlu1 %v11138_v54, %s6748_s18  ;;  %4113 = vrot.lane.b32.xlu0 %v11222_v9, %s6750_s10 }
0x109f   :  { %v11228_v35 = vpop.permute.xlu0 %4313  ;;  %v11230_v32 = vpop.permute.xlu1 %4153 }
0x10a1   :  { %4204 = vrot.lane.b32.xlu1 %v11138_v54, %s6751_s0  ;;  %4402 = vrot.lane.b32.xlu0 %v11156_v2, %s6743_s25 }
0x10a3   :  { %v11236_v37 = vpop.permute.xlu0 %4282  ;;  %v11238_v19 = vpop.permute.xlu1 %4133 }
0x10a5   :  { %4060 = vrot.lane.b32.xlu1 %v11138_v54, %s6733_s6  ;;  %4380 = vrot.lane.b32.xlu0 %v11222_v9, %s6755_s9 }
0x10a7   :  { %v11244_v16 = vpop.permute.xlu0 %4260  ;;  %v11246_v40 = vpop.permute.xlu1 %4129 }
0x10a9   :  { %4342 = vrot.lane.b32.xlu1 %v11132_v56, %s6744_s23  ;;  %4396 = vrot.lane.b32.xlu0 %v11156_v2, %s6750_s10 }
0x10ab   :  { %v11252_v0 = vpop.permute.xlu0 %4229  ;;  %v11254_v20 = vpop.permute.xlu1 %4109 }
0x10ad   :  { %4288 = vrot.lane.b32.xlu1 %v11132_v56, %s6746_s17  ;;  %4020 = vrot.lane.b32.xlu0 %v11222_v9, %s14030_s30 }
0x10af   :  { %v11260_v4 = vpop.permute.xlu0 %4206  ;;  %v11262_v44 = vpop.permute.xlu1 %4105 }
0x10b1   :  { %4262 = vrot.lane.b32.xlu1 %v11132_v56, %s6748_s18  ;;  %4384 = vrot.lane.b32.xlu0 %v11156_v2, %s6755_s9 }
0x10b3   :  { %v11268_v23 = vpop.permute.xlu0 %4177  ;;  %v11270_v36 = vpop.permute.xlu1 %4085 }
0x10b5   :  { %4235 = vrot.lane.b32.xlu1 %v11132_v56, %s6749_s3  ;;  %4344 = vrot.lane.b32.xlu0 %v11222_v9, %s6744_s23 }
0x10b7   :  { %v11276_v30 = vpop.permute.xlu0 %4062  ;;  %v11278_v10 = vpop.permute.xlu1 %4081 }
0x10b9   :  { %4208 = vrot.lane.b32.xlu1 %v11132_v56, %s6751_s0  ;;  %4290 = vrot.lane.b32.xlu0 %v11222_v9, %s6746_s17 }
0x10bb   :  { %v11284_v28 = vpop.permute.xlu0 %4405  ;;  %v11286_v26 = vpop.permute.xlu1 %4376 }
0x10bc   :  { %14299 = vst [vmem:[#allocation15_spill] sm:$0xff] %v11284_v28 }
0x10bd   :  { %4183 = vrot.lane.b32.xlu1 %v11132_v56, %s6752_s22  ;;  %4348 = vrot.lane.b32.xlu0 %v11156_v2, %s6744_s23 }
0x10bf   :  { %v11292_v21 = vpop.permute.xlu0 %4135  ;;  %v11294_v45 = vpop.permute.xlu1 %4372 }
0x10c1   :  { %4411 = vrot.lane.b32.xlu1 %v11132_v56, %s6754_s5  ;;  %4264 = vrot.lane.b32.xlu0 %v11222_v9, %s6748_s18 }
0x10c3   :  { %v11300_v11 = vpop.permute.xlu1 %4039  ;;  %v11302_v43 = vpop.permute.xlu0 %4107 }
0x10c5   :  { %4321 = vrot.lane.b32.xlu0 %v11156_v2, %s6745_s24  ;;  %4161 = vrot.lane.b32.xlu1 %v11222_v9, %s6743_s25 }
0x10c7   :  { %v11308_v55 = vpop.permute.xlu1 %4035  ;;  %v11310_v33 = vpop.permute.xlu0 %4111 }
0x10c9   :  { %4237 = vrot.lane.b32.xlu0 %v11222_v9, %s6749_s3  ;;  %4137 = vrot.lane.b32.xlu1 %v11222_v9, %s6747_s13 }
0x10cb   :  { %v11316_v49 = vpop.permute.xlu1 %4016  ;;  %v11318_v42 = vpop.permute.xlu0 %4083 }
0x10cd   :  { %4294 = vrot.lane.b32.xlu0 %v11156_v2, %s6746_s17  ;;  %4089 = vrot.lane.b32.xlu1 %v11222_v9, %s6753_s2 }
0x10cf   :  { %v11324_v25 = vpop.permute.xlu1 %4012  ;;  %v11326_v31 = vpop.permute.xlu0 %4087 }
0x10d1   :  { %4210 = vrot.lane.b32.xlu0 %v11222_v9, %s6751_s0  ;;  %4399 = vrot.lane.b32.xlu1 %v11156_v2, %s6747_s13 }
0x10d3   :  { %v11332_v22 = vpop.permute.xlu1 %3993  ;;  %v11334_v52 = vpop.permute.xlu0 %4374 }
0x10d5   :  { %4268 = vrot.lane.b32.xlu0 %v11156_v2, %s6748_s18  ;;  %4043 = vrot.lane.b32.xlu1 %v11222_v9, %s6735_s28 }
0x10d7   :  { %v11340_v8 = vpop.permute.xlu1 %3989  ;;  %v11342_v50 = vpop.permute.xlu0 %4378 }
0x10d9   :  { %4185 = vrot.lane.b32.xlu0 %v11222_v9, %s6752_s22  ;;  %4393 = vrot.lane.b32.xlu1 %v11156_v2, %s6753_s2 }
0x10db   :  { %v11348_v13 = vpop.permute.xlu1 %4340  ;;  %v11350_v58 = vpop.permute.xlu0 %4037 }
0x10dd   :  { %4241 = vrot.lane.b32.xlu0 %v11156_v2, %s6749_s3  ;;  %3997 = vrot.lane.b32.xlu1 %v11222_v9, %s6710_s29 }
0x10df   :  { %v4310_v6 = vpop.permute.xlu1 %4309  ;;  %v11356_v12 = vpop.permute.xlu0 %4041 }
0x10e1   :  { %4214 = vrot.lane.b32.xlu0 %v11156_v2, %s6751_s0  ;;  %4369 = vrot.lane.b32.xlu1 %v11156_v2, %s6735_s28 }
0x10e3   :  { %v11362_v15 = vpop.permute.xlu1 %4286  ;;  %v11364_v38 = vpop.permute.xlu0 %4014 }
0x10e5   :  { %4413 = vrot.lane.b32.xlu0 %v11222_v9, %s6754_s5  ;;  %4366 = vrot.lane.b32.xlu1 %v11156_v2, %s14030_s30 }
0x10e7   :  { %v11370_v51 = vpop.permute.xlu1 %4256  ;;  %v11372_v24 = vpop.permute.xlu0 %4018 }
0x10e9   :  { %4363 = vrot.lane.b32.xlu1 %v11156_v2, %s6710_s29  ;;  %4163 = vrot.lane.b32.xlu0 %v11374_v27, %s6743_s25 }
0x10eb   :  { %v11380_v7 = vpop.permute.xlu1 %4233  ;;  %v11382_v39 = vpop.permute.xlu0 %3991 }
0x10ed   :  { %4317 = vrot.lane.b32.xlu1 %v11222_v9, %s6745_s24  ;;  %4139 = vrot.lane.b32.xlu0 %v11374_v27, %s6747_s13 }
0x10ef   :  { %v11388_v59 = vpop.permute.xlu1 %4202  ;;  %v11390_v29 = vpop.permute.xlu0 %3995 }
0x10f1   :  { %4066 = vrot.lane.b32.xlu1 %v11222_v9, %s6733_s6  ;;  %4091 = vrot.lane.b32.xlu0 %v11374_v27, %s6753_s2 }
0x10f3   :  { %v11396_v18 = vpop.permute.xlu1 %4181  ;;  %v4339_v41 = vpop.permute.xlu0 %4338 }
0x10f4   :  { %v4352_v3 = vsel %vm13960_vm12, %v4339_v41, %v11348_v13  ;;  %v4351_v57 = vsel %vm13960_vm12, %v11220_v34, %v4339_v41 }
0x10f5   :  { %4643 = vmatprep.subr.mxu1 %v4352_v3  ;;  %4115 = vrot.lane.b32.xlu1 %v11374_v27, %s6750_s10 }
0x10f6   :  { %4045 = vrot.lane.b32.xlu0 %v11374_v27, %s6735_s28  ;;  %4644 = vmatpush1.msra.mxu1 %v4351_v57 }
0x10f7   :  { %v11406_v46 = vpop.permute.xlu1 %4058  ;;  %v4285_v17 = vpop.permute.xlu0 %4284 }
0x10f9   :  { %4382 = vrot.lane.b32.xlu1 %v11374_v27, %s6755_s9 }
0x10fa   :  { %3999 = vrot.lane.b32.xlu0 %v11374_v27, %s6710_s29 }
0x10fb   :  { %v11412_v47 = vpop.permute.xlu1 %4409  ;;  %v4232_v34 = vpop.permute.xlu0 %4231 }
0x10fc   :  { %14300 = vst [vmem:[#allocation45_spill] sm:$0xff] %v11412_v47  ;;  %v4298_v47 = vsel %vm4296_vm1, %v4285_v17, %v11362_v15 }
0x10fd   :  { %4022 = vrot.lane.b32.xlu1 %v11374_v27, %s14030_s30 }
0x10fe   :  { %4068 = vrot.lane.b32.xlu0 %v11374_v27, %s6733_s6 }
0x10ff   :  { %v4180_v41 = vpop.permute.xlu0 %4179  ;;  %v4156_v3 = vpop.permute.xlu1 %4155 }
0x1100   :  { %v4166_v1 = vsel %vm4165_vm14, %v11230_v32, %v4156_v3  ;;  %v11450_v32 = vsel %vm4141_vm15, %v11238_v19, %v11292_v21 }
0x1101   :  { %4346 = vrot.lane.b32.xlu1 %v11374_v27, %s6744_s23 }
0x1103   :  { %v11420_v57 = vpop.permute.xlu0 %4315  ;;  %v11422_v14 = vpop.permute.xlu1 %4159 }
0x1104   :  { %v11427_v5 = vsel %vm4165_vm14, %v11218_v60, %v11422_v14 }
0x1105   :  { %4319 = vrot.lane.b32.xlu1 %v11374_v27, %s6745_s24  ;;  %4521 = vrot.lane.b32.xlu0 %v11427_v5, %s6754_s5 }
0x1107   :  { %v11433_v62 = vpop.permute.xlu0 %4407  ;;  %v4132_v61 = vpop.permute.xlu1 %4131 }
0x1108   :  { %14301 = vst [vmem:[#allocation18_spill] sm:$0xff] %v11433_v62 }
0x1109   :  { %4292 = vrot.lane.b32.xlu1 %v11374_v27, %s6746_s17  ;;  %4517 = vrot.lane.b32.xlu0 %v4166_v1, %s6754_s5 }
0x110b   :  { %v11440_v53 = vpop.permute.xlu0 %4064  ;;  %v4312_v9 = vpop.permute.xlu1 %4311 }
0x110c   :  { %v4325_v28 = vsel %vm4323_vm6, %v4312_v9, %v11228_v35  ;;  %v4324_v62 = vsel %vm4323_vm6, %v4310_v6, %v4312_v9  ;;  %v4297_v9 = vsel %vm4296_vm1, %v11236_v37, %v4285_v17 }
0x110d   :  { %4645 = vmatprep.subr.mxu1 %v4325_v28  ;;  %4266 = vrot.lane.b32.xlu1 %v11374_v27, %s6748_s18 }
0x110e   :  { %4507 = vrot.lane.b32.xlu0 %v11450_v32, %s6754_s5  ;;  %4646 = vmatpush1.msra.mxu1 %v4324_v62  ;;  %v4245_v62 = vsel %vm4243_vm4, %v4232_v34, %v11380_v7 }
0x110f   :  { %4647 = vmatprep.subr.mxu1 %v4298_v47  ;;  %v4259_v2 = vpop.permute.xlu1 %4258  ;;  %v11456_v63 = vpop.permute.xlu0 %4113  ;;  %v4142_v47 = vsel %vm4141_vm15, %v11246_v40, %v4132_v61 }
0x1110   :  { %4648 = vmatpush1.msra.mxu1 %v4297_v9  ;;  %v4271_v28 = vsel %vm14302_vm2, %v4259_v2, %v11244_v16  ;;  %v4270_v6 = vsel %vm14303_vm5, %v11370_v51, %v4259_v2  ;;  %v4244_v2 = vsel %vm4243_vm4, %v11252_v0, %v4232_v34  ;;  %vm4117_vm2 = vcmask 801792  }
0x1111   :  { %4649 = vmatprep.subr.mxu1 %v4271_v28  ;;  %4239 = vrot.lane.b32.xlu1 %v11374_v27, %s6749_s3  ;;  %v11484_v9 = vsel %vm4117_vm2, %v11254_v20, %v11310_v33  ;;  %v4191_v0 = vsel %vm4189_vm9, %v4180_v41, %v11396_v18  ;;  %vm4093_vm5 = vcmask 809984  }
0x1112   :  { %4503 = vrot.lane.b32.xlu0 %v4142_v47, %s6754_s5  ;;  %4650 = vmatpush1.msra.mxu1 %v4270_v6  ;;  %v4167_v6 = vsel %vm4165_vm14, %v4156_v3, %v11218_v60  ;;  %v4119_v60 = vsel %vm4117_vm2, %v11302_v43, %v11254_v20 }
0x1113   :  { %4651 = vmatprep.subr.mxu1 %v4245_v62  ;;  %v4205_v37 = vpop.permute.xlu1 %4204  ;;  %v11471_v17 = vpop.permute.xlu0 %4402  ;;  %v4118_v62 = vsel %vm4117_vm2, %v11262_v44, %v11302_v43  ;;  %v4094_v44 = vsel %vm4093_vm5, %v11278_v10, %v11318_v42  ;;  %v4048_v10 = vsel %vm1408_vm13, %v11350_v58, %v11300_v11 }
0x1114   :  { %4652 = vmatpush1.msra.mxu1 %v4244_v2  ;;  %v4218_v51 = vsel %vm4216_vm11, %v4205_v37, %v11260_v4  ;;  %v4217_v40 = vsel %vm4216_vm11, %v11388_v59, %v4205_v37  ;;  %v4190_v59 = vsel %vm4189_vm9, %v11268_v23, %v4180_v41  ;;  %v4143_v37 = vsel %vm4141_vm15, %v4132_v61, %v11238_v19 }
0x1115   :  { %4653 = vmatprep.subr.mxu1 %v4218_v51  ;;  %4212 = vrot.lane.b32.xlu1 %v11374_v27, %s6751_s0  ;;  %v4095_v61 = vsel %vm4093_vm5, %v11318_v42, %v11270_v36  ;;  %v4047_v2 = vsel %vm1408_vm13, %v11308_v55, %v11350_v58  ;;  %v4387_v51 = vsel %vm13965_vm8, %v11294_v45, %v11334_v52 }
0x1116   :  { %4493 = vrot.lane.b32.xlu0 %v11484_v9, %s6754_s5  ;;  %4654 = vmatpush1.msra.mxu1 %v4217_v40  ;;  %v4024_v40 = vsel %vm1386_vm0, %v11324_v25, %v11364_v38  ;;  %v4002_v55 = vsel %vm13966_vm10, %v11382_v39, %v11332_v22  ;;  %v4001_v45 = vsel %vm13966_vm10, %v11340_v8, %v11382_v39 }
0x1117   :  { %4655 = vmatprep.subr.mxu1 %v4191_v0  ;;  %v4061_v34 = vpop.permute.xlu1 %4060  ;;  %v11490_v28 = vpop.permute.xlu0 %4380 }
0x1118   :  { %4656 = vmatpush1.msra.mxu1 %v4190_v59  ;;  %v4071_v43 = vsel %vm1430_vm3, %v4061_v34, %v11276_v30  ;;  %v4070_v3 = vsel %vm1430_vm3, %v11406_v46, %v4061_v34  ;;  %v4025_v46 = vsel %vm1386_vm0, %v11364_v38, %v11316_v49  ;;  %v4389_v34 = vsel %vm13965_vm8, %v11286_v26, %v11342_v50 }
0x1119   :  { %4657 = vmatprep.subr.mxu1 %v4167_v6  ;;  %4187 = vrot.lane.b32.xlu1 %v11374_v27, %s6752_s22  ;;  %v11603_v59 = vsel %vm13966_vm10, %v11332_v22, %v11390_v29  ;;  %v11618_v22 = vsel %vm1386_vm0, %v11316_v49, %v11372_v24 }
0x111a   :  { %4489 = vrot.lane.b32.xlu0 %v4118_v62, %s6754_s5  ;;  %4658 = vmatpush1.msra.mxu1 %v4166_v1  ;;  %v11513_v1 = vsel %vm4093_vm5, %v11270_v36, %v11326_v31  ;;  %v4388_v36 = vsel %vm13965_vm8, %v11334_v52, %v11286_v26  ;;  %v11573_v52 = vsel %vm1408_vm13, %v11300_v11, %v11356_v12 }
0x111b   :  { %4659 = vmatprep.subr.mxu1 %v4143_v37  ;;  %v4343_v23 = vpop.permute.xlu1 %4342  ;;  %v11504_v41 = vpop.permute.xlu0 %4396 }
0x111c   :  { %4660 = vmatpush1.msra.mxu1 %v4142_v47  ;;  %v4353_v8 = vsel %vm13960_vm12, %v11348_v13, %v4343_v23 }
0x111d   :  { %4661 = vmatprep.subr.mxu1 %v4119_v60  ;;  %4519 = vrot.lane.b32.xlu1 %v4167_v6, %s6754_s5 }
0x111e   :  { %4479 = vrot.lane.b32.xlu0 %v11513_v1, %s6754_s5  ;;  %4662 = vmatpush1.msra.mxu1 %v4118_v62 }
0x111f   :  { %4663 = vmatprep.subr.mxu1 %v4095_v61  ;;  %v11520_v19 = vpop.permute.xlu1 %4288  ;;  %v11522_v20 = vpop.permute.xlu0 %4020 }
0x1120   :  { %4664 = vmatpush1.msra.mxu1 %v4094_v44 }
0x1121   :  { %4665 = vmatprep.subr.mxu1 %v4071_v43  ;;  %4505 = vrot.lane.b32.xlu1 %v4143_v37, %s6754_s5 }
0x1122   :  { %4463 = vrot.lane.b32.xlu0 %v4388_v36, %s6754_s5  ;;  %4666 = vmatpush1.msra.mxu1 %v4070_v3 }
0x1123   :  { %4667 = vmatprep.subr.mxu1 %v4048_v10  ;;  %v11539_v42 = vpop.permute.xlu1 %4262  ;;  %v11541_v47 = vpop.permute.xlu0 %4384 }
0x1124   :  { %4668 = vmatpush1.msra.mxu1 %v4047_v2 }
0x1125   :  { %4669 = vmatprep.subr.mxu1 %v4025_v46  ;;  %4491 = vrot.lane.b32.xlu1 %v4119_v60, %s6754_s5 }
0x1126   :  { %4461 = vrot.lane.b32.xlu0 %v4387_v51, %s6754_s5  ;;  %4670 = vmatpush1.msra.mxu1 %v4024_v40 }
0x1127   :  { %4671 = vmatprep.subr.mxu1 %v4002_v55  ;;  %v11560_v58 = vpop.permute.xlu1 %4235  ;;  %v11562_v0 = vpop.permute.xlu0 %4344 }
0x1128   :  { %4672 = vmatpush1.msra.mxu1 %v4001_v45  ;;  %v4354_v25 = vsel %vm13960_vm12, %v4343_v23, %v11562_v0  ;;  %v11623_v23 = vld [vmem:[%s13826_s11 + $0x8] sm:$0xff]  ;;  %vm14306_vm12 = vmmov %vm14305_vm7 }
0x1129   :  { %4673 = vmatprep.subr.mxu1 %v11138_v54  ;;  %4714 = vmatprep.subr.mxu0 %v4354_v25 }
0x112a   :  { %4477 = vrot.lane.b32.xlu1 %v4095_v61, %s6754_s5  ;;  %4451 = vrot.lane.b32.xlu0 %v11573_v52, %s6754_s5 }
0x112b   :  { %4674 = vmatpush1.msra.mxu1 %v11092_v48  ;;  %4715 = vmatpush1.msra.mxu0 %v4353_v8  ;;  %v11581_v38 = vpop.permute.xlu1 %4208  ;;  %v11583_v54 = vpop.permute.xlu0 %4290  ;;  %v4390_v8 = vsel %vm13965_vm8, %v11342_v50, %v11490_v28 }
0x112c   :  { %6465 = vmatprep.mubr.msk.f32.mxu1 %vm14305_vm7, %v11623_v23  ;;  %6466 = vmatprep.mubr.msk.f32.mxu0 %vm14306_vm12, %v11623_v23  ;;  %vm14311_vm7 = vcmask 556032  }
0x112d   :  { %vm14312_vm12 = vmmov %vm14311_vm7 }
0x112e   :  { %4475 = vrot.lane.b32.xlu1 %v4094_v44, %s6754_s5  ;;  %4435 = vrot.lane.b32.xlu0 %v4025_v46, %s6754_s5 }
0x112f   :  { %v11587_v11 = vpop.permute.xlu1 %4183  ;;  %v11589_v39 = vpop.permute.xlu0 %4348 }
0x1132   :  { %4465 = vrot.lane.b32.xlu1 %v4389_v34, %s6754_s5  ;;  %4433 = vrot.lane.b32.xlu0 %v4024_v40, %s6754_s5  ;;  %v11676_v40 = vsel %vm4117_vm2, %v11310_v33, %v11456_v63 }
0x1133   :  { %v11596_v48 = vpop.permute.xlu1 %4411  ;;  %v11598_v13 = vpop.permute.xlu0 %4264 }
0x1134   :  { %14304 = vst [vmem:[#allocation32_spill] sm:$0xff] %v11596_v48 }
0x1136   :  { %4449 = vrot.lane.b32.xlu1 %v4048_v10, %s6754_s5  ;;  %4423 = vrot.lane.b32.xlu0 %v11603_v59, %s6754_s5 }
0x1137   :  { %v11608_v6 = vpop.permute.xlu0 %4321  ;;  %v4162_v26 = vpop.permute.xlu1 %4161 }
0x1138   :  { %v11651_v3 = vsel %vm4165_vm14, %v11422_v14, %v4162_v26 }
0x113a   :  { %4447 = vrot.lane.b32.xlu1 %v4047_v2, %s6754_s5  ;;  %4529 = vrot.lane.b32.xlu0 %v11471_v17, %s6754_s5 }
0x113b   :  { %v11613_v62 = vpop.permute.xlu0 %4237  ;;  %v4138_v37 = vpop.permute.xlu1 %4137 }
0x113c   :  { %v11663_v46 = vsel %vm4141_vm15, %v11292_v21, %v4138_v37 }
0x113e   :  { %4437 = vrot.lane.b32.xlu1 %v11618_v22, %s6754_s5 }
0x113f   :  { %v11629_v60 = vpop.permute.xlu0 %4294  ;;  %v11631_v61 = vpop.permute.xlu1 %4089 }
0x1142   :  { %4421 = vrot.lane.b32.xlu1 %v4002_v55, %s6754_s5 }
0x1143   :  { %v11636_v49 = vpop.permute.xlu0 %4210  ;;  %v11638_v44 = vpop.permute.xlu1 %4399 }
0x1144   :  { %4515 = vrot.lane.b32.xlu0 %v11638_v44, %s6754_s5 }
0x1146   :  { %4419 = vrot.lane.b32.xlu1 %v4001_v45, %s6754_s5  ;;  %v11689_v45 = vsel %vm4093_vm5, %v11326_v31, %v11631_v61 }
0x1147   :  { %v11643_v43 = vpop.permute.xlu0 %4268  ;;  %v11645_v36 = vpop.permute.xlu1 %4043 }
0x1148   :  { %4501 = vrot.lane.b32.xlu0 %v11504_v41, %s6754_s5 }
0x114a   :  { %4523 = vrot.lane.b32.xlu1 %v11651_v3, %s6754_s5 }
0x114b   :  { %v11655_v10 = vpop.permute.xlu0 %4185  ;;  %v11657_v2 = vpop.permute.xlu1 %4393 }
0x114c   :  { %4487 = vrot.lane.b32.xlu0 %v11657_v2, %s6754_s5 }
0x114e   :  { %4509 = vrot.lane.b32.xlu1 %v11663_v46, %s6754_s5 }
0x114f   :  { %v11667_v51 = vpop.permute.xlu0 %4241  ;;  %v11669_v14 = vpop.permute.xlu1 %3997 }
0x1150   :  { %4473 = vrot.lane.b32.xlu0 %v11541_v47, %s6754_s5 }
0x1152   :  { %4495 = vrot.lane.b32.xlu1 %v11676_v40, %s6754_s5 }
0x1153   :  { %v11680_v21 = vpop.permute.xlu0 %4214  ;;  %v11682_v55 = vpop.permute.xlu1 %4369 }
0x1154   :  { %14307 = vst [vmem:[#allocation50_spill] sm:$0xff] %v11680_v21  ;;  %4459 = vrot.lane.b32.xlu0 %v11682_v55, %s6754_s5 }
0x1156   :  { %4481 = vrot.lane.b32.xlu1 %v11689_v45, %s6754_s5 }
0x1157   :  { %v11693_v33 = vpop.permute.xlu0 %4413  ;;  %v11695_v25 = vpop.permute.xlu1 %4366 }
0x1158   :  { %14308 = vst [vmem:[#allocation47_spill] sm:$0xff] %v11693_v33  ;;  %4445 = vrot.lane.b32.xlu0 %v11695_v25, %s6754_s5  ;;  %v11714_v33 = vsel %vm1408_vm13, %v11356_v12, %v11645_v36  ;;  %v11734_v12 = vsel %vm1386_vm0, %v11372_v24, %v11522_v20 }
0x115a   :  { %4467 = vrot.lane.b32.xlu1 %v4390_v8, %s6754_s5 }
0x115b   :  { %v11703_v34 = vpop.permute.xlu1 %4363  ;;  %v11705_v31 = vpop.permute.xlu0 %4163 }
0x115c   :  { %v11709_v48 = vsel %vm4165_vm14, %v4162_v26, %v11705_v31 }
0x115d   :  { %14309 = vst [vmem:[#allocation41_spill] sm:$0xff] %v11709_v48  ;;  %4525 = vrot.lane.b32.xlu0 %v11709_v48, %s6754_s5  ;;  %v4326_v48 = vsel %vm4323_vm6, %v11228_v35, %v11420_v57  ;;  %v4273_v35 = vsel %vm14311_vm7, %v11539_v42, %v11598_v13  ;;  %vm13970_vm7 = vcmask 326656  }
0x115e   :  { %4453 = vrot.lane.b32.xlu1 %v11714_v33, %s6754_s5 }
0x115f   :  { %v11720_v50 = vpop.permute.xlu1 %4317  ;;  %v11722_v8 = vpop.permute.xlu0 %4139 }
0x1160   :  { %v4327_v26 = vsel %vm4323_vm6, %v11420_v57, %v11720_v50  ;;  %v11729_v21 = vsel %vm4141_vm15, %v4138_v37, %v11722_v8  ;;  %v4300_v37 = vsel %vm4296_vm1, %v11520_v19, %v11583_v54  ;;  %v4004_v57 = vsel %vm13966_vm10, %v11390_v29, %v11669_v14 }
0x1161   :  { %14310 = vst [vmem:[#allocation39_spill] sm:$0xff] %v11729_v21  ;;  %4716 = vmatprep.subr.mxu0 %v4327_v26  ;;  %4511 = vrot.lane.b32.xlu0 %v11729_v21, %s6754_s5  ;;  %v4299_v21 = vsel %vm4296_vm1, %v11362_v15, %v11520_v19  ;;  %v4247_v15 = vsel %vm4243_vm4, %v11560_v58, %v11613_v62 }
0x1162   :  { %4439 = vrot.lane.b32.xlu1 %v11734_v12, %s6754_s5  ;;  %4717 = vmatpush1.msra.mxu0 %v4326_v48  ;;  %v4272_v48 = vsel %vm14312_vm12, %v11244_v16, %v11539_v42  ;;  %v4220_v16 = vsel %vm4216_vm11, %v11581_v38, %v11636_v49  ;;  %v4404_v42 = vsel %vm4165_vm14, %v11705_v31, %v11471_v17  ;;  %vm14318_vm12 = vcmask 334848  }
0x1163   :  { %4718 = vmatprep.subr.mxu0 %v4300_v37  ;;  %v11746_v26 = vpop.permute.xlu1 %4066  ;;  %v11748_v24 = vpop.permute.xlu0 %4091  ;;  %v4192_v17 = vsel %vm4189_vm9, %v11396_v18, %v11587_v11 }
0x1164   :  { %4719 = vmatpush1.msra.mxu0 %v4299_v21  ;;  %v4246_v21 = vsel %vm4243_vm4, %v11380_v7, %v11560_v58  ;;  %v4219_v7 = vsel %vm4216_vm11, %v11260_v4, %v11581_v38  ;;  %v4401_v38 = vsel %vm4141_vm15, %v11722_v8, %v11638_v44 }
0x1165   :  { %4720 = vmatprep.subr.mxu0 %v4273_v35  ;;  %v11799_v35 = vsel %vm4093_vm5, %v11631_v61, %v11748_v24 }
0x1166   :  { %4425 = vrot.lane.b32.xlu1 %v4004_v57, %s6754_s5  ;;  %4721 = vmatpush1.msra.mxu0 %v4272_v48 }
0x1167   :  { %4722 = vmatprep.subr.mxu0 %v4247_v15  ;;  %v11766_v19 = vpop.permute.xlu1 %4115 }
0x1168   :  { %v11771_v37 = vpop.permute.xlu0 %4045  ;;  %4723 = vmatpush1.msra.mxu0 %v4246_v21  ;;  %v11779_v29 = vsel %vm4117_vm2, %v11456_v63, %v11766_v19  ;;  %v4193_v63 = vsel %vm4189_vm9, %v11587_v11, %v11655_v10  ;;  %v4398_v61 = vsel %vm4117_vm2, %v11766_v19, %v11504_v41 }
0x1169   :  { %4724 = vmatprep.subr.mxu0 %v4220_v16  ;;  %4497 = vrot.lane.b32.xlu0 %v11779_v29, %s6754_s5  ;;  %v11836_v41 = vsel %vm1408_vm13, %v11645_v36, %v11771_v37 }
0x116a   :  { %4527 = vrot.lane.b32.xlu1 %v4404_v42, %s6754_s5  ;;  %4725 = vmatpush1.msra.mxu0 %v4219_v7 }
0x116b   :  { %4726 = vmatprep.subr.mxu0 %v4193_v63  ;;  %v4383_v58 = vpop.permute.xlu1 %4382 }
0x116c   :  { %4727 = vmatpush1.msra.mxu0 %v4192_v17  ;;  %v11801_v4 = vpop.permute.xlu0 %3999  ;;  %v4391_v11 = vsel %vm13965_vm8, %v11490_v28, %v4383_v58  ;;  %v4073_v28 = vsel %vm1430_vm3, %v11440_v53, %v11746_v26 }
0x116d   :  { %4728 = vmatprep.subr.mxu0 %v11651_v3  ;;  %4483 = vrot.lane.b32.xlu0 %v11799_v35, %s6754_s5 }
0x116e   :  { %4513 = vrot.lane.b32.xlu1 %v4401_v38, %s6754_s5  ;;  %4729 = vmatpush1.msra.mxu0 %v11427_v5 }
0x116f   :  { %4730 = vmatprep.subr.mxu0 %v11663_v46  ;;  %v11812_v18 = vpop.permute.xlu1 %4022 }
0x1170   :  { %4731 = vmatpush1.msra.mxu0 %v11450_v32  ;;  %v11824_v5 = vpop.permute.xlu0 %4068  ;;  %v11856_v3 = vsel %vm1386_vm0, %v11522_v20, %v11812_v18  ;;  %v11871_v20 = vsel %vm13966_vm10, %v11669_v14, %v11801_v4  ;;  %v4368_v46 = vsel %vm1386_vm0, %v11812_v18, %v11695_v25 }
0x1171   :  { %4732 = vmatprep.subr.mxu0 %v11676_v40  ;;  %4469 = vrot.lane.b32.xlu0 %v4391_v11, %s6754_s5  ;;  %v4365_v40 = vsel %vm13966_vm10, %v11801_v4, %v11703_v34  ;;  %vm14320_vm10 = vcmask 588800  }
0x1172   :  { %4499 = vrot.lane.b32.xlu1 %v4398_v61, %s6754_s5  ;;  %4733 = vmatpush1.msra.mxu0 %v11484_v9  ;;  %v4395_v9 = vsel %vm4093_vm5, %v11748_v24, %v11657_v2 }
0x1173   :  { %4734 = vmatprep.subr.mxu0 %v11689_v45  ;;  %v11827_v32 = vpop.permute.xlu1 %4346 }
0x1174   :  { %4735 = vmatpush1.msra.mxu0 %v11513_v1  ;;  %v4072_v1 = vsel %vm1430_vm3, %v11276_v30, %v11440_v53  ;;  %v4392_v53 = vsel %vm13965_vm8, %v4383_v58, %v11541_v47  ;;  %v4371_v47 = vsel %vm1408_vm13, %v11771_v37, %v11682_v55  ;;  %v14314_v55 = vld [vmem:[#allocation17_spill] sm:$0xff]  ;;  %vm14319_vm8 = vmmov %vm14318_vm12 }
0x1175   :  { %4736 = vmatprep.subr.mxu0 %v4073_v28  ;;  %4455 = vrot.lane.b32.xlu0 %v11836_v41, %s6754_s5 }
0x1176   :  { %4485 = vrot.lane.b32.xlu1 %v4395_v9, %s6754_s5  ;;  %4737 = vmatpush1.msra.mxu0 %v4072_v1 }
0x1177   :  { %4738 = vmatprep.subr.mxu0 %v11714_v33  ;;  %v11848_v44 = vpop.permute.xlu1 %4319  ;;  %v11850_v36 = vpop.permute.xlu0 %4521 }
0x1178   :  { %4739 = vmatpush1.msra.mxu0 %v11573_v52 }
0x1179   :  { %4740 = vmatprep.subr.mxu0 %v11734_v12  ;;  %4441 = vrot.lane.b32.xlu0 %v11856_v3, %s6754_s5 }
0x117a   :  { %4471 = vrot.lane.b32.xlu1 %v4392_v53, %s6754_s5  ;;  %4741 = vmatpush1.msra.mxu0 %v11618_v22  ;;  %v14313_v22 = vld [vmem:[#allocation11_spill] sm:$0xff] }
0x117b   :  { %4742 = vmatprep.subr.mxu0 %v4004_v57  ;;  %v11865_v30 = vpop.permute.xlu1 %4292  ;;  %v4518_v52 = vpop.permute.xlu0 %4517 }
0x117c   :  { %4743 = vmatpush1.msra.mxu0 %v11603_v59 }
0x117d   :  { %4744 = vmatprep.subr.mxu0 %v11132_v56  ;;  %4427 = vrot.lane.b32.xlu0 %v11871_v20, %s6754_s5 }
0x117e   :  { %4457 = vrot.lane.b32.xlu1 %v4371_v47, %s6754_s5  ;;  %4745 = vmatpush1.msra.mxu0 %v14313_v22 }
0x117f   :  { %v11881_v2 = vpop.permute.xlu1 %4266 }
0x1180   :  { %v11883_v59 = vpop.permute.xlu0 %4507 }
0x1181   :  { %4431 = vrot.lane.b32.xlu0 %v11703_v34, %s6754_s5 }
0x1182   :  { %4443 = vrot.lane.b32.xlu1 %v4368_v46, %s6754_s5 }
0x1183   :  { %v11891_v56 = vpop.permute.xlu1 %4239 }
0x1184   :  { %v4504_v14 = vpop.permute.xlu0 %4503 }
0x1185   :  { %4417 = vrot.lane.b32.xlu0 %v14314_v55, %s6754_s5 }
0x1186   :  { %4429 = vrot.lane.b32.xlu1 %v4365_v40, %s6754_s5 }
0x1187   :  { %v11899_v45 = vpop.permute.xlu1 %4212 }
0x1188   :  { %v11901_v33 = vpop.permute.xlu0 %4493 }
0x118a   :  { %4415 = vrot.lane.b32.xlu1 %v11374_v27, %s6754_s5 }
0x118b   :  { %v11905_v25 = vpop.permute.xlu1 %4187 }
0x118c   :  { %v4490_v12 = vpop.permute.xlu0 %4489 }
0x118f   :  { %v4520_v57 = vpop.permute.xlu1 %4519 }
0x1190   :  { %v11907_v48 = vpop.permute.xlu0 %4479  ;;  %v4581_v34 = vsel %vm13970_vm7, %v4520_v57, %v11850_v36  ;;  %v4580_v15 = vsel %vm13970_vm7, %v4518_v52, %v4520_v57 }
0x1191   :  { %4689 = vmatprep.subr.mxu1 %v4581_v34 }
0x1192   :  { %4690 = vmatpush2.msra.mxu1 %v4580_v15 }
0x1193   :  { %v4506_v21 = vpop.permute.xlu1 %4505 }
0x1194   :  { %v4464_v16 = vpop.permute.xlu0 %4463  ;;  %v4575_v42 = vsel %vm13970_vm7, %v4506_v21, %v11883_v59  ;;  %v4574_v7 = vsel %vm13970_vm7, %v4504_v14, %v4506_v21 }
0x1195   :  { %4691 = vmatprep.subr.mxu1 %v4575_v42 }
0x1196   :  { %4692 = vmatpush2.msra.mxu1 %v4574_v7 }
0x1197   :  { %v4492_v63 = vpop.permute.xlu1 %4491 }
0x1198   :  { %v4462_v58 = vpop.permute.xlu0 %4461  ;;  %v4569_v17 = vsel %vm13970_vm7, %v4492_v63, %v11901_v33  ;;  %v4568_v38 = vsel %vm13970_vm7, %v4490_v12, %v4492_v63 }
0x1199   :  { %4693 = vmatprep.subr.mxu1 %v4569_v17  ;;  %v4556_v22 = vsel %vm13970_vm7, %v4462_v58, %v4464_v16 }
0x119a   :  { %4694 = vmatpush2.msra.mxu1 %v4568_v38  ;;  %v14315_v38 = vld [vmem:[#allocation45_spill] sm:$0xff] }
0x119c   :  { %v4478_v11 = vpop.permute.xlu1 %4477  ;;  %v11918_v61 = vpop.permute.xlu0 %4451 }
0x119d   :  { %v4563_v28 = vsel %vm13970_vm7, %v4478_v11, %v11907_v48 }
0x119e   :  { %4695 = vmatprep.subr.mxu1 %v4563_v28 }
0x11a0   :  { %v4476_v9 = vpop.permute.xlu1 %4475  ;;  %v4436_v1 = vpop.permute.xlu0 %4435 }
0x11a1   :  { %v4562_v53 = vsel %vm13970_vm7, %v4476_v9, %v4478_v11  ;;  %v14316_v11 = vld [vmem:[#allocation18_spill] sm:$0xff] }
0x11a2   :  { %4696 = vmatpush2.msra.mxu1 %v4562_v53  ;;  %v4533_v28 = vsel %vm13970_vm7, %v14316_v11, %v14315_v38  ;;  %v14317_v53 = vld [vmem:[#allocation15_spill] sm:$0xff] }
0x11a4   :  { %v11923_v52 = vpop.permute.xlu1 %4465  ;;  %v4434_v46 = vpop.permute.xlu0 %4433 }
0x11a5   :  { %v4557_v47 = vsel %vm13970_vm7, %v4464_v16, %v11923_v52  ;;  %v4544_v21 = vsel %vm13970_vm7, %v4434_v46, %v4436_v1  ;;  %v4356_v46 = vsel %vm14318_vm12, %v11827_v32, %v11589_v39  ;;  %v4328_v39 = vsel %vm4323_vm6, %v11720_v50, %v11848_v44 }
0x11a6   :  { %4697 = vmatprep.subr.mxu1 %v4557_v47  ;;  %v4532_v47 = vsel %vm13970_vm7, %v14317_v53, %v14316_v11  ;;  %vm14332_vm12 = vcmask 760832  }
0x11a7   :  { %4698 = vmatpush2.msra.mxu1 %v4556_v22 }
0x11a8   :  { %v4450_v14 = vpop.permute.xlu1 %4449  ;;  %v11930_v55 = vpop.permute.xlu0 %4423 }
0x11a9   :  { %v4551_v40 = vsel %vm13970_vm7, %v4450_v14, %v11918_v61 }
0x11aa   :  { %4699 = vmatprep.subr.mxu1 %v4551_v40  ;;  %v4329_v40 = vsel %vm4323_vm6, %v11848_v44, %v11608_v6  ;;  %v4301_v6 = vsel %vm4296_vm1, %v11583_v54, %v11865_v30  ;;  %v4248_v54 = vsel %vm4243_vm4, %v11613_v62, %v11891_v56  ;;  %v4194_v62 = vsel %vm4189_vm9, %v11655_v10, %v11905_v25 }
0x11ac   :  { %v4448_v12 = vpop.permute.xlu1 %4447  ;;  %v11938_v16 = vpop.permute.xlu0 %4529 }
0x11ad   :  { %v4550_v57 = vsel %vm13970_vm7, %v4448_v12, %v4450_v14  ;;  %v4355_v14 = vsel %vm14319_vm8, %v11562_v0, %v11827_v32  ;;  %v4302_v0 = vsel %vm4296_vm1, %v11865_v30, %v11629_v60  ;;  %v4249_v60 = vsel %vm4243_vm4, %v11891_v56, %v11667_v51 }
0x11ae   :  { %4700 = vmatpush2.msra.mxu1 %v4550_v57 }
0x11b0   :  { %v11933_v34 = vpop.permute.xlu1 %4437 }
0x11b1   :  { %v4545_v15 = vsel %vm13970_vm7, %v4436_v1, %v11933_v34  ;;  %v11953_v1 = vld [vmem:[%s13826_s11] sm:$0xff] }
0x11b2   :  { %4701 = vmatprep.subr.mxu1 %v4545_v15 }
0x11b3   :  { %4702 = vmatpush2.msra.mxu1 %v4544_v21  ;;  %v14324_v21 = vld [vmem:[#allocation41_spill] sm:$0xff] }
0x11b4   :  { %v4422_v42 = vpop.permute.xlu1 %4421 }
0x11b5   :  { %v4539_v7 = vsel %vm13970_vm7, %v4422_v42, %v11930_v55 }
0x11b6   :  { %4703 = vmatprep.subr.mxu1 %v4539_v7  ;;  %v11942_v63 = vpop.permute.xlu0 %4515 }
0x11b8   :  { %v4420_v58 = vpop.permute.xlu1 %4419 }
0x11b9   :  { %v4538_v17 = vsel %vm13970_vm7, %v4420_v58, %v4422_v42  ;;  %v14325_v42 = vld [vmem:[#allocation39_spill] sm:$0xff] }
0x11ba   :  { %4704 = vmatpush2.msra.mxu1 %v4538_v17  ;;  %v11948_v9 = vpop.permute.xlu0 %4501 }
0x11bb   :  { %4705 = vmatprep.subr.mxu1 %v4533_v28 }
0x11bc   :  { %v4524_v22 = vpop.permute.xlu1 %4523  ;;  %4706 = vmatpush2.msra.mxu1 %v4532_v47 }
0x11bd   :  { %4785 = vmatprep.subr.mxu1 %v4356_v46  ;;  %4708 = vmatmul.mubr.f32.vlgmr.msra.gmra.mxu1 %v11953_v1 }
0x11be   :  { %4786 = vmatpush1.msra.mxu1 %v4355_v14  ;;  %v11968_v12 = vpop.permute.xlu0 %4487  ;;  %6467 = vmatprep.mubr.msk.f32.mxu1 %vm14320_vm10, %v11623_v23  ;;  %vm14321_vm10 = vcmask 556032  }
0x11bf   :  { %4787 = vmatprep.subr.mxu1 %v4329_v40  ;;  %v4275_v23 = vsel %vm14321_vm10, %v11881_v2, %v11643_v43  ;;  %vm14322_vm8 = vmmov %vm14321_vm10  ;;  %v14323_v43 = vld [vmem:[#allocation50_spill] sm:$0xff] }
0x11c0   :  { %v4510_v57 = vpop.permute.xlu1 %4509  ;;  %4788 = vmatpush1.msra.mxu1 %v4328_v39  ;;  %v4274_v50 = vsel %vm14322_vm8, %v11598_v13, %v11881_v2  ;;  %v4222_v30 = vsel %vm4216_vm11, %v11899_v45, %v14323_v43  ;;  %v4221_v13 = vsel %vm4216_vm11, %v11636_v49, %v11899_v45  ;;  %vm14333_vm10 = vmmov %vm14332_vm12  ;;  %vm14334_vm8 = vcmask 1044480  }
0x11c1   :  { %4789 = vmatprep.subr.mxu1 %v4302_v0  ;;  %v14328_v0 = vld [vmem:[#allocation36_spill] sm:$0xff] }
0x11c2   :  { %4790 = vmatpush1.msra.mxu1 %v4301_v6  ;;  %v11984_v32 = vpop.permute.xlu0 %4473 }
0x11c3   :  { %4791 = vmatprep.subr.mxu1 %v4275_v23 }
0x11c4   :  { %v4496_v44 = vpop.permute.xlu1 %4495  ;;  %4792 = vmatpush1.msra.mxu1 %v4274_v50 }
0x11c5   :  { %4793 = vmatprep.subr.mxu1 %v4249_v60 }
0x11c6   :  { %4794 = vmatpush1.msra.mxu1 %v4248_v54  ;;  %v11998_v15 = vpop.permute.xlu0 %4459  ;;  %v14329_v54 = vld [vmem:[#allocation26_spill] sm:$0xff] }
0x11c7   :  { %4795 = vmatprep.subr.mxu1 %v4222_v30  ;;  %v14330_v30 = vld [vmem:[#allocation47_spill] sm:$0xff] }
0x11c8   :  { %v4482_v2 = vpop.permute.xlu1 %4481  ;;  %4796 = vmatpush1.msra.mxu1 %v4221_v13  ;;  %v14331_v13 = vld [vmem:[#allocation32_spill] sm:$0xff] }
0x11c9   :  { %4797 = vmatprep.subr.mxu1 %v11905_v25  ;;  %v4564_v7 = vsel %vm13970_vm7, %v11907_v48, %v4482_v2 }
0x11ca   :  { %4798 = vmatpush1.msra.mxu1 %v4194_v62  ;;  %v12007_v51 = vpop.permute.xlu0 %4445  ;;  %v5056_v62 = vld [vmem:[%s13823_s12 + $0x350] sm:$0xff] }
0x11cb   :  { %4799 = vmatprep.subr.mxu1 %v11705_v31  ;;  %v4582_v31 = vsel %vm13970_vm7, %v11850_v36, %v4524_v22 }
0x11cc   :  { %v4468_v56 = vpop.permute.xlu1 %4467  ;;  %4800 = vmatpush1.msra.mxu1 %v14324_v21 }
0x11cd   :  { %4801 = vmatprep.subr.mxu1 %v11722_v8  ;;  %v4074_v8 = vsel %vm1430_vm3, %v11746_v26, %v11824_v5  ;;  %v4558_v28 = vsel %vm13970_vm7, %v11923_v52, %v4468_v56 }
0x11ce   :  { %4802 = vmatpush1.msra.mxu1 %v14325_v42 }
0x11cf   :  { %4803 = vmatprep.subr.mxu1 %v11766_v19  ;;  %v4526_v49 = vpop.permute.xlu0 %4525 }
0x11d0   :  { %v4454_v45 = vpop.permute.xlu1 %4453  ;;  %4804 = vmatpush1.msra.mxu1 %v11779_v29  ;;  %v4583_v10 = vsel %vm13970_vm7, %v4524_v22, %v4526_v49 }
0x11d1   :  { %4805 = vmatprep.subr.mxu1 %v11748_v24  ;;  %4760 = vmatprep.subr.mxu0 %v4583_v10  ;;  %v4576_v24 = vsel %vm13970_vm7, %v11883_v59, %v4510_v57  ;;  %v4552_v46 = vsel %vm13970_vm7, %v11918_v61, %v4454_v45  ;;  %v14327_v61 = vld [vmem:[#allocation58_spill] sm:$0xff]  ;;  %v5048_v10 = vld [vmem:[%s13823_s12 + $0x310] sm:$0xff] }
0x11d2   :  { %4806 = vmatpush1.msra.mxu1 %v11799_v35  ;;  %4761 = vmatpush2.msra.mxu0 %v4582_v31  ;;  %v4945_v6 = vmul.f32 %v14328_v0, %v14327_v61  ;;  %v5015_v61 = vld [vmem:[%s13823_s12 + $0x208] sm:$0xff] }
0x11d3   :  { %4807 = vmatprep.subr.mxu1 %v11824_v5  ;;  %v4512_v19 = vpop.permute.xlu0 %4511  ;;  %v14326_v5 = vld [vmem:[#allocation52_spill] sm:$0xff] }
0x11d4   :  { %v4440_v25 = vpop.permute.xlu1 %4439  ;;  %4808 = vmatpush1.msra.mxu1 %v4074_v8  ;;  %v4577_v29 = vsel %vm13970_vm7, %v4510_v57, %v4512_v19  ;;  %v4947_v43 = vadd.f32 %v4945_v6, %v14329_v54  ;;  %v5041_v8 = vld [vmem:[%s13823_s12 + $0x2d8] sm:$0xff]  ;;  %v4972_v6 = vld [vmem:[%s13823_s12 + $0xb0] sm:$0xff] }
0x11d5   :  { %4809 = vmatprep.subr.mxu1 %v11771_v37  ;;  %4762 = vmatprep.subr.mxu0 %v4577_v29  ;;  %v4546_v57 = vsel %vm13970_vm7, %v11933_v34, %v4440_v25  ;;  %v5035_v29 = vld [vmem:[%s13823_s12 + $0x2a8] sm:$0xff] }
0x11d6   :  { %4810 = vmatpush1.msra.mxu1 %v11836_v41  ;;  %4763 = vmatpush2.msra.mxu0 %v4576_v24  ;;  %v4570_v41 = vsel %vm13970_vm7, %v11901_v33, %v4496_v44  ;;  %v5034_v24 = vld [vmem:[%s13823_s12 + $0x2a0] sm:$0xff] }
0x11d7   :  { %4811 = vmatprep.subr.mxu1 %v11812_v18 }
0x11d8   :  { %v12030_v35 = vpop.permute.xlu1 %4425  ;;  %4812 = vmatpush1.msra.mxu1 %v11856_v3 }
0x11d9   :  { %4813 = vmatprep.subr.mxu1 %v11801_v4  ;;  %v4540_v34 = vsel %vm13970_vm7, %v11930_v55, %v12030_v35  ;;  %v4534_v55 = vsel %vm13970_vm7, %v14315_v38, %v14331_v13  ;;  %v5049_v38 = vld [vmem:[%s13823_s12 + $0x318] sm:$0xff] }
0x11da   :  { %4814 = vmatpush1.msra.mxu1 %v11871_v20 }
0x11db   :  { %4815 = vmatprep.subr.mxu1 %v11374_v27  ;;  %v4498_v26 = vpop.permute.xlu0 %4497 }
0x11dc   :  { %v4528_v37 = vpop.permute.xlu1 %4527  ;;  %4816 = vmatpush1.msra.mxu1 %v14326_v5  ;;  %v4571_v36 = vsel %vm13970_vm7, %v4496_v44, %v4498_v26  ;;  %v5027_v5 = vld [vmem:[%s13823_s12 + $0x268] sm:$0xff] }
0x11dd   :  { %4764 = vmatprep.subr.mxu0 %v4571_v36  ;;  %v4585_v18 = vsel %vm13970_vm7, %v4528_v37, %v11938_v16  ;;  %v4584_v3 = vsel %vm13970_vm7, %v4526_v49, %v4528_v37  ;;  %v12094_v49 = vmax.f32 %v4947_v43, 0.0  ;;  %v5001_v43 = vld [vmem:[%s13823_s12 + $0x198] sm:$0xff] }
0x11de   :  { %4831 = vmatprep.subr.mxu1 %v4585_v18  ;;  %4765 = vmatpush2.msra.mxu0 %v4570_v41  ;;  %v5021_v41 = vld [vmem:[%s13823_s12 + $0x238] sm:$0xff] }
0x11df   :  { %4832 = vmatpush2.msra.mxu1 %v4584_v3  ;;  %v4484_v4 = vpop.permute.xlu0 %4483  ;;  %v5058_v3 = vld [vmem:[%s13823_s12 + $0x360] sm:$0xff] }
0x11e0   :  { %v4514_v27 = vpop.permute.xlu1 %4513  ;;  %v4565_v20 = vsel %vm13970_vm7, %v4482_v2, %v4484_v4  ;;  %v4535_v2 = vsel %vm13970_vm7, %v14331_v13, %v14330_v30  ;;  %v4995_v13 = vld [vmem:[%s13823_s12 + $0x168] sm:$0xff] }
0x11e1   :  { %4766 = vmatprep.subr.mxu0 %v4565_v20  ;;  %v4579_v59 = vsel %vm13970_vm7, %v4514_v27, %v11942_v63  ;;  %v4578_v16 = vsel %vm13970_vm7, %v4512_v19, %v4514_v27  ;;  %v5057_v27 = vld [vmem:[%s13823_s12 + $0x358] sm:$0xff]  ;;  %v5014_v20 = vld [vmem:[%s13823_s12 + $0x200] sm:$0xff] }
0x11e2   :  { %4833 = vmatprep.subr.mxu1 %v4579_v59  ;;  %4767 = vmatpush2.msra.mxu0 %v4564_v7  ;;  %v5051_v59 = vld [vmem:[%s13823_s12 + $0x328] sm:$0xff]  ;;  %v5013_v7 = vld [vmem:[%s13823_s12 + $0x1f8] sm:$0xff] }
0x11e3   :  { %4834 = vmatpush2.msra.mxu1 %v4578_v16  ;;  %v4470_v33 = vpop.permute.xlu0 %4469  ;;  %v5050_v16 = vld [vmem:[%s13823_s12 + $0x320] sm:$0xff] }
0x11e4   :  { %v4500_v58 = vpop.permute.xlu1 %4499  ;;  %v4559_v17 = vsel %vm13970_vm7, %v4468_v56, %v4470_v33 }
0x11e5   :  { %4768 = vmatprep.subr.mxu0 %v4559_v17  ;;  %v4573_v11 = vsel %vm13970_vm7, %v4500_v58, %v11948_v9  ;;  %v4572_v63 = vsel %vm13970_vm7, %v4498_v26, %v4500_v58  ;;  %v5006_v58 = vld [vmem:[%s13823_s12 + $0x1c0] sm:$0xff]  ;;  %v5043_v17 = vld [vmem:[%s13823_s12 + $0x2e8] sm:$0xff] }
0x11e6   :  { %4835 = vmatprep.subr.mxu1 %v4573_v11  ;;  %4769 = vmatpush2.msra.mxu0 %v4558_v28  ;;  %v5000_v11 = vld [vmem:[%s13823_s12 + $0x190] sm:$0xff]  ;;  %v5037_v28 = vld [vmem:[%s13823_s12 + $0x2b8] sm:$0xff] }
0x11e7   :  { %4836 = vmatpush2.msra.mxu1 %v4572_v63  ;;  %v4456_v48 = vpop.permute.xlu0 %4455  ;;  %v4999_v63 = vld [vmem:[%s13823_s12 + $0x188] sm:$0xff] }
0x11e8   :  { %v4486_v53 = vpop.permute.xlu1 %4485  ;;  %v4553_v47 = vsel %vm13970_vm7, %v4454_v45, %v4456_v48 }
0x11e9   :  { %4770 = vmatprep.subr.mxu0 %v4553_v47  ;;  %v4567_v22 = vsel %vm13970_vm7, %v4486_v53, %v11968_v12  ;;  %v4566_v9 = vsel %vm13970_vm7, %v4484_v4, %v4486_v53  ;;  %v5020_v4 = vld [vmem:[%s13823_s12 + $0x230] sm:$0xff]  ;;  %v4993_v53 = vld [vmem:[%s13823_s12 + $0x158] sm:$0xff]  ;;  %v5030_v47 = vld [vmem:[%s13823_s12 + $0x280] sm:$0xff] }
0x11ea   :  { %4837 = vmatprep.subr.mxu1 %v4567_v22  ;;  %4771 = vmatpush2.msra.mxu0 %v4552_v46  ;;  %v4992_v22 = vld [vmem:[%s13823_s12 + $0x150] sm:$0xff]  ;;  %v5029_v46 = vld [vmem:[%s13823_s12 + $0x278] sm:$0xff] }
0x11eb   :  { %4838 = vmatpush2.msra.mxu1 %v4566_v9  ;;  %v4442_v52 = vpop.permute.xlu0 %4441  ;;  %v4986_v9 = vld [vmem:[%s13823_s12 + $0x120] sm:$0xff] }
0x11ec   :  { %v4472_v14 = vpop.permute.xlu1 %4471  ;;  %v4547_v40 = vsel %vm13970_vm7, %v4440_v25, %v4442_v52 }
0x11ed   :  { %4772 = vmatprep.subr.mxu0 %v4547_v40  ;;  %v4561_v39 = vsel %vm13970_vm7, %v4472_v14, %v11984_v32  ;;  %v4560_v12 = vsel %vm13970_vm7, %v4470_v33, %v4472_v14  ;;  %v5044_v33 = vld [vmem:[%s13823_s12 + $0x2f0] sm:$0xff]  ;;  %v4985_v14 = vld [vmem:[%s13823_s12 + $0x118] sm:$0xff]  ;;  %v5022_v40 = vld [vmem:[%s13823_s12 + $0x240] sm:$0xff] }
0x11ee   :  { %4839 = vmatprep.subr.mxu1 %v4561_v39  ;;  %4773 = vmatpush2.msra.mxu0 %v4546_v57  ;;  %v4979_v39 = vld [vmem:[%s13823_s12 + $0xe8] sm:$0xff]  ;;  %v5016_v57 = vld [vmem:[%s13823_s12 + $0x210] sm:$0xff] }
0x11ef   :  { %4840 = vmatpush2.msra.mxu1 %v4560_v12  ;;  %v4428_v23 = vpop.permute.xlu0 %4427  ;;  %v4978_v12 = vld [vmem:[%s13823_s12 + $0xe0] sm:$0xff] }
0x11f0   :  { %v4458_v50 = vpop.permute.xlu1 %4457  ;;  %v4541_v44 = vsel %vm13970_vm7, %v12030_v35, %v4428_v23  ;;  %v5028_v35 = vld [vmem:[%s13823_s12 + $0x270] sm:$0xff] }
0x11f1   :  { %4774 = vmatprep.subr.mxu0 %v4541_v44  ;;  %v4555_v32 = vsel %vm13970_vm7, %v4458_v50, %v11998_v15  ;;  %v4554_v60 = vsel %vm13970_vm7, %v4456_v48, %v4458_v50  ;;  %v5055_v15 = vld [vmem:[%s13823_s12 + $0x348] sm:$0xff]  ;;  %v5036_v48 = vld [vmem:[%s13823_s12 + $0x2b0] sm:$0xff] }
0x11f2   :  { %4841 = vmatprep.subr.mxu1 %v4555_v32  ;;  %4775 = vmatpush2.msra.mxu0 %v4540_v34  ;;  %v4971_v50 = vld [vmem:[%s13823_s12 + $0xa8] sm:$0xff]  ;;  %v5008_v44 = vld [vmem:[%s13823_s12 + $0x1d0] sm:$0xff]  ;;  %v4965_v32 = vld [vmem:[%s13823_s12 + $0x78] sm:$0xff] }
0x11f3   :  { %4842 = vmatpush2.msra.mxu1 %v4554_v60  ;;  %4776 = vmatprep.subr.mxu0 %v4535_v2  ;;  %v4432_v45 = vpop.permute.xlu0 %4431  ;;  %v5002_v34 = vld [vmem:[%s13823_s12 + $0x1a0] sm:$0xff]  ;;  %v4964_v60 = vld [vmem:[%s13823_s12 + $0x70] sm:$0xff]  ;;  %v4957_v2 = vld [vmem:[%s13823_s12 + $0x38] sm:$0xff] }
0x11f4   :  { %v4444_v56 = vpop.permute.xlu1 %4443  ;;  %4777 = vmatpush2.msra.mxu0 %v4534_v55  ;;  %v4951_v55 = vld [vmem:[%s13823_s12 + $0x8] sm:$0xff] }
0x11f5   :  { %4779 = vmatmul.mubr.f32.vlgmr.msra.gmra.mxu0 %v11953_v1  ;;  %v4549_v21 = vsel %vm13970_vm7, %v4444_v56, %v12007_v51  ;;  %5170 = vmatprep.subr.mxu0 %v5056_v62  ;;  %v4548_v42 = vsel %vm13970_vm7, %v4442_v52, %v4444_v56  ;;  %v5042_v51 = vld [vmem:[%s13823_s12 + $0x2e0] sm:$0xff]  ;;  %v5023_v52 = vld [vmem:[%s13823_s12 + $0x248] sm:$0xff] }
0x11f6   :  { %4843 = vmatprep.subr.mxu1 %v4549_v21  ;;  %5171 = vmatpush1.msra.mxu0 %v5055_v15  ;;  %v4994_v62 = vld [vmem:[%s13823_s12 + $0x160] sm:$0xff]  ;;  %v4988_v15 = vld [vmem:[%s13823_s12 + $0x130] sm:$0xff]  ;;  %v4987_v21 = vld [vmem:[%s13823_s12 + $0x128] sm:$0xff] }
0x11f7   :  { %4844 = vmatpush2.msra.mxu1 %v4548_v42  ;;  %6476 = vmatprep.mubr.msk.f32.mxu0 %vm14332_vm12, %v12094_v49  ;;  %v4418_v26 = vpop.permute.xlu0 %4417  ;;  %v4950_v56 = vld [vmem:[%s13823_s12] sm:$0xff]  ;;  %v5140_v42 = vld [vmem:[%s13823_s12 + $0x5f0] sm:$0x1f]  ;;  %vm14335_vm12 = vmmov %vm14334_vm8 }
0x11f8   :  { %v4430_v31 = vpop.permute.xlu1 %4429  ;;  %5172 = vmatprep.subr.mxu0 %v5049_v38  ;;  %v4981_v38 = vld [vmem:[%s13823_s12 + $0xf8] sm:$0xff] }
0x11f9   :  { %5173 = vmatpush1.msra.mxu0 %v5048_v10  ;;  %v4543_v19 = vsel %vm13970_vm7, %v4430_v31, %v4432_v45  ;;  %v4542_v25 = vsel %vm13970_vm7, %v4428_v23, %v4430_v31  ;;  %v5009_v23 = vld [vmem:[%s13823_s12 + $0x1d8] sm:$0xff]  ;;  %v5139_v45 = vld [vmem:[%s13823_s12 + $0x5e8] sm:$0x1f]  ;;  %v4980_v10 = vld [vmem:[%s13823_s12 + $0xf0] sm:$0xff] }
0x11fa   :  { %4845 = vmatprep.subr.mxu1 %v4543_v19  ;;  %5174 = vmatprep.subr.mxu0 %v5042_v51  ;;  %v5133_v51 = vld [vmem:[%s13823_s12 + $0x5b8] sm:$0xff]  ;;  %v4974_v31 = vld [vmem:[%s13823_s12 + $0xc0] sm:$0xff] }
0x11fb   :  { %4846 = vmatpush2.msra.mxu1 %v4542_v25  ;;  %5175 = vmatpush1.msra.mxu0 %v5041_v8  ;;  %v5132_v8 = vld [vmem:[%s13823_s12 + $0x5b0] sm:$0xff]  ;;  %v4973_v19 = vld [vmem:[%s13823_s12 + $0xb8] sm:$0xff]  ;;  %v5126_v25 = vld [vmem:[%s13823_s12 + $0x580] sm:$0xff] }
0x11fc   :  { %v4416_v37 = vpop.permute.xlu1 %4415  ;;  %5176 = vmatprep.subr.mxu0 %v5035_v29  ;;  %v4967_v29 = vld [vmem:[%s13823_s12 + $0x88] sm:$0xff] }
0x11fd   :  { %5177 = vmatpush1.msra.mxu0 %v5034_v24  ;;  %v4537_v36 = vsel %vm13970_vm7, %v4416_v37, %v4418_v26  ;;  %v4536_v18 = vsel %vm13970_vm7, %v14330_v30, %v4416_v37  ;;  %v4958_v30 = vld [vmem:[%s13823_s12 + $0x40] sm:$0xff]  ;;  %v5125_v24 = vld [vmem:[%s13823_s12 + $0x578] sm:$0xff]  ;;  %v5119_v26 = vld [vmem:[%s13823_s12 + $0x548] sm:$0xff] }
0x11fe   :  { %4847 = vmatprep.subr.mxu1 %v4537_v36  ;;  %5178 = vmatprep.subr.mxu0 %v5028_v35  ;;  %v4966_v35 = vld [vmem:[%s13823_s12 + $0x80] sm:$0xff]  ;;  %v4960_v37 = vld [vmem:[%s13823_s12 + $0x50] sm:$0xff]  ;;  %v4959_v36 = vld [vmem:[%s13823_s12 + $0x48] sm:$0xff] }
0x11ff   :  { %4848 = vmatpush2.msra.mxu1 %v4536_v18  ;;  %5179 = vmatpush1.msra.mxu0 %v5027_v5  ;;  %v5118_v5 = vld [vmem:[%s13823_s12 + $0x540] sm:$0xff]  ;;  %v5112_v18 = vld [vmem:[%s13823_s12 + $0x510] sm:$0xff] }
0x1200   :  { %4850 = vmatmul.mubr.f32.vlgmr.msra.gmra.mxu1 %v11953_v1  ;;  %5180 = vmatprep.subr.mxu0 %v5021_v41  ;;  %v5007_v1 = vld [vmem:[%s13823_s12 + $0x1c8] sm:$0xff]  ;;  %v4953_v41 = vld [vmem:[%s13823_s12 + $0x18] sm:$0xff] }
0x1201   :  { %5241 = vmatprep.subr.mxu1 %v5058_v3  ;;  %5181 = vmatpush1.msra.mxu0 %v5020_v4  ;;  %v5111_v3 = vld [vmem:[%s13823_s12 + $0x508] sm:$0xff]  ;;  %v4952_v4 = vld [vmem:[%s13823_s12 + $0x10] sm:$0xff] }
0x1202   :  { %5242 = vmatpush1.msra.mxu1 %v5057_v27  ;;  %6479 = vmatprep.mubr.msk.f32.mxu1 %vm14333_vm10, %v12094_v49  ;;  %v5105_v27 = vld [vmem:[%s13823_s12 + $0x4d8] sm:$0xff]  ;;  %vm14336_vm10 = vmmov %vm14334_vm8 }
0x1203   :  { %5182 = vmatprep.subr.mxu0 %v5014_v20  ;;  %5243 = vmatprep.subr.mxu1 %v5051_v59  ;;  %v5142_v20 = vld [vmem:[%s13823_s12 + $0x600] sm:$0x1f]  ;;  %v5104_v59 = vld [vmem:[%s13823_s12 + $0x4d0] sm:$0xff] }
0x1204   :  { %5183 = vmatpush1.msra.mxu0 %v5013_v7  ;;  %5244 = vmatpush1.msra.mxu1 %v5050_v16  ;;  %v5141_v7 = vld [vmem:[%s13823_s12 + $0x5f8] sm:$0x1f]  ;;  %v5098_v16 = vld [vmem:[%s13823_s12 + $0x4a0] sm:$0xff] }
0x1205   :  { %5184 = vmatprep.subr.mxu0 %v5007_v1  ;;  %5245 = vmatprep.subr.mxu1 %v5044_v33  ;;  %v5135_v1 = vld [vmem:[%s13823_s12 + $0x5c8] sm:$0xff]  ;;  %v5097_v33 = vld [vmem:[%s13823_s12 + $0x498] sm:$0xff] }
0x1206   :  { %5185 = vmatpush1.msra.mxu0 %v5006_v58  ;;  %5246 = vmatpush1.msra.mxu1 %v5043_v17  ;;  %v5134_v58 = vld [vmem:[%s13823_s12 + $0x5c0] sm:$0xff]  ;;  %v5091_v17 = vld [vmem:[%s13823_s12 + $0x468] sm:$0xff] }
0x1207   :  { %5186 = vmatprep.subr.mxu0 %v5000_v11  ;;  %5247 = vmatprep.subr.mxu1 %v5037_v28  ;;  %v5128_v11 = vld [vmem:[%s13823_s12 + $0x590] sm:$0xff]  ;;  %v5090_v28 = vld [vmem:[%s13823_s12 + $0x460] sm:$0xff] }
0x1208   :  { %5187 = vmatpush1.msra.mxu0 %v4999_v63  ;;  %5248 = vmatpush1.msra.mxu1 %v5036_v48  ;;  %v5127_v63 = vld [vmem:[%s13823_s12 + $0x588] sm:$0xff]  ;;  %v5084_v48 = vld [vmem:[%s13823_s12 + $0x430] sm:$0xff] }
0x1209   :  { %5188 = vmatprep.subr.mxu0 %v4993_v53  ;;  %5249 = vmatprep.subr.mxu1 %v5030_v47  ;;  %v5121_v53 = vld [vmem:[%s13823_s12 + $0x558] sm:$0xff]  ;;  %v5083_v47 = vld [vmem:[%s13823_s12 + $0x428] sm:$0xff] }
0x120a   :  { %5189 = vmatpush1.msra.mxu0 %v4992_v22  ;;  %5250 = vmatpush1.msra.mxu1 %v5029_v46  ;;  %v5120_v22 = vld [vmem:[%s13823_s12 + $0x550] sm:$0xff]  ;;  %v5077_v46 = vld [vmem:[%s13823_s12 + $0x3f8] sm:$0xff] }
0x120b   :  { %5190 = vmatprep.subr.mxu0 %v4986_v9  ;;  %5251 = vmatprep.subr.mxu1 %v5023_v52  ;;  %v5114_v9 = vld [vmem:[%s13823_s12 + $0x520] sm:$0xff]  ;;  %v14337_v52 = vld [vmem:[#allocation49_spill] sm:$0xff] }
0x120c   :  { %5191 = vmatpush1.msra.mxu0 %v4985_v14  ;;  %5252 = vmatpush1.msra.mxu1 %v5022_v40  ;;  %v4944_v14 = vmul.f32 %v14328_v0, %v14337_v52  ;;  %v5076_v40 = vld [vmem:[%s13823_s12 + $0x3f0] sm:$0xff]  ;;  %v5107_v0 = vld [vmem:[%s13823_s12 + $0x4e8] sm:$0xff]  ;;  %v4998_v52 = vld [vmem:[%s13823_s12 + $0x180] sm:$0xff] }
0x120d   :  { %5192 = vmatprep.subr.mxu0 %v4979_v39  ;;  %5253 = vmatprep.subr.mxu1 %v5016_v57  ;;  %v5113_v39 = vld [vmem:[%s13823_s12 + $0x518] sm:$0xff]  ;;  %v5070_v57 = vld [vmem:[%s13823_s12 + $0x3c0] sm:$0xff] }
0x120e   :  { %5193 = vmatpush1.msra.mxu0 %v4978_v12  ;;  %5254 = vmatpush1.msra.mxu1 %v5015_v61  ;;  %v5069_v12 = vld [vmem:[%s13823_s12 + $0x3b8] sm:$0xff]  ;;  %v5106_v61 = vld [vmem:[%s13823_s12 + $0x4e0] sm:$0xff] }
0x120f   :  { %5194 = vmatprep.subr.mxu0 %v4972_v6  ;;  %5255 = vmatprep.subr.mxu1 %v5009_v23  ;;  %v4946_v6 = vadd.f32 %v4944_v14, %v14329_v54  ;;  %v5063_v23 = vld [vmem:[%s13823_s12 + $0x388] sm:$0xff] }
0x1210   :  { %5195 = vmatpush1.msra.mxu0 %v4971_v50  ;;  %5256 = vmatpush1.msra.mxu1 %v5008_v44  ;;  %v5100_v50 = vld [vmem:[%s13823_s12 + $0x4b0] sm:$0xff]  ;;  %v5062_v44 = vld [vmem:[%s13823_s12 + $0x380] sm:$0xff]  ;;  %v5099_v54 = vld [vmem:[%s13823_s12 + $0x4a8] sm:$0xff] }
0x1211   :  { %5196 = vmatprep.subr.mxu0 %v4965_v32  ;;  %5257 = vmatprep.subr.mxu1 %v5002_v34  ;;  %v5093_v32 = vld [vmem:[%s13823_s12 + $0x478] sm:$0xff]  ;;  %v12416_v34 = vmax.f32 %v4946_v6, 0.0  ;;  %v4955_v14 = vld [vmem:[%s13823_s12 + $0x28] sm:$0xff]  ;;  %v5136_v6 = vld [vmem:[%s13823_s12 + $0x5d0] sm:$0xff] }
0x1212   :  { %5197 = vmatpush1.msra.mxu0 %v4964_v60  ;;  %5258 = vmatpush1.msra.mxu1 %v5001_v43  ;;  %v5060_v60 = vld [vmem:[%s13823_s12 + $0x370] sm:$0xff] }
0x1213   :  { %5198 = vmatprep.subr.mxu0 %v4958_v30  ;;  %5259 = vmatprep.subr.mxu1 %v4995_v13  ;;  %v5092_v43 = vld [vmem:[%s13823_s12 + $0x470] sm:$0xff]  ;;  %v5059_v30 = vld [vmem:[%s13823_s12 + $0x368] sm:$0xff]  ;;  %v5086_v13 = vld [vmem:[%s13823_s12 + $0x440] sm:$0xff] }
0x1214   :  { %5199 = vmatpush1.msra.mxu0 %v4957_v2  ;;  %5260 = vmatpush1.msra.mxu1 %v4994_v62  ;;  %v5053_v2 = vld [vmem:[%s13823_s12 + $0x338] sm:$0xff] }
0x1215   :  { %5200 = vmatprep.subr.mxu0 %v4951_v55  ;;  %5261 = vmatprep.subr.mxu1 %v4988_v15  ;;  %v5085_v62 = vld [vmem:[%s13823_s12 + $0x438] sm:$0xff]  ;;  %v5052_v55 = vld [vmem:[%s13823_s12 + $0x330] sm:$0xff]  ;;  %v5079_v15 = vld [vmem:[%s13823_s12 + $0x408] sm:$0xff] }
0x1216   :  { %5201 = vmatpush1.msra.mxu0 %v4950_v56  ;;  %5262 = vmatpush1.msra.mxu1 %v4987_v21  ;;  %v5046_v56 = vld [vmem:[%s13823_s12 + $0x300] sm:$0xff] }
0x1217   :  { %6474 = vmatprep.subr.msk.mxu0 %vm14334_vm8, %v5140_v42  ;;  %5263 = vmatprep.subr.mxu1 %v4981_v38  ;;  %v5078_v21 = vld [vmem:[%s13823_s12 + $0x400] sm:$0xff]  ;;  %v5045_v42 = vld [vmem:[%s13823_s12 + $0x2f8] sm:$0xff]  ;;  %v5072_v38 = vld [vmem:[%s13823_s12 + $0x3d0] sm:$0xff] }
0x1218   :  { %6475 = vmatpush2.msk.msra.mxu0 %vm14335_vm12, %v5139_v45  ;;  %5264 = vmatpush1.msra.mxu1 %v4980_v10  ;;  %vm14338_vm12 = vcmask 760832   ;;  %v5039_v45 = vld [vmem:[%s13823_s12 + $0x2c8] sm:$0xff] }
0x1219   :  { %5212 = vmatprep.subr.mxu0 %v5133_v51  ;;  %5265 = vmatprep.subr.mxu1 %v4974_v31  ;;  %v5071_v10 = vld [vmem:[%s13823_s12 + $0x3c8] sm:$0xff]  ;;  %v5038_v51 = vld [vmem:[%s13823_s12 + $0x2c0] sm:$0xff]  ;;  %v5065_v31 = vld [vmem:[%s13823_s12 + $0x398] sm:$0xff] }
0x121a   :  { %5213 = vmatpush2.msra.mxu0 %v5132_v8  ;;  %5266 = vmatpush1.msra.mxu1 %v4973_v19  ;;  %v5032_v8 = vld [vmem:[%s13823_s12 + $0x290] sm:$0xff] }
0x121b   :  { %5214 = vmatprep.subr.mxu0 %v5126_v25  ;;  %5267 = vmatprep.subr.mxu1 %v4967_v29  ;;  %v5064_v19 = vld [vmem:[%s13823_s12 + $0x390] sm:$0xff]  ;;  %v5031_v25 = vld [vmem:[%s13823_s12 + $0x288] sm:$0xff]  ;;  %v5025_v29 = vld [vmem:[%s13823_s12 + $0x258] sm:$0xff] }
0x121c   :  { %5215 = vmatpush2.msra.mxu0 %v5125_v24  ;;  %5268 = vmatpush1.msra.mxu1 %v4966_v35  ;;  %v5024_v24 = vld [vmem:[%s13823_s12 + $0x250] sm:$0xff]  ;;  %v5061_v35 = vld [vmem:[%s13823_s12 + $0x378] sm:$0xff] }
0x121d   :  { %5216 = vmatprep.subr.mxu0 %v5119_v26  ;;  %5269 = vmatprep.subr.mxu1 %v4960_v37  ;;  %v5018_v26 = vld [vmem:[%s13823_s12 + $0x220] sm:$0xff]  ;;  %v14339_v37 = vmov 0.0  }
0x121e   :  { %5217 = vmatpush2.msra.mxu0 %v5118_v5  ;;  %5270 = vmatpush1.msra.mxu1 %v4959_v36  ;;  %v5017_v5 = vld [vmem:[%s13823_s12 + $0x218] sm:$0xff]  ;;  %v5054_v36 = vld [vmem:[%s13823_s12 + $0x340] sm:$0xff] }
0x121f   :  { %5218 = vmatprep.subr.mxu0 %v5112_v18  ;;  %5271 = vmatprep.subr.mxu1 %v4953_v41  ;;  %v5011_v18 = vld [vmem:[%s13823_s12 + $0x1e8] sm:$0xff]  ;;  %v5010_v41 = vld [vmem:[%s13823_s12 + $0x1e0] sm:$0xff] }
0x1220   :  { %5219 = vmatpush2.msra.mxu0 %v5111_v3  ;;  %5272 = vmatpush1.msra.mxu1 %v4952_v4  ;;  %v5047_v3 = vld [vmem:[%s13823_s12 + $0x308] sm:$0xff] }
0x1221   :  { %5220 = vmatprep.subr.mxu0 %v5105_v27  ;;  %6477 = vmatprep.subr.msk.mxu1 %vm14336_vm10, %v5142_v20  ;;  %vm14340_vm10 = vmmov %vm14338_vm12  ;;  %v5003_v4 = vld [vmem:[%s13823_s12 + $0x1a8] sm:$0xff]  ;;  %v5040_v27 = vld [vmem:[%s13823_s12 + $0x2d0] sm:$0xff] }
0x1222   :  { %5221 = vmatpush2.msra.mxu0 %v5104_v59  ;;  %6478 = vmatpush2.msk.msra.mxu1 %vm14334_vm8, %v5141_v7  ;;  %v4997_v20 = vld [vmem:[%s13823_s12 + $0x178] sm:$0xff]  ;;  %v4996_v59 = vld [vmem:[%s13823_s12 + $0x170] sm:$0xff] }
0x1223   :  { %5222 = vmatprep.subr.mxu0 %v5098_v16  ;;  %5283 = vmatprep.subr.mxu1 %v5135_v1  ;;  %v5033_v7 = vld [vmem:[%s13823_s12 + $0x298] sm:$0xff]  ;;  %v4990_v16 = vld [vmem:[%s13823_s12 + $0x140] sm:$0xff] }
0x1224   :  { %5223 = vmatpush2.msra.mxu0 %v5097_v33  ;;  %5284 = vmatpush2.msra.mxu1 %v5134_v58  ;;  %v4989_v1 = vld [vmem:[%s13823_s12 + $0x138] sm:$0xff]  ;;  %v5026_v33 = vld [vmem:[%s13823_s12 + $0x260] sm:$0xff]  ;;  %v4983_v58 = vld [vmem:[%s13823_s12 + $0x108] sm:$0xff] }
0x1225   :  { %5224 = vmatprep.subr.mxu0 %v5091_v17  ;;  %5285 = vmatprep.subr.mxu1 %v5128_v11  ;;  %v4982_v17 = vld [vmem:[%s13823_s12 + $0x100] sm:$0xff]  ;;  %v5019_v11 = vld [vmem:[%s13823_s12 + $0x228] sm:$0xff] }
0x1226   :  { %5225 = vmatpush2.msra.mxu0 %v5090_v28  ;;  %5286 = vmatpush2.msra.mxu1 %v5127_v63  ;;  %v4976_v28 = vld [vmem:[%s13823_s12 + $0xd0] sm:$0xff]  ;;  %v4975_v63 = vld [vmem:[%s13823_s12 + $0xc8] sm:$0xff] }
0x1227   :  { %5226 = vmatprep.subr.mxu0 %v5084_v48  ;;  %5287 = vmatprep.subr.mxu1 %v5121_v53  ;;  %v5012_v48 = vld [vmem:[%s13823_s12 + $0x1f0] sm:$0xff]  ;;  %v4969_v53 = vld [vmem:[%s13823_s12 + $0x98] sm:$0xff] }
0x1228   :  { %5227 = vmatpush2.msra.mxu0 %v5083_v47  ;;  %5288 = vmatpush2.msra.mxu1 %v5120_v22  ;;  %v4968_v47 = vld [vmem:[%s13823_s12 + $0x90] sm:$0xff]  ;;  %v5005_v22 = vld [vmem:[%s13823_s12 + $0x1b8] sm:$0xff] }
0x1229   :  { %5228 = vmatprep.subr.mxu0 %v5077_v46  ;;  %5289 = vmatprep.subr.mxu1 %v5114_v9  ;;  %v4962_v46 = vld [vmem:[%s13823_s12 + $0x60] sm:$0xff]  ;;  %v4961_v9 = vld [vmem:[%s13823_s12 + $0x58] sm:$0xff] }
0x122a   :  { %5229 = vmatpush2.msra.mxu0 %v5076_v40  ;;  %5290 = vmatpush2.msra.mxu1 %v5113_v39  ;;  %v4954_v40 = vld [vmem:[%s13823_s12 + $0x20] sm:$0xff]  ;;  %v4991_v39 = vld [vmem:[%s13823_s12 + $0x148] sm:$0xff] }
0x122b   :  { %5230 = vmatprep.subr.mxu0 %v5070_v57  ;;  %5291 = vmatprep.subr.mxu1 %v5107_v0  ;;  %v5144_v57 = vld [vmem:[%s13823_s12 + $0x610] sm:$0x1f]  ;;  %v5143_v0 = vld [vmem:[%s13823_s12 + $0x608] sm:$0x1f] }
0x122c   :  { %5231 = vmatpush2.msra.mxu0 %v5069_v12  ;;  %5292 = vmatpush2.msra.mxu1 %v5106_v61  ;;  %v4984_v12 = vld [vmem:[%s13823_s12 + $0x110] sm:$0xff]  ;;  %v5137_v61 = vld [vmem:[%s13823_s12 + $0x5d8] sm:$0xff] }
0x122d   :  { %5232 = vmatprep.subr.mxu0 %v5063_v23  ;;  %5293 = vmatprep.subr.mxu1 %v5100_v50  ;;  %v4977_v23 = vld [vmem:[%s13823_s12 + $0xd8] sm:$0xff]  ;;  %v5130_v50 = vld [vmem:[%s13823_s12 + $0x5a0] sm:$0xff] }
0x122e   :  { %5233 = vmatpush2.msra.mxu0 %v5062_v44  ;;  %5294 = vmatpush2.msra.mxu1 %v5099_v54  ;;  %v5129_v44 = vld [vmem:[%s13823_s12 + $0x598] sm:$0xff]  ;;  %v4970_v54 = vld [vmem:[%s13823_s12 + $0xa0] sm:$0xff] }
0x122f   :  { %5235 = vmatmul.mubr.f32.vlgmr.msra.gmra.mxu0 %v12416_v34  ;;  %5295 = vmatprep.subr.mxu1 %v5093_v32  ;;  %v5123_v32 = vld [vmem:[%s13823_s12 + $0x568] sm:$0xff] }
0x1230   :  { %5312 = vmatprep.subr.mxu0 %v5060_v60  ;;  %5296 = vmatpush2.msra.mxu1 %v5092_v43  ;;  %v5122_v60 = vld [vmem:[%s13823_s12 + $0x560] sm:$0xff]  ;;  %v4963_v43 = vld [vmem:[%s13823_s12 + $0x68] sm:$0xff] }
0x1231   :  { %5313 = vmatpush1.msra.mxu0 %v5059_v30  ;;  %6482 = vmatprep.mubr.msk.f32.mxu0 %vm14338_vm12, %v12094_v49  ;;  %vm14341_vm12 = vmmov %vm14334_vm8  ;;  %v5116_v30 = vld [vmem:[%s13823_s12 + $0x530] sm:$0xff] }
0x1232   :  { %5297 = vmatprep.subr.mxu1 %v5086_v13  ;;  %5314 = vmatprep.subr.mxu0 %v5053_v2  ;;  %v5115_v13 = vld [vmem:[%s13823_s12 + $0x528] sm:$0xff]  ;;  %v4956_v2 = vld [vmem:[%s13823_s12 + $0x30] sm:$0xff] }
0x1233   :  { %5298 = vmatpush2.msra.mxu1 %v5085_v62  ;;  %5315 = vmatpush1.msra.mxu0 %v5052_v55  ;;  %v5109_v62 = vld [vmem:[%s13823_s12 + $0x4f8] sm:$0xff]  ;;  %v5108_v55 = vld [vmem:[%s13823_s12 + $0x4f0] sm:$0xff] }
0x1234   :  { %5299 = vmatprep.subr.mxu1 %v5079_v15  ;;  %5316 = vmatprep.subr.mxu0 %v5046_v56  ;;  %v5145_v15 = vld [vmem:[%s13823_s12 + $0x618] sm:$0x1f]  ;;  %v5102_v56 = vld [vmem:[%s13823_s12 + $0x4c0] sm:$0xff] }
0x1235   :  { %5300 = vmatpush2.msra.mxu1 %v5078_v21  ;;  %5317 = vmatpush1.msra.mxu0 %v5045_v42  ;;  %v5101_v21 = vld [vmem:[%s13823_s12 + $0x4b8] sm:$0xff]  ;;  %v5138_v42 = vld [vmem:[%s13823_s12 + $0x5e0] sm:$0xff] }
0x1236   :  { %5301 = vmatprep.subr.mxu1 %v5072_v38  ;;  %5318 = vmatprep.subr.mxu0 %v5039_v45  ;;  %v5095_v38 = vld [vmem:[%s13823_s12 + $0x488] sm:$0xff]  ;;  %v5094_v45 = vld [vmem:[%s13823_s12 + $0x480] sm:$0xff] }
0x1237   :  { %5302 = vmatpush2.msra.mxu1 %v5071_v10  ;;  %5319 = vmatpush1.msra.mxu0 %v5038_v51  ;;  %v5131_v10 = vld [vmem:[%s13823_s12 + $0x5a8] sm:$0xff]  ;;  %v5088_v51 = vld [vmem:[%s13823_s12 + $0x450] sm:$0xff] }
0x1238   :  { %5303 = vmatprep.subr.mxu1 %v5065_v31  ;;  %5320 = vmatprep.subr.mxu0 %v5032_v8  ;;  %v5087_v31 = vld [vmem:[%s13823_s12 + $0x448] sm:$0xff]  ;;  %v5124_v8 = vld [vmem:[%s13823_s12 + $0x570] sm:$0xff] }
0x1239   :  { %5304 = vmatpush2.msra.mxu1 %v5064_v19  ;;  %5321 = vmatpush1.msra.mxu0 %v5031_v25  ;;  %v5081_v19 = vld [vmem:[%s13823_s12 + $0x418] sm:$0xff]  ;;  %v5080_v25 = vld [vmem:[%s13823_s12 + $0x410] sm:$0xff] }
0x123a   :  { %5306 = vmatmul.mubr.f32.vlgmr.msra.gmra.mxu1 %v12416_v34  ;;  %5322 = vmatprep.subr.mxu0 %v5025_v29  ;;  %v5117_v29 = vld [vmem:[%s13823_s12 + $0x538] sm:$0xff] }
0x123b   :  { %5383 = vmatprep.subr.mxu1 %v14339_v37  ;;  %5323 = vmatpush1.msra.mxu0 %v5024_v24  ;;  %v5074_v24 = vld [vmem:[%s13823_s12 + $0x3e0] sm:$0xff] }
0x123c   :  { %5384 = vmatpush1.msra.mxu1 %v5061_v35  ;;  %6484 = vmatprep.mubr.msk.f32.mxu1 %vm14340_vm10, %v12094_v49  ;;  %v5004_v49 = vld [vmem:[%s13823_s12 + $0x1b0] sm:$0xff]  ;;  %vm14342_vm10 = vmmov %vm14334_vm8  ;;  %v5073_v35 = vld [vmem:[%s13823_s12 + $0x3d8] sm:$0xff] }
0x123d   :  { %5324 = vmatprep.subr.mxu0 %v5018_v26  ;;  %5385 = vmatprep.subr.mxu1 %v14339_v37  ;;  %v5110_v26 = vld [vmem:[%s13823_s12 + $0x500] sm:$0xff] }
0x123e   :  { %5325 = vmatpush1.msra.mxu0 %v5017_v5  ;;  %5386 = vmatpush1.msra.mxu1 %v5054_v36  ;;  %v5067_v5 = vld [vmem:[%s13823_s12 + $0x3a8] sm:$0xff]  ;;  %v5066_v36 = vld [vmem:[%s13823_s12 + $0x3a0] sm:$0xff] }
0x123f   :  { %5326 = vmatprep.subr.mxu0 %v5011_v18  ;;  %5387 = vmatprep.subr.mxu1 %v14339_v37  ;;  %v5103_v18 = vld [vmem:[%s13823_s12 + $0x4c8] sm:$0xff] }
0x1240   :  { %5327 = vmatpush1.msra.mxu0 %v5010_v41  ;;  %5388 = vmatpush1.msra.mxu1 %v5047_v3  ;;  %v5096_v41 = vld [vmem:[%s13823_s12 + $0x490] sm:$0xff]  ;;  %v5089_v3 = vld [vmem:[%s13823_s12 + $0x458] sm:$0xff] }
0x1241   :  { %5328 = vmatprep.subr.mxu0 %v5004_v49  ;;  %5389 = vmatprep.subr.mxu1 %v14339_v37  ;;  %v5082_v49 = vld [vmem:[%s13823_s12 + $0x420] sm:$0xff] }
0x1242   :  { %5329 = vmatpush1.msra.mxu0 %v5003_v4  ;;  %5390 = vmatpush1.msra.mxu1 %v5040_v27  ;;  %v5075_v4 = vld [vmem:[%s13823_s12 + $0x3e8] sm:$0xff]  ;;  %v5068_v27 = vld [vmem:[%s13823_s12 + $0x3b0] sm:$0xff] }
0x1243   :  { %5330 = vmatprep.subr.mxu0 %v4997_v20  ;;  %5391 = vmatprep.subr.mxu1 %v14339_v37 }
0x1244   :  { %5331 = vmatpush1.msra.mxu0 %v4996_v59  ;;  %5392 = vmatpush1.msra.mxu1 %v5033_v7 }
0x1245   :  { %5332 = vmatprep.subr.mxu0 %v4990_v16  ;;  %5393 = vmatprep.subr.mxu1 %v14339_v37 }
0x1246   :  { %5333 = vmatpush1.msra.mxu0 %v4989_v1  ;;  %5394 = vmatpush1.msra.mxu1 %v5026_v33 }
0x1247   :  { %5334 = vmatprep.subr.mxu0 %v4983_v58  ;;  %5395 = vmatprep.subr.mxu1 %v14339_v37 }
0x1248   :  { %5335 = vmatpush1.msra.mxu0 %v4982_v17  ;;  %5396 = vmatpush1.msra.mxu1 %v5019_v11 }
0x1249   :  { %5336 = vmatprep.subr.mxu0 %v4976_v28  ;;  %5397 = vmatprep.subr.mxu1 %v14339_v37 }
0x124a   :  { %5337 = vmatpush1.msra.mxu0 %v4975_v63  ;;  %5398 = vmatpush1.msra.mxu1 %v5012_v48 }
0x124b   :  { %5338 = vmatprep.subr.mxu0 %v4969_v53  ;;  %5399 = vmatprep.subr.mxu1 %v14339_v37 }
0x124c   :  { %5339 = vmatpush1.msra.mxu0 %v4968_v47  ;;  %5400 = vmatpush1.msra.mxu1 %v5005_v22 }
0x124d   :  { %5340 = vmatprep.subr.mxu0 %v4962_v46  ;;  %5401 = vmatprep.subr.mxu1 %v14339_v37 }
0x124e   :  { %5341 = vmatpush1.msra.mxu0 %v4961_v9  ;;  %5402 = vmatpush1.msra.mxu1 %v4998_v52 }
0x124f   :  { %5342 = vmatprep.subr.mxu0 %v4955_v14  ;;  %5403 = vmatprep.subr.mxu1 %v14339_v37 }
0x1250   :  { %5343 = vmatpush1.msra.mxu0 %v4954_v40  ;;  %5404 = vmatpush1.msra.mxu1 %v4991_v39 }
0x1251   :  { %6480 = vmatprep.subr.msk.mxu0 %vm14334_vm8, %v5144_v57  ;;  %5405 = vmatprep.subr.mxu1 %v14339_v37 }
0x1252   :  { %6481 = vmatpush2.msk.msra.mxu0 %vm14341_vm12, %v5143_v0  ;;  %5406 = vmatpush1.msra.mxu1 %v4984_v12  ;;  %v6756_v0 = vmov 1966171168   ;;  %vm14354_vm12 = vcmask 334848  }
0x1253   :  { %5354 = vmatprep.subr.mxu0 %v5137_v61  ;;  %5407 = vmatprep.subr.mxu1 %v14339_v37  ;;  %v4902_v12 = vunpack.c.l.s4 %v6756_v0 }
0x1254   :  { %5355 = vmatpush2.msra.mxu0 %v5136_v6  ;;  %5408 = vmatpush1.msra.mxu1 %v4977_v23 }
0x1255   :  { %5356 = vmatprep.subr.mxu0 %v5130_v50  ;;  %5409 = vmatprep.subr.mxu1 %v14339_v37  ;;  %v4903_v50 = vunpack.c.0.s8 %v4902_v12 }
0x1256   :  { %5357 = vmatpush2.msra.mxu0 %v5129_v44  ;;  %5410 = vmatpush1.msra.mxu1 %v4970_v54 }
0x1257   :  { %5358 = vmatprep.subr.mxu0 %v5123_v32  ;;  %5411 = vmatprep.subr.mxu1 %v14339_v37  ;;  %v14343_v32 = vld [vmem:[#allocation13_spill] sm:$0xff] }
0x1258   :  { %5359 = vmatpush2.msra.mxu0 %v5122_v60  ;;  %5412 = vmatpush1.msra.mxu1 %v4963_v43  ;;  %v12737_v60 = vsub.s32 %v4903_v50, %v14343_v32 }
0x1259   :  { %5360 = vmatprep.subr.mxu0 %v5116_v30  ;;  %5413 = vmatprep.subr.mxu1 %v14339_v37 }
0x125a   :  { %5361 = vmatpush2.msra.mxu0 %v5115_v13  ;;  %5414 = vmatpush1.msra.mxu1 %v4956_v2  ;;  %14344 = vst [vmem:[#allocation23_spill] sm:$0xff] %v12737_v60 }
0x125b   :  { %5362 = vmatprep.subr.mxu0 %v5109_v62  ;;  %5423 = vmatprep.subr.mxu1 %v14339_v37 }
0x125c   :  { %5363 = vmatpush2.msra.mxu0 %v5108_v55  ;;  %6483 = vmatpush2.msk.msra.mxu1 %vm14342_vm10, %v5145_v15  ;;  %vm14355_vm10 = vmmov %vm14354_vm12 }
0x125d   :  { %5364 = vmatprep.subr.mxu0 %v5102_v56  ;;  %5425 = vmatprep.subr.mxu1 %v14339_v37 }
0x125e   :  { %5365 = vmatpush2.msra.mxu0 %v5101_v21  ;;  %5426 = vmatpush2.msra.mxu1 %v5138_v42 }
0x125f   :  { %5366 = vmatprep.subr.mxu0 %v5095_v38  ;;  %5427 = vmatprep.subr.mxu1 %v14339_v37  ;;  %v14345_v38 = vlaneseq }
0x1260   :  { %5367 = vmatpush2.msra.mxu0 %v5094_v45  ;;  %5428 = vmatpush2.msra.mxu1 %v5131_v10  ;;  %v14346_v45 = vmov 0 }
0x1261   :  { %5368 = vmatprep.subr.mxu0 %v5088_v51  ;;  %5429 = vmatprep.subr.mxu1 %v14339_v37  ;;  %vm12745_vm8 = vcmp.lt.s32.totalorder %v14345_v38, 725 }
0x1262   :  { %5369 = vmatpush2.msra.mxu0 %v5087_v31  ;;  %5430 = vmatpush2.msra.mxu1 %v5124_v8  ;;  %v14347_v45 = vsel %vm12745_vm8, 4294967295, %v14346_v45 }
0x1263   :  { %5370 = vmatprep.subr.mxu0 %v5081_v19  ;;  %5431 = vmatprep.subr.mxu1 %v14339_v37  ;;  %14348 = vst [vmem:[#allocation54_spill] sm:$0xff] %v14347_v45 }
0x1264   :  { %5371 = vmatpush2.msra.mxu0 %v5080_v25  ;;  %5432 = vmatpush2.msra.mxu1 %v5117_v29 }
0x1265   :  { %5372 = vmatprep.subr.mxu0 %v5074_v24  ;;  %5433 = vmatprep.subr.mxu1 %v14339_v37 }
0x1266   :  { %5373 = vmatpush2.msra.mxu0 %v5073_v35  ;;  %5434 = vmatpush2.msra.mxu1 %v5110_v26 }
0x1267   :  { %5374 = vmatprep.subr.mxu0 %v5067_v5  ;;  %5435 = vmatprep.subr.mxu1 %v14339_v37 }
0x1268   :  { %5375 = vmatpush2.msra.mxu0 %v5066_v36  ;;  %5436 = vmatpush2.msra.mxu1 %v5103_v18 }
0x1269   :  { %5377 = vmatmul.mubr.f32.vlgmr.msra.gmra.mxu0 %v12416_v34  ;;  %5437 = vmatprep.subr.mxu1 %v14339_v37 }
0x126a   :  { %5438 = vmatpush2.msra.mxu1 %v5096_v41 }
0x126b   :  { %5439 = vmatprep.subr.mxu1 %v14339_v37 }
0x126c   :  { %5440 = vmatpush2.msra.mxu1 %v5089_v3 }
0x126d   :  { %5441 = vmatprep.subr.mxu1 %v14339_v37 }
0x126e   :  { %5442 = vmatpush2.msra.mxu1 %v5082_v49 }
0x126f   :  { %5443 = vmatprep.subr.mxu1 %v14339_v37 }
0x1270   :  { %5444 = vmatpush2.msra.mxu1 %v5075_v4 }
0x1271   :  { %5445 = vmatprep.subr.mxu1 %v14339_v37 }
0x1272   :  { %5446 = vmatpush2.msra.mxu1 %v5068_v27 }
0x1273   :  { %5448 = vmatmul.mubr.f32.vlgmr.msra.gmra.mxu1 %v12416_v34 }
0x127d   :  { %v4709_v20 = vpop.f32.mrf.mxu1 }
0x127e   :  { %v6468_v7 = vmul.f32 -1.442695, %v4709_v20 }
0x127f   :  { %v4711_v59 = vpop.f32.mrf.mxu1 }
0x1280   :  { %v6469_v16 = vmul.f32 -1.442695, %v4711_v59  ;;  %6629 = vpow2.f32 %v6468_v7 }
0x128d   :  { %v6630_v48 = vpop.eup %6629 }
0x128e   :  { %v4874_v46 = vadd.f32 1.0, %v6630_v48 }
0x12b5   :  { %v4780_v1 = vpop.f32.mrf.mxu0 }
0x12b6   :  { %v6470_v33 = vmul.f32 -1.442695, %v4780_v1 }
0x12b7   :  { %v4782_v58 = vpop.f32.mrf.mxu0 }
0x12b8   :  { %6631 = vpow2.f32 %v6470_v33  ;;  %v6471_v17 = vmul.f32 -1.442695, %v4782_v58 }
0x12b9   :  { %6633 = vpow2.f32 %v6469_v16 }
0x12ba   :  { %6635 = vpow2.f32 %v6471_v17 }
0x12c0   :  { %v4851_v11 = vpop.f32.mrf.mxu1 }
0x12c1   :  { %v6472_v28 = vmul.f32 -1.442695, %v4851_v11 }
0x12c2   :  { %v4853_v63 = vpop.f32.mrf.mxu1 }
0x12c3   :  { %6637 = vpow2.f32 %v6472_v28  ;;  %v6473_v37 = vmul.f32 -1.442695, %v4853_v63 }
0x12c5   :  { %v6632_v53 = vpop.eup %6631  ;;  %6639 = vpow2.f32 %v6473_v37 }
0x12c6   :  { %v6634_v34 = vpop.eup %6633  ;;  %v4876_v47 = vadd.f32 1.0, %v6632_v53 }
0x12c7   :  { %v6636_v22 = vpop.eup %6635  ;;  %v4875_v52 = vadd.f32 1.0, %v6634_v34 }
0x12c8   :  { %v4877_v9 = vadd.f32 1.0, %v6636_v22  ;;  %6641 = vrcp.f32 %v4876_v47 }
0x12ca   :  { %6643 = vrcp.f32 %v4877_v9 }
0x12cb   :  { %6645 = vrcp.f32 %v4874_v46 }
0x12cc   :  { %6647 = vrcp.f32 %v4875_v52 }
0x12d0   :  { %v6638_v14 = vpop.eup %6637 }
0x12d1   :  { %v4878_v40 = vadd.f32 1.0, %v6638_v14 }
0x12d2   :  { %v6640_v39 = vpop.eup %6639 }
0x12d3   :  { %6649 = vrcp.f32 %v4878_v40  ;;  %v4879_v57 = vadd.f32 1.0, %v6640_v39 }
0x12d5   :  { %6651 = vrcp.f32 %v4879_v57  ;;  %v6642_v61 = vpop.eup %6641 }
0x12d7   :  { %v6644_v6 = vpop.eup %6643 }
0x12d8   :  { %v6646_v23 = vpop.eup %6645  ;;  %v4899_v54 = vcombine.low %v6642_v61, %v6644_v6 }
0x12d9   :  { %v6648_v44 = vpop.eup %6647 }
0x12da   :  { %v4898_v43 = vcombine.low %v6646_v23, %v6648_v44  ;;  %v4914_v30 = vrot.slane %v4899_v54, %v12737_v60 }
0x12dc   :  { %v4907_v2 = vrot.slane %v4898_v43, %v12737_v60 }
0x12de   :  { %v4922_v55 = vcombine.low %v4907_v2, %v4914_v30 }
0x12e0   :  { %v6650_v13 = vpop.eup %6649  ;;  %v4929_v21 = vrot.slane %v4922_v55, %v12737_v60 }
0x12e2   :  { %v6652_v62 = vpop.eup %6651 }
0x12e3   :  { %v4900_v15 = vcombine.low %v6650_v13, %v6652_v62 }
0x12e5   :  { %v4921_v56 = vrot.slane %v4900_v15, %v12737_v60 }
0x12e7   :  { %v4936_v42 = vrot.slane %v4921_v56, %v12737_v60 }
0x12e9   :  { %v4937_v10 = vcombine.low %v4929_v21, %v4936_v42 }
0x12eb   :  { %4943 = vst.msk [vmem:[%s13827_s15] ss:$2 sm:$0x3f] %vm12745_vm8, %v4937_v10 }
0x12ef   :  { %v12754_v51 = vpop.f32.mrf.mxu0 }
0x12f0   :  { %5799 = vrot.lane.b32.xlu1 %v12754_v51, %s6744_s23 }
0x12f1   :  { %v12792_v8 = vpop.f32.mrf.mxu0 }
0x12fa   :  { %v12758_v31 = vpop.f32.mrf.mxu1 }
0x12fb   :  { %5626 = vrot.lane.b32.xlu0 %v12758_v31, %s6743_s25  ;;  %5777 = vrot.lane.b32.xlu1 %v12758_v31, %s6745_s24 }
0x12fc   :  { %v12798_v19 = vpop.f32.mrf.mxu1 }
0x12ff   :  { %5747 = vrot.lane.b32.xlu1 %v12754_v51, %s6746_s17  ;;  %5622 = vrot.lane.b32.xlu0 %v12754_v51, %s6743_s25 }
0x1303   :  { %5725 = vrot.lane.b32.xlu1 %v12758_v31, %s6748_s18  ;;  %5603 = vrot.lane.b32.xlu0 %v12758_v31, %s6747_s13 }
0x1307   :  { %5695 = vrot.lane.b32.xlu1 %v12754_v51, %s6749_s3  ;;  %5599 = vrot.lane.b32.xlu0 %v12754_v51, %s6747_s13 }
0x130b   :  { %5673 = vrot.lane.b32.xlu1 %v12758_v31, %s6751_s0  ;;  %5580 = vrot.lane.b32.xlu0 %v12758_v31, %s6750_s10 }
0x130f   :  { %5645 = vrot.lane.b32.xlu1 %v12754_v51, %s6752_s22  ;;  %5576 = vrot.lane.b32.xlu0 %v12754_v51, %s6750_s10 }
0x1313   :  { %5534 = vrot.lane.b32.xlu1 %v12758_v31, %s6733_s6  ;;  %5557 = vrot.lane.b32.xlu0 %v12758_v31, %s6753_s2 }
0x1317   :  { %5866 = vrot.lane.b32.xlu1 %v12754_v51, %s6754_s5  ;;  %5553 = vrot.lane.b32.xlu0 %v12754_v51, %s6753_s2 }
0x131b   :  { %5838 = vrot.lane.b32.xlu0 %v12758_v31, %s6755_s9  ;;  %5624 = vrot.lane.b32.xlu1 %v12792_v8, %s6743_s25 }
0x131f   :  { %5834 = vrot.lane.b32.xlu0 %v12754_v51, %s6755_s9  ;;  %5628 = vrot.lane.b32.xlu1 %v12798_v19, %s6743_s25 }
0x1323   :  { %5511 = vrot.lane.b32.xlu0 %v12758_v31, %s6735_s28  ;;  %5601 = vrot.lane.b32.xlu1 %v12792_v8, %s6747_s13 }
0x1327   :  { %5507 = vrot.lane.b32.xlu0 %v12754_v51, %s6735_s28  ;;  %5605 = vrot.lane.b32.xlu1 %v12798_v19, %s6747_s13 }
0x1329   :  { %v12904_v3 = vpop.f32.mrf.mxu0 }
0x132a   :  { %14350 = vst [vmem:[#allocation40_spill] sm:$0xff] %v12904_v3 }
0x132b   :  { %5488 = vrot.lane.b32.xlu0 %v12758_v31, %s14030_s30  ;;  %5578 = vrot.lane.b32.xlu1 %v12792_v8, %s6750_s10  ;;  %v13038_v54 = vpop.f32.mrf.mxu0 }
0x132c   :  { %14352 = vst [vmem:[#allocation2_spill] sm:$0xff] %v13038_v54 }
0x132f   :  { %5484 = vrot.lane.b32.xlu0 %v12754_v51, %s14030_s30  ;;  %5582 = vrot.lane.b32.xlu1 %v12798_v19, %s6750_s10 }
0x1333   :  { %v12820_v25 = vpop.f32.mrf.mxu1  ;;  %5465 = vrot.lane.b32.xlu0 %v12758_v31, %s6710_s29  ;;  %5555 = vrot.lane.b32.xlu1 %v12792_v8, %s6753_s2 }
0x1334   :  { %14349 = vst [vmem:[#allocation22_spill] sm:$0xff] %v12820_v25 }
0x1335   :  { %v5451_v29 = vpop.f32.mrf.mxu1 }
0x1337   :  { %5461 = vrot.lane.b32.xlu0 %v12754_v51, %s6710_s29  ;;  %5559 = vrot.lane.b32.xlu1 %v12798_v19, %s6753_s2 }
0x133b   :  { %5803 = vrot.lane.b32.xlu0 %v12758_v31, %s6744_s23  ;;  %5836 = vrot.lane.b32.xlu1 %v12792_v8, %s6755_s9 }
0x133f   :  { %5773 = vrot.lane.b32.xlu0 %v12754_v51, %s6745_s24  ;;  %5840 = vrot.lane.b32.xlu1 %v12798_v19, %s6755_s9 }
0x1343   :  { %5751 = vrot.lane.b32.xlu0 %v12758_v31, %s6746_s17  ;;  %5509 = vrot.lane.b32.xlu1 %v12792_v8, %s6735_s28 }
0x1347   :  { %5721 = vrot.lane.b32.xlu0 %v12754_v51, %s6748_s18  ;;  %5513 = vrot.lane.b32.xlu1 %v12798_v19, %s6735_s28 }
0x134b   :  { %5699 = vrot.lane.b32.xlu0 %v12758_v31, %s6749_s3  ;;  %5486 = vrot.lane.b32.xlu1 %v12792_v8, %s14030_s30 }
0x134f   :  { %5669 = vrot.lane.b32.xlu0 %v12754_v51, %s6751_s0  ;;  %5490 = vrot.lane.b32.xlu1 %v12798_v19, %s14030_s30 }
0x1353   :  { %5649 = vrot.lane.b32.xlu0 %v12758_v31, %s6752_s22  ;;  %5463 = vrot.lane.b32.xlu1 %v12792_v8, %s6710_s29 }
0x1357   :  { %5530 = vrot.lane.b32.xlu0 %v12754_v51, %s6733_s6  ;;  %5467 = vrot.lane.b32.xlu1 %v12798_v19, %s6710_s29 }
0x135b   :  { %5870 = vrot.lane.b32.xlu0 %v12758_v31, %s6754_s5  ;;  %5801 = vrot.lane.b32.xlu1 %v12792_v8, %s6744_s23 }
0x135f   :  { %5775 = vrot.lane.b32.xlu0 %v12792_v8, %s6745_s24  ;;  %5749 = vrot.lane.b32.xlu1 %v12792_v8, %s6746_s17 }
0x1362   :  { %v12878_v24 = vpop.permute.xlu1 %5799 }
0x1363   :  { %5723 = vrot.lane.b32.xlu0 %v12792_v8, %s6748_s18  ;;  %5697 = vrot.lane.b32.xlu1 %v12792_v8, %s6749_s3 }
0x1367   :  { %5671 = vrot.lane.b32.xlu0 %v12792_v8, %s6751_s0  ;;  %5647 = vrot.lane.b32.xlu1 %v12792_v8, %s6752_s22 }
0x136b   :  { %5532 = vrot.lane.b32.xlu0 %v12792_v8, %s6733_s6  ;;  %5805 = vrot.lane.b32.xlu1 %v12798_v19, %s6744_s23 }
0x136d   :  { %v12884_v35 = vpop.permute.xlu0 %5626  ;;  %v12886_v26 = vpop.permute.xlu1 %5777 }
0x136f   :  { %5779 = vrot.lane.b32.xlu0 %v12798_v19, %s6745_s24  ;;  %5868 = vrot.lane.b32.xlu1 %v12792_v8, %s6754_s5 }
0x1371   :  { %v12892_v5 = vpop.permute.xlu1 %5747  ;;  %v12894_v36 = vpop.permute.xlu0 %5622 }
0x1373   :  { %5753 = vrot.lane.b32.xlu0 %v12798_v19, %s6746_s17  ;;  %5536 = vrot.lane.b32.xlu1 %v12798_v19, %s6733_s6 }
0x1375   :  { %v12900_v18 = vpop.permute.xlu1 %5725  ;;  %v12902_v41 = vpop.permute.xlu0 %5603 }
0x1377   :  { %5727 = vrot.lane.b32.xlu0 %v12798_v19, %s6748_s18  ;;  %5607 = vrot.lane.b32.xlu1 %v12904_v3, %s6747_s13 }
0x1379   :  { %v12910_v49 = vpop.permute.xlu1 %5695  ;;  %v12912_v4 = vpop.permute.xlu0 %5599 }
0x137b   :  { %5701 = vrot.lane.b32.xlu0 %v12798_v19, %s6749_s3  ;;  %5863 = vrot.lane.b32.xlu1 %v12820_v25, %s6743_s25 }
0x137d   :  { %v12918_v27 = vpop.permute.xlu1 %5673  ;;  %v12920_v20 = vpop.permute.xlu0 %5580 }
0x137f   :  { %5675 = vrot.lane.b32.xlu0 %v12798_v19, %s6751_s0  ;;  %5561 = vrot.lane.b32.xlu1 %v12904_v3, %s6753_s2 }
0x1381   :  { %v12926_v59 = vpop.permute.xlu1 %5645  ;;  %v12928_v7 = vpop.permute.xlu0 %5576 }
0x1383   :  { %5651 = vrot.lane.b32.xlu0 %v12798_v19, %s6752_s22  ;;  %5857 = vrot.lane.b32.xlu1 %v12820_v25, %s6750_s10 }
0x1385   :  { %v12934_v16 = vpop.permute.xlu1 %5534  ;;  %v12936_v1 = vpop.permute.xlu0 %5557 }
0x1387   :  { %5872 = vrot.lane.b32.xlu0 %v12798_v19, %s6754_s5  ;;  %5515 = vrot.lane.b32.xlu1 %v12904_v3, %s6735_s28 }
0x1389   :  { %v12942_v33 = vpop.permute.xlu1 %5866  ;;  %v12944_v58 = vpop.permute.xlu0 %5553 }
0x138a   :  { %14351 = vst [vmem:[#allocation30_spill] sm:$0xff] %v12942_v33 }
0x138b   :  { %5846 = vrot.lane.b32.xlu1 %v12820_v25, %s6755_s9  ;;  %5630 = vrot.lane.b32.xlu0 %v12904_v3, %s6743_s25 }
0x138d   :  { %v12950_v17 = vpop.permute.xlu0 %5838  ;;  %v12952_v11 = vpop.permute.xlu1 %5624 }
0x138f   :  { %5781 = vrot.lane.b32.xlu1 %v12904_v3, %s6745_s24  ;;  %5584 = vrot.lane.b32.xlu0 %v12904_v3, %s6750_s10 }
0x1391   :  { %v12958_v28 = vpop.permute.xlu0 %5834  ;;  %v12960_v63 = vpop.permute.xlu1 %5628 }
0x1393   :  { %5811 = vrot.lane.b32.xlu1 %v12820_v25, %s6744_s23  ;;  %5860 = vrot.lane.b32.xlu0 %v12820_v25, %s6747_s13 }
0x1395   :  { %v12966_v37 = vpop.permute.xlu0 %5511  ;;  %v12968_v48 = vpop.permute.xlu1 %5601 }
0x1397   :  { %5755 = vrot.lane.b32.xlu1 %v12904_v3, %s6746_s17  ;;  %5842 = vrot.lane.b32.xlu0 %v12904_v3, %s6755_s9 }
0x1399   :  { %v12974_v53 = vpop.permute.xlu0 %5507  ;;  %v12976_v34 = vpop.permute.xlu1 %5605 }
0x139b   :  { %5785 = vrot.lane.b32.xlu1 %v12820_v25, %s6745_s24  ;;  %5854 = vrot.lane.b32.xlu0 %v12820_v25, %s6753_s2 }
0x139d   :  { %v12982_v47 = vpop.permute.xlu0 %5488  ;;  %v12984_v22 = vpop.permute.xlu1 %5578 }
0x139f   :  { %5729 = vrot.lane.b32.xlu1 %v12904_v3, %s6748_s18  ;;  %5492 = vrot.lane.b32.xlu0 %v12904_v3, %s14030_s30 }
0x13a1   :  { %v12990_v46 = vpop.permute.xlu0 %5484  ;;  %v12992_v9 = vpop.permute.xlu1 %5582 }
0x13a3   :  { %5759 = vrot.lane.b32.xlu1 %v12820_v25, %s6746_s17  ;;  %5831 = vrot.lane.b32.xlu0 %v12820_v25, %s6735_s28 }
0x13a5   :  { %v12998_v52 = vpop.permute.xlu0 %5465  ;;  %v13000_v14 = vpop.permute.xlu1 %5555 }
0x13a7   :  { %5703 = vrot.lane.b32.xlu1 %v12904_v3, %s6749_s3  ;;  %5469 = vrot.lane.b32.xlu0 %v12904_v3, %s6710_s29 }
0x13a9   :  { %v13006_v40 = vpop.permute.xlu0 %5461  ;;  %v13008_v39 = vpop.permute.xlu1 %5559 }
0x13ab   :  { %5733 = vrot.lane.b32.xlu1 %v12820_v25, %s6748_s18  ;;  %5828 = vrot.lane.b32.xlu0 %v12820_v25, %s14030_s30 }
0x13ad   :  { %v13014_v57 = vpop.permute.xlu0 %5803  ;;  %v13016_v0 = vpop.permute.xlu1 %5836 }
0x13af   :  { %5677 = vrot.lane.b32.xlu1 %v12904_v3, %s6751_s0  ;;  %5825 = vrot.lane.b32.xlu0 %v12820_v25, %s6710_s29 }
0x13b1   :  { %v5774_v12 = vpop.permute.xlu0 %5773  ;;  %v13022_v61 = vpop.permute.xlu1 %5840 }
0x13b3   :  { %5707 = vrot.lane.b32.xlu1 %v12820_v25, %s6749_s3  ;;  %5807 = vrot.lane.b32.xlu0 %v12904_v3, %s6744_s23 }
0x13b5   :  { %v13028_v6 = vpop.permute.xlu0 %5751  ;;  %v13030_v23 = vpop.permute.xlu1 %5509 }
0x13b7   :  { %5653 = vrot.lane.b32.xlu1 %v12904_v3, %s6752_s22  ;;  %5538 = vrot.lane.b32.xlu0 %v12904_v3, %s6733_s6 }
0x13b9   :  { %v5722_v50 = vpop.permute.xlu0 %5721  ;;  %v13036_v44 = vpop.permute.xlu1 %5513 }
0x13bb   :  { %5681 = vrot.lane.b32.xlu1 %v12820_v25, %s6751_s0  ;;  %5609 = vrot.lane.b32.xlu0 %v13038_v54, %s6747_s13 }
0x13bd   :  { %v13044_v32 = vpop.permute.xlu0 %5699  ;;  %v13046_v43 = vpop.permute.xlu1 %5486 }
0x13bf   :  { %5874 = vrot.lane.b32.xlu1 %v12904_v3, %s6754_s5  ;;  %5563 = vrot.lane.b32.xlu0 %v13038_v54, %s6753_s2 }
0x13c1   :  { %v5670_v30 = vpop.permute.xlu0 %5669  ;;  %v13052_v13 = vpop.permute.xlu1 %5490 }
0x13c3   :  { %5517 = vrot.lane.b32.xlu0 %v13038_v54, %s6735_s28  ;;  %5632 = vrot.lane.b32.xlu1 %v13038_v54, %s6743_s25 }
0x13c5   :  { %v13058_v2 = vpop.permute.xlu0 %5649  ;;  %v13060_v62 = vpop.permute.xlu1 %5463 }
0x13c7   :  { %5809 = vrot.lane.b32.xlu0 %v13038_v54, %s6744_s23  ;;  %5586 = vrot.lane.b32.xlu1 %v13038_v54, %s6750_s10 }
0x13c9   :  { %v13066_v55 = vpop.permute.xlu0 %5530  ;;  %v13068_v15 = vpop.permute.xlu1 %5467 }
0x13cb   :  { %5783 = vrot.lane.b32.xlu0 %v13038_v54, %s6745_s24  ;;  %5844 = vrot.lane.b32.xlu1 %v13038_v54, %s6755_s9 }
0x13cd   :  { %v13074_v56 = vpop.permute.xlu0 %5870  ;;  %v5802_v21 = vpop.permute.xlu1 %5801 }
0x13ce   :  { %14353 = vst [vmem:[#allocation51_spill] sm:$0xff] %v13074_v56  ;;  %v5814_v42 = vsel %vm14354_vm12, %v5802_v21, %v13014_v57  ;;  %v5813_v38 = vsel %vm14355_vm10, %v12878_v24, %v5802_v21  ;;  %vm14356_vm12 = vcmask 556032  }
0x13cf   :  { %6103 = vmatprep.subr.mxu0 %v5814_v42  ;;  %5757 = vrot.lane.b32.xlu0 %v13038_v54, %s6746_s17  ;;  %vm14357_vm10 = vmmov %vm14356_vm12 }
0x13d0   :  { %5494 = vrot.lane.b32.xlu1 %v13038_v54, %s14030_s30  ;;  %6104 = vmatpush1.msra.mxu0 %v5813_v38 }
0x13d1   :  { %v5776_v10 = vpop.permute.xlu0 %5775  ;;  %v5750_v29 = vpop.permute.xlu1 %5749 }
0x13d2   :  { %v5788_v45 = vsel %vm4323_vm6, %v5776_v10, %v12886_v26  ;;  %v5787_v60 = vsel %vm4323_vm6, %v5774_v12, %v5776_v10  ;;  %v5762_v24 = vsel %vm4296_vm1, %v5750_v29, %v13028_v6  ;;  %v5761_v38 = vsel %vm4296_vm1, %v12892_v5, %v5750_v29 }
0x13d3   :  { %6105 = vmatprep.subr.mxu0 %v5788_v45  ;;  %5731 = vrot.lane.b32.xlu0 %v13038_v54, %s6748_s18 }
0x13d4   :  { %5471 = vrot.lane.b32.xlu1 %v13038_v54, %s6710_s29  ;;  %6106 = vmatpush1.msra.mxu0 %v5787_v60 }
0x13d5   :  { %v5724_v21 = vpop.permute.xlu0 %5723  ;;  %6107 = vmatprep.subr.mxu0 %v5762_v24  ;;  %v5698_v42 = vpop.permute.xlu1 %5697 }
0x13d6   :  { %6108 = vmatpush1.msra.mxu0 %v5761_v38  ;;  %v5736_v45 = vsel %vm14356_vm12, %v5724_v21, %v12900_v18  ;;  %v5735_v12 = vsel %vm14357_vm10, %v5722_v50, %v5724_v21  ;;  %v5710_v60 = vsel %vm4243_vm4, %v5698_v42, %v13044_v32  ;;  %v5709_v29 = vsel %vm4243_vm4, %v12910_v49, %v5698_v42 }
0x13d7   :  { %6109 = vmatprep.subr.mxu0 %v5736_v45  ;;  %5705 = vrot.lane.b32.xlu0 %v13038_v54, %s6749_s3  ;;  %v13114_v21 = vsel %vm4165_vm14, %v12884_v35, %v12960_v63  ;;  %v5635_v45 = vsel %vm4165_vm14, %v12952_v11, %v12884_v35  ;;  %v5611_v35 = vsel %vm4141_vm15, %v12912_v4, %v12968_v48  ;;  %vm14359_vm12 = vcmask 1039360  }
0x13d8   :  { %5540 = vrot.lane.b32.xlu1 %v13038_v54, %s6733_s6  ;;  %6110 = vmatpush1.msra.mxu0 %v5735_v12  ;;  %v5634_v12 = vsel %vm4165_vm14, %v12894_v36, %v12952_v11  ;;  %v5589_v36 = vsel %vm4117_vm2, %v12984_v22, %v12920_v20  ;;  %v13150_v11 = vsel %vm4141_vm15, %v12902_v41, %v12976_v34  ;;  %vm14360_vm10 = vmmov %vm14359_vm12 }
0x13d9   :  { %v5672_v10 = vpop.permute.xlu0 %5671  ;;  %6111 = vmatprep.subr.mxu0 %v5710_v60  ;;  %v5648_v5 = vpop.permute.xlu1 %5647  ;;  %v5566_v4 = vsel %vm4093_vm5, %v13000_v14, %v12936_v1 }
0x13da   :  { %6112 = vmatpush1.msra.mxu0 %v5709_v29  ;;  %v5684_v50 = vsel %vm4216_vm11, %v5672_v10, %v12918_v27  ;;  %v5683_v24 = vsel %vm4216_vm11, %v5670_v30, %v5672_v10  ;;  %v5658_v49 = vsel %vm4189_vm9, %v5648_v5, %v13058_v2  ;;  %v5657_v30 = vsel %vm4189_vm9, %v12926_v59, %v5648_v5 }
0x13db   :  { %6113 = vmatprep.subr.mxu0 %v5684_v50  ;;  %5679 = vrot.lane.b32.xlu0 %v13038_v54, %s6751_s0  ;;  %v5612_v59 = vsel %vm4141_vm15, %v12968_v48, %v12902_v41  ;;  %v5588_v5 = vsel %vm4117_vm2, %v12928_v7, %v12984_v22  ;;  %v5565_v41 = vsel %vm4093_vm5, %v12944_v58, %v13000_v14 }
0x13dc   :  { %5982 = vrot.lane.b32.xlu1 %v13114_v21, %s6754_s5  ;;  %6114 = vmatpush1.msra.mxu0 %v5683_v24  ;;  %v5520_v50 = vsel %vm1408_vm13, %v13030_v23, %v12966_v37  ;;  %v5519_v14 = vsel %vm1408_vm13, %v12974_v53, %v13030_v23  ;;  %v5474_v53 = vsel %vm14359_vm12, %v13060_v62, %v12998_v52  ;;  %vm14361_vm12 = vcmask 818176  }
0x13dd   :  { %v5533_v42 = vpop.permute.xlu0 %5532  ;;  %6115 = vmatprep.subr.mxu0 %v5658_v49  ;;  %v13120_v38 = vpop.permute.xlu1 %5805  ;;  %v13190_v49 = vsel %vm4117_vm2, %v12920_v20, %v12992_v9  ;;  %v5473_v20 = vsel %vm14360_vm10, %v13006_v40, %v13060_v62  ;;  %vm14362_vm10 = vmmov %vm14361_vm12 }
0x13de   :  { %6116 = vmatpush1.msra.mxu0 %v5657_v30  ;;  %v5543_v7 = vsel %vm1430_vm3, %v5533_v42, %v12934_v16  ;;  %v5542_v22 = vsel %vm1430_vm3, %v13066_v55, %v5533_v42  ;;  %v5497_v55 = vsel %vm1386_vm0, %v13046_v43, %v12982_v47  ;;  %v5496_v42 = vsel %vm1386_vm0, %v12990_v46, %v13046_v43  ;;  %vm14364_vm7 = vmmov %vm14362_vm10 }
0x13df   :  { %6117 = vmatprep.subr.mxu0 %v5635_v45  ;;  %5655 = vrot.lane.b32.xlu0 %v13038_v54, %s6752_s22  ;;  %v5849_v62 = vsel %vm14362_vm10, %v13016_v0, %v12950_v17  ;;  %vm14368_vm10 = vcmask 1039360  }
0x13e0   :  { %5978 = vrot.lane.b32.xlu1 %v5634_v12, %s6754_s5  ;;  %6118 = vmatpush1.msra.mxu0 %v5634_v12 }
0x13e1   :  { %v13136_v60 = vpop.permute.xlu0 %5779  ;;  %6119 = vmatprep.subr.mxu0 %v5612_v59  ;;  %v13138_v10 = vpop.permute.xlu1 %5868 }
0x13e2   :  { %14358 = vst [vmem:[#allocation46_spill] sm:$0xff] %v13138_v10  ;;  %6120 = vmatpush1.msra.mxu0 %v5611_v35 }
0x13e3   :  { %6121 = vmatprep.subr.mxu0 %v5589_v36  ;;  %5980 = vrot.lane.b32.xlu0 %v5635_v45, %s6754_s5  ;;  %v13219_v45 = vsel %vm4093_vm5, %v12936_v1, %v13008_v39 }
0x13e4   :  { %5968 = vrot.lane.b32.xlu1 %v13150_v11, %s6754_s5  ;;  %6122 = vmatpush1.msra.mxu0 %v5588_v5 }
0x13e5   :  { %v13160_v48 = vpop.permute.xlu0 %5753  ;;  %6123 = vmatprep.subr.mxu0 %v5566_v4  ;;  %v13162_v29 = vpop.permute.xlu1 %5536 }
0x13e6   :  { %6124 = vmatpush1.msra.mxu0 %v5565_v41 }
0x13e7   :  { %6125 = vmatprep.subr.mxu0 %v5543_v7  ;;  %5966 = vrot.lane.b32.xlu0 %v5612_v59, %s6754_s5  ;;  %v5848_v59 = vsel %vm14364_vm7, %v12958_v28, %v13016_v0  ;;  %v13263_v28 = vsel %vm1386_vm0, %v12982_v47, %v13052_v13  ;;  %vm14366_vm7 = vcmask 588800  }
0x13e8   :  { %5964 = vrot.lane.b32.xlu1 %v5611_v35, %s6754_s5  ;;  %6126 = vmatpush1.msra.mxu0 %v5542_v22  ;;  %v13291_v22 = vsel %vm14368_vm10, %v12998_v52, %v13068_v15 }
0x13e9   :  { %v13176_v24 = vpop.permute.xlu0 %5727  ;;  %6127 = vmatprep.subr.mxu0 %v5520_v50  ;;  %v13178_v58 = vpop.permute.xlu1 %5607 }
0x13ea   :  { %6128 = vmatpush1.msra.mxu0 %v5519_v14 }
0x13eb   :  { %6129 = vmatprep.subr.mxu0 %v5497_v55  ;;  %5952 = vrot.lane.b32.xlu0 %v5589_v36, %s6754_s5 }
0x13ec   :  { %5954 = vrot.lane.b32.xlu1 %v13190_v49, %s6754_s5  ;;  %6130 = vmatpush1.msra.mxu0 %v5496_v42 }
0x13ed   :  { %v13200_v23 = vpop.permute.xlu0 %5701  ;;  %6131 = vmatprep.subr.mxu0 %v5474_v53  ;;  %v13202_v30 = vpop.permute.xlu1 %5863 }
0x13ee   :  { %6132 = vmatpush1.msra.mxu0 %v5473_v20 }
0x13ef   :  { %6133 = vmatprep.subr.mxu0 %v12792_v8  ;;  %5938 = vrot.lane.b32.xlu0 %v5566_v4, %s6754_s5 }
0x13f0   :  { %5950 = vrot.lane.b32.xlu1 %v5588_v5, %s6754_s5  ;;  %6134 = vmatpush1.msra.mxu0 %v12754_v51  ;;  %v5850_v51 = vsel %vm14361_vm12, %v12950_v17, %v13022_v61  ;;  %v13252_v17 = vsel %vm1408_vm13, %v12966_v37, %v13036_v44  ;;  %v13270_v37 = vld [vmem:[%s13826_s11 + $0x8] sm:$0xff]  ;;  %vm14367_vm12 = vmmov %vm14366_vm7 }
0x13f1   :  { %v13211_v46 = vpop.permute.xlu0 %5675  ;;  %v13213_v43 = vpop.permute.xlu1 %5561  ;;  %14365 = vst [vmem:[#allocation48_spill] sm:$0xff] %v13270_v37  ;;  %6485 = vmatprep.mubr.msk.f32.mxu0 %vm14366_vm7, %v13270_v37  ;;  %6486 = vmatprep.mubr.msk.f32.mxu1 %vm14367_vm12, %v13270_v37  ;;  %vm14369_vm7 = vcmask 818176   ;;  %vm14370_vm12 = vcmask 334848  }
0x13f2   :  { %vm14371_vm10 = vmmov %vm14370_vm12 }
0x13f3   :  { %5936 = vrot.lane.b32.xlu0 %v5565_v41, %s6754_s5 }
0x13f4   :  { %5940 = vrot.lane.b32.xlu1 %v13219_v45, %s6754_s5 }
0x13f5   :  { %v13223_v8 = vpop.permute.xlu0 %5651  ;;  %v13225_v40 = vpop.permute.xlu1 %5857 }
0x13f7   :  { %5926 = vrot.lane.b32.xlu0 %v5850_v51, %s6754_s5 }
0x13f8   :  { %5924 = vrot.lane.b32.xlu1 %v5849_v62, %s6754_s5 }
0x13f9   :  { %v13235_v1 = vpop.permute.xlu0 %5872  ;;  %v13237_v12 = vpop.permute.xlu1 %5515 }
0x13fa   :  { %14363 = vst [vmem:[#allocation28_spill] sm:$0xff] %v13235_v1  ;;  %v13364_v33 = vsel %vm1408_vm13, %v13036_v44, %v13237_v12  ;;  %v5815_v44 = vsel %vm14371_vm10, %v13014_v57, %v13120_v38 }
0x13fb   :  { %5910 = vrot.lane.b32.xlu0 %v5520_v50, %s6754_s5 }
0x13fc   :  { %5922 = vrot.lane.b32.xlu1 %v5848_v59, %s6754_s5  ;;  %v13341_v59 = vsel %vm4093_vm5, %v13008_v39, %v13213_v43 }
0x13fd   :  { %v13244_v35 = vpop.permute.xlu1 %5846  ;;  %v13246_v36 = vpop.permute.xlu0 %5630 }
0x13ff   :  { %5908 = vrot.lane.b32.xlu0 %v5519_v14, %s6754_s5 }
0x1400   :  { %5912 = vrot.lane.b32.xlu1 %v13252_v17, %s6754_s5 }
0x1401   :  { %v13256_v5 = vpop.permute.xlu1 %5781  ;;  %v13258_v4 = vpop.permute.xlu0 %5584 }
0x1402   :  { %v13328_v51 = vsel %vm4117_vm2, %v12992_v9, %v13258_v4 }
0x1403   :  { %5898 = vrot.lane.b32.xlu0 %v13263_v28, %s6754_s5 }
0x1404   :  { %5896 = vrot.lane.b32.xlu1 %v5497_v55, %s6754_s5  ;;  %v13302_v55 = vsel %vm4165_vm14, %v12960_v63, %v13246_v36 }
0x1405   :  { %v13275_v0 = vpop.permute.xlu1 %5811  ;;  %v13277_v41 = vpop.permute.xlu0 %5860 }
0x1407   :  { %5882 = vrot.lane.b32.xlu0 %v5474_v53, %s6754_s5  ;;  %v13315_v53 = vsel %vm4141_vm15, %v12976_v34, %v13178_v58 }
0x1408   :  { %5894 = vrot.lane.b32.xlu1 %v5496_v42, %s6754_s5 }
0x1409   :  { %v13283_v47 = vpop.permute.xlu1 %5755  ;;  %v13285_v7 = vpop.permute.xlu0 %5842 }
0x140a   :  { %v5851_v3 = vsel %vm14369_vm7, %v13022_v61, %v13285_v7  ;;  %vm14372_vm7 = vcmask 1039360  }
0x140b   :  { %5880 = vrot.lane.b32.xlu0 %v5473_v20, %s6754_s5 }
0x140c   :  { %5884 = vrot.lane.b32.xlu1 %v13291_v22, %s6754_s5 }
0x140d   :  { %v13295_v50 = vpop.permute.xlu1 %5785  ;;  %v13297_v14 = vpop.permute.xlu0 %5854 }
0x140f   :  { %5984 = vrot.lane.b32.xlu0 %v13302_v55, %s6754_s5 }
0x1410   :  { %5990 = vrot.lane.b32.xlu1 %v13202_v30, %s6754_s5 }
0x1411   :  { %v13308_v52 = vpop.permute.xlu1 %5729  ;;  %v13310_v42 = vpop.permute.xlu0 %5492 }
0x1412   :  { %v13375_v10 = vsel %vm1386_vm0, %v13052_v13, %v13310_v42  ;;  %v5790_v13 = vsel %vm4323_vm6, %v13136_v60, %v13256_v5 }
0x1413   :  { %5970 = vrot.lane.b32.xlu0 %v13315_v53, %s6754_s5 }
0x1414   :  { %5976 = vrot.lane.b32.xlu1 %v13277_v41, %s6754_s5 }
0x1415   :  { %v13321_v63 = vpop.permute.xlu1 %5759  ;;  %v13323_v20 = vpop.permute.xlu0 %5831 }
0x1417   :  { %5956 = vrot.lane.b32.xlu0 %v13328_v51, %s6754_s5 }
0x1418   :  { %5962 = vrot.lane.b32.xlu1 %v13225_v40, %s6754_s5 }
0x1419   :  { %v13334_v34 = vpop.permute.xlu1 %5703  ;;  %v13336_v62 = vpop.permute.xlu0 %5469 }
0x141a   :  { %v13399_v57 = vsel %vm14372_vm7, %v13068_v15, %v13336_v62  ;;  %vm14375_vm7 = vcmask 334848  }
0x141b   :  { %5942 = vrot.lane.b32.xlu0 %v13341_v59, %s6754_s5 }
0x141c   :  { %5948 = vrot.lane.b32.xlu1 %v13297_v14, %s6754_s5 }
0x141d   :  { %v13347_v9 = vpop.permute.xlu1 %5733  ;;  %v13349_v1 = vpop.permute.xlu0 %5828 }
0x141f   :  { %5928 = vrot.lane.b32.xlu0 %v5851_v3, %s6754_s5 }
0x1420   :  { %5934 = vrot.lane.b32.xlu1 %v13244_v35, %s6754_s5 }
0x1421   :  { %v13357_v39 = vpop.permute.xlu1 %5677  ;;  %v13359_v37 = vpop.permute.xlu0 %5825 }
0x1423   :  { %5914 = vrot.lane.b32.xlu0 %v13364_v33, %s6754_s5 }
0x1424   :  { %5920 = vrot.lane.b32.xlu1 %v13323_v20, %s6754_s5 }
0x1425   :  { %v13370_v61 = vpop.permute.xlu1 %5707  ;;  %v5808_v3 = vpop.permute.xlu0 %5807 }
0x1426   :  { %v5816_v56 = vsel %vm14370_vm12, %v13120_v38, %v5808_v3  ;;  %v5764_v38 = vsel %vm4296_vm1, %v13160_v48, %v13283_v47  ;;  %vm14373_vm12 = vcmask 556032  }
0x1427   :  { %6174 = vmatprep.subr.mxu1 %v5816_v56  ;;  %5900 = vrot.lane.b32.xlu0 %v13375_v10, %s6754_s5  ;;  %v5789_v56 = vsel %vm4323_vm6, %v12886_v26, %v13136_v60  ;;  %v5738_v26 = vsel %vm14373_vm12, %v13176_v24, %v13308_v52  ;;  %vm14374_vm10 = vmmov %vm14373_vm12 }
0x1428   :  { %5906 = vrot.lane.b32.xlu1 %v13349_v1, %s6754_s5  ;;  %6175 = vmatpush1.msra.mxu1 %v5815_v44  ;;  %v5763_v44 = vsel %vm4296_vm1, %v13028_v6, %v13160_v48  ;;  %v5712_v6 = vsel %vm4243_vm4, %v13200_v23, %v13334_v34  ;;  %v5711_v48 = vsel %vm4243_vm4, %v13044_v32, %v13200_v23 }
0x1429   :  { %v13389_v25 = vpop.permute.xlu1 %5653  ;;  %6176 = vmatprep.subr.mxu1 %v5790_v13  ;;  %v13391_v54 = vpop.permute.xlu0 %5538  ;;  %v5737_v13 = vsel %vm14374_vm10, %v12900_v18, %v13176_v24  ;;  %v5685_v18 = vsel %vm4216_vm11, %v12918_v27, %v13211_v46  ;;  %v5659_v32 = vsel %vm4189_vm9, %v13058_v2, %v13223_v8 }
0x142a   :  { %6177 = vmatpush1.msra.mxu1 %v5789_v56  ;;  %v5686_v56 = vsel %vm4216_vm11, %v13211_v46, %v13357_v39  ;;  %v5660_v24 = vsel %vm4189_vm9, %v13223_v8, %v13389_v25 }
0x142b   :  { %6178 = vmatprep.subr.mxu1 %v5764_v38  ;;  %5886 = vrot.lane.b32.xlu0 %v13399_v57, %s6754_s5 }
0x142c   :  { %5892 = vrot.lane.b32.xlu1 %v13359_v37, %s6754_s5  ;;  %6179 = vmatpush1.msra.mxu1 %v5763_v44 }
0x142d   :  { %v13414_v15 = vpop.permute.xlu1 %5681  ;;  %6180 = vmatprep.subr.mxu1 %v5738_v26  ;;  %v13416_v60 = vpop.permute.xlu0 %5609 }
0x142e   :  { %6181 = vmatpush1.msra.mxu1 %v5737_v13  ;;  %v5862_v8 = vsel %vm4141_vm15, %v13416_v60, %v13277_v41  ;;  %v14386_v13 = vld [vmem:[#allocation22_spill] sm:$0xff] }
0x142f   :  { %6182 = vmatprep.subr.mxu1 %v5712_v6 }
0x1430   :  { %6183 = vmatpush1.msra.mxu1 %v5711_v48 }
0x1431   :  { %v13430_v38 = vpop.permute.xlu1 %5874  ;;  %6184 = vmatprep.subr.mxu1 %v5686_v56  ;;  %v13432_v44 = vpop.permute.xlu0 %5563 }
0x1432   :  { %6185 = vmatpush1.msra.mxu1 %v5685_v18 }
0x1433   :  { %6186 = vmatprep.subr.mxu1 %v5660_v24 }
0x1434   :  { %6187 = vmatpush1.msra.mxu1 %v5659_v32 }
0x1435   :  { %6188 = vmatprep.subr.mxu1 %v13302_v55  ;;  %v13444_v23 = vpop.permute.xlu0 %5517  ;;  %v13446_v26 = vpop.permute.xlu1 %5632  ;;  %v5544_v55 = vsel %vm1430_vm3, %v12934_v16, %v13162_v29 }
0x1436   :  { %6189 = vmatpush1.msra.mxu1 %v13114_v21  ;;  %v5865_v27 = vsel %vm4165_vm14, %v13446_v26, %v13202_v30  ;;  %v13455_v46 = vsel %vm4165_vm14, %v13246_v36, %v13446_v26  ;;  %vm14376_vm14 = vmmov %vm14375_vm7 }
0x1437   :  { %6190 = vmatprep.subr.mxu1 %v13315_v53  ;;  %5988 = vrot.lane.b32.xlu0 %v5865_v27, %s6754_s5 }
0x1438   :  { %5986 = vrot.lane.b32.xlu1 %v13455_v46, %s6754_s5  ;;  %6191 = vmatpush1.msra.mxu1 %v13150_v11  ;;  %v13481_v11 = vsel %vm4141_vm15, %v13178_v58, %v13416_v60  ;;  %vm14377_vm15 = vcmask 818176  }
0x1439   :  { %6192 = vmatprep.subr.mxu1 %v13328_v51  ;;  %v5810_v2 = vpop.permute.xlu0 %5809  ;;  %v13463_v21 = vpop.permute.xlu1 %5586 }
0x143a   :  { %v13466_v30 = vsel %vm14375_vm7, %v5808_v3, %v5810_v2  ;;  %6193 = vmatpush1.msra.mxu1 %v13190_v49  ;;  %v13474_v36 = vsel %vm14376_vm14, %v5810_v2, %v13275_v0  ;;  %v5545_v49 = vsel %vm1430_vm3, %v13162_v29, %v13391_v54  ;;  %v13508_v16 = vsel %vm4117_vm2, %v13258_v4, %v13463_v21 }
0x143b   :  { %6194 = vmatprep.subr.mxu1 %v13341_v59  ;;  %5974 = vrot.lane.b32.xlu0 %v5862_v8, %s6754_s5 }
0x143c   :  { %5972 = vrot.lane.b32.xlu1 %v13481_v11, %s6754_s5  ;;  %6195 = vmatpush1.msra.mxu1 %v13219_v45  ;;  %v5859_v45 = vsel %vm4117_vm2, %v13463_v21, %v13225_v40  ;;  %vm14380_vm2 = vmmov %vm14377_vm15 }
0x143d   :  { %6196 = vmatprep.subr.mxu1 %v5545_v49  ;;  %v5784_v0 = vpop.permute.xlu0 %5783  ;;  %v5845_v41 = vpop.permute.xlu1 %5844 }
0x143e   :  { %v13494_v58 = vsel %vm4323_vm6, %v13256_v5, %v5784_v0  ;;  %6197 = vmatpush1.msra.mxu1 %v5544_v55  ;;  %v13501_v53 = vsel %vm4323_vm6, %v5784_v0, %v13295_v50  ;;  %v5856_v5 = vsel %vm4093_vm5, %v13432_v44, %v13297_v14  ;;  %vm14378_vm6 = vmmov %vm14374_vm10 }
0x143f   :  { %6198 = vmatprep.subr.mxu1 %v13364_v33  ;;  %5960 = vrot.lane.b32.xlu0 %v5859_v45, %s6754_s5 }
0x1440   :  { %5958 = vrot.lane.b32.xlu1 %v13508_v16, %s6754_s5  ;;  %6199 = vmatpush1.msra.mxu1 %v13252_v17 }
0x1441   :  { %6200 = vmatprep.subr.mxu1 %v13375_v10  ;;  %v5758_v29 = vpop.permute.xlu0 %5757  ;;  %v13533_v10 = vsel %vm4093_vm5, %v13213_v43, %v13432_v44 }
0x1442   :  { %v13516_v40 = vsel %vm4296_vm1, %v13283_v47, %v5758_v29  ;;  %v13518_v33 = vpop.permute.xlu1 %5494  ;;  %6201 = vmatpush1.msra.mxu1 %v13263_v28  ;;  %v13526_v4 = vsel %vm4296_vm1, %v5758_v29, %v13321_v63  ;;  %v5853_v28 = vsel %vm14377_vm15, %v5845_v41, %v13244_v35  ;;  %vm14379_vm1 = vmmov %vm14378_vm6 }
0x1443   :  { %6202 = vmatprep.subr.mxu1 %v13399_v57  ;;  %5946 = vrot.lane.b32.xlu0 %v5856_v5, %s6754_s5 }
0x1444   :  { %5944 = vrot.lane.b32.xlu1 %v13533_v10, %s6754_s5  ;;  %6203 = vmatpush1.msra.mxu1 %v13291_v22  ;;  %v5852_v22 = vsel %vm14380_vm2, %v13285_v7, %v5845_v41  ;;  %v13573_v7 = vsel %vm1408_vm13, %v13237_v12, %v13444_v23  ;;  %v13593_v12 = vsel %vm1386_vm0, %v13310_v42, %v13518_v33 }
0x1445   :  { %6204 = vmatprep.subr.mxu1 %v12798_v19  ;;  %v5732_v17 = vpop.permute.xlu0 %5731 }
0x1446   :  { %v13543_v47 = vsel %vm14378_vm6, %v13308_v52, %v5732_v17  ;;  %v13545_v50 = vpop.permute.xlu1 %5471  ;;  %6205 = vmatpush1.msra.mxu1 %v12758_v31  ;;  %v13550_v43 = vsel %vm14379_vm1, %v5732_v17, %v13347_v9  ;;  %v5833_v31 = vsel %vm1408_vm13, %v13444_v23, %v13323_v20  ;;  %vm14381_vm13 = vcmask 1039360  }
0x1447   :  { %5932 = vrot.lane.b32.xlu0 %v5853_v28, %s6754_s5 }
0x1448   :  { %5930 = vrot.lane.b32.xlu1 %v5852_v22, %s6754_s5 }
0x1449   :  { %v5706_v19 = vpop.permute.xlu0 %5705 }
0x144a   :  { %v13558_v35 = vsel %vm4243_vm4, %v13334_v34, %v5706_v19  ;;  %v13560_v14 = vpop.permute.xlu1 %5540  ;;  %v13567_v52 = vsel %vm4243_vm4, %v5706_v19, %v13370_v61  ;;  %v5830_v34 = vsel %vm1386_vm0, %v13518_v33, %v13349_v1  ;;  %vm14382_vm4 = vmmov %vm14381_vm13  ;;  %vm14383_vm0 = vcmask 326656  }
0x144b   :  { %5918 = vrot.lane.b32.xlu0 %v5833_v31, %s6754_s5  ;;  %v13606_v1 = vsel %vm14382_vm4, %v13336_v62, %v13545_v50  ;;  %vm14384_vm5 = vmmov %vm14383_vm0 }
0x144c   :  { %5916 = vrot.lane.b32.xlu1 %v13573_v7, %s6754_s5  ;;  %vm14387_vm12 = vmmov %vm14383_vm0 }
0x144d   :  { %v13577_v63 = vpop.permute.xlu0 %5679  ;;  %vm14388_vm10 = vmmov %vm14383_vm0 }
0x144e   :  { %v13582_v20 = vsel %vm4216_vm11, %v13357_v39, %v13577_v63  ;;  %v13584_v51 = vpop.permute.xlu1 %5982  ;;  %v5827_v39 = vsel %vm14381_vm13, %v13545_v50, %v13359_v37  ;;  %v14385_v37 = vld [vmem:[#allocation2_spill] sm:$0xff]  ;;  %vm14389_vm7 = vmmov %vm14383_vm0 }
0x144f   :  { %5904 = vrot.lane.b32.xlu0 %v5830_v34, %s6754_s5  ;;  %vm14390_vm14 = vmmov %vm14383_vm0 }
0x1450   :  { %5902 = vrot.lane.b32.xlu1 %v13593_v12, %s6754_s5  ;;  %vm14391_vm15 = vmmov %vm14383_vm0 }
0x1451   :  { %v13597_v59 = vpop.permute.xlu0 %5655  ;;  %vm14392_vm6 = vmmov %vm14383_vm0 }
0x1452   :  { %v5979_v9 = vpop.permute.xlu1 %5978  ;;  %vm14393_vm1 = vmmov %vm14383_vm0 }
0x1453   :  { %5890 = vrot.lane.b32.xlu0 %v5827_v39, %s6754_s5  ;;  %vm14394_vm2 = vmmov %vm14383_vm0 }
0x1454   :  { %5888 = vrot.lane.b32.xlu1 %v13606_v1, %s6754_s5  ;;  %vm14395_vm13 = vmmov %vm14383_vm0 }
0x1455   :  { %v5981_v42 = vpop.permute.xlu0 %5980  ;;  %vm14396_vm4 = vmmov %vm14383_vm0 }
0x1456   :  { %v6040_v61 = vsel %vm14383_vm0, %v5979_v9, %v5981_v42  ;;  %v13611_v3 = vpop.permute.xlu1 %5968  ;;  %v6041_v57 = vsel %vm14384_vm5, %v5981_v42, %v13584_v51  ;;  %vm14397_vm5 = vmmov %vm14383_vm0 }
0x1457   :  { %5876 = vrot.lane.b32.xlu0 %v14385_v37, %s6754_s5  ;;  %6149 = vmatprep.subr.mxu0 %v6041_v57 }
0x1458   :  { %5878 = vrot.lane.b32.xlu1 %v14386_v13, %s6754_s5  ;;  %6150 = vmatpush2.msra.mxu0 %v6040_v61 }
0x1459   :  { %v5967_v62 = vpop.permute.xlu0 %5966 }
0x145a   :  { %v5965_v6 = vpop.permute.xlu1 %5964  ;;  %v6035_v48 = vsel %vm14387_vm12, %v5967_v62, %v13611_v3  ;;  %vm14398_vm12 = vmmov %vm14383_vm0 }
0x145b   :  { %v6034_v56 = vsel %vm14388_vm10, %v5965_v6, %v5967_v62  ;;  %6151 = vmatprep.subr.mxu0 %v6035_v48  ;;  %vm14399_vm10 = vmmov %vm14383_vm0 }
0x145c   :  { %6152 = vmatpush2.msra.mxu0 %v6034_v56 }
0x145d   :  { %v5953_v18 = vpop.permute.xlu0 %5952 }
0x145e   :  { %v13622_v24 = vpop.permute.xlu1 %5954 }
0x145f   :  { %v6029_v32 = vsel %vm14389_vm7, %v5953_v18, %v13622_v24  ;;  %vm14402_vm7 = vmmov %vm14383_vm0 }
0x1460   :  { %6153 = vmatprep.subr.mxu0 %v6029_v32 }
0x1461   :  { %v5939_v27 = vpop.permute.xlu0 %5938 }
0x1462   :  { %v5951_v2 = vpop.permute.xlu1 %5950 }
0x1463   :  { %v6028_v8 = vsel %vm14390_vm14, %v5951_v2, %v5953_v18  ;;  %v14401_v2 = vld [vmem:[#allocation46_spill] sm:$0xff]  ;;  %vm14404_vm14 = vmmov %vm14383_vm0 }
0x1464   :  { %6154 = vmatpush2.msra.mxu0 %v6028_v8 }
0x1465   :  { %v5937_v49 = vpop.permute.xlu0 %5936 }
0x1466   :  { %v6022_v0 = vsel %vm14391_vm15, %v5937_v49, %v5939_v27  ;;  %v13628_v41 = vpop.permute.xlu1 %5940  ;;  %v13660_v49 = vld [vmem:[%s13826_s11] sm:$0xff]  ;;  %vm14406_vm15 = vcmask 588800  }
0x1467   :  { %v6023_v55 = vsel %vm14392_vm6, %v5939_v27, %v13628_v41  ;;  %v14400_v27 = vld [vmem:[#allocation51_spill] sm:$0xff]  ;;  %vm14411_vm6 = vmmov %vm14383_vm0 }
0x1468   :  { %6155 = vmatprep.subr.mxu0 %v6023_v55  ;;  %v5993_v8 = vsel %vm14402_vm7, %v14401_v2, %v14400_v27  ;;  %v14403_v55 = vld [vmem:[#allocation30_spill] sm:$0xff]  ;;  %vm14419_vm7 = vmmov %vm14383_vm0 }
0x1469   :  { %6156 = vmatpush2.msra.mxu0 %v6022_v0  ;;  %v13632_v45 = vpop.permute.xlu0 %5926 }
0x146a   :  { %v5925_v29 = vpop.permute.xlu1 %5924 }
0x146b   :  { %v6017_v5 = vsel %vm14393_vm1, %v5925_v29, %v13632_v45  ;;  %vm14412_vm1 = vmmov %vm14383_vm0 }
0x146c   :  { %6157 = vmatprep.subr.mxu0 %v6017_v5 }
0x146d   :  { %v5911_v17 = vpop.permute.xlu0 %5910 }
0x146e   :  { %v5923_v28 = vpop.permute.xlu1 %5922 }
0x146f   :  { %v6016_v22 = vsel %vm14394_vm2, %v5923_v28, %v5925_v29  ;;  %v5992_v29 = vsel %vm14404_vm14, %v14403_v55, %v14401_v2  ;;  %vm14413_vm2 = vmmov %vm14383_vm0 }
0x1470   :  { %6158 = vmatpush2.msra.mxu0 %v6016_v22  ;;  %vm14420_vm14 = vmmov %vm14383_vm0 }
0x1471   :  { %v5909_v19 = vpop.permute.xlu0 %5908 }
0x1472   :  { %v6010_v31 = vsel %vm14395_vm13, %v5909_v19, %v5911_v17  ;;  %v13638_v34 = vpop.permute.xlu1 %5912  ;;  %vm14414_vm13 = vmmov %vm14383_vm0 }
0x1473   :  { %v6011_v9 = vsel %vm14396_vm4, %v5911_v17, %v13638_v34  ;;  %v14405_v17 = vld [vmem:[#allocation48_spill] sm:$0xff]  ;;  %vm14415_vm4 = vmmov %vm14383_vm0 }
0x1474   :  { %6159 = vmatprep.subr.mxu0 %v6011_v9 }
0x1475   :  { %6160 = vmatpush2.msra.mxu0 %v6010_v31  ;;  %v13642_v39 = vpop.permute.xlu0 %5898 }
0x1476   :  { %v5897_v42 = vpop.permute.xlu1 %5896 }
0x1477   :  { %v6005_v61 = vsel %vm14383_vm0, %v5897_v42, %v13642_v39 }
0x1478   :  { %6161 = vmatprep.subr.mxu0 %v6005_v61 }
0x1479   :  { %v5883_v57 = vpop.permute.xlu0 %5882 }
0x147a   :  { %v5895_v13 = vpop.permute.xlu1 %5894 }
0x147b   :  { %v6004_v62 = vsel %vm14397_vm5, %v5895_v13, %v5897_v42  ;;  %vm14416_vm5 = vmmov %vm14383_vm0 }
0x147c   :  { %6162 = vmatpush2.msra.mxu0 %v6004_v62 }
0x147d   :  { %v5881_v6 = vpop.permute.xlu0 %5880 }
0x147e   :  { %v5998_v48 = vsel %vm14398_vm12, %v5881_v6, %v5883_v57  ;;  %v13648_v56 = vpop.permute.xlu1 %5884  ;;  %vm14417_vm12 = vmmov %vm14383_vm0 }
0x147f   :  { %v5999_v18 = vsel %vm14399_vm10, %v5883_v57, %v13648_v56  ;;  %vm14418_vm10 = vmmov %vm14383_vm0 }
0x1480   :  { %6163 = vmatprep.subr.mxu0 %v5999_v18 }
0x1481   :  { %6164 = vmatpush2.msra.mxu0 %v5998_v48  ;;  %v13652_v32 = vpop.permute.xlu0 %5984 }
0x1482   :  { %6165 = vmatprep.subr.mxu0 %v5993_v8  ;;  %v5991_v0 = vpop.permute.xlu1 %5990 }
0x1483   :  { %6166 = vmatpush2.msra.mxu0 %v5992_v29 }
0x1484   :  { %6245 = vmatprep.subr.mxu0 %v13474_v36  ;;  %6168 = vmatmul.mubr.f32.vlgmr.msra.gmra.mxu0 %v13660_v49 }
0x1485   :  { %6246 = vmatpush1.msra.mxu0 %v13466_v30  ;;  %v13668_v5 = vpop.permute.xlu0 %5970  ;;  %6487 = vmatprep.mubr.msk.f32.mxu0 %vm14406_vm15, %v14405_v17  ;;  %vm14421_vm15 = vmmov %vm14383_vm0 }
0x1486   :  { %6247 = vmatprep.subr.mxu0 %v13501_v53  ;;  %v5977_v28 = vpop.permute.xlu1 %5976 }
0x1487   :  { %6248 = vmatpush1.msra.mxu0 %v13494_v58  ;;  %v5688_v58 = vsel %vm4216_vm11, %v13577_v63, %v13414_v15  ;;  %v5546_v15 = vsel %vm1430_vm3, %v13391_v54, %v13560_v14  ;;  %v14407_v54 = vld [vmem:[#allocation40_spill] sm:$0xff]  ;;  %vm14408_vm3 = vmmov %vm14383_vm0  ;;  %v6036_v63 = vsel %vm14415_vm4, %v13611_v3, %v13668_v5 }
0x1488   :  { %6249 = vmatprep.subr.mxu0 %v13526_v4  ;;  %vm14409_vm11 = vmmov %vm14383_vm0 }
0x1489   :  { %6250 = vmatpush1.msra.mxu0 %v13516_v40  ;;  %v13676_v22 = vpop.permute.xlu0 %5956  ;;  %v5661_v40 = vsel %vm4189_vm9, %v13389_v25, %v13597_v59  ;;  %vm14410_vm9 = vmmov %vm14383_vm0 }
0x148a   :  { %6251 = vmatprep.subr.mxu0 %v13550_v43  ;;  %v5963_v36 = vpop.permute.xlu1 %5962  ;;  %vm14429_vm4 = vmmov %vm14383_vm0 }
0x148b   :  { %6252 = vmatpush1.msra.mxu0 %v13543_v47 }
0x148c   :  { %6253 = vmatprep.subr.mxu0 %v13567_v52 }
0x148d   :  { %6254 = vmatpush1.msra.mxu0 %v13558_v35  ;;  %v13682_v30 = vpop.permute.xlu0 %5942 }
0x148e   :  { %6255 = vmatprep.subr.mxu0 %v5688_v58  ;;  %v13687_v53 = vpop.permute.xlu1 %5948 }
0x148f   :  { %6256 = vmatpush1.msra.mxu0 %v13582_v20 }
0x1490   :  { %6257 = vmatprep.subr.mxu0 %v13597_v59 }
0x1491   :  { %6258 = vmatpush1.msra.mxu0 %v5661_v40  ;;  %v13695_v4 = vpop.permute.xlu0 %5928  ;;  %v14438_v40 = vld [vmem:[#allocation28_spill] sm:$0xff] }
0x1492   :  { %6259 = vmatprep.subr.mxu0 %v13446_v26  ;;  %v13698_v47 = vpop.permute.xlu1 %5934 }
0x1493   :  { %6260 = vmatpush1.msra.mxu0 %v13455_v46 }
0x1494   :  { %6261 = vmatprep.subr.mxu0 %v13416_v60 }
0x1495   :  { %6262 = vmatpush1.msra.mxu0 %v13481_v11  ;;  %v13705_v25 = vpop.permute.xlu0 %5914 }
0x1496   :  { %6263 = vmatprep.subr.mxu0 %v13463_v21  ;;  %v13711_v26 = vpop.permute.xlu1 %5920 }
0x1497   :  { %6264 = vmatpush1.msra.mxu0 %v13508_v16 }
0x1498   :  { %6265 = vmatprep.subr.mxu0 %v13432_v44 }
0x1499   :  { %6266 = vmatpush1.msra.mxu0 %v13533_v10  ;;  %v13717_v60 = vpop.permute.xlu0 %5900 }
0x149a   :  { %6267 = vmatprep.subr.mxu0 %v13560_v14  ;;  %v13720_v44 = vpop.permute.xlu1 %5906 }
0x149b   :  { %6268 = vmatpush1.msra.mxu0 %v5546_v15 }
0x149c   :  { %6269 = vmatprep.subr.mxu0 %v13444_v23 }
0x149d   :  { %6270 = vmatpush1.msra.mxu0 %v13573_v7  ;;  %v13726_v46 = vpop.permute.xlu0 %5886 }
0x149e   :  { %6271 = vmatprep.subr.mxu0 %v13518_v33  ;;  %v13728_v23 = vpop.permute.xlu1 %5892 }
0x149f   :  { %6272 = vmatpush1.msra.mxu0 %v13593_v12 }
0x14a0   :  { %6273 = vmatprep.subr.mxu0 %v13545_v50  ;;  %v6042_v50 = vsel %vm14411_vm6, %v13584_v51, %v13652_v32  ;;  %vm14425_vm6 = vmmov %vm14383_vm0 }
0x14a1   :  { %6274 = vmatpush1.msra.mxu0 %v13606_v1 }
0x14a2   :  { %6275 = vmatprep.subr.mxu0 %v14385_v37  ;;  %v6030_v37 = vsel %vm14418_vm10, %v13622_v24, %v13676_v22  ;;  %vm14432_vm10 = vmmov %vm14383_vm0 }
0x14a3   :  { %6276 = vmatpush1.msra.mxu0 %v14407_v54 }
0x14a9   :  { %v5989_v21 = vpop.permute.xlu0 %5988 }
0x14aa   :  { %v5987_v11 = vpop.permute.xlu1 %5986  ;;  %v6045_v16 = vsel %vm14408_vm3, %v5989_v21, %v5991_v0  ;;  %vm14422_vm3 = vmmov %vm14383_vm0  ;;  %v6012_v0 = vsel %vm14383_vm0, %v13638_v34, %v13705_v25 }
0x14ab   :  { %v6044_v33 = vsel %vm14409_vm11, %v5987_v11, %v5989_v21  ;;  %v6043_v10 = vsel %vm14410_vm9, %v13652_v32, %v5987_v11  ;;  %6291 = vmatprep.subr.mxu0 %v6045_v16  ;;  %v6024_v61 = vsel %vm14422_vm3, %v13628_v41, %v13682_v30  ;;  %vm14423_vm11 = vmmov %vm14383_vm0 }
0x14ac   :  { %6220 = vmatprep.subr.mxu1 %v6043_v10  ;;  %6292 = vmatpush2.msra.mxu0 %v6044_v33  ;;  %vm14424_vm9 = vmmov %vm14383_vm0 }
0x14ad   :  { %6221 = vmatpush2.msra.mxu1 %v6042_v50  ;;  %v5975_v43 = vpop.permute.xlu0 %5974  ;;  %vm14436_vm3 = vmmov %vm14383_vm0 }
0x14ae   :  { %v5973_v35 = vpop.permute.xlu1 %5972  ;;  %v6039_v14 = vsel %vm14412_vm1, %v5975_v43, %v5977_v28  ;;  %vm14426_vm1 = vmmov %vm14383_vm0 }
0x14af   :  { %v6038_v52 = vsel %vm14413_vm2, %v5973_v35, %v5975_v43  ;;  %v6037_v7 = vsel %vm14414_vm13, %v13668_v5, %v5973_v35  ;;  %6293 = vmatprep.subr.mxu0 %v6039_v14  ;;  %v6018_v48 = vsel %vm14426_vm1, %v13632_v45, %v13695_v4  ;;  %vm14427_vm2 = vmmov %vm14383_vm0 }
0x14b0   :  { %6222 = vmatprep.subr.mxu1 %v6037_v7  ;;  %6294 = vmatpush2.msra.mxu0 %v6038_v52  ;;  %vm14428_vm13 = vmmov %vm14383_vm0 }
0x14b1   :  { %6223 = vmatpush2.msra.mxu1 %v6036_v63  ;;  %v5961_v20 = vpop.permute.xlu0 %5960  ;;  %vm14441_vm1 = vmmov %vm14383_vm0 }
0x14b2   :  { %v5959_v51 = vpop.permute.xlu1 %5958  ;;  %v6033_v12 = vsel %vm14383_vm0, %v5961_v20, %v5963_v36  ;;  %v5994_v15 = vsel %vm14441_vm1, %v14400_v27, %v14438_v40 }
0x14b3   :  { %v6032_v59 = vsel %vm14416_vm5, %v5959_v51, %v5961_v20  ;;  %v6031_v1 = vsel %vm14417_vm12, %v13676_v22, %v5959_v51  ;;  %6295 = vmatprep.subr.mxu0 %v6033_v12  ;;  %vm14430_vm5 = vmmov %vm14383_vm0 }
0x14b4   :  { %6224 = vmatprep.subr.mxu1 %v6031_v1  ;;  %6296 = vmatpush2.msra.mxu0 %v6032_v59  ;;  %vm14431_vm12 = vmmov %vm14383_vm0 }
0x14b5   :  { %6225 = vmatpush2.msra.mxu1 %v6030_v37  ;;  %v5947_v3 = vpop.permute.xlu0 %5946 }
0x14b6   :  { %v5945_v19 = vpop.permute.xlu1 %5944  ;;  %v6027_v31 = vsel %vm14419_vm7, %v5947_v3, %v13687_v53  ;;  %vm14433_vm7 = vmmov %vm14383_vm0 }
0x14b7   :  { %v6026_v9 = vsel %vm14420_vm14, %v5945_v19, %v5947_v3  ;;  %v6025_v42 = vsel %vm14421_vm15, %v13682_v30, %v5945_v19  ;;  %6297 = vmatprep.subr.mxu0 %v6027_v31  ;;  %v6006_v28 = vsel %vm14433_vm7, %v13642_v39, %v13717_v60  ;;  %vm14434_vm14 = vmmov %vm14383_vm0 }
0x14b8   :  { %6226 = vmatprep.subr.mxu1 %v6025_v42  ;;  %6298 = vmatpush2.msra.mxu0 %v6026_v9  ;;  %vm14435_vm15 = vmmov %vm14383_vm0 }
0x14b9   :  { %6227 = vmatpush2.msra.mxu1 %v6024_v61  ;;  %v5933_v24 = vpop.permute.xlu0 %5932  ;;  %v14443_v61 = vld [vmem:[#allocation23_spill] sm:$0xff] }
0x14ba   :  { %v5931_v57 = vpop.permute.xlu1 %5930  ;;  %v6021_v13 = vsel %vm14423_vm11, %v5933_v24, %v13698_v47  ;;  %vm14437_vm11 = vmmov %vm14383_vm0 }
0x14bb   :  { %v6020_v62 = vsel %vm14424_vm9, %v5931_v57, %v5933_v24  ;;  %v6019_v6 = vsel %vm14425_vm6, %v13695_v4, %v5931_v57  ;;  %6299 = vmatprep.subr.mxu0 %v6021_v13  ;;  %v6000_v53 = vsel %vm14437_vm11, %v13648_v56, %v13726_v46  ;;  %vm14439_vm9 = vmmov %vm14383_vm0 }
0x14bc   :  { %6228 = vmatprep.subr.mxu1 %v6019_v6  ;;  %6300 = vmatpush2.msra.mxu0 %v6020_v62  ;;  %v5995_v4 = vsel %vm14439_vm9, %v14438_v40, %v13430_v38  ;;  %vm14440_vm6 = vmmov %vm14383_vm0 }
0x14bd   :  { %6229 = vmatpush2.msra.mxu1 %v6018_v48  ;;  %v5919_v41 = vpop.permute.xlu0 %5918 }
0x14be   :  { %v5917_v18 = vpop.permute.xlu1 %5916  ;;  %v6015_v32 = vsel %vm14427_vm2, %v5919_v41, %v13711_v26  ;;  %vm14442_vm2 = vmmov %vm14383_vm0 }
0x14bf   :  { %v6014_v2 = vsel %vm14428_vm13, %v5917_v18, %v5919_v41  ;;  %v6013_v8 = vsel %vm14429_vm4, %v13705_v25, %v5917_v18  ;;  %6301 = vmatprep.subr.mxu0 %v6015_v32 }
0x14c0   :  { %6230 = vmatprep.subr.mxu1 %v6013_v8  ;;  %6302 = vmatpush2.msra.mxu0 %v6014_v2 }
0x14c1   :  { %6231 = vmatpush2.msra.mxu1 %v6012_v0  ;;  %v5905_v45 = vpop.permute.xlu0 %5904 }
0x14c2   :  { %v5903_v55 = vpop.permute.xlu1 %5902  ;;  %v6009_v29 = vsel %vm14430_vm5, %v5905_v45, %v13720_v44 }
0x14c3   :  { %v6008_v5 = vsel %vm14431_vm12, %v5903_v55, %v5905_v45  ;;  %v6007_v17 = vsel %vm14432_vm10, %v13717_v60, %v5903_v55  ;;  %6303 = vmatprep.subr.mxu0 %v6009_v29 }
0x14c4   :  { %6232 = vmatprep.subr.mxu1 %v6007_v17  ;;  %6304 = vmatpush2.msra.mxu0 %v6008_v5 }
0x14c5   :  { %6233 = vmatpush2.msra.mxu1 %v6006_v28  ;;  %v5891_v34 = vpop.permute.xlu0 %5890 }
0x14c6   :  { %v5889_v22 = vpop.permute.xlu1 %5888  ;;  %v6003_v36 = vsel %vm14434_vm14, %v5891_v34, %v13728_v23 }
0x14c7   :  { %v6002_v30 = vsel %vm14435_vm15, %v5889_v22, %v5891_v34  ;;  %v6001_v58 = vsel %vm14436_vm3, %v13726_v46, %v5889_v22  ;;  %6305 = vmatprep.subr.mxu0 %v6003_v36 }
0x14c8   :  { %6234 = vmatprep.subr.mxu1 %v6001_v58  ;;  %6306 = vmatpush2.msra.mxu0 %v6002_v30 }
0x14c9   :  { %6235 = vmatpush2.msra.mxu1 %v6000_v53  ;;  %v5877_v39 = vpop.permute.xlu0 %5876 }
0x14ca   :  { %v5996_v47 = vsel %vm14440_vm6, %v13430_v38, %v5877_v39  ;;  %6236 = vmatprep.subr.mxu1 %v5995_v4  ;;  %v5879_v25 = vpop.permute.xlu1 %5878 }
0x14cb   :  { %6237 = vmatpush2.msra.mxu1 %v5994_v15  ;;  %v5997_v56 = vsel %vm14442_vm2, %v5877_v39, %v5879_v25 }
0x14cc   :  { %6239 = vmatmul.mubr.f32.vlgmr.msra.gmra.mxu1 %v13660_v49  ;;  %6307 = vmatprep.subr.mxu0 %v5997_v56 }
0x14cd   :  { %6308 = vmatpush2.msra.mxu0 %v5996_v47 }
0x14ce   :  { %6310 = vmatmul.mubr.f32.vlgmr.msra.gmra.mxu0 %v13660_v49 }
0x1544   :  { %v6169_v26 = vpop.f32.mrf.mxu0 }
0x1545   :  { %v6488_v44 = vmul.f32 -1.442695, %v6169_v26 }
0x1546   :  { %v6171_v60 = vpop.f32.mrf.mxu0 }
0x1547   :  { %v6489_v54 = vmul.f32 -1.442695, %v6171_v60  ;;  %6653 = vpow2.f32 %v6488_v44 }
0x1549   :  { %6655 = vpow2.f32 %v6489_v54 }
0x1554   :  { %v6654_v10 = vpop.eup %6653 }
0x1555   :  { %v6334_v50 = vadd.f32 1.0, %v6654_v10 }
0x1556   :  { %v6656_v49 = vpop.eup %6655 }
0x1557   :  { %v6335_v43 = vadd.f32 1.0, %v6656_v49 }
0x158c   :  { %v6240_v38 = vpop.f32.mrf.mxu1 }
0x158d   :  { %v6490_v46 = vmul.f32 -1.442695, %v6240_v38 }
0x158e   :  { %v6242_v23 = vpop.f32.mrf.mxu1  ;;  %v6311_v21 = vpop.f32.mrf.mxu0 }
0x158f   :  { %6657 = vpow2.f32 %v6490_v46  ;;  %v6491_v27 = vmul.f32 -1.442695, %v6242_v23  ;;  %v6492_v11 = vmul.f32 -1.442695, %v6311_v21 }
0x1590   :  { %v6313_v16 = vpop.f32.mrf.mxu0 }
0x1591   :  { %6659 = vpow2.f32 %v6491_v27  ;;  %v6493_v33 = vmul.f32 -1.442695, %v6313_v16 }
0x1592   :  { %6661 = vpow2.f32 %v6492_v11 }
0x1593   :  { %6663 = vpow2.f32 %v6493_v33 }
0x1594   :  { %6665 = vrcp.f32 %v6334_v50 }
0x1595   :  { %6667 = vrcp.f32 %v6335_v43 }
0x159c   :  { %v6658_v35 = vpop.eup %6657 }
0x159d   :  { %v6336_v14 = vadd.f32 1.0, %v6658_v35 }
0x159e   :  { %v6660_v52 = vpop.eup %6659 }
0x159f   :  { %v6662_v7 = vpop.eup %6661  ;;  %v6337_v63 = vadd.f32 1.0, %v6660_v52  ;;  %6669 = vrcp.f32 %v6336_v14 }
0x15a0   :  { %v6664_v20 = vpop.eup %6663  ;;  %v6338_v51 = vadd.f32 1.0, %v6662_v7 }
0x15a1   :  { %6671 = vrcp.f32 %v6337_v63  ;;  %v6339_v12 = vadd.f32 1.0, %v6664_v20  ;;  %v6666_v59 = vpop.eup %6665 }
0x15a2   :  { %6673 = vrcp.f32 %v6338_v51  ;;  %v6668_v1 = vpop.eup %6667 }
0x15a3   :  { %6675 = vrcp.f32 %v6339_v12  ;;  %v6358_v3 = vcombine.low %v6666_v59, %v6668_v1 }
0x15a5   :  { %v6367_v24 = vrot.slane %v6358_v3, %v14443_v61 }
0x15ac   :  { %v6670_v37 = vpop.eup %6669 }
0x15ae   :  { %v6672_v19 = vpop.eup %6671 }
0x15af   :  { %v6674_v31 = vpop.eup %6673  ;;  %v6359_v9 = vcombine.low %v6670_v37, %v6672_v19 }
0x15b0   :  { %v6676_v42 = vpop.eup %6675 }
0x15b1   :  { %v6374_v57 = vrot.slane %v6359_v9, %v14443_v61  ;;  %v6360_v13 = vcombine.low %v6674_v31, %v6676_v42 }
0x15b3   :  { %v6382_v62 = vcombine.low %v6367_v24, %v6374_v57  ;;  %v6381_v6 = vrot.slane %v6360_v13, %v14443_v61 }
0x15b5   :  { %v6389_v48 = vrot.slane %v6382_v62, %v14443_v61  ;;  %v6396_v41 = vrot.slane %v6381_v6, %v14443_v61 }
0x15b7   :  { %v6397_v18 = vcombine.low %v6389_v48, %v6396_v41 }
0x15b9   :  { %6494 = vst.msk [vmem:[%s13827_s15 + $0x1] ss:$2 sm:$0x3f] %vm12745_vm8, %v6397_v18 }

</bundles_post_ra>
